<compile_context>
chip_gen: v7x
topology: tpu7x:2x2x1
jax: 0.10.0
libtpu: 0.0.40
codegen_flags: <defaults>
</compile_context>

<pallas_src>
import math

import jax
import jax.numpy as jnp
from jax.experimental import pallas as pl
from jax.experimental.pallas import tpu as pltpu

# ------------------------- small, module-consistent config -------------------
B = 2            # batch
C_IN = 3         # RGB (CLIPImageProcessor normalizes 3 channels)
IMG_SIZE = 32    # stands in for 384 in the real model
PATCH = 4        # stands in for patch14/patch16
GRID_P = IMG_SIZE // PATCH      # patch grid side -> "patch_size" in the torch code
SEQ = GRID_P * GRID_P           # number of image tokens (729/576/256 in the real model)
HIDDEN = 64
N_HEADS = 2
HEAD_DIM = HIDDEN // N_HEADS
MLP = 128
N_LAYERS = 2
D_VIS = 32       # visual codebook embedding dim
D_SEM = 32       # semantic codebook embedding dim
K_VIS = 128      # visual codebook size
K_SEM = 128      # semantic codebook size
DEPTH_VIS = 4    # residual-quantization depth (tokens per position, visual)
DEPTH_SEM = 4    # residual-quantization depth (tokens per position, semantic)
TOK_PAD = 128    # lane-dense packed token buffer width (vis @ 0.., sem @ 64..)
SEM_TOK_OFFSET = 64

PARAM_DTYPE = jnp.bfloat16   # module is built with torch_dtype=bfloat16

_PAR = pltpu.CompilerParams(dimension_semantics=("parallel",))


def _const_spec(arr):
    """Full-array block replicated across the (batch) grid axis."""
    nd = arr.ndim
    return pl.BlockSpec(arr.shape, lambda i, _nd=nd: (0,) * _nd)


# ------------------------------ in-kernel helpers -----------------------------
def _layernorm_f32(x_f32, g_ref, b_ref, eps=1e-6):
    mu = jnp.mean(x_f32, axis=-1, keepdims=True)
    var = jnp.mean((x_f32 - mu) * (x_f32 - mu), axis=-1, keepdims=True)
    y = (x_f32 - mu) * jax.lax.rsqrt(var + eps)
    return y * g_ref[...].astype(jnp.float32) + b_ref[...].astype(jnp.float32)


def _rq_quantize(x_f32, cb, cb_sq, depth, lane_offset):
    """Residual quantization of x (f32, (N,D)) against codebook cb (bf16, (K,D)).

    cb_sq: precomputed ||c||^2 per code, f32 (1, K).
    Returns (quantized f32 (N,D), tokens int32 (N, TOK_PAD) with `depth` valid
    columns starting at lane `lane_offset`, zeros elsewhere).
    """
    n = x_f32.shape[0]
    k = cb.shape[0]
    lane_iota = jax.lax.broadcasted_iota(jnp.int32, (n, k), 1)
    tok_iota = jax.lax.broadcasted_iota(jnp.int32, (n, TOK_PAD), 1)
    resid = x_f32
    acc = jnp.zeros_like(x_f32)
    toks = jnp.zeros((n, TOK_PAD), jnp.int32)
    for d in range(depth):
        # ||r - c||^2 up to a per-row constant: ||c||^2 - 2 r.c  (argmin unchanged).
        cross = jax.lax.dot_general(resid.astype(cb.dtype), cb,
                                    (((1,), (1,)), ((), ())),
                                    preferred_element_type=jnp.float32)   # (N, K)
        dist = cb_sq - 2.0 * cross
        min_d = jnp.min(dist, axis=-1, keepdims=True)
        idx = jnp.min(jnp.where(dist <= min_d, lane_iota, k),
                      axis=-1, keepdims=True)                             # first argmin
        onehot = (lane_iota == idx).astype(cb.dtype)                      # (N, K) bf16
        quant = jnp.dot(onehot, cb, preferred_element_type=jnp.float32)   # exact cb rows
        acc = acc + quant
        resid = resid - quant
        toks = jnp.where(tok_iota == (lane_offset + d), idx, toks)
    return acc, toks


# ------------------------------ Pallas kernels --------------------------------
def _patch_embed_kernel(x_ref, w_ref, b_ref, pos_ref, o_ref):
    # patch-conv-as-matmul + bias + positional embedding, fused.
    acc = jnp.dot(x_ref[0], w_ref[...], preferred_element_type=jnp.float32)
    acc = acc + b_ref[...].astype(jnp.float32) + pos_ref[...].astype(jnp.float32)
    o_ref[0] = acc.astype(o_ref.dtype)


def _layer_kernel(h_ref, g1_ref, be1_ref,
                  wq_ref, bq_ref, wk_ref, bk_ref, wv_ref, bv_ref,
                  wo_ref, bo_ref, g2_ref, be2_ref,
                  w1_ref, bf1_ref, w2_ref, bf2_ref, o_ref):
    """One full pre-LN transformer block for a single batch element, fused.

    LN1 -> per-head {q,k,v} projections -> softmax attention -> out-proj sum
        -> +residual -> LN2 -> fc1 -> gelu -> fc2 -> +residual.
    No activation leaves VMEM; heads never require lane slicing/transposes.
    """
    x = h_ref[0].astype(jnp.float32)                     # (S, H)
    y = _layernorm_f32(x, g1_ref, be1_ref)
    y_bf = y.astype(PARAM_DTYPE)

    scale = 1.0 / math.sqrt(HEAD_DIM)
    attn = jnp.zeros_like(x)
    for h in range(N_HEADS):                             # static unroll, tiny
        qh = jnp.dot(y_bf, wq_ref[h], preferred_element_type=jnp.float32) \
            + bq_ref[h].astype(jnp.float32)              # (S, Dh)
        kh = jnp.dot(y_bf, wk_ref[h], preferred_element_type=jnp.float32) \
            + bk_ref[h].astype(jnp.float32)
        vh = jnp.dot(y_bf, wv_ref[h], preferred_element_type=jnp.float32) \
            + bv_ref[h].astype(jnp.float32)
        s = jax.lax.dot_general(qh.astype(PARAM_DTYPE), kh.astype(PARAM_DTYPE),
                                (((1,), (1,)), ((), ())),
                                preferred_element_type=jnp.float32) * scale
        s = s - jnp.max(s, axis=-1, keepdims=True)
        p = jnp.exp(s)
        inv = pl.reciprocal(jnp.sum(p, axis=-1, keepdims=True), approx=True)
        oh = jnp.dot(p.astype(PARAM_DTYPE), vh.astype(PARAM_DTYPE),
                     preferred_element_type=jnp.float32) * inv           # (S, Dh)
        # head merge == sum of per-head out-projections (no lane concat).
        attn = attn + jnp.dot(oh.astype(PARAM_DTYPE), wo_ref[h],
                              preferred_element_type=jnp.float32)
    h1 = attn + bo_ref[...].astype(jnp.float32) + x      # residual 1

    y2 = _layernorm_f32(h1, g2_ref, be2_ref)
    m = jnp.dot(y2.astype(PARAM_DTYPE), w1_ref[...], preferred_element_type=jnp.float32)
    m = jax.nn.gelu(m + bf1_ref[...].astype(jnp.float32))   # tanh approx (gelu_pytorch_tanh)
    out = jnp.dot(m.astype(PARAM_DTYPE), w2_ref[...], preferred_element_type=jnp.float32)
    out = out + bf2_ref[...].astype(jnp.float32) + h1       # residual 2
    o_ref[0] = out.astype(o_ref.dtype)


def _head_rq_kernel(h_ref, g_ref, b_ref, wv_ref, bv_ref, ws_ref, bs_ref,
                    cbv_ref, cbvsq_ref, cbs_ref, cbssq_ref,
                    qv_ref, qs_ref, tok_ref):
    # final LN -> separate visual / semantic projections -> both RQ branches.
    x = h_ref[0].astype(jnp.float32)
    y = _layernorm_f32(x, g_ref, b_ref)
    y_bf = y.astype(PARAM_DTYPE)
    fv = jnp.dot(y_bf, wv_ref[...], preferred_element_type=jnp.float32) \
        + bv_ref[...].astype(jnp.float32)
    fs = jnp.dot(y_bf, ws_ref[...], preferred_element_type=jnp.float32) \
        + bs_ref[...].astype(jnp.float32)
    qv, tv = _rq_quantize(fv, cbv_ref[...], cbvsq_ref[...], DEPTH_VIS, lane_offset=0)
    qs, ts = _rq_quantize(fs, cbs_ref[...], cbssq_ref[...], DEPTH_SEM,
                          lane_offset=SEM_TOK_OFFSET)
    qv_ref[0] = qv.astype(qv_ref.dtype)
    qs_ref[0] = qs.astype(qs_ref.dtype)
    tok_ref[0] = tv + ts          # disjoint lanes, zeros elsewhere -> one lane-dense write


# ------------------------------ pallas_call wrappers ---------------------------
def pallas_patch_embed(x_patches, w, bias, pos):
    bn, s, kp = x_patches.shape
    h = w.shape[1]
    return pl.pallas_call(
        _patch_embed_kernel,
        grid=(bn,),
        in_specs=[pl.BlockSpec((1, s, kp), lambda i: (i, 0, 0)),
                  _const_spec(w), _const_spec(bias), _const_spec(pos)],
        out_specs=pl.BlockSpec((1, s, h), lambda i: (i, 0, 0)),
        out_shape=jax.ShapeDtypeStruct((bn, s, h), PARAM_DTYPE),
        compiler_params=_PAR,
    )(x_patches, w, bias, pos)


def pallas_layer(h, lp):
    bsz, s, d = h.shape
    args = (h, lp["ln1_g"], lp["ln1_b"],
            lp["w_q"], lp["b_q"], lp["w_k"], lp["b_k"], lp["w_v"], lp["b_v"],
            lp["w_o"], lp["b_o"], lp["ln2_g"], lp["ln2_b"],
            lp["w_fc1"], lp["b_fc1"], lp["w_fc2"], lp["b_fc2"])
    in_specs = [pl.BlockSpec((1, s, d), lambda i: (i, 0, 0))] + \
               [_const_spec(a) for a in args[1:]]
    return pl.pallas_call(
        _layer_kernel,
        grid=(bsz,),
        in_specs=in_specs,
        out_specs=pl.BlockSpec((1, s, d), lambda i: (i, 0, 0)),
        out_shape=jax.ShapeDtypeStruct((bsz, s, d), h.dtype),
        compiler_params=_PAR,
    )(*args)


def pallas_head_rq(h, p):
    bsz, s, d = h.shape
    # Precompute codebook squared norms (loop-invariant) in f32, outside the kernel.
    cbv_sq = jnp.sum(jnp.square(p["cb_vis"].astype(jnp.float32)), axis=1).reshape(1, K_VIS)
    cbs_sq = jnp.sum(jnp.square(p["cb_sem"].astype(jnp.float32)), axis=1).reshape(1, K_SEM)
    args = (h, p["ln_f_g"], p["ln_f_b"],
            p["w_vis"], p["b_vis"], p["w_sem"], p["b_sem"],
            p["cb_vis"], cbv_sq, p["cb_sem"], cbs_sq)
    in_specs = [pl.BlockSpec((1, s, d), lambda i: (i, 0, 0))] + \
               [_const_spec(a) for a in args[1:]]
    return pl.pallas_call(
        _head_rq_kernel,
        grid=(bsz,),
        in_specs=in_specs,
        out_specs=[pl.BlockSpec((1, s, D_VIS), lambda i: (i, 0, 0)),
                   pl.BlockSpec((1, s, D_SEM), lambda i: (i, 0, 0)),
                   pl.BlockSpec((1, s, TOK_PAD), lambda i: (i, 0, 0))],
        out_shape=(jax.ShapeDtypeStruct((bsz, s, D_VIS), h.dtype),
                   jax.ShapeDtypeStruct((bsz, s, D_SEM), h.dtype),
                   jax.ShapeDtypeStruct((bsz, s, TOK_PAD), jnp.int32)),
        compiler_params=_PAR,
    )(*args)


# ------------------------------ parameters ------------------------------------
def init_params(key):
    keys = iter(jax.random.split(key, 64))

    def nrm(shape, scale=0.02):
        return (scale * jax.random.normal(next(keys), shape, dtype=jnp.float32)
                ).astype(PARAM_DTYPE)

    def zeros(*shape):
        return jnp.zeros(shape, PARAM_DTYPE)

    def ones(*shape):
        return jnp.ones(shape, PARAM_DTYPE)

    p = {
        "patch_w": nrm((PATCH * PATCH * C_IN, HIDDEN)),
        "patch_b": zeros(1, HIDDEN),
        "pos_emb": nrm((SEQ, HIDDEN)),
        "ln_f_g": ones(1, HIDDEN), "ln_f_b": zeros(1, HIDDEN),
        "w_vis": nrm((HIDDEN, D_VIS)), "b_vis": zeros(1, D_VIS),
        "w_sem": nrm((HIDDEN, D_SEM)), "b_sem": zeros(1, D_SEM),
        "cb_vis": nrm((K_VIS, D_VIS), scale=1.0),
        "cb_sem": nrm((K_SEM, D_SEM), scale=1.0),
        "layers": [],
    }
    for _ in range(N_LAYERS):
        p["layers"].append({
            "ln1_g": ones(1, HIDDEN), "ln1_b": zeros(1, HIDDEN),
            # per-head weight slabs: no lane slicing of activations in-kernel.
            "w_q": nrm((N_HEADS, HIDDEN, HEAD_DIM)), "b_q": zeros(N_HEADS, 1, HEAD_DIM),
            "w_k": nrm((N_HEADS, HIDDEN, HEAD_DIM)), "b_k": zeros(N_HEADS, 1, HEAD_DIM),
            "w_v": nrm((N_HEADS, HIDDEN, HEAD_DIM)), "b_v": zeros(N_HEADS, 1, HEAD_DIM),
            "w_o": nrm((N_HEADS, HEAD_DIM, HIDDEN)), "b_o": zeros(1, HIDDEN),
            "ln2_g": ones(1, HIDDEN), "ln2_b": zeros(1, HIDDEN),
            "w_fc1": nrm((HIDDEN, MLP)), "b_fc1": zeros(1, MLP),
            "w_fc2": nrm((MLP, HIDDEN)), "b_fc2": zeros(1, HIDDEN),
        })
    return p


# ------------------------------ forward pass -----------------------------------
def vision_tower_forward(params, images):
    """images: NCHW float array [B, 3, H, W] (PyTorch convention).

    Returns (image_features_visual [B, P^2, D_VIS],
             image_features_semantic [B, P^2, D_SEM],
             tokens_visual [B, P^2, DEPTH_VIS] int32,
             tokens_semantic [B, P^2, DEPTH_SEM] int32)
    """
    b = images.shape[0]
    if images.shape[2] != IMG_SIZE:
        # TODO(synk): F.interpolate(bilinear, align_corners=False) kept in plain JAX
        # (gather-heavy, no clean Pallas tile); note jax.image.resize antialiases
        # by default whereas F.interpolate does not.
        images = jax.image.resize(images, (b, C_IN, IMG_SIZE, IMG_SIZE), method="bilinear")

    x = images.astype(PARAM_DTYPE)
    # NCHW -> NHWC -> flattened non-overlapping patches, feature axis last (lanes).
    x = jnp.transpose(x, (0, 2, 3, 1))
    x = x.reshape(b, GRID_P, PATCH, GRID_P, PATCH, C_IN)
    x = jnp.transpose(x, (0, 1, 3, 2, 4, 5)).reshape(b, SEQ, PATCH * PATCH * C_IN)

    # Patch embedding + bias + positional embedding (fused kernel), batch-parallel.
    h = pallas_patch_embed(x, params["patch_w"], params["patch_b"], params["pos_emb"])

    # One fused pallas_call per transformer layer; activations stay (B, SEQ, HIDDEN).
    for lp in params["layers"]:
        h = pallas_layer(h, lp)

    # Final LN + visual/semantic projections + residual quantization (fused).
    q_vis, q_sem, toks = pallas_head_rq(h, params)

    # Same reshape semantics as the torch forward: [bs, P, P, dim] -> [bs, P^2, dim].
    image_features_visual = q_vis
    image_features_semantic = q_sem
    # TODO(synk): PyTorch quantizers emit int64 token ids; we keep int32 on TPU.
    tokens_visual = toks[..., :DEPTH_VIS]
    tokens_semantic = toks[..., SEM_TOK_OFFSET:SEM_TOK_OFFSET + DEPTH_SEM]
    return image_features_visual, image_features_semantic, tokens_visual, tokens_semantic


# ------------------------------------ main --------------------------------------
if __name__ == "__main__":
    root = jax.random.PRNGKey(0)
    k_params, k_img = jax.random.split(root)
    params = init_params(k_params)

    # Deterministic small input, NCHW, already at the target resolution
    # (so, like a 384x384 input in the real module, the interpolate branch is skipped).
    images = jax.random.normal(k_img, (B, C_IN, IMG_SIZE, IMG_SIZE), dtype=jnp.float32)

    forward = jax.jit(vision_tower_forward)
    outs = forward(params, images)
    outs = jax.block_until_ready(outs)

    fv, fs, tv, ts = outs
    assert fv.shape == (B, SEQ, D_VIS) and fv.dtype == PARAM_DTYPE
    assert fs.shape == (B, SEQ, D_SEM) and fs.dtype == PARAM_DTYPE
    assert tv.shape == (B, SEQ, DEPTH_VIS) and tv.dtype == jnp.int32
    assert ts.shape == (B, SEQ, DEPTH_SEM) and ts.dtype == jnp.int32
    print("KERNEL_OK")
</pallas_src>

<mosaic_0001>
module attributes {stable_mosaic.version = 11 : i64} {
  func.func @_patch_embed_kernel(%arg0: i32, %arg1: memref<1x64x48xbf16, #tpu.memory_space<vmem>>, %arg2: memref<48x64xbf16, #tpu.memory_space<vmem>>, %arg3: memref<1x64xbf16, #tpu.memory_space<vmem>>, %arg4: memref<64x64xbf16, #tpu.memory_space<vmem>>, %arg5: memref<1x64x64xbf16, #tpu.memory_space<vmem>>) attributes {dimension_semantics = [#tpu.dimension_semantics<parallel>], iteration_bounds = array<i64: 2>, scalar_prefetch = 0 : i64, scratch_operands = 0 : i64, tpu.core_type = #tpu.core_type<tc>, window_params = [{transform_indices = @transform_0, window_bounds = array<i64: 1, 64, 48>}, {pipeline_mode = #tpu.pipeline_mode<synchronous>, transform_indices = @transform_1, window_bounds = array<i64: 48, 64>}, {pipeline_mode = #tpu.pipeline_mode<synchronous>, transform_indices = @transform_2, window_bounds = array<i64: 1, 64>}, {pipeline_mode = #tpu.pipeline_mode<synchronous>, transform_indices = @transform_3, window_bounds = array<i64: 64, 64>}, {transform_indices = @transform_4, window_bounds = array<i64: 1, 64, 64>}]} {
    %c0 = arith.constant 0 : index
    %c0_0 = arith.constant 0 : index
    %c0_1 = arith.constant 0 : index
    %0 = vector.load %arg1[%c0, %c0_0, %c0_1] : memref<1x64x48xbf16, #tpu.memory_space<vmem>>, vector<1x64x48xbf16>
    %1 = vector.shape_cast %0 : vector<1x64x48xbf16> to vector<64x48xbf16>
    %c0_2 = arith.constant 0 : index
    %c0_3 = arith.constant 0 : index
    %2 = vector.load %arg2[%c0_2, %c0_3] : memref<48x64xbf16, #tpu.memory_space<vmem>>, vector<48x64xbf16>
    %cst = arith.constant dense<0.000000e+00> : vector<64x64xf32>
    %3 = tpu.matmul %1, %2, %cst {dimension_numbers = #tpu.dot_dimension_numbers<[1], [0], [0], [1], [0, 0, 1, 1], [], []>} : vector<64x48xbf16>, vector<48x64xbf16>, vector<64x64xf32> -> vector<64x64xf32>
    %c0_4 = arith.constant 0 : index
    %c0_5 = arith.constant 0 : index
    %4 = vector.load %arg3[%c0_4, %c0_5] : memref<1x64xbf16, #tpu.memory_space<vmem>>, vector<1x64xbf16>
    %5 = arith.extf %4 : vector<1x64xbf16> to vector<1x64xf32>
    %6 = vector.broadcast %5 : vector<1x64xf32> to vector<64x64xf32>
    %7 = arith.addf %3, %6 : vector<64x64xf32>
    %c0_6 = arith.constant 0 : index
    %c0_7 = arith.constant 0 : index
    %8 = vector.load %arg4[%c0_6, %c0_7] : memref<64x64xbf16, #tpu.memory_space<vmem>>, vector<64x64xbf16>
    %9 = arith.extf %8 : vector<64x64xbf16> to vector<64x64xf32>
    %10 = arith.addf %7, %9 : vector<64x64xf32>
    %11 = arith.truncf %10 : vector<64x64xf32> to vector<64x64xbf16>
    %c0_8 = arith.constant 0 : index
    %c0_9 = arith.constant 0 : index
    %c0_10 = arith.constant 0 : index
    %12 = vector.load %arg5[%c0_8, %c0_9, %c0_10] : memref<1x64x64xbf16, #tpu.memory_space<vmem>>, vector<1x64x64xbf16>
    %13 = vector.shape_cast %12 : vector<1x64x64xbf16> to vector<64x64xbf16>
    %14 = vector.shape_cast %11 : vector<64x64xbf16> to vector<1x64x64xbf16>
    tpu.vector_store %arg5[%c0_8, %c0_9, %c0_10], %14 {strides = array<i32>} : memref<1x64x64xbf16, #tpu.memory_space<vmem>>, vector<1x64x64xbf16>,
    return
  }
  func.func @transform_0(%arg0: i32) -> (i32, i32, i32) {
    %c0_i32 = arith.constant 0 : i32
    %c0_i32_0 = arith.constant 0 : i32
    %c0_i32_1 = arith.constant 0 : i32
    return %arg0, %c0_i32, %c0_i32_0 : i32, i32, i32
  }
  func.func @transform_1(%arg0: i32) -> (i32, i32) {
    %c0_i32 = arith.constant 0 : i32
    %c0_i32_0 = arith.constant 0 : i32
    %c0_i32_1 = arith.constant 0 : i32
    return %c0_i32, %c0_i32_0 : i32, i32
  }
  func.func @transform_2(%arg0: i32) -> (i32, i32) {
    %c0_i32 = arith.constant 0 : i32
    %c0_i32_0 = arith.constant 0 : i32
    %c0_i32_1 = arith.constant 0 : i32
    return %c0_i32, %c0_i32_0 : i32, i32
  }
  func.func @transform_3(%arg0: i32) -> (i32, i32) {
    %c0_i32 = arith.constant 0 : i32
    %c0_i32_0 = arith.constant 0 : i32
    %c0_i32_1 = arith.constant 0 : i32
    return %c0_i32, %c0_i32_0 : i32, i32
  }
  func.func @transform_4(%arg0: i32) -> (i32, i32, i32) {
    %c0_i32 = arith.constant 0 : i32
    %c0_i32_0 = arith.constant 0 : i32
    %c0_i32_1 = arith.constant 0 : i32
    return %arg0, %c0_i32, %c0_i32_0 : i32, i32, i32
  }
}

module attributes {stable_mosaic.version = 11 : i64} {
  func.func @_layer_kernel(%arg0: i32, %arg1: memref<1x64x64xbf16, #tpu.memory_space<vmem>>, %arg2: memref<1x64xbf16, #tpu.memory_space<vmem>>, %arg3: memref<1x64xbf16, #tpu.memory_space<vmem>>, %arg4: memref<2x64x32xbf16, #tpu.memory_space<vmem>>, %arg5: memref<2x1x32xbf16, #tpu.memory_space<vmem>>, %arg6: memref<2x64x32xbf16, #tpu.memory_space<vmem>>, %arg7: memref<2x1x32xbf16, #tpu.memory_space<vmem>>, %arg8: memref<2x64x32xbf16, #tpu.memory_space<vmem>>, %arg9: memref<2x1x32xbf16, #tpu.memory_space<vmem>>, %arg10: memref<2x32x64xbf16, #tpu.memory_space<vmem>>, %arg11: memref<1x64xbf16, #tpu.memory_space<vmem>>, %arg12: memref<1x64xbf16, #tpu.memory_space<vmem>>, %arg13: memref<1x64xbf16, #tpu.memory_space<vmem>>, %arg14: memref<64x128xbf16, #tpu.memory_space<vmem>>, %arg15: memref<1x128xbf16, #tpu.memory_space<vmem>>, %arg16: memref<128x64xbf16, #tpu.memory_space<vmem>>, %arg17: memref<1x64xbf16, #tpu.memory_space<vmem>>, %arg18: memref<1x64x64xbf16, #tpu.memory_space<vmem>>) attributes {dimension_semantics = [#tpu.dimension_semantics<parallel>], iteration_bounds = array<i64: 2>, scalar_prefetch = 0 : i64, scratch_operands = 0 : i64, tpu.core_type = #tpu.core_type<tc>, window_params = [{transform_indices = @transform_0, window_bounds = array<i64: 1, 64, 64>}, {pipeline_mode = #tpu.pipeline_mode<synchronous>, transform_indices = @transform_1, window_bounds = array<i64: 1, 64>}, {pipeline_mode = #tpu.pipeline_mode<synchronous>, transform_indices = @transform_2, window_bounds = array<i64: 1, 64>}, {pipeline_mode = #tpu.pipeline_mode<synchronous>, transform_indices = @transform_3, window_bounds = array<i64: 2, 64, 32>}, {pipeline_mode = #tpu.pipeline_mode<synchronous>, transform_indices = @transform_4, window_bounds = array<i64: 2, 1, 32>}, {pipeline_mode = #tpu.pipeline_mode<synchronous>, transform_indices = @transform_5, window_bounds = array<i64: 2, 64, 32>}, {pipeline_mode = #tpu.pipeline_mode<synchronous>, transform_indices = @transform_6, window_bounds = array<i64: 2, 1, 32>}, {pipeline_mode = #tpu.pipeline_mode<synchronous>, transform_indices = @transform_7, window_bounds = array<i64: 2, 64, 32>}, {pipeline_mode = #tpu.pipeline_mode<synchronous>, transform_indices = @transform_8, window_bounds = array<i64: 2, 1, 32>}, {pipeline_mode = #tpu.pipeline_mode<synchronous>, transform_indices = @transform_9, window_bounds = array<i64: 2, 32, 64>}, {pipeline_mode = #tpu.pipeline_mode<synchronous>, transform_indices = @transform_10, window_bounds = array<i64: 1, 64>}, {pipeline_mode = #tpu.pipeline_mode<synchronous>, transform_indices = @transform_11, window_bounds = array<i64: 1, 64>}, {pipeline_mode = #tpu.pipeline_mode<synchronous>, transform_indices = @transform_12, window_bounds = array<i64: 1, 64>}, {pipeline_mode = #tpu.pipeline_mode<synchronous>, transform_indices = @transform_13, window_bounds = array<i64: 64, 128>}, {pipeline_mode = #tpu.pipeline_mode<synchronous>, transform_indices = @transform_14, window_bounds = array<i64: 1, 128>}, {pipeline_mode = #tpu.pipeline_mode<synchronous>, transform_indices = @transform_15, window_bounds = array<i64: 128, 64>}, {pipeline_mode = #tpu.pipeline_mode<synchronous>, transform_indices = @transform_16, window_bounds = array<i64: 1, 64>}, {transform_indices = @transform_17, window_bounds = array<i64: 1, 64, 64>}]} {
    %c0 = arith.constant 0 : index
    %c0_0 = arith.constant 0 : index
    %c0_1 = arith.constant 0 : index
    %0 = vector.load %arg1[%c0, %c0_0, %c0_1] : memref<1x64x64xbf16, #tpu.memory_space<vmem>>, vector<1x64x64xbf16>
    %1 = vector.shape_cast %0 : vector<1x64x64xbf16> to vector<64x64xbf16>
    %2 = arith.extf %1 : vector<64x64xbf16> to vector<64x64xf32>
    %cst = arith.constant dense<0.000000e+00> : vector<64xf32>
    %3 = vector.multi_reduction <add>, %2, %cst [1] : vector<64x64xf32> to vector<64xf32>
    %4 = vector.shape_cast %3 : vector<64xf32> to vector<64x1xf32>
    %cst_2 = arith.constant 6.400000e+01 : f32
    %5 = vector.broadcast %cst_2 : f32 to vector<64x1xf32>
    %6 = arith.divf %4, %5 : vector<64x1xf32>
    %7 = vector.broadcast %6 : vector<64x1xf32> to vector<64x64xf32>
    %8 = arith.subf %2, %7 : vector<64x64xf32>
    %9 = vector.broadcast %6 : vector<64x1xf32> to vector<64x64xf32>
    %10 = arith.subf %2, %9 : vector<64x64xf32>
    %11 = arith.mulf %8, %10 : vector<64x64xf32>
    %cst_3 = arith.constant dense<0.000000e+00> : vector<64xf32>
    %12 = vector.multi_reduction <add>, %11, %cst_3 [1] : vector<64x64xf32> to vector<64xf32>
    %13 = vector.shape_cast %12 : vector<64xf32> to vector<64x1xf32>
    %cst_4 = arith.constant 6.400000e+01 : f32
    %14 = vector.broadcast %cst_4 : f32 to vector<64x1xf32>
    %15 = arith.divf %13, %14 : vector<64x1xf32>
    %16 = vector.broadcast %6 : vector<64x1xf32> to vector<64x64xf32>
    %17 = arith.subf %2, %16 : vector<64x64xf32>
    %cst_5 = arith.constant 9.99999997E-7 : f32
    %18 = vector.broadcast %cst_5 : f32 to vector<64x1xf32>
    %19 = arith.addf %15, %18 : vector<64x1xf32>
    %20 = math.rsqrt %19 : vector<64x1xf32>
    %21 = vector.broadcast %20 : vector<64x1xf32> to vector<64x64xf32>
    %22 = arith.mulf %17, %21 : vector<64x64xf32>
    %c0_6 = arith.constant 0 : index
    %c0_7 = arith.constant 0 : index
    %23 = vector.load %arg2[%c0_6, %c0_7] : memref<1x64xbf16, #tpu.memory_space<vmem>>, vector<1x64xbf16>
    %24 = arith.extf %23 : vector<1x64xbf16> to vector<1x64xf32>
    %25 = vector.broadcast %24 : vector<1x64xf32> to vector<64x64xf32>
    %26 = arith.mulf %22, %25 : vector<64x64xf32>
    %c0_8 = arith.constant 0 : index
    %c0_9 = arith.constant 0 : index
    %27 = vector.load %arg3[%c0_8, %c0_9] : memref<1x64xbf16, #tpu.memory_space<vmem>>, vector<1x64xbf16>
    %28 = arith.extf %27 : vector<1x64xbf16> to vector<1x64xf32>
    %29 = vector.broadcast %28 : vector<1x64xf32> to vector<64x64xf32>
    %30 = arith.addf %26, %29 : vector<64x64xf32>
    %31 = arith.truncf %30 : vector<64x64xf32> to vector<64x64xbf16>
    %cst_10 = arith.constant 0.000000e+00 : f32
    %32 = vector.broadcast %cst_10 : f32 to vector<64x64xf32>
    %c0_11 = arith.constant 0 : index
    %c0_12 = arith.constant 0 : index
    %c0_13 = arith.constant 0 : index
    %33 = vector.load %arg4[%c0_11, %c0_12, %c0_13] : memref<2x64x32xbf16, #tpu.memory_space<vmem>>, vector<1x64x32xbf16>
    %34 = vector.shape_cast %33 : vector<1x64x32xbf16> to vector<64x32xbf16>
    %cst_14 = arith.constant dense<0.000000e+00> : vector<64x32xf32>
    %35 = tpu.matmul %31, %34, %cst_14 {dimension_numbers = #tpu.dot_dimension_numbers<[1], [0], [0], [1], [0, 0, 1, 1], [], []>} : vector<64x64xbf16>, vector<64x32xbf16>, vector<64x32xf32> -> vector<64x32xf32>
    %c0_15 = arith.constant 0 : index
    %c0_16 = arith.constant 0 : index
    %c0_17 = arith.constant 0 : index
    %36 = vector.load %arg5[%c0_15, %c0_16, %c0_17] : memref<2x1x32xbf16, #tpu.memory_space<vmem>>, vector<1x1x32xbf16>
    %37 = vector.shape_cast %36 : vector<1x1x32xbf16> to vector<1x32xbf16>
    %38 = arith.extf %37 : vector<1x32xbf16> to vector<1x32xf32>
    %39 = vector.broadcast %38 : vector<1x32xf32> to vector<64x32xf32>
    %40 = arith.addf %35, %39 : vector<64x32xf32>
    %c0_18 = arith.constant 0 : index
    %c0_19 = arith.constant 0 : index
    %c0_20 = arith.constant 0 : index
    %41 = vector.load %arg6[%c0_18, %c0_19, %c0_20] : memref<2x64x32xbf16, #tpu.memory_space<vmem>>, vector<1x64x32xbf16>
    %42 = vector.shape_cast %41 : vector<1x64x32xbf16> to vector<64x32xbf16>
    %cst_21 = arith.constant dense<0.000000e+00> : vector<64x32xf32>
    %43 = tpu.matmul %31, %42, %cst_21 {dimension_numbers = #tpu.dot_dimension_numbers<[1], [0], [0], [1], [0, 0, 1, 1], [], []>} : vector<64x64xbf16>, vector<64x32xbf16>, vector<64x32xf32> -> vector<64x32xf32>
    %c0_22 = arith.constant 0 : index
    %c0_23 = arith.constant 0 : index
    %c0_24 = arith.constant 0 : index
    %44 = vector.load %arg7[%c0_22, %c0_23, %c0_24] : memref<2x1x32xbf16, #tpu.memory_space<vmem>>, vector<1x1x32xbf16>
    %45 = vector.shape_cast %44 : vector<1x1x32xbf16> to vector<1x32xbf16>
    %46 = arith.extf %45 : vector<1x32xbf16> to vector<1x32xf32>
    %47 = vector.broadcast %46 : vector<1x32xf32> to vector<64x32xf32>
    %48 = arith.addf %43, %47 : vector<64x32xf32>
    %c0_25 = arith.constant 0 : index
    %c0_26 = arith.constant 0 : index
    %c0_27 = arith.constant 0 : index
    %49 = vector.load %arg8[%c0_25, %c0_26, %c0_27] : memref<2x64x32xbf16, #tpu.memory_space<vmem>>, vector<1x64x32xbf16>
    %50 = vector.shape_cast %49 : vector<1x64x32xbf16> to vector<64x32xbf16>
    %cst_28 = arith.constant dense<0.000000e+00> : vector<64x32xf32>
    %51 = tpu.matmul %31, %50, %cst_28 {dimension_numbers = #tpu.dot_dimension_numbers<[1], [0], [0], [1], [0, 0, 1, 1], [], []>} : vector<64x64xbf16>, vector<64x32xbf16>, vector<64x32xf32> -> vector<64x32xf32>
    %c0_29 = arith.constant 0 : index
    %c0_30 = arith.constant 0 : index
    %c0_31 = arith.constant 0 : index
    %52 = vector.load %arg9[%c0_29, %c0_30, %c0_31] : memref<2x1x32xbf16, #tpu.memory_space<vmem>>, vector<1x1x32xbf16>
    %53 = vector.shape_cast %52 : vector<1x1x32xbf16> to vector<1x32xbf16>
    %54 = arith.extf %53 : vector<1x32xbf16> to vector<1x32xf32>
    %55 = vector.broadcast %54 : vector<1x32xf32> to vector<64x32xf32>
    %56 = arith.addf %51, %55 : vector<64x32xf32>
    %57 = arith.truncf %40 : vector<64x32xf32> to vector<64x32xbf16>
    %58 = arith.truncf %48 : vector<64x32xf32> to vector<64x32xbf16>
    %cst_32 = arith.constant dense<0.000000e+00> : vector<64x64xf32>
    %59 = tpu.matmul %57, %58, %cst_32 {dimension_numbers = #tpu.dot_dimension_numbers<[1], [1], [0], [0], [0, 0, 1, 0], [], []>} : vector<64x32xbf16>, vector<64x32xbf16>, vector<64x64xf32> -> vector<64x64xf32>
    %cst_33 = arith.constant 0.176776692 : f32
    %60 = vector.broadcast %cst_33 : f32 to vector<64x64xf32>
    %61 = arith.mulf %59, %60 : vector<64x64xf32>
    %cst_34 = arith.constant dense<0xFF800000> : vector<64xf32>
    %62 = vector.multi_reduction <maximumf>, %61, %cst_34 [1] : vector<64x64xf32> to vector<64xf32>
    %63 = vector.shape_cast %62 : vector<64xf32> to vector<64x1xf32>
    %64 = vector.broadcast %63 : vector<64x1xf32> to vector<64x64xf32>
    %65 = arith.subf %61, %64 : vector<64x64xf32>
    %66 = math.exp %65 : vector<64x64xf32>
    %cst_35 = arith.constant dense<0.000000e+00> : vector<64xf32>
    %67 = vector.multi_reduction <add>, %66, %cst_35 [1] : vector<64x64xf32> to vector<64xf32>
    %68 = vector.shape_cast %67 : vector<64xf32> to vector<64x1xf32>
    %69 = tpu.reciprocal %68 {approx = true} : vector<64x1xf32> -> vector<64x1xf32>
    %70 = arith.truncf %66 : vector<64x64xf32> to vector<64x64xbf16>
    %71 = arith.truncf %56 : vector<64x32xf32> to vector<64x32xbf16>
    %cst_36 = arith.constant dense<0.000000e+00> : vector<64x32xf32>
    %72 = tpu.matmul %70, %71, %cst_36 {dimension_numbers = #tpu.dot_dimension_numbers<[1], [0], [0], [1], [0, 0, 1, 1], [], []>} : vector<64x64xbf16>, vector<64x32xbf16>, vector<64x32xf32> -> vector<64x32xf32>
    %73 = vector.broadcast %69 : vector<64x1xf32> to vector<64x32xf32>
    %74 = arith.mulf %72, %73 : vector<64x32xf32>
    %75 = arith.truncf %74 : vector<64x32xf32> to vector<64x32xbf16>
    %c0_37 = arith.constant 0 : index
    %c0_38 = arith.constant 0 : index
    %c0_39 = arith.constant 0 : index
    %76 = vector.load %arg10[%c0_37, %c0_38, %c0_39] : memref<2x32x64xbf16, #tpu.memory_space<vmem>>, vector<1x32x64xbf16>
    %77 = vector.shape_cast %76 : vector<1x32x64xbf16> to vector<32x64xbf16>
    %cst_40 = arith.constant dense<0.000000e+00> : vector<64x64xf32>
    %78 = tpu.matmul %75, %77, %cst_40 {dimension_numbers = #tpu.dot_dimension_numbers<[1], [0], [0], [1], [0, 0, 1, 1], [], []>} : vector<64x32xbf16>, vector<32x64xbf16>, vector<64x64xf32> -> vector<64x64xf32>
    %79 = arith.addf %32, %78 : vector<64x64xf32>
    %c1 = arith.constant 1 : index
    %c0_41 = arith.constant 0 : index
    %c0_42 = arith.constant 0 : index
    %80 = vector.load %arg4[%c1, %c0_41, %c0_42] : memref<2x64x32xbf16, #tpu.memory_space<vmem>>, vector<1x64x32xbf16>
    %81 = vector.shape_cast %80 : vector<1x64x32xbf16> to vector<64x32xbf16>
    %cst_43 = arith.constant dense<0.000000e+00> : vector<64x32xf32>
    %82 = tpu.matmul %31, %81, %cst_43 {dimension_numbers = #tpu.dot_dimension_numbers<[1], [0], [0], [1], [0, 0, 1, 1], [], []>} : vector<64x64xbf16>, vector<64x32xbf16>, vector<64x32xf32> -> vector<64x32xf32>
    %c1_44 = arith.constant 1 : index
    %c0_45 = arith.constant 0 : index
    %c0_46 = arith.constant 0 : index
    %83 = vector.load %arg5[%c1_44, %c0_45, %c0_46] : memref<2x1x32xbf16, #tpu.memory_space<vmem>>, vector<1x1x32xbf16>
    %84 = vector.shape_cast %83 : vector<1x1x32xbf16> to vector<1x32xbf16>
    %85 = arith.extf %84 : vector<1x32xbf16> to vector<1x32xf32>
    %86 = vector.broadcast %85 : vector<1x32xf32> to vector<64x32xf32>
    %87 = arith.addf %82, %86 : vector<64x32xf32>
    %c1_47 = arith.constant 1 : index
    %c0_48 = arith.constant 0 : index
    %c0_49 = arith.constant 0 : index
    %88 = vector.load %arg6[%c1_47, %c0_48, %c0_49] : memref<2x64x32xbf16, #tpu.memory_space<vmem>>, vector<1x64x32xbf16>
    %89 = vector.shape_cast %88 : vector<1x64x32xbf16> to vector<64x32xbf16>
    %cst_50 = arith.constant dense<0.000000e+00> : vector<64x32xf32>
    %90 = tpu.matmul %31, %89, %cst_50 {dimension_numbers = #tpu.dot_dimension_numbers<[1], [0], [0], [1], [0, 0, 1, 1], [], []>} : vector<64x64xbf16>, vector<64x32xbf16>, vector<64x32xf32> -> vector<64x32xf32>
    %c1_51 = arith.constant 1 : index
    %c0_52 = arith.constant 0 : index
    %c0_53 = arith.constant 0 : index
    %91 = vector.load %arg7[%c1_51, %c0_52, %c0_53] : memref<2x1x32xbf16, #tpu.memory_space<vmem>>, vector<1x1x32xbf16>
    %92 = vector.shape_cast %91 : vector<1x1x32xbf16> to vector<1x32xbf16>
    %93 = arith.extf %92 : vector<1x32xbf16> to vector<1x32xf32>
    %94 = vector.broadcast %93 : vector<1x32xf32> to vector<64x32xf32>
    %95 = arith.addf %90, %94 : vector<64x32xf32>
    %c1_54 = arith.constant 1 : index
    %c0_55 = arith.constant 0 : index
    %c0_56 = arith.constant 0 : index
    %96 = vector.load %arg8[%c1_54, %c0_55, %c0_56] : memref<2x64x32xbf16, #tpu.memory_space<vmem>>, vector<1x64x32xbf16>
    %97 = vector.shape_cast %96 : vector<1x64x32xbf16> to vector<64x32xbf16>
    %cst_57 = arith.constant dense<0.000000e+00> : vector<64x32xf32>
    %98 = tpu.matmul %31, %97, %cst_57 {dimension_numbers = #tpu.dot_dimension_numbers<[1], [0], [0], [1], [0, 0, 1, 1], [], []>} : vector<64x64xbf16>, vector<64x32xbf16>, vector<64x32xf32> -> vector<64x32xf32>
    %c1_58 = arith.constant 1 : index
    %c0_59 = arith.constant 0 : index
    %c0_60 = arith.constant 0 : index
    %99 = vector.load %arg9[%c1_58, %c0_59, %c0_60] : memref<2x1x32xbf16, #tpu.memory_space<vmem>>, vector<1x1x32xbf16>
    %100 = vector.shape_cast %99 : vector<1x1x32xbf16> to vector<1x32xbf16>
    %101 = arith.extf %100 : vector<1x32xbf16> to vector<1x32xf32>
    %102 = vector.broadcast %101 : vector<1x32xf32> to vector<64x32xf32>
    %103 = arith.addf %98, %102 : vector<64x32xf32>
    %104 = arith.truncf %87 : vector<64x32xf32> to vector<64x32xbf16>
    %105 = arith.truncf %95 : vector<64x32xf32> to vector<64x32xbf16>
    %cst_61 = arith.constant dense<0.000000e+00> : vector<64x64xf32>
    %106 = tpu.matmul %104, %105, %cst_61 {dimension_numbers = #tpu.dot_dimension_numbers<[1], [1], [0], [0], [0, 0, 1, 0], [], []>} : vector<64x32xbf16>, vector<64x32xbf16>, vector<64x64xf32> -> vector<64x64xf32>
    %cst_62 = arith.constant 0.176776692 : f32
    %107 = vector.broadcast %cst_62 : f32 to vector<64x64xf32>
    %108 = arith.mulf %106, %107 : vector<64x64xf32>
    %cst_63 = arith.constant dense<0xFF800000> : vector<64xf32>
    %109 = vector.multi_reduction <maximumf>, %108, %cst_63 [1] : vector<64x64xf32> to vector<64xf32>
    %110 = vector.shape_cast %109 : vector<64xf32> to vector<64x1xf32>
    %111 = vector.broadcast %110 : vector<64x1xf32> to vector<64x64xf32>
    %112 = arith.subf %108, %111 : vector<64x64xf32>
    %113 = math.exp %112 : vector<64x64xf32>
    %cst_64 = arith.constant dense<0.000000e+00> : vector<64xf32>
    %114 = vector.multi_reduction <add>, %113, %cst_64 [1] : vector<64x64xf32> to vector<64xf32>
    %115 = vector.shape_cast %114 : vector<64xf32> to vector<64x1xf32>
    %116 = tpu.reciprocal %115 {approx = true} : vector<64x1xf32> -> vector<64x1xf32>
    %117 = arith.truncf %113 : vector<64x64xf32> to vector<64x64xbf16>
    %118 = arith.truncf %103 : vector<64x32xf32> to vector<64x32xbf16>
    %cst_65 = arith.constant dense<0.000000e+00> : vector<64x32xf32>
    %119 = tpu.matmul %117, %118, %cst_65 {dimension_numbers = #tpu.dot_dimension_numbers<[1], [0], [0], [1], [0, 0, 1, 1], [], []>} : vector<64x64xbf16>, vector<64x32xbf16>, vector<64x32xf32> -> vector<64x32xf32>
    %120 = vector.broadcast %116 : vector<64x1xf32> to vector<64x32xf32>
    %121 = arith.mulf %119, %120 : vector<64x32xf32>
    %122 = arith.truncf %121 : vector<64x32xf32> to vector<64x32xbf16>
    %c1_66 = arith.constant 1 : index
    %c0_67 = arith.constant 0 : index
    %c0_68 = arith.constant 0 : index
    %123 = vector.load %arg10[%c1_66, %c0_67, %c0_68] : memref<2x32x64xbf16, #tpu.memory_space<vmem>>, vector<1x32x64xbf16>
    %124 = vector.shape_cast %123 : vector<1x32x64xbf16> to vector<32x64xbf16>
    %cst_69 = arith.constant dense<0.000000e+00> : vector<64x64xf32>
    %125 = tpu.matmul %122, %124, %cst_69 {dimension_numbers = #tpu.dot_dimension_numbers<[1], [0], [0], [1], [0, 0, 1, 1], [], []>} : vector<64x32xbf16>, vector<32x64xbf16>, vector<64x64xf32> -> vector<64x64xf32>
    %126 = arith.addf %79, %125 : vector<64x64xf32>
    %c0_70 = arith.constant 0 : index
    %c0_71 = arith.constant 0 : index
    %127 = vector.load %arg11[%c0_70, %c0_71] : memref<1x64xbf16, #tpu.memory_space<vmem>>, vector<1x64xbf16>
    %128 = arith.extf %127 : vector<1x64xbf16> to vector<1x64xf32>
    %129 = vector.broadcast %128 : vector<1x64xf32> to vector<64x64xf32>
    %130 = arith.addf %126, %129 : vector<64x64xf32>
    %131 = arith.addf %130, %2 : vector<64x64xf32>
    %cst_72 = arith.constant dense<0.000000e+00> : vector<64xf32>
    %132 = vector.multi_reduction <add>, %131, %cst_72 [1] : vector<64x64xf32> to vector<64xf32>
    %133 = vector.shape_cast %132 : vector<64xf32> to vector<64x1xf32>
    %cst_73 = arith.constant 6.400000e+01 : f32
    %134 = vector.broadcast %cst_73 : f32 to vector<64x1xf32>
    %135 = arith.divf %133, %134 : vector<64x1xf32>
    %136 = vector.broadcast %135 : vector<64x1xf32> to vector<64x64xf32>
    %137 = arith.subf %131, %136 : vector<64x64xf32>
    %138 = vector.broadcast %135 : vector<64x1xf32> to vector<64x64xf32>
    %139 = arith.subf %131, %138 : vector<64x64xf32>
    %140 = arith.mulf %137, %139 : vector<64x64xf32>
    %cst_74 = arith.constant dense<0.000000e+00> : vector<64xf32>
    %141 = vector.multi_reduction <add>, %140, %cst_74 [1] : vector<64x64xf32> to vector<64xf32>
    %142 = vector.shape_cast %141 : vector<64xf32> to vector<64x1xf32>
    %cst_75 = arith.constant 6.400000e+01 : f32
    %143 = vector.broadcast %cst_75 : f32 to vector<64x1xf32>
    %144 = arith.divf %142, %143 : vector<64x1xf32>
    %145 = vector.broadcast %135 : vector<64x1xf32> to vector<64x64xf32>
    %146 = arith.subf %131, %145 : vector<64x64xf32>
    %cst_76 = arith.constant 9.99999997E-7 : f32
    %147 = vector.broadcast %cst_76 : f32 to vector<64x1xf32>
    %148 = arith.addf %144, %147 : vector<64x1xf32>
    %149 = math.rsqrt %148 : vector<64x1xf32>
    %150 = vector.broadcast %149 : vector<64x1xf32> to vector<64x64xf32>
    %151 = arith.mulf %146, %150 : vector<64x64xf32>
    %c0_77 = arith.constant 0 : index
    %c0_78 = arith.constant 0 : index
    %152 = vector.load %arg12[%c0_77, %c0_78] : memref<1x64xbf16, #tpu.memory_space<vmem>>, vector<1x64xbf16>
    %153 = arith.extf %152 : vector<1x64xbf16> to vector<1x64xf32>
    %154 = vector.broadcast %153 : vector<1x64xf32> to vector<64x64xf32>
    %155 = arith.mulf %151, %154 : vector<64x64xf32>
    %c0_79 = arith.constant 0 : index
    %c0_80 = arith.constant 0 : index
    %156 = vector.load %arg13[%c0_79, %c0_80] : memref<1x64xbf16, #tpu.memory_space<vmem>>, vector<1x64xbf16>
    %157 = arith.extf %156 : vector<1x64xbf16> to vector<1x64xf32>
    %158 = vector.broadcast %157 : vector<1x64xf32> to vector<64x64xf32>
    %159 = arith.addf %155, %158 : vector<64x64xf32>
    %160 = arith.truncf %159 : vector<64x64xf32> to vector<64x64xbf16>
    %c0_81 = arith.constant 0 : index
    %c0_82 = arith.constant 0 : index
    %161 = vector.load %arg14[%c0_81, %c0_82] : memref<64x128xbf16, #tpu.memory_space<vmem>>, vector<64x128xbf16>
    %cst_83 = arith.constant dense<0.000000e+00> : vector<64x128xf32>
    %162 = tpu.matmul %160, %161, %cst_83 {dimension_numbers = #tpu.dot_dimension_numbers<[1], [0], [0], [1], [0, 0, 1, 1], [], []>} : vector<64x64xbf16>, vector<64x128xbf16>, vector<64x128xf32> -> vector<64x128xf32>
    %c0_84 = arith.constant 0 : index
    %c0_85 = arith.constant 0 : index
    %163 = vector.load %arg15[%c0_84, %c0_85] : memref<1x128xbf16, #tpu.memory_space<vmem>>, vector<1x128xbf16>
    %164 = arith.extf %163 : vector<1x128xbf16> to vector<1x128xf32>
    %165 = vector.broadcast %164 : vector<1x128xf32> to vector<64x128xf32>
    %166 = arith.addf %162, %165 : vector<64x128xf32>
    %167 = arith.mulf %166, %166 : vector<64x128xf32>
    %168 = arith.mulf %166, %167 : vector<64x128xf32>
    %cst_86 = arith.constant 4.471500e-02 : f32
    %169 = vector.broadcast %cst_86 : f32 to vector<64x128xf32>
    %170 = arith.mulf %169, %168 : vector<64x128xf32>
    %171 = arith.addf %166, %170 : vector<64x128xf32>
    %cst_87 = arith.constant 0.797884583 : f32
    %172 = vector.broadcast %cst_87 : f32 to vector<64x128xf32>
    %173 = arith.mulf %172, %171 : vector<64x128xf32>
    %174 = math.tanh %173 : vector<64x128xf32>
    %cst_88 = arith.constant 1.000000e+00 : f32
    %175 = vector.broadcast %cst_88 : f32 to vector<64x128xf32>
    %176 = arith.addf %175, %174 : vector<64x128xf32>
    %cst_89 = arith.constant 5.000000e-01 : f32
    %177 = vector.broadcast %cst_89 : f32 to vector<64x128xf32>
    %178 = arith.mulf %177, %176 : vector<64x128xf32>
    %179 = arith.mulf %166, %178 : vector<64x128xf32>
    %180 = arith.truncf %179 : vector<64x128xf32> to vector<64x128xbf16>
    %c0_90 = arith.constant 0 : index
    %c0_91 = arith.constant 0 : index
    %181 = vector.load %arg16[%c0_90, %c0_91] : memref<128x64xbf16, #tpu.memory_space<vmem>>, vector<128x64xbf16>
    %cst_92 = arith.constant dense<0.000000e+00> : vector<64x64xf32>
    %182 = tpu.matmul %180, %181, %cst_92 {dimension_numbers = #tpu.dot_dimension_numbers<[1], [0], [0], [1], [0, 0, 1, 1], [], []>} : vector<64x128xbf16>, vector<128x64xbf16>, vector<64x64xf32> -> vector<64x64xf32>
    %c0_93 = arith.constant 0 : index
    %c0_94 = arith.constant 0 : index
    %183 = vector.load %arg17[%c0_93, %c0_94] : memref<1x64xbf16, #tpu.memory_space<vmem>>, vector<1x64xbf16>
    %184 = arith.extf %183 : vector<1x64xbf16> to vector<1x64xf32>
    %185 = vector.broadcast %184 : vector<1x64xf32> to vector<64x64xf32>
    %186 = arith.addf %182, %185 : vector<64x64xf32>
    %187 = arith.addf %186, %131 : vector<64x64xf32>
    %188 = arith.truncf %187 : vector<64x64xf32> to vector<64x64xbf16>
    %c0_95 = arith.constant 0 : index
    %c0_96 = arith.constant 0 : index
    %c0_97 = arith.constant 0 : index
    %189 = vector.load %arg18[%c0_95, %c0_96, %c0_97] : memref<1x64x64xbf16, #tpu.memory_space<vmem>>, vector<1x64x64xbf16>
    %190 = vector.shape_cast %189 : vector<1x64x64xbf16> to vector<64x64xbf16>
    %191 = vector.shape_cast %188 : vector<64x64xbf16> to vector<1x64x64xbf16>
    tpu.vector_store %arg18[%c0_95, %c0_96, %c0_97], %191 {strides = array<i32>} : memref<1x64x64xbf16, #tpu.memory_space<vmem>>, vector<1x64x64xbf16>,
    return
  }
  func.func @transform_0(%arg0: i32) -> (i32, i32, i32) {
    %c0_i32 = arith.constant 0 : i32
    %c0_i32_0 = arith.constant 0 : i32
    %c0_i32_1 = arith.constant 0 : i32
    return %arg0, %c0_i32, %c0_i32_0 : i32, i32, i32
  }
  func.func @transform_1(%arg0: i32) -> (i32, i32) {
    %c0_i32 = arith.constant 0 : i32
    %c0_i32_0 = arith.constant 0 : i32
    %c0_i32_1 = arith.constant 0 : i32
    return %c0_i32, %c0_i32_0 : i32, i32
  }
  func.func @transform_2(%arg0: i32) -> (i32, i32) {
    %c0_i32 = arith.constant 0 : i32
    %c0_i32_0 = arith.constant 0 : i32
    %c0_i32_1 = arith.constant 0 : i32
    return %c0_i32, %c0_i32_0 : i32, i32
  }
  func.func @transform_3(%arg0: i32) -> (i32, i32, i32) {
    %c0_i32 = arith.constant 0 : i32
    %c0_i32_0 = arith.constant 0 : i32
    %c0_i32_1 = arith.constant 0 : i32
    %c0_i32_2 = arith.constant 0 : i32
    return %c0_i32, %c0_i32_0, %c0_i32_1 : i32, i32, i32
  }
  func.func @transform_4(%arg0: i32) -> (i32, i32, i32) {
    %c0_i32 = arith.constant 0 : i32
    %c0_i32_0 = arith.constant 0 : i32
    %c0_i32_1 = arith.constant 0 : i32
    %c0_i32_2 = arith.constant 0 : i32
    return %c0_i32, %c0_i32_0, %c0_i32_1 : i32, i32, i32
  }
  func.func @transform_5(%arg0: i32) -> (i32, i32, i32) {
    %c0_i32 = arith.constant 0 : i32
    %c0_i32_0 = arith.constant 0 : i32
    %c0_i32_1 = arith.constant 0 : i32
    %c0_i32_2 = arith.constant 0 : i32
    return %c0_i32, %c0_i32_0, %c0_i32_1 : i32, i32, i32
  }
  func.func @transform_6(%arg0: i32) -> (i32, i32, i32) {
    %c0_i32 = arith.constant 0 : i32
    %c0_i32_0 = arith.constant 0 : i32
    %c0_i32_1 = arith.constant 0 : i32
    %c0_i32_2 = arith.constant 0 : i32
    return %c0_i32, %c0_i32_0, %c0_i32_1 : i32, i32, i32
  }
  func.func @transform_7(%arg0: i32) -> (i32, i32, i32) {
    %c0_i32 = arith.constant 0 : i32
    %c0_i32_0 = arith.constant 0 : i32
    %c0_i32_1 = arith.constant 0 : i32
    %c0_i32_2 = arith.constant 0 : i32
    return %c0_i32, %c0_i32_0, %c0_i32_1 : i32, i32, i32
  }
  func.func @transform_8(%arg0: i32) -> (i32, i32, i32) {
    %c0_i32 = arith.constant 0 : i32
    %c0_i32_0 = arith.constant 0 : i32
    %c0_i32_1 = arith.constant 0 : i32
    %c0_i32_2 = arith.constant 0 : i32
    return %c0_i32, %c0_i32_0, %c0_i32_1 : i32, i32, i32
  }
  func.func @transform_9(%arg0: i32) -> (i32, i32, i32) {
    %c0_i32 = arith.constant 0 : i32
    %c0_i32_0 = arith.constant 0 : i32
    %c0_i32_1 = arith.constant 0 : i32
    %c0_i32_2 = arith.constant 0 : i32
    return %c0_i32, %c0_i32_0, %c0_i32_1 : i32, i32, i32
  }
  func.func @transform_10(%arg0: i32) -> (i32, i32) {
    %c0_i32 = arith.constant 0 : i32
    %c0_i32_0 = arith.constant 0 : i32
    %c0_i32_1 = arith.constant 0 : i32
    return %c0_i32, %c0_i32_0 : i32, i32
  }
  func.func @transform_11(%arg0: i32) -> (i32, i32) {
    %c0_i32 = arith.constant 0 : i32
    %c0_i32_0 = arith.constant 0 : i32
    %c0_i32_1 = arith.constant 0 : i32
    return %c0_i32, %c0_i32_0 : i32, i32
  }
  func.func @transform_12(%arg0: i32) -> (i32, i32) {
    %c0_i32 = arith.constant 0 : i32
    %c0_i32_0 = arith.constant 0 : i32
    %c0_i32_1 = arith.constant 0 : i32
    return %c0_i32, %c0_i32_0 : i32, i32
  }
  func.func @transform_13(%arg0: i32) -> (i32, i32) {
    %c0_i32 = arith.constant 0 : i32
    %c0_i32_0 = arith.constant 0 : i32
    %c0_i32_1 = arith.constant 0 : i32
    return %c0_i32, %c0_i32_0 : i32, i32
  }
  func.func @transform_14(%arg0: i32) -> (i32, i32) {
    %c0_i32 = arith.constant 0 : i32
    %c0_i32_0 = arith.constant 0 : i32
    %c0_i32_1 = arith.constant 0 : i32
    return %c0_i32, %c0_i32_0 : i32, i32
  }
  func.func @transform_15(%arg0: i32) -> (i32, i32) {
    %c0_i32 = arith.constant 0 : i32
    %c0_i32_0 = arith.constant 0 : i32
    %c0_i32_1 = arith.constant 0 : i32
    return %c0_i32, %c0_i32_0 : i32, i32
  }
  func.func @transform_16(%arg0: i32) -> (i32, i32) {
    %c0_i32 = arith.constant 0 : i32
    %c0_i32_0 = arith.constant 0 : i32
    %c0_i32_1 = arith.constant 0 : i32
    return %c0_i32, %c0_i32_0 : i32, i32
  }
  func.func @transform_17(%arg0: i32) -> (i32, i32, i32) {
    %c0_i32 = arith.constant 0 : i32
    %c0_i32_0 = arith.constant 0 : i32
    %c0_i32_1 = arith.constant 0 : i32
    return %arg0, %c0_i32, %c0_i32_0 : i32, i32, i32
  }
}

module attributes {stable_mosaic.version = 11 : i64} {
  func.func @_head_rq_kernel(%arg0: i32, %arg1: memref<1x64x64xbf16, #tpu.memory_space<vmem>>, %arg2: memref<1x64xbf16, #tpu.memory_space<vmem>>, %arg3: memref<1x64xbf16, #tpu.memory_space<vmem>>, %arg4: memref<64x32xbf16, #tpu.memory_space<vmem>>, %arg5: memref<1x32xbf16, #tpu.memory_space<vmem>>, %arg6: memref<64x32xbf16, #tpu.memory_space<vmem>>, %arg7: memref<1x32xbf16, #tpu.memory_space<vmem>>, %arg8: memref<128x32xbf16, #tpu.memory_space<vmem>>, %arg9: memref<1x128xf32, #tpu.memory_space<vmem>>, %arg10: memref<128x32xbf16, #tpu.memory_space<vmem>>, %arg11: memref<1x128xf32, #tpu.memory_space<vmem>>, %arg12: memref<1x64x32xbf16, #tpu.memory_space<vmem>>, %arg13: memref<1x64x32xbf16, #tpu.memory_space<vmem>>, %arg14: memref<1x64x128xi32, #tpu.memory_space<vmem>>) attributes {dimension_semantics = [#tpu.dimension_semantics<parallel>], iteration_bounds = array<i64: 2>, scalar_prefetch = 0 : i64, scratch_operands = 0 : i64, tpu.core_type = #tpu.core_type<tc>, window_params = [{transform_indices = @transform_0, window_bounds = array<i64: 1, 64, 64>}, {pipeline_mode = #tpu.pipeline_mode<synchronous>, transform_indices = @transform_1, window_bounds = array<i64: 1, 64>}, {pipeline_mode = #tpu.pipeline_mode<synchronous>, transform_indices = @transform_2, window_bounds = array<i64: 1, 64>}, {pipeline_mode = #tpu.pipeline_mode<synchronous>, transform_indices = @transform_3, window_bounds = array<i64: 64, 32>}, {pipeline_mode = #tpu.pipeline_mode<synchronous>, transform_indices = @transform_4, window_bounds = array<i64: 1, 32>}, {pipeline_mode = #tpu.pipeline_mode<synchronous>, transform_indices = @transform_5, window_bounds = array<i64: 64, 32>}, {pipeline_mode = #tpu.pipeline_mode<synchronous>, transform_indices = @transform_6, window_bounds = array<i64: 1, 32>}, {pipeline_mode = #tpu.pipeline_mode<synchronous>, transform_indices = @transform_7, window_bounds = array<i64: 128, 32>}, {pipeline_mode = #tpu.pipeline_mode<synchronous>, transform_indices = @transform_8, window_bounds = array<i64: 1, 128>}, {pipeline_mode = #tpu.pipeline_mode<synchronous>, transform_indices = @transform_9, window_bounds = array<i64: 128, 32>}, {pipeline_mode = #tpu.pipeline_mode<synchronous>, transform_indices = @transform_10, window_bounds = array<i64: 1, 128>}, {transform_indices = @transform_11, window_bounds = array<i64: 1, 64, 32>}, {transform_indices = @transform_12, window_bounds = array<i64: 1, 64, 32>}, {transform_indices = @transform_13, window_bounds = array<i64: 1, 64, 128>}]} {
    %c0 = arith.constant 0 : index
    %c0_0 = arith.constant 0 : index
    %c0_1 = arith.constant 0 : index
    %0 = vector.load %arg1[%c0, %c0_0, %c0_1] : memref<1x64x64xbf16, #tpu.memory_space<vmem>>, vector<1x64x64xbf16>
    %1 = vector.shape_cast %0 : vector<1x64x64xbf16> to vector<64x64xbf16>
    %2 = arith.extf %1 : vector<64x64xbf16> to vector<64x64xf32>
    %cst = arith.constant dense<0.000000e+00> : vector<64xf32>
    %3 = vector.multi_reduction <add>, %2, %cst [1] : vector<64x64xf32> to vector<64xf32>
    %4 = vector.shape_cast %3 : vector<64xf32> to vector<64x1xf32>
    %cst_2 = arith.constant 6.400000e+01 : f32
    %5 = vector.broadcast %cst_2 : f32 to vector<64x1xf32>
    %6 = arith.divf %4, %5 : vector<64x1xf32>
    %7 = vector.broadcast %6 : vector<64x1xf32> to vector<64x64xf32>
    %8 = arith.subf %2, %7 : vector<64x64xf32>
    %9 = vector.broadcast %6 : vector<64x1xf32> to vector<64x64xf32>
    %10 = arith.subf %2, %9 : vector<64x64xf32>
    %11 = arith.mulf %8, %10 : vector<64x64xf32>
    %cst_3 = arith.constant dense<0.000000e+00> : vector<64xf32>
    %12 = vector.multi_reduction <add>, %11, %cst_3 [1] : vector<64x64xf32> to vector<64xf32>
    %13 = vector.shape_cast %12 : vector<64xf32> to vector<64x1xf32>
    %cst_4 = arith.constant 6.400000e+01 : f32
    %14 = vector.broadcast %cst_4 : f32 to vector<64x1xf32>
    %15 = arith.divf %13, %14 : vector<64x1xf32>
    %16 = vector.broadcast %6 : vector<64x1xf32> to vector<64x64xf32>
    %17 = arith.subf %2, %16 : vector<64x64xf32>
    %cst_5 = arith.constant 9.99999997E-7 : f32
    %18 = vector.broadcast %cst_5 : f32 to vector<64x1xf32>
    %19 = arith.addf %15, %18 : vector<64x1xf32>
    %20 = math.rsqrt %19 : vector<64x1xf32>
    %21 = vector.broadcast %20 : vector<64x1xf32> to vector<64x64xf32>
    %22 = arith.mulf %17, %21 : vector<64x64xf32>
    %c0_6 = arith.constant 0 : index
    %c0_7 = arith.constant 0 : index
    %23 = vector.load %arg2[%c0_6, %c0_7] : memref<1x64xbf16, #tpu.memory_space<vmem>>, vector<1x64xbf16>
    %24 = arith.extf %23 : vector<1x64xbf16> to vector<1x64xf32>
    %25 = vector.broadcast %24 : vector<1x64xf32> to vector<64x64xf32>
    %26 = arith.mulf %22, %25 : vector<64x64xf32>
    %c0_8 = arith.constant 0 : index
    %c0_9 = arith.constant 0 : index
    %27 = vector.load %arg3[%c0_8, %c0_9] : memref<1x64xbf16, #tpu.memory_space<vmem>>, vector<1x64xbf16>
    %28 = arith.extf %27 : vector<1x64xbf16> to vector<1x64xf32>
    %29 = vector.broadcast %28 : vector<1x64xf32> to vector<64x64xf32>
    %30 = arith.addf %26, %29 : vector<64x64xf32>
    %31 = arith.truncf %30 : vector<64x64xf32> to vector<64x64xbf16>
    %c0_10 = arith.constant 0 : index
    %c0_11 = arith.constant 0 : index
    %32 = vector.load %arg4[%c0_10, %c0_11] : memref<64x32xbf16, #tpu.memory_space<vmem>>, vector<64x32xbf16>
    %cst_12 = arith.constant dense<0.000000e+00> : vector<64x32xf32>
    %33 = tpu.matmul %31, %32, %cst_12 {dimension_numbers = #tpu.dot_dimension_numbers<[1], [0], [0], [1], [0, 0, 1, 1], [], []>} : vector<64x64xbf16>, vector<64x32xbf16>, vector<64x32xf32> -> vector<64x32xf32>
    %c0_13 = arith.constant 0 : index
    %c0_14 = arith.constant 0 : index
    %34 = vector.load %arg5[%c0_13, %c0_14] : memref<1x32xbf16, #tpu.memory_space<vmem>>, vector<1x32xbf16>
    %35 = arith.extf %34 : vector<1x32xbf16> to vector<1x32xf32>
    %36 = vector.broadcast %35 : vector<1x32xf32> to vector<64x32xf32>
    %37 = arith.addf %33, %36 : vector<64x32xf32>
    %c0_15 = arith.constant 0 : index
    %c0_16 = arith.constant 0 : index
    %38 = vector.load %arg6[%c0_15, %c0_16] : memref<64x32xbf16, #tpu.memory_space<vmem>>, vector<64x32xbf16>
    %cst_17 = arith.constant dense<0.000000e+00> : vector<64x32xf32>
    %39 = tpu.matmul %31, %38, %cst_17 {dimension_numbers = #tpu.dot_dimension_numbers<[1], [0], [0], [1], [0, 0, 1, 1], [], []>} : vector<64x64xbf16>, vector<64x32xbf16>, vector<64x32xf32> -> vector<64x32xf32>
    %c0_18 = arith.constant 0 : index
    %c0_19 = arith.constant 0 : index
    %40 = vector.load %arg7[%c0_18, %c0_19] : memref<1x32xbf16, #tpu.memory_space<vmem>>, vector<1x32xbf16>
    %41 = arith.extf %40 : vector<1x32xbf16> to vector<1x32xf32>
    %42 = vector.broadcast %41 : vector<1x32xf32> to vector<64x32xf32>
    %43 = arith.addf %39, %42 : vector<64x32xf32>
    %c0_20 = arith.constant 0 : index
    %c0_21 = arith.constant 0 : index
    %44 = vector.load %arg8[%c0_20, %c0_21] : memref<128x32xbf16, #tpu.memory_space<vmem>>, vector<128x32xbf16>
    %c0_22 = arith.constant 0 : index
    %c0_23 = arith.constant 0 : index
    %45 = vector.load %arg9[%c0_22, %c0_23] : memref<1x128xf32, #tpu.memory_space<vmem>>, vector<1x128xf32>
    %46 = tpu.iota {dimensions = array<i32: 1>} : vector<64x128xi32>
    %47 = tpu.iota {dimensions = array<i32: 1>} : vector<64x128xi32>
    %cst_24 = arith.constant 0.000000e+00 : f32
    %48 = vector.broadcast %cst_24 : f32 to vector<64x32xf32>
    %c0_i32 = arith.constant 0 : i32
    %49 = vector.broadcast %c0_i32 : i32 to vector<64x128xi32>
    %50 = arith.truncf %37 : vector<64x32xf32> to vector<64x32xbf16>
    %cst_25 = arith.constant dense<0.000000e+00> : vector<64x128xf32>
    %51 = tpu.matmul %50, %44, %cst_25 {dimension_numbers = #tpu.dot_dimension_numbers<[1], [1], [0], [0], [0, 0, 1, 0], [], []>} : vector<64x32xbf16>, vector<128x32xbf16>, vector<64x128xf32> -> vector<64x128xf32>
    %cst_26 = arith.constant 2.000000e+00 : f32
    %52 = vector.broadcast %cst_26 : f32 to vector<64x128xf32>
    %53 = arith.mulf %52, %51 : vector<64x128xf32>
    %54 = vector.broadcast %45 : vector<1x128xf32> to vector<64x128xf32>
    %55 = arith.subf %54, %53 : vector<64x128xf32>
    %cst_27 = arith.constant dense<0x7F800000> : vector<64xf32>
    %56 = vector.multi_reduction <minimumf>, %55, %cst_27 [1] : vector<64x128xf32> to vector<64xf32>
    %57 = vector.shape_cast %56 : vector<64xf32> to vector<64x1xf32>
    %58 = vector.broadcast %57 : vector<64x1xf32> to vector<64x128xf32>
    %59 = arith.cmpf ole, %55, %58 : vector<64x128xf32>
    %c128_i32 = arith.constant 128 : i32
    %60 = vector.broadcast %c128_i32 : i32 to vector<64x128xi32>
    %61 = arith.select %59, %46, %60 : vector<64x128xi1>, vector<64x128xi32>
    %cst_28 = arith.constant dense<2147483647> : vector<64xi32>
    %62 = vector.multi_reduction <minsi>, %61, %cst_28 [1] : vector<64x128xi32> to vector<64xi32>
    %63 = vector.shape_cast %62 : vector<64xi32> to vector<64x1xi32>
    %64 = vector.broadcast %63 : vector<64x1xi32> to vector<64x128xi32>
    %65 = arith.cmpi eq, %46, %64 : vector<64x128xi32>
    %66 = arith.extui %65 : vector<64x128xi1> to vector<64x128xi32>
    %67 = arith.sitofp %66 : vector<64x128xi32> to vector<64x128xf32>
    %68 = arith.truncf %67 : vector<64x128xf32> to vector<64x128xbf16>
    %cst_29 = arith.constant dense<0.000000e+00> : vector<64x32xf32>
    %69 = tpu.matmul %68, %44, %cst_29 {dimension_numbers = #tpu.dot_dimension_numbers<[1], [0], [0], [1], [0, 0, 1, 1], [], []>} : vector<64x128xbf16>, vector<128x32xbf16>, vector<64x32xf32> -> vector<64x32xf32>
    %70 = arith.addf %48, %69 : vector<64x32xf32>
    %71 = arith.subf %37, %69 : vector<64x32xf32>
    %c0_i32_30 = arith.constant 0 : i32
    %72 = vector.broadcast %c0_i32_30 : i32 to vector<64x128xi32>
    %73 = arith.cmpi eq, %47, %72 : vector<64x128xi32>
    %74 = vector.shape_cast %63 : vector<64x1xi32> to vector<64x1xi32>
    %75 = vector.broadcast %74 : vector<64x1xi32> to vector<64x128xi32>
    %76 = arith.select %73, %75, %49 : vector<64x128xi1>, vector<64x128xi32>
    %77 = arith.truncf %71 : vector<64x32xf32> to vector<64x32xbf16>
    %cst_31 = arith.constant dense<0.000000e+00> : vector<64x128xf32>
    %78 = tpu.matmul %77, %44, %cst_31 {dimension_numbers = #tpu.dot_dimension_numbers<[1], [1], [0], [0], [0, 0, 1, 0], [], []>} : vector<64x32xbf16>, vector<128x32xbf16>, vector<64x128xf32> -> vector<64x128xf32>
    %cst_32 = arith.constant 2.000000e+00 : f32
    %79 = vector.broadcast %cst_32 : f32 to vector<64x128xf32>
    %80 = arith.mulf %79, %78 : vector<64x128xf32>
    %81 = vector.broadcast %45 : vector<1x128xf32> to vector<64x128xf32>
    %82 = arith.subf %81, %80 : vector<64x128xf32>
    %cst_33 = arith.constant dense<0x7F800000> : vector<64xf32>
    %83 = vector.multi_reduction <minimumf>, %82, %cst_33 [1] : vector<64x128xf32> to vector<64xf32>
    %84 = vector.shape_cast %83 : vector<64xf32> to vector<64x1xf32>
    %85 = vector.broadcast %84 : vector<64x1xf32> to vector<64x128xf32>
    %86 = arith.cmpf ole, %82, %85 : vector<64x128xf32>
    %c128_i32_34 = arith.constant 128 : i32
    %87 = vector.broadcast %c128_i32_34 : i32 to vector<64x128xi32>
    %88 = arith.select %86, %46, %87 : vector<64x128xi1>, vector<64x128xi32>
    %cst_35 = arith.constant dense<2147483647> : vector<64xi32>
    %89 = vector.multi_reduction <minsi>, %88, %cst_35 [1] : vector<64x128xi32> to vector<64xi32>
    %90 = vector.shape_cast %89 : vector<64xi32> to vector<64x1xi32>
    %91 = vector.broadcast %90 : vector<64x1xi32> to vector<64x128xi32>
    %92 = arith.cmpi eq, %46, %91 : vector<64x128xi32>
    %93 = arith.extui %92 : vector<64x128xi1> to vector<64x128xi32>
    %94 = arith.sitofp %93 : vector<64x128xi32> to vector<64x128xf32>
    %95 = arith.truncf %94 : vector<64x128xf32> to vector<64x128xbf16>
    %cst_36 = arith.constant dense<0.000000e+00> : vector<64x32xf32>
    %96 = tpu.matmul %95, %44, %cst_36 {dimension_numbers = #tpu.dot_dimension_numbers<[1], [0], [0], [1], [0, 0, 1, 1], [], []>} : vector<64x128xbf16>, vector<128x32xbf16>, vector<64x32xf32> -> vector<64x32xf32>
    %97 = arith.addf %70, %96 : vector<64x32xf32>
    %98 = arith.subf %71, %96 : vector<64x32xf32>
    %c1_i32 = arith.constant 1 : i32
    %99 = vector.broadcast %c1_i32 : i32 to vector<64x128xi32>
    %100 = arith.cmpi eq, %47, %99 : vector<64x128xi32>
    %101 = vector.shape_cast %90 : vector<64x1xi32> to vector<64x1xi32>
    %102 = vector.broadcast %101 : vector<64x1xi32> to vector<64x128xi32>
    %103 = arith.select %100, %102, %76 : vector<64x128xi1>, vector<64x128xi32>
    %104 = arith.truncf %98 : vector<64x32xf32> to vector<64x32xbf16>
    %cst_37 = arith.constant dense<0.000000e+00> : vector<64x128xf32>
    %105 = tpu.matmul %104, %44, %cst_37 {dimension_numbers = #tpu.dot_dimension_numbers<[1], [1], [0], [0], [0, 0, 1, 0], [], []>} : vector<64x32xbf16>, vector<128x32xbf16>, vector<64x128xf32> -> vector<64x128xf32>
    %cst_38 = arith.constant 2.000000e+00 : f32
    %106 = vector.broadcast %cst_38 : f32 to vector<64x128xf32>
    %107 = arith.mulf %106, %105 : vector<64x128xf32>
    %108 = vector.broadcast %45 : vector<1x128xf32> to vector<64x128xf32>
    %109 = arith.subf %108, %107 : vector<64x128xf32>
    %cst_39 = arith.constant dense<0x7F800000> : vector<64xf32>
    %110 = vector.multi_reduction <minimumf>, %109, %cst_39 [1] : vector<64x128xf32> to vector<64xf32>
    %111 = vector.shape_cast %110 : vector<64xf32> to vector<64x1xf32>
    %112 = vector.broadcast %111 : vector<64x1xf32> to vector<64x128xf32>
    %113 = arith.cmpf ole, %109, %112 : vector<64x128xf32>
    %c128_i32_40 = arith.constant 128 : i32
    %114 = vector.broadcast %c128_i32_40 : i32 to vector<64x128xi32>
    %115 = arith.select %113, %46, %114 : vector<64x128xi1>, vector<64x128xi32>
    %cst_41 = arith.constant dense<2147483647> : vector<64xi32>
    %116 = vector.multi_reduction <minsi>, %115, %cst_41 [1] : vector<64x128xi32> to vector<64xi32>
    %117 = vector.shape_cast %116 : vector<64xi32> to vector<64x1xi32>
    %118 = vector.broadcast %117 : vector<64x1xi32> to vector<64x128xi32>
    %119 = arith.cmpi eq, %46, %118 : vector<64x128xi32>
    %120 = arith.extui %119 : vector<64x128xi1> to vector<64x128xi32>
    %121 = arith.sitofp %120 : vector<64x128xi32> to vector<64x128xf32>
    %122 = arith.truncf %121 : vector<64x128xf32> to vector<64x128xbf16>
    %cst_42 = arith.constant dense<0.000000e+00> : vector<64x32xf32>
    %123 = tpu.matmul %122, %44, %cst_42 {dimension_numbers = #tpu.dot_dimension_numbers<[1], [0], [0], [1], [0, 0, 1, 1], [], []>} : vector<64x128xbf16>, vector<128x32xbf16>, vector<64x32xf32> -> vector<64x32xf32>
    %124 = arith.addf %97, %123 : vector<64x32xf32>
    %125 = arith.subf %98, %123 : vector<64x32xf32>
    %c2_i32 = arith.constant 2 : i32
    %126 = vector.broadcast %c2_i32 : i32 to vector<64x128xi32>
    %127 = arith.cmpi eq, %47, %126 : vector<64x128xi32>
    %128 = vector.shape_cast %117 : vector<64x1xi32> to vector<64x1xi32>
    %129 = vector.broadcast %128 : vector<64x1xi32> to vector<64x128xi32>
    %130 = arith.select %127, %129, %103 : vector<64x128xi1>, vector<64x128xi32>
    %131 = arith.truncf %125 : vector<64x32xf32> to vector<64x32xbf16>
    %cst_43 = arith.constant dense<0.000000e+00> : vector<64x128xf32>
    %132 = tpu.matmul %131, %44, %cst_43 {dimension_numbers = #tpu.dot_dimension_numbers<[1], [1], [0], [0], [0, 0, 1, 0], [], []>} : vector<64x32xbf16>, vector<128x32xbf16>, vector<64x128xf32> -> vector<64x128xf32>
    %cst_44 = arith.constant 2.000000e+00 : f32
    %133 = vector.broadcast %cst_44 : f32 to vector<64x128xf32>
    %134 = arith.mulf %133, %132 : vector<64x128xf32>
    %135 = vector.broadcast %45 : vector<1x128xf32> to vector<64x128xf32>
    %136 = arith.subf %135, %134 : vector<64x128xf32>
    %cst_45 = arith.constant dense<0x7F800000> : vector<64xf32>
    %137 = vector.multi_reduction <minimumf>, %136, %cst_45 [1] : vector<64x128xf32> to vector<64xf32>
    %138 = vector.shape_cast %137 : vector<64xf32> to vector<64x1xf32>
    %139 = vector.broadcast %138 : vector<64x1xf32> to vector<64x128xf32>
    %140 = arith.cmpf ole, %136, %139 : vector<64x128xf32>
    %c128_i32_46 = arith.constant 128 : i32
    %141 = vector.broadcast %c128_i32_46 : i32 to vector<64x128xi32>
    %142 = arith.select %140, %46, %141 : vector<64x128xi1>, vector<64x128xi32>
    %cst_47 = arith.constant dense<2147483647> : vector<64xi32>
    %143 = vector.multi_reduction <minsi>, %142, %cst_47 [1] : vector<64x128xi32> to vector<64xi32>
    %144 = vector.shape_cast %143 : vector<64xi32> to vector<64x1xi32>
    %145 = vector.broadcast %144 : vector<64x1xi32> to vector<64x128xi32>
    %146 = arith.cmpi eq, %46, %145 : vector<64x128xi32>
    %147 = arith.extui %146 : vector<64x128xi1> to vector<64x128xi32>
    %148 = arith.sitofp %147 : vector<64x128xi32> to vector<64x128xf32>
    %149 = arith.truncf %148 : vector<64x128xf32> to vector<64x128xbf16>
    %cst_48 = arith.constant dense<0.000000e+00> : vector<64x32xf32>
    %150 = tpu.matmul %149, %44, %cst_48 {dimension_numbers = #tpu.dot_dimension_numbers<[1], [0], [0], [1], [0, 0, 1, 1], [], []>} : vector<64x128xbf16>, vector<128x32xbf16>, vector<64x32xf32> -> vector<64x32xf32>
    %151 = arith.addf %124, %150 : vector<64x32xf32>
    %c3_i32 = arith.constant 3 : i32
    %152 = vector.broadcast %c3_i32 : i32 to vector<64x128xi32>
    %153 = arith.cmpi eq, %47, %152 : vector<64x128xi32>
    %154 = vector.shape_cast %144 : vector<64x1xi32> to vector<64x1xi32>
    %155 = vector.broadcast %154 : vector<64x1xi32> to vector<64x128xi32>
    %156 = arith.select %153, %155, %130 : vector<64x128xi1>, vector<64x128xi32>
    %c0_49 = arith.constant 0 : index
    %c0_50 = arith.constant 0 : index
    %157 = vector.load %arg10[%c0_49, %c0_50] : memref<128x32xbf16, #tpu.memory_space<vmem>>, vector<128x32xbf16>
    %c0_51 = arith.constant 0 : index
    %c0_52 = arith.constant 0 : index
    %158 = vector.load %arg11[%c0_51, %c0_52] : memref<1x128xf32, #tpu.memory_space<vmem>>, vector<1x128xf32>
    %159 = tpu.iota {dimensions = array<i32: 1>} : vector<64x128xi32>
    %160 = tpu.iota {dimensions = array<i32: 1>} : vector<64x128xi32>
    %cst_53 = arith.constant 0.000000e+00 : f32
    %161 = vector.broadcast %cst_53 : f32 to vector<64x32xf32>
    %c0_i32_54 = arith.constant 0 : i32
    %162 = vector.broadcast %c0_i32_54 : i32 to vector<64x128xi32>
    %163 = arith.truncf %43 : vector<64x32xf32> to vector<64x32xbf16>
    %cst_55 = arith.constant dense<0.000000e+00> : vector<64x128xf32>
    %164 = tpu.matmul %163, %157, %cst_55 {dimension_numbers = #tpu.dot_dimension_numbers<[1], [1], [0], [0], [0, 0, 1, 0], [], []>} : vector<64x32xbf16>, vector<128x32xbf16>, vector<64x128xf32> -> vector<64x128xf32>
    %cst_56 = arith.constant 2.000000e+00 : f32
    %165 = vector.broadcast %cst_56 : f32 to vector<64x128xf32>
    %166 = arith.mulf %165, %164 : vector<64x128xf32>
    %167 = vector.broadcast %158 : vector<1x128xf32> to vector<64x128xf32>
    %168 = arith.subf %167, %166 : vector<64x128xf32>
    %cst_57 = arith.constant dense<0x7F800000> : vector<64xf32>
    %169 = vector.multi_reduction <minimumf>, %168, %cst_57 [1] : vector<64x128xf32> to vector<64xf32>
    %170 = vector.shape_cast %169 : vector<64xf32> to vector<64x1xf32>
    %171 = vector.broadcast %170 : vector<64x1xf32> to vector<64x128xf32>
    %172 = arith.cmpf ole, %168, %171 : vector<64x128xf32>
    %c128_i32_58 = arith.constant 128 : i32
    %173 = vector.broadcast %c128_i32_58 : i32 to vector<64x128xi32>
    %174 = arith.select %172, %159, %173 : vector<64x128xi1>, vector<64x128xi32>
    %cst_59 = arith.constant dense<2147483647> : vector<64xi32>
    %175 = vector.multi_reduction <minsi>, %174, %cst_59 [1] : vector<64x128xi32> to vector<64xi32>
    %176 = vector.shape_cast %175 : vector<64xi32> to vector<64x1xi32>
    %177 = vector.broadcast %176 : vector<64x1xi32> to vector<64x128xi32>
    %178 = arith.cmpi eq, %159, %177 : vector<64x128xi32>
    %179 = arith.extui %178 : vector<64x128xi1> to vector<64x128xi32>
    %180 = arith.sitofp %179 : vector<64x128xi32> to vector<64x128xf32>
    %181 = arith.truncf %180 : vector<64x128xf32> to vector<64x128xbf16>
    %cst_60 = arith.constant dense<0.000000e+00> : vector<64x32xf32>
    %182 = tpu.matmul %181, %157, %cst_60 {dimension_numbers = #tpu.dot_dimension_numbers<[1], [0], [0], [1], [0, 0, 1, 1], [], []>} : vector<64x128xbf16>, vector<128x32xbf16>, vector<64x32xf32> -> vector<64x32xf32>
    %183 = arith.addf %161, %182 : vector<64x32xf32>
    %184 = arith.subf %43, %182 : vector<64x32xf32>
    %c64_i32 = arith.constant 64 : i32
    %185 = vector.broadcast %c64_i32 : i32 to vector<64x128xi32>
    %186 = arith.cmpi eq, %160, %185 : vector<64x128xi32>
    %187 = vector.shape_cast %176 : vector<64x1xi32> to vector<64x1xi32>
    %188 = vector.broadcast %187 : vector<64x1xi32> to vector<64x128xi32>
    %189 = arith.select %186, %188, %162 : vector<64x128xi1>, vector<64x128xi32>
    %190 = arith.truncf %184 : vector<64x32xf32> to vector<64x32xbf16>
    %cst_61 = arith.constant dense<0.000000e+00> : vector<64x128xf32>
    %191 = tpu.matmul %190, %157, %cst_61 {dimension_numbers = #tpu.dot_dimension_numbers<[1], [1], [0], [0], [0, 0, 1, 0], [], []>} : vector<64x32xbf16>, vector<128x32xbf16>, vector<64x128xf32> -> vector<64x128xf32>
    %cst_62 = arith.constant 2.000000e+00 : f32
    %192 = vector.broadcast %cst_62 : f32 to vector<64x128xf32>
    %193 = arith.mulf %192, %191 : vector<64x128xf32>
    %194 = vector.broadcast %158 : vector<1x128xf32> to vector<64x128xf32>
    %195 = arith.subf %194, %193 : vector<64x128xf32>
    %cst_63 = arith.constant dense<0x7F800000> : vector<64xf32>
    %196 = vector.multi_reduction <minimumf>, %195, %cst_63 [1] : vector<64x128xf32> to vector<64xf32>
    %197 = vector.shape_cast %196 : vector<64xf32> to vector<64x1xf32>
    %198 = vector.broadcast %197 : vector<64x1xf32> to vector<64x128xf32>
    %199 = arith.cmpf ole, %195, %198 : vector<64x128xf32>
    %c128_i32_64 = arith.constant 128 : i32
    %200 = vector.broadcast %c128_i32_64 : i32 to vector<64x128xi32>
    %201 = arith.select %199, %159, %200 : vector<64x128xi1>, vector<64x128xi32>
    %cst_65 = arith.constant dense<2147483647> : vector<64xi32>
    %202 = vector.multi_reduction <minsi>, %201, %cst_65 [1] : vector<64x128xi32> to vector<64xi32>
    %203 = vector.shape_cast %202 : vector<64xi32> to vector<64x1xi32>
    %204 = vector.broadcast %203 : vector<64x1xi32> to vector<64x128xi32>
    %205 = arith.cmpi eq, %159, %204 : vector<64x128xi32>
    %206 = arith.extui %205 : vector<64x128xi1> to vector<64x128xi32>
    %207 = arith.sitofp %206 : vector<64x128xi32> to vector<64x128xf32>
    %208 = arith.truncf %207 : vector<64x128xf32> to vector<64x128xbf16>
    %cst_66 = arith.constant dense<0.000000e+00> : vector<64x32xf32>
    %209 = tpu.matmul %208, %157, %cst_66 {dimension_numbers = #tpu.dot_dimension_numbers<[1], [0], [0], [1], [0, 0, 1, 1], [], []>} : vector<64x128xbf16>, vector<128x32xbf16>, vector<64x32xf32> -> vector<64x32xf32>
    %210 = arith.addf %183, %209 : vector<64x32xf32>
    %211 = arith.subf %184, %209 : vector<64x32xf32>
    %c65_i32 = arith.constant 65 : i32
    %212 = vector.broadcast %c65_i32 : i32 to vector<64x128xi32>
    %213 = arith.cmpi eq, %160, %212 : vector<64x128xi32>
    %214 = vector.shape_cast %203 : vector<64x1xi32> to vector<64x1xi32>
    %215 = vector.broadcast %214 : vector<64x1xi32> to vector<64x128xi32>
    %216 = arith.select %213, %215, %189 : vector<64x128xi1>, vector<64x128xi32>
    %217 = arith.truncf %211 : vector<64x32xf32> to vector<64x32xbf16>
    %cst_67 = arith.constant dense<0.000000e+00> : vector<64x128xf32>
    %218 = tpu.matmul %217, %157, %cst_67 {dimension_numbers = #tpu.dot_dimension_numbers<[1], [1], [0], [0], [0, 0, 1, 0], [], []>} : vector<64x32xbf16>, vector<128x32xbf16>, vector<64x128xf32> -> vector<64x128xf32>
    %cst_68 = arith.constant 2.000000e+00 : f32
    %219 = vector.broadcast %cst_68 : f32 to vector<64x128xf32>
    %220 = arith.mulf %219, %218 : vector<64x128xf32>
    %221 = vector.broadcast %158 : vector<1x128xf32> to vector<64x128xf32>
    %222 = arith.subf %221, %220 : vector<64x128xf32>
    %cst_69 = arith.constant dense<0x7F800000> : vector<64xf32>
    %223 = vector.multi_reduction <minimumf>, %222, %cst_69 [1] : vector<64x128xf32> to vector<64xf32>
    %224 = vector.shape_cast %223 : vector<64xf32> to vector<64x1xf32>
    %225 = vector.broadcast %224 : vector<64x1xf32> to vector<64x128xf32>
    %226 = arith.cmpf ole, %222, %225 : vector<64x128xf32>
    %c128_i32_70 = arith.constant 128 : i32
    %227 = vector.broadcast %c128_i32_70 : i32 to vector<64x128xi32>
    %228 = arith.select %226, %159, %227 : vector<64x128xi1>, vector<64x128xi32>
    %cst_71 = arith.constant dense<2147483647> : vector<64xi32>
    %229 = vector.multi_reduction <minsi>, %228, %cst_71 [1] : vector<64x128xi32> to vector<64xi32>
    %230 = vector.shape_cast %229 : vector<64xi32> to vector<64x1xi32>
    %231 = vector.broadcast %230 : vector<64x1xi32> to vector<64x128xi32>
    %232 = arith.cmpi eq, %159, %231 : vector<64x128xi32>
    %233 = arith.extui %232 : vector<64x128xi1> to vector<64x128xi32>
    %234 = arith.sitofp %233 : vector<64x128xi32> to vector<64x128xf32>
    %235 = arith.truncf %234 : vector<64x128xf32> to vector<64x128xbf16>
    %cst_72 = arith.constant dense<0.000000e+00> : vector<64x32xf32>
    %236 = tpu.matmul %235, %157, %cst_72 {dimension_numbers = #tpu.dot_dimension_numbers<[1], [0], [0], [1], [0, 0, 1, 1], [], []>} : vector<64x128xbf16>, vector<128x32xbf16>, vector<64x32xf32> -> vector<64x32xf32>
    %237 = arith.addf %210, %236 : vector<64x32xf32>
    %238 = arith.subf %211, %236 : vector<64x32xf32>
    %c66_i32 = arith.constant 66 : i32
    %239 = vector.broadcast %c66_i32 : i32 to vector<64x128xi32>
    %240 = arith.cmpi eq, %160, %239 : vector<64x128xi32>
    %241 = vector.shape_cast %230 : vector<64x1xi32> to vector<64x1xi32>
    %242 = vector.broadcast %241 : vector<64x1xi32> to vector<64x128xi32>
    %243 = arith.select %240, %242, %216 : vector<64x128xi1>, vector<64x128xi32>
    %244 = arith.truncf %238 : vector<64x32xf32> to vector<64x32xbf16>
    %cst_73 = arith.constant dense<0.000000e+00> : vector<64x128xf32>
    %245 = tpu.matmul %244, %157, %cst_73 {dimension_numbers = #tpu.dot_dimension_numbers<[1], [1], [0], [0], [0, 0, 1, 0], [], []>} : vector<64x32xbf16>, vector<128x32xbf16>, vector<64x128xf32> -> vector<64x128xf32>
    %cst_74 = arith.constant 2.000000e+00 : f32
    %246 = vector.broadcast %cst_74 : f32 to vector<64x128xf32>
    %247 = arith.mulf %246, %245 : vector<64x128xf32>
    %248 = vector.broadcast %158 : vector<1x128xf32> to vector<64x128xf32>
    %249 = arith.subf %248, %247 : vector<64x128xf32>
    %cst_75 = arith.constant dense<0x7F800000> : vector<64xf32>
    %250 = vector.multi_reduction <minimumf>, %249, %cst_75 [1] : vector<64x128xf32> to vector<64xf32>
    %251 = vector.shape_cast %250 : vector<64xf32> to vector<64x1xf32>
    %252 = vector.broadcast %251 : vector<64x1xf32> to vector<64x128xf32>
    %253 = arith.cmpf ole, %249, %252 : vector<64x128xf32>
    %c128_i32_76 = arith.constant 128 : i32
    %254 = vector.broadcast %c128_i32_76 : i32 to vector<64x128xi32>
    %255 = arith.select %253, %159, %254 : vector<64x128xi1>, vector<64x128xi32>
    %cst_77 = arith.constant dense<2147483647> : vector<64xi32>
    %256 = vector.multi_reduction <minsi>, %255, %cst_77 [1] : vector<64x128xi32> to vector<64xi32>
    %257 = vector.shape_cast %256 : vector<64xi32> to vector<64x1xi32>
    %258 = vector.broadcast %257 : vector<64x1xi32> to vector<64x128xi32>
    %259 = arith.cmpi eq, %159, %258 : vector<64x128xi32>
    %260 = arith.extui %259 : vector<64x128xi1> to vector<64x128xi32>
    %261 = arith.sitofp %260 : vector<64x128xi32> to vector<64x128xf32>
    %262 = arith.truncf %261 : vector<64x128xf32> to vector<64x128xbf16>
    %cst_78 = arith.constant dense<0.000000e+00> : vector<64x32xf32>
    %263 = tpu.matmul %262, %157, %cst_78 {dimension_numbers = #tpu.dot_dimension_numbers<[1], [0], [0], [1], [0, 0, 1, 1], [], []>} : vector<64x128xbf16>, vector<128x32xbf16>, vector<64x32xf32> -> vector<64x32xf32>
    %264 = arith.addf %237, %263 : vector<64x32xf32>
    %c67_i32 = arith.constant 67 : i32
    %265 = vector.broadcast %c67_i32 : i32 to vector<64x128xi32>
    %266 = arith.cmpi eq, %160, %265 : vector<64x128xi32>
    %267 = vector.shape_cast %257 : vector<64x1xi32> to vector<64x1xi32>
    %268 = vector.broadcast %267 : vector<64x1xi32> to vector<64x128xi32>
    %269 = arith.select %266, %268, %243 : vector<64x128xi1>, vector<64x128xi32>
    %270 = arith.truncf %151 : vector<64x32xf32> to vector<64x32xbf16>
    %c0_79 = arith.constant 0 : index
    %c0_80 = arith.constant 0 : index
    %c0_81 = arith.constant 0 : index
    %271 = vector.load %arg12[%c0_79, %c0_80, %c0_81] : memref<1x64x32xbf16, #tpu.memory_space<vmem>>, vector<1x64x32xbf16>
    %272 = vector.shape_cast %271 : vector<1x64x32xbf16> to vector<64x32xbf16>
    %273 = vector.shape_cast %270 : vector<64x32xbf16> to vector<1x64x32xbf16>
    tpu.vector_store %arg12[%c0_79, %c0_80, %c0_81], %273 {strides = array<i32>} : memref<1x64x32xbf16, #tpu.memory_space<vmem>>, vector<1x64x32xbf16>,
    %274 = arith.truncf %264 : vector<64x32xf32> to vector<64x32xbf16>
    %c0_82 = arith.constant 0 : index
    %c0_83 = arith.constant 0 : index
    %c0_84 = arith.constant 0 : index
    %275 = vector.load %arg13[%c0_82, %c0_83, %c0_84] : memref<1x64x32xbf16, #tpu.memory_space<vmem>>, vector<1x64x32xbf16>
    %276 = vector.shape_cast %275 : vector<1x64x32xbf16> to vector<64x32xbf16>
    %277 = vector.shape_cast %274 : vector<64x32xbf16> to vector<1x64x32xbf16>
    tpu.vector_store %arg13[%c0_82, %c0_83, %c0_84], %277 {strides = array<i32>} : memref<1x64x32xbf16, #tpu.memory_space<vmem>>, vector<1x64x32xbf16>,
    %278 = arith.addi %156, %269 : vector<64x128xi32>
    %c0_85 = arith.constant 0 : index
    %c0_86 = arith.constant 0 : index
    %c0_87 = arith.constant 0 : index
    %279 = vector.load %arg14[%c0_85, %c0_86, %c0_87] : memref<1x64x128xi32, #tpu.memory_space<vmem>>, vector<1x64x128xi32>
    %280 = vector.shape_cast %279 : vector<1x64x128xi32> to vector<64x128xi32>
    %281 = vector.shape_cast %278 : vector<64x128xi32> to vector<1x64x128xi32>
    tpu.vector_store %arg14[%c0_85, %c0_86, %c0_87], %281 {strides = array<i32>} : memref<1x64x128xi32, #tpu.memory_space<vmem>>, vector<1x64x128xi32>,
    return
  }
  func.func @transform_0(%arg0: i32) -> (i32, i32, i32) {
    %c0_i32 = arith.constant 0 : i32
    %c0_i32_0 = arith.constant 0 : i32
    %c0_i32_1 = arith.constant 0 : i32
    return %arg0, %c0_i32, %c0_i32_0 : i32, i32, i32
  }
  func.func @transform_1(%arg0: i32) -> (i32, i32) {
    %c0_i32 = arith.constant 0 : i32
    %c0_i32_0 = arith.constant 0 : i32
    %c0_i32_1 = arith.constant 0 : i32
    return %c0_i32, %c0_i32_0 : i32, i32
  }
  func.func @transform_2(%arg0: i32) -> (i32, i32) {
    %c0_i32 = arith.constant 0 : i32
    %c0_i32_0 = arith.constant 0 : i32
    %c0_i32_1 = arith.constant 0 : i32
    return %c0_i32, %c0_i32_0 : i32, i32
  }
  func.func @transform_3(%arg0: i32) -> (i32, i32) {
    %c0_i32 = arith.constant 0 : i32
    %c0_i32_0 = arith.constant 0 : i32
    %c0_i32_1 = arith.constant 0 : i32
    return %c0_i32, %c0_i32_0 : i32, i32
  }
  func.func @transform_4(%arg0: i32) -> (i32, i32) {
    %c0_i32 = arith.constant 0 : i32
    %c0_i32_0 = arith.constant 0 : i32
    %c0_i32_1 = arith.constant 0 : i32
    return %c0_i32, %c0_i32_0 : i32, i32
  }
  func.func @transform_5(%arg0: i32) -> (i32, i32) {
    %c0_i32 = arith.constant 0 : i32
    %c0_i32_0 = arith.constant 0 : i32
    %c0_i32_1 = arith.constant 0 : i32
    return %c0_i32, %c0_i32_0 : i32, i32
  }
  func.func @transform_6(%arg0: i32) -> (i32, i32) {
    %c0_i32 = arith.constant 0 : i32
    %c0_i32_0 = arith.constant 0 : i32
    %c0_i32_1 = arith.constant 0 : i32
    return %c0_i32, %c0_i32_0 : i32, i32
  }
  func.func @transform_7(%arg0: i32) -> (i32, i32) {
    %c0_i32 = arith.constant 0 : i32
    %c0_i32_0 = arith.constant 0 : i32
    %c0_i32_1 = arith.constant 0 : i32
    return %c0_i32, %c0_i32_0 : i32, i32
  }
  func.func @transform_8(%arg0: i32) -> (i32, i32) {
    %c0_i32 = arith.constant 0 : i32
    %c0_i32_0 = arith.constant 0 : i32
    %c0_i32_1 = arith.constant 0 : i32
    return %c0_i32, %c0_i32_0 : i32, i32
  }
  func.func @transform_9(%arg0: i32) -> (i32, i32) {
    %c0_i32 = arith.constant 0 : i32
    %c0_i32_0 = arith.constant 0 : i32
    %c0_i32_1 = arith.constant 0 : i32
    return %c0_i32, %c0_i32_0 : i32, i32
  }
  func.func @transform_10(%arg0: i32) -> (i32, i32) {
    %c0_i32 = arith.constant 0 : i32
    %c0_i32_0 = arith.constant 0 : i32
    %c0_i32_1 = arith.constant 0 : i32
    return %c0_i32, %c0_i32_0 : i32, i32
  }
  func.func @transform_11(%arg0: i32) -> (i32, i32, i32) {
    %c0_i32 = arith.constant 0 : i32
    %c0_i32_0 = arith.constant 0 : i32
    %c0_i32_1 = arith.constant 0 : i32
    return %arg0, %c0_i32, %c0_i32_0 : i32, i32, i32
  }
  func.func @transform_12(%arg0: i32) -> (i32, i32, i32) {
    %c0_i32 = arith.constant 0 : i32
    %c0_i32_0 = arith.constant 0 : i32
    %c0_i32_1 = arith.constant 0 : i32
    return %arg0, %c0_i32, %c0_i32_0 : i32, i32, i32
  }
  func.func @transform_13(%arg0: i32) -> (i32, i32, i32) {
    %c0_i32 = arith.constant 0 : i32
    %c0_i32_0 = arith.constant 0 : i32
    %c0_i32_1 = arith.constant 0 : i32
    return %arg0, %c0_i32, %c0_i32_0 : i32, i32, i32
  }
}

</mosaic_0001>

<bundles_post_ra>
// kernel: vision_tower_forward.4
= control target key start
LH: loop header
LB: loop body
LE: loop exit
PB: predicated region body
PF: predicated region fallthrough
CT: control target
= control target key end

     0   :  { %s589_s15 = smov 0   ;;  %s645_s0 = inlined_call_operand.vmem [shape: bf16[2,64,48], index: 0, kind: input, shape index: {}]   ;;  %s646_s1 = inlined_call_operand.vmem [shape: bf16[48,64], index: 1, kind: input, shape index: {}]   ;;  %s647_s2 = inlined_call_operand.vmem [shape: bf16[1,64], index: 2, kind: input, shape index: {}]   ;;  %s648_s3 = inlined_call_operand.vmem [shape: bf16[64,64], index: 3, kind: input, shape index: {}]   ;;  %s649_s4 = inlined_call_operand.vmem [shape: bf16[2,64,64], index: 4, kind: output, shape index: {}]  }
   0x1 LB: > { %s455_s16 = sadd.s32 4294967295, %s562_s15   ;;  %p459_p0 = scmp.ge.s32.totalorder %s562_s15, 1  ;;  %s562_s15 = sphi %s589_s15, %s14_s15  }
   0x2   : > { %p162_p1 = scmp.lt.s32.totalorder %s562_s15, 3 }
   0x4   : > { %p163_p2 = pnand %p459_p0, %p162_p1 }
   0x5   : > { %v549_v0 = vld [vmem:[%s646_s1] sm:$0xff] (!%p163_p2)   ;;  %p188_p3 = scmp.lt.s32.totalorder (!%p163_p2), %s455_s16, 1  ;;  %v550_v1 = vld [vmem:[%s646_s1 + $0x8] sm:$0xff] (!%p163_p2)   ;;  %v551_v2 = vld [vmem:[%s646_s1 + $0x10] sm:$0xff] (!%p163_p2)   ;;  %vm257_vm0 = vcmask (!%p163_p2), 392192   ;;  %v215_v7 = vlaneseq (!%p163_p2)  ;;  %vm391_vm1 = vcmask (!%p163_p2), 519168  }
   0x6   : > { %166 = sbr.rel (%p163_p2) target bundleno = 240 (0xf0), region = 36  ;;  %521 = vmatprep.subr.bf16.mxu0 (!%p163_p2), %v549_v0  ;;  %535 = vmatprep.subr.bf16.mxu1 (!%p163_p2), %v549_v0  ;;  %v213_v9 = vld [vmem:[%s647_s2] sm:$0x1] (!%p163_p2)  ;;  %v511_v12 = vld [vmem:[%s648_s3 + $0x8] sm:$0xff] (!%p163_p2)   ;;  %v513_v13 = vld [vmem:[%s648_s3 + $0x18] sm:$0xff] (!%p163_p2)  }
   0x7   : > { %522 = vmatpush3.bf16.msra.mxu0 (!%p163_p2), %v549_v0  ;;  %538 = vmatpush3.bf16.msra.mxu1 (!%p163_p2), %v549_v0  ;;  %v216_v8 = vshrl.u32 (!%p163_p2), %v215_v7, 7  ;;  %v214_v10 = vunpack.c.l.bf16 (!%p163_p2), %v213_v9  ;;  %v496_v15 = vld [vmem:[%s648_s3] sm:$0xff] (!%p163_p2)   ;;  %v512_v16 = vld [vmem:[%s648_s3 + $0x10] sm:$0xff] (!%p163_p2)   ;;  %v501_v17 = vunpack.c.l.bf16 (!%p163_p2), %v511_v12  ;;  %v509_v18 = vunpack.c.l.bf16 (!%p163_p2), %v513_v13 }
   0x8   : > { %523 = vmatprep.subr.bf16.mxu0 (!%p163_p2), %v550_v1  ;;  %536 = vmatprep.subr.bf16.mxu1 (!%p163_p2), %v550_v1  ;;  %v497_v21 = vunpack.c.l.bf16 (!%p163_p2), %v496_v15  ;;  %v505_v22 = vunpack.c.l.bf16 (!%p163_p2), %v512_v16  ;;  %v502_v23 = vunpack.c.h.bf16 (!%p163_p2), %v511_v12  ;;  %v510_v28 = vunpack.c.h.bf16 (!%p163_p2), %v513_v13 }
   0x9   : > { %v217_v11 = vsub.s32 (!%p163_p2), 0, %v216_v8  ;;  %v498_v29 = vunpack.c.h.bf16 (!%p163_p2), %v496_v15  ;;  %v506_v34 = vunpack.c.h.bf16 (!%p163_p2), %v512_v16 }
   0xb   : > { %524 = vmatpush3.bf16.msra.mxu0 (!%p163_p2), %v550_v1  ;;  %539 = vmatpush3.bf16.msra.mxu1 (!%p163_p2), %v550_v1  ;;  %v218_v14 = vrot.slane (!%p163_p2), %v214_v10, %v217_v11 }
   0xc   : > { %525 = vmatprep.subr.bf16.mxu0 (!%p163_p2), %v551_v2  ;;  %537 = vmatprep.subr.bf16.mxu1 (!%p163_p2), %v551_v2 }
   0xd   : > { %s651_s16 = smov (!%p188_p3, %s455_s16), 1 }
   0xe   : > { %s485_s23 = sshll.u32 %s651_s16, 5 }
   0xf   : > { %s192_s26 = scalar_lea.vmem %s645_s0, %s485_s23  ;;  %526 = vmatpush3.bf16.msra.mxu0 %v551_v2  ;;  %540 = vmatpush3.bf16.msra.mxu1 %v551_v2  ;;  %s197_s13 = scalar_lea.vmem %s649_s4, %s485_s23 }
  0x10   : > { %v552_v3 = vld [vmem:[%s192_s26] sm:$0xff]   ;;  %v553_v4 = vld [vmem:[%s192_s26 + $0x10] sm:$0xff]   ;;  %v554_v5 = vld [vmem:[%s192_s26 + $0x8] sm:$0xff]  }
  0x11   : > { %527 = vmatprep.mubr.msk.bf16.mxu0 %vm257_vm0, %v552_v3  ;;  %531 = vmatprep.mubr.msk.bf16.mxu1 %vm257_vm0, %v553_v4  ;;  %v555_v6 = vld [vmem:[%s192_s26 + $0x18] sm:$0xff]  }
  0x12   : > { %528 = vmatmul.mubr.msk.bf16.vlgmr.msra.gmra.mrb[0].mxu0 %vm257_vm0, %v554_v5  ;;  %532 = vmatmul.mubr.msk.bf16.vlgmr.msra.gmra.mrb[0].mxu1 %vm257_vm0, %v555_v6 }
  0xe5   : > { %v529_v19 = vpop.f32.mrb[0].mxu0  ;;  %v533_v20 = vpop.f32.mrb[0].mxu1 }
  0xe6   : > { %v313_v24 = vadd.f32 %v529_v19, %v218_v14  ;;  %v329_v25 = vadd.f32 %v533_v20, %v218_v14  ;;  %v304_v26 = vpop.f32.mrb[1].mxu0  ;;  %v320_v27 = vpop.f32.mrb[1].mxu1 }
  0xe7   : > { %v305_v30 = vadd.f32 %v304_v26, %v218_v14  ;;  %v321_v31 = vadd.f32 %v320_v27, %v218_v14  ;;  %v530_v32 = vpop.f32.mrb[2].mxu0  ;;  %v534_v33 = vpop.f32.mrb[2].mxu1 }
  0xe8   : > { %v353_v35 = vadd.f32 %v501_v17, %v313_v24  ;;  %v357_v36 = vadd.f32 %v509_v18, %v329_v25  ;;  %v316_v37 = vadd.f32 %v530_v32, %v218_v14  ;;  %v332_v38 = vadd.f32 %v534_v33, %v218_v14  ;;  %v307_v39 = vpop.f32.mrb[3].mxu0  ;;  %v323_v40 = vpop.f32.mrb[3].mxu1 }
  0xe9   : > { %v351_v41 = vadd.f32 %v497_v21, %v305_v30  ;;  %v355_v42 = vadd.f32 %v505_v22, %v321_v31  ;;  %v308_v43 = vadd.f32 %v307_v39, %v218_v14  ;;  %v324_v44 = vadd.f32 %v323_v40, %v218_v14 }
  0xea   : > { %v489_v45 = vpack.c.bf16 %v353_v35, %v353_v35  ;;  %v493_v46 = vpack.c.bf16 %v357_v36, %v357_v36  ;;  %v354_v47 = vadd.f32 %v502_v23, %v316_v37  ;;  %v358_v48 = vadd.f32 %v510_v28, %v332_v38 }
  0xeb   : > { %v487_v49 = vpack.c.bf16 %v351_v41, %v351_v41  ;;  %v491_v50 = vpack.c.bf16 %v355_v42, %v355_v42  ;;  %v352_v51 = vadd.f32 %v498_v29, %v308_v43  ;;  %v356_v52 = vadd.f32 %v506_v34, %v324_v44 }
  0xec   : > { %394 = vst.msk [vmem:[%s197_s13 + $0x8] sm:$0xf] %vm391_vm1, %v489_v45  ;;  %398 = vst.msk [vmem:[%s197_s13 + $0x18] sm:$0xf] %vm391_vm1, %v493_v46  ;;  %v490_v53 = vpack.c.bf16 %v354_v47, %v354_v47  ;;  %v494_v54 = vpack.c.bf16 %v358_v48, %v358_v48 }
  0xed   : > { %392 = vst.msk [vmem:[%s197_s13] sm:$0xf] %vm391_vm1, %v487_v49  ;;  %396 = vst.msk [vmem:[%s197_s13 + $0x10] sm:$0xf] %vm391_vm1, %v491_v50  ;;  %v488_v55 = vpack.c.bf16 %v352_v51, %v352_v51  ;;  %v492_v56 = vpack.c.bf16 %v356_v52, %v356_v52 }
  0xee   : > { %395 = vst.msk [vmem:[%s197_s13 + $0xc] sm:$0xf] %vm391_vm1, %v490_v53  ;;  %399 = vst.msk [vmem:[%s197_s13 + $0x1c] sm:$0xf] %vm391_vm1, %v494_v54 }
  0xef   : > { %393 = vst.msk [vmem:[%s197_s13 + $0x4] sm:$0xf] %vm391_vm1, %v488_v55  ;;  %397 = vst.msk [vmem:[%s197_s13 + $0x14] sm:$0xf] %vm391_vm1, %v492_v56 }
  0xf0 PF: > { %s14_s15 = sadd.s32 1, %s562_s15  }
  0xf1   : > { %p11_p4 = scmp.ge.s32.totalorder %s14_s15, 4  }
  0xf3   :  { %13 = sbr.rel (!%p11_p4) target bundleno = 1 (0x1), region = 66 }

// kernel: vision_tower_forward.5
= control target key start
LH: loop header
LB: loop body
LE: loop exit
PB: predicated region body
PF: predicated region fallthrough
CT: control target
= control target key end

     0   :  { %s3461_s24 = smov 0   ;;  %s4171_s0 = inlined_call_operand.vmem [shape: bf16[2,64,64], index: 0, kind: input, shape index: {}]   ;;  %s4172_s1 = inlined_call_operand.vmem [shape: bf16[1,64], index: 1, kind: input, shape index: {}]   ;;  %s4173_s2 = inlined_call_operand.vmem [shape: bf16[1,64], index: 2, kind: input, shape index: {}]   ;;  %s4174_s3 = inlined_call_operand.vmem [shape: bf16[2,64,32], index: 3, kind: input, shape index: {}]   ;;  %s4175_s4 = inlined_call_operand.vmem [shape: bf16[2,1,32], index: 4, kind: input, shape index: {}]   ;;  %s4176_s5 = inlined_call_operand.vmem [shape: bf16[2,64,32], index: 5, kind: input, shape index: {}]   ;;  %s4177_s6 = inlined_call_operand.vmem [shape: bf16[2,1,32], index: 6, kind: input, shape index: {}]   ;;  %s4178_s7 = inlined_call_operand.vmem [shape: bf16[2,64,32], index: 7, kind: input, shape index: {}]   ;;  %s4179_s8 = inlined_call_operand.vmem [shape: bf16[2,1,32], index: 8, kind: input, shape index: {}]   ;;  %s4180_s9 = inlined_call_operand.vmem [shape: bf16[2,32,64], index: 9, kind: input, shape index: {}]   ;;  %s4181_s10 = inlined_call_operand.vmem [shape: bf16[1,64], index: 10, kind: input, shape index: {}]   ;;  %s4182_s11 = inlined_call_operand.vmem [shape: bf16[1,64], index: 11, kind: input, shape index: {}]   ;;  %s4183_s12 = inlined_call_operand.vmem [shape: bf16[1,64], index: 12, kind: input, shape index: {}]   ;;  %s4184_s13 = inlined_call_operand.vmem [shape: bf16[64,128], index: 13, kind: input, shape index: {}]   ;;  %s4185_s14 = inlined_call_operand.vmem [shape: bf16[1,128], index: 14, kind: input, shape index: {}]   ;;  %s4186_s15 = inlined_call_operand.vmem [shape: bf16[128,64], index: 15, kind: input, shape index: {}]   ;;  %s4187_s16 = inlined_call_operand.vmem [shape: bf16[1,64], index: 16, kind: input, shape index: {}]   ;;  %s4188_s17 = inlined_call_operand.vmem [shape: bf16[2,64,64], index: 17, kind: output, shape index: {}]  }
   0x1   :  { %4189 = sst [smem:[#allocation2_spill]] %s4171_s0 }
   0x2   :  { %4190 = sst [smem:[#allocation3_spill]] %s4172_s1 }
   0x3 LB: > { %s2680_s25 = sadd.s32 4294967295, %s3369_s24   ;;  %p2684_p0 = scmp.ge.s32.totalorder %s3369_s24, 1  ;;  %s3369_s24 = sphi %s3461_s24, %s27_s24  }
   0x4   : > { %p487_p1 = scmp.lt.s32.totalorder %s3369_s24, 3 }
   0x6   : > { %p488_p2 = pnand %p2684_p0, %p487_p1 }
   0x7   : > { %p539_p3 = scmp.lt.s32.totalorder (!%p488_p2), %s2680_s25, 1  ;;  %s4191_s29 = sld [smem:[#allocation2_spill]] (!%p488_p2)  ;;  %vm566_vm0 = vcmask (!%p488_p2), 523264   ;;  %v3211_v60 = vld [vmem:[%s4174_s3] sm:$0xff] (!%p488_p2)   ;;  %v3213_v62 = vld [vmem:[%s4174_s3 + $0x8] sm:$0xff] (!%p488_p2)   ;;  %vm1033_vm1 = vcmask (!%p488_p2), 261120  }
   0x8   : > { %491 = sbr.rel (%p488_p2) target bundleno = 2844 (0xb1c), region = 88  ;;  %v3212_v61 = vld [vmem:[%s4176_s5] sm:$0xff] (!%p488_p2)   ;;  %2963 = vmatprep.subr.bf16.mxu0 (!%p488_p2), %v3211_v60  ;;  %v3214_v63 = vld [vmem:[%s4176_s5 + $0x8] sm:$0xff] (!%p488_p2)   ;;  %s4192_s27 = sld [smem:[#allocation3_spill]] (!%p488_p2)  ;;  %vm2616_vm2 = vcmask (!%p488_p2), 519168  }
   0x9   : > { %2979 = vmatprep.subr.bf16.mxu1 (!%p488_p2), %v3212_v61  ;;  %2964 = vmatpush3.bf16.msra.mxu0 (!%p488_p2), %v3211_v60 }
   0xa   : > { %2980 = vmatpush3.bf16.msra.mxu1 (!%p488_p2), %v3212_v61  ;;  %2965 = vmatprep.subr.bf16.mxu0 (!%p488_p2), %v3213_v62 }
   0xb   : > { %2981 = vmatprep.subr.bf16.mxu1 (!%p488_p2), %v3214_v63 }
   0xd   : > { %2966 = vmatpush3.bf16.msra.mxu0 (!%p488_p2), %v3213_v62 }
   0xe   : > { %2982 = vmatpush3.bf16.msra.mxu1 (!%p488_p2), %v3214_v63 }
   0xf   : > { %s4194_s25 = smov (!%p539_p3, %s2680_s25), 1 }
  0x10   : > { %s2822_s26 = sshll.u32 %s4194_s25, 5 }
  0x11   : > { %s543_s0 = scalar_lea.vmem %s4191_s29, %s2822_s26  ;;  %s4143_s18 = scalar_lea.vmem %s4188_s17, %s2822_s26 }
  0x12   : > { %v2833_v0 = vld [vmem:[%s543_s0] sm:$0xff]   ;;  %v2848_v1 = vld [vmem:[%s543_s0 + $0x8] sm:$0xff]   ;;  %v2849_v2 = vld [vmem:[%s543_s0 + $0x10] sm:$0xff]  }
  0x13   : > { %v3477_v3 = vunpack.c.l.bf16 %v2833_v0  ;;  %v3479_v4 = vunpack.c.l.bf16 %v2848_v1  ;;  %v3481_v5 = vunpack.c.h.bf16 %v2833_v0  ;;  %v3483_v6 = vunpack.c.h.bf16 %v2848_v1  ;;  %v2850_v7 = vld [vmem:[%s543_s0 + $0x18] sm:$0xff]   ;;  %v3215_v0 = vld [vmem:[%s4174_s3 + $0x10] sm:$0xff]  }
  0x14   : > { %v3485_v8 = vunpack.c.l.bf16 %v2849_v2  ;;  %v3487_v9 = vunpack.c.h.bf16 %v2849_v2  ;;  %v3489_v10 = vunpack.c.l.bf16 %v2850_v7  ;;  %v3491_v11 = vunpack.c.h.bf16 %v2850_v7  ;;  %v3216_v1 = vld [vmem:[%s4176_s5 + $0x10] sm:$0xff]   ;;  %2967 = vmatprep.subr.bf16.mxu0 %v3215_v0  ;;  %v3217_v2 = vld [vmem:[%s4174_s3 + $0x18] sm:$0xff]  }
  0x15   : > { %v567_v12 = vsel %vm566_vm0, %v3477_v3, 0.0  ;;  %v573_v13 = vsel %vm566_vm0, %v3479_v4, 0.0  ;;  %v570_v14 = vsel %vm566_vm0, %v3481_v5, 0.0  ;;  %v576_v15 = vsel %vm566_vm0, %v3483_v6, 0.0  ;;  %2983 = vmatprep.subr.bf16.mxu1 %v3216_v1  ;;  %2968 = vmatpush3.bf16.msra.mxu0 %v3215_v0  ;;  %v3218_v7 = vld [vmem:[%s4176_s5 + $0x18] sm:$0xff]  }
  0x16   : > { %568 = vadd.xlane.f32.xlu0 %v567_v12  ;;  %574 = vadd.xlane.f32.xlu1 %v573_v13  ;;  %v579_v16 = vsel %vm566_vm0, %v3485_v8, 0.0  ;;  %v582_v17 = vsel %vm566_vm0, %v3487_v9, 0.0  ;;  %v585_v18 = vsel %vm566_vm0, %v3489_v10, 0.0  ;;  %v588_v19 = vsel %vm566_vm0, %v3491_v11, 0.0  ;;  %v3584_v12 = vld [vmem:[%s4178_s7] sm:$0xff]  }
  0x17   : > { %2984 = vmatpush3.bf16.msra.mxu1 %v3216_v1  ;;  %2969 = vmatprep.subr.bf16.mxu0 %v3217_v2 }
  0x18   : > { %2985 = vmatprep.subr.bf16.mxu1 %v3218_v7 }
  0x19   : > { %2970 = vmatpush3.bf16.msra.mxu0 %v3217_v2 }
  0x1a   : > { %571 = vadd.xlane.f32.xlu0 %v570_v14  ;;  %577 = vadd.xlane.f32.xlu1 %v576_v15 }
  0x1b   : > { %2986 = vmatpush3.bf16.msra.mxu1 %v3218_v7  ;;  %2995 = vmatprep.subr.bf16.mxu0 %v3584_v12 }
  0x1e   : > { %580 = vadd.xlane.f32.xlu0 %v579_v16  ;;  %583 = vadd.xlane.f32.xlu1 %v582_v17  ;;  %v674_v16 = vlaneseq }
  0x22   : > { %586 = vadd.xlane.f32.xlu0 %v585_v18  ;;  %589 = vadd.xlane.f32.xlu1 %v588_v19 }
  0xa3   : > { %v569_v20 = vpop.xlane.xlu0 %568  ;;  %v575_v21 = vpop.xlane.xlu1 %574 }
  0xa4   : > { %v592_v22 = vmul.f32 0.015625, %v569_v20  ;;  %v594_v23 = vmul.f32 0.015625, %v575_v21 }
  0xa6   : > { %v3510_v24 = vsub.f32 %v3477_v3, %v592_v22  ;;  %v3513_v25 = vsub.f32 %v3479_v4, %v594_v23  ;;  %v675_v23 = vshrl.u32 %v674_v16, 7 }
  0xa7   : > { %v572_v26 = vpop.xlane.xlu0 %571  ;;  %v578_v27 = vpop.xlane.xlu1 %577 }
  0xa8   : > { %v593_v28 = vmul.f32 0.015625, %v572_v26  ;;  %v595_v29 = vmul.f32 0.015625, %v578_v27  ;;  %v608_v30 = vmul.f32 %v3510_v24, %v3510_v24  ;;  %v610_v31 = vmul.f32 %v3513_v25, %v3513_v25 }
  0xaa   : > { %v3520_v32 = vsub.f32 %v3481_v5, %v593_v28  ;;  %v3523_v33 = vsub.f32 %v3483_v6, %v595_v29  ;;  %v616_v34 = vsel %vm566_vm0, %v608_v30, 0.0  ;;  %v622_v37 = vsel %vm566_vm0, %v610_v31, 0.0  ;;  %v672_v28 = vld [vmem:[%s4192_s27] sm:$0x1] }
  0xab   : > { %617 = vadd.xlane.f32.xlu0 %v616_v34  ;;  %v581_v35 = vpop.xlane.xlu0 %580  ;;  %v584_v36 = vpop.xlane.xlu1 %583 }
  0xac   : > { %v596_v38 = vmul.f32 0.015625, %v581_v35  ;;  %v597_v39 = vmul.f32 0.015625, %v584_v36  ;;  %v609_v40 = vmul.f32 %v3520_v32, %v3520_v32  ;;  %v611_v41 = vmul.f32 %v3523_v33, %v3523_v33 }
  0xad   : > { %v673_v35 = vunpack.c.l.bf16 %v672_v28  ;;  %v3590_v36 = vsub.s32 0, %v675_v23  ;;  %v3221_v28 = vld [vmem:[%s4178_s7 + $0x10] sm:$0xff]  }
  0xae   : > { %v3532_v42 = vsub.f32 %v3485_v8, %v596_v38  ;;  %v3535_v43 = vsub.f32 %v3487_v9, %v597_v39  ;;  %v619_v44 = vsel %vm566_vm0, %v609_v40, 0.0  ;;  %v625_v47 = vsel %vm566_vm0, %v611_v41, 0.0  ;;  %v686_v39 = vld [vmem:[%s4173_s2] sm:$0x1] }
  0xaf   : > { %623 = vadd.xlane.f32.xlu0 %v622_v37  ;;  %620 = vadd.xlane.f32.xlu1 %v619_v44  ;;  %v587_v45 = vpop.xlane.xlu0 %586  ;;  %v590_v46 = vpop.xlane.xlu1 %589 }
  0xb0   : > { %v598_v48 = vmul.f32 0.015625, %v587_v45  ;;  %v599_v49 = vmul.f32 0.015625, %v590_v46  ;;  %v612_v50 = vmul.f32 %v3532_v42, %v3532_v42  ;;  %v613_v51 = vmul.f32 %v3535_v43, %v3535_v43 }
  0xb2   : > { %v3544_v52 = vsub.f32 %v3489_v10, %v598_v48  ;;  %v3547_v53 = vsub.f32 %v3491_v11, %v599_v49  ;;  %v628_v54 = vsel %vm566_vm0, %v612_v50, 0.0  ;;  %v631_v55 = vsel %vm566_vm0, %v613_v51, 0.0 }
  0xb3   : > { %626 = vadd.xlane.f32.xlu1 %v625_v47  ;;  %629 = vadd.xlane.f32.xlu0 %v628_v54  ;;  %v677_v47 = vrot.slane %v673_v35, %v3590_v36  ;;  %v687_v48 = vunpack.c.l.bf16 %v686_v39 }
  0xb4   : > { %v614_v56 = vmul.f32 %v3544_v52, %v3544_v52  ;;  %v615_v57 = vmul.f32 %v3547_v53, %v3547_v53 }
  0xb6   : > { %v634_v58 = vsel %vm566_vm0, %v614_v56, 0.0  ;;  %v637_v59 = vsel %vm566_vm0, %v615_v57, 0.0  ;;  %v691_v57 = vrot.slane %v687_v48, %v3590_v36 }
  0xb7   : > { %632 = vadd.xlane.f32.xlu1 %v631_v55  ;;  %635 = vadd.xlane.f32.xlu0 %v634_v58 }
  0xbb   : > { %638 = vadd.xlane.f32.xlu1 %v637_v59 }
 0x138   : > { %v618_v13 = vpop.xlane.xlu0 %617 }
 0x139   : > { %v640_v14 = vmul.f32 0.015625, %v618_v13 }
 0x13b   : > { %v648_v15 = vadd.f32 1e-06, %v640_v14 }
 0x13c   : > { %v621_v17 = vpop.xlane.xlu1 %620  ;;  %v624_v18 = vpop.xlane.xlu0 %623 }
 0x13d   : > { %3251 = vrsqrt.f32 %v648_v15  ;;  %v641_v19 = vmul.f32 0.015625, %v621_v17  ;;  %v642_v20 = vmul.f32 0.015625, %v624_v18 }
 0x13f   : > { %v649_v21 = vadd.f32 1e-06, %v641_v19  ;;  %v650_v22 = vadd.f32 1e-06, %v642_v20  ;;  %v3220_v20 = vld [vmem:[%s4178_s7 + $0x8] sm:$0xff]  }
 0x140   : > { %v627_v26 = vpop.xlane.xlu1 %626  ;;  %v630_v27 = vpop.xlane.xlu0 %629 }
 0x141   : > { %3253 = vrsqrt.f32 %v649_v21  ;;  %v643_v29 = vmul.f32 0.015625, %v627_v26  ;;  %v644_v30 = vmul.f32 0.015625, %v630_v27 }
 0x142   : > { %3255 = vrsqrt.f32 %v650_v22 }
 0x143   : > { %v651_v31 = vadd.f32 1e-06, %v643_v29  ;;  %v652_v34 = vadd.f32 1e-06, %v644_v30 }
 0x144   : > { %v633_v37 = vpop.xlane.xlu1 %632  ;;  %v636_v38 = vpop.xlane.xlu0 %635 }
 0x145   : > { %3257 = vrsqrt.f32 %v651_v31  ;;  %v645_v40 = vmul.f32 0.015625, %v633_v37  ;;  %v646_v41 = vmul.f32 0.015625, %v636_v38  ;;  %v712_v31 = vld [vmem:[%s4175_s4] sm:$0x1] }
 0x146   : > { %3259 = vrsqrt.f32 %v652_v34  ;;  %v827_v34 = vld [vmem:[%s4177_s6] sm:$0x1]  ;;  %v713_v35 = vunpack.c.l.bf16 %v712_v31 }
 0x147   : > { %v3252_v44 = vpop.eup %3251  ;;  %v653_v45 = vadd.f32 1e-06, %v645_v40  ;;  %v654_v46 = vadd.f32 1e-06, %v646_v41  ;;  %v828_v37 = vunpack.c.l.bf16 %v827_v34 }
 0x148   : > { %v664_v49 = vmul.f32 %v3252_v44, %v3510_v24  ;;  %v639_v50 = vpop.xlane.xlu1 %638  ;;  %v717_v38 = vrot.slane %v713_v35, %v3590_v36 }
 0x149   : > { %3261 = vrsqrt.f32 %v653_v45  ;;  %v647_v51 = vmul.f32 0.015625, %v639_v50  ;;  %v832_v39 = vrot.slane %v828_v37, %v3590_v36 }
 0x14a   : > { %3263 = vrsqrt.f32 %v654_v46  ;;  %v678_v58 = vmul.f32 %v677_v47, %v664_v49 }
 0x14b   : > { %v3254_v54 = vpop.eup %3253  ;;  %v655_v55 = vadd.f32 1e-06, %v647_v51 }
 0x14c   : > { %v3256_v56 = vpop.eup %3255  ;;  %v665_v59 = vmul.f32 %v3254_v54, %v3520_v32  ;;  %v692_v0 = vadd.f32 %v691_v57, %v678_v58 }
 0x14d   : > { %v666_v60 = vmul.f32 %v3256_v56, %v3513_v25  ;;  %3265 = vrsqrt.f32 %v655_v55 }
 0x14e   : > { %v679_v61 = vmul.f32 %v677_v47, %v665_v59 }
 0x14f   : > { %v3258_v62 = vpop.eup %3257  ;;  %v680_v1 = vmul.f32 %v677_v47, %v666_v60 }
 0x150   : > { %v3260_v63 = vpop.eup %3259  ;;  %v693_v24 = vadd.f32 %v691_v57, %v679_v61  ;;  %v667_v2 = vmul.f32 %v3258_v62, %v3523_v33 }
 0x151   : > { %v668_v7 = vmul.f32 %v3260_v63, %v3532_v42  ;;  %v694_v32 = vadd.f32 %v691_v57, %v680_v1 }
 0x152   : > { %v681_v13 = vmul.f32 %v677_v47, %v667_v2  ;;  %v3602_v14 = vpack.c.bf16 %v693_v24, %v692_v0  ;;  %v930_v0 = vld [vmem:[%s4179_s8] sm:$0x1] }
 0x153   : > { %v3262_v15 = vpop.eup %3261  ;;  %v682_v16 = vmul.f32 %v677_v47, %v668_v7 }
 0x154   : > { %v3264_v17 = vpop.eup %3263  ;;  %v695_v18 = vadd.f32 %v691_v57, %v681_v13  ;;  %v669_v25 = vmul.f32 %v3262_v15, %v3535_v43  ;;  %2971 = vmatprep.mubr.msk.bf16.mxu0 %vm566_vm0, %v3602_v14  ;;  %2987 = vmatprep.mubr.msk.bf16.mxu1 %vm566_vm0, %v3602_v14 }
 0x155   : > { %v670_v33 = vmul.f32 %v3264_v17, %v3544_v52  ;;  %v696_v22 = vadd.f32 %v691_v57, %v682_v16  ;;  %v931_v17 = vunpack.c.l.bf16 %v930_v0  ;;  %v3224_v0 = vld [vmem:[%s4176_s5 + $0x28] sm:$0xff]  }
 0x156   : > { %v683_v19 = vmul.f32 %v677_v47, %v669_v25  ;;  %v3610_v42 = vpack.c.bf16 %v695_v18, %v694_v32 }
 0x157   : > { %v3266_v21 = vpop.eup %3265  ;;  %v684_v26 = vmul.f32 %v677_v47, %v670_v33 }
 0x158   : > { %v697_v23 = vadd.f32 %v691_v57, %v683_v19  ;;  %v671_v43 = vmul.f32 %v3266_v21, %v3547_v53  ;;  %2972 = vmatmul.mubr.msk.bf16.vlgmr.msra.gmra.mrb[0].mxu0 %vm566_vm0, %v3610_v42  ;;  %2988 = vmatmul.mubr.msk.bf16.vlgmr.msra.gmra.mrb[0].mxu1 %vm566_vm0, %v3610_v42 }
 0x159   : > { %2996 = vmatpush3.bf16.msra.mxu0 %v3584_v12  ;;  %v698_v29 = vadd.f32 %v691_v57, %v684_v26  ;;  %v3222_v12 = vld [vmem:[%s4178_s7 + $0x18] sm:$0xff]  }
 0x15a   : > { %v685_v52 = vmul.f32 %v677_v47, %v671_v43  ;;  %v3621_v27 = vpack.c.bf16 %v697_v23, %v696_v22  ;;  %2997 = vmatprep.subr.bf16.mxu0 %v3220_v20 }
 0x15c   : > { %v699_v30 = vadd.f32 %v691_v57, %v685_v52  ;;  %2975 = vmatprep.mubr.msk.bf16.mxu0 %vm566_vm0, %v3621_v27  ;;  %2991 = vmatprep.mubr.msk.bf16.mxu1 %vm566_vm0, %v3621_v27 }
 0x15d   : > { %2998 = vmatpush3.bf16.msra.mxu0 %v3220_v20 }
 0x15e   : > { %v3630_v53 = vpack.c.bf16 %v699_v30, %v698_v29  ;;  %2999 = vmatprep.subr.bf16.mxu0 %v3221_v28  ;;  %v935_v30 = vrot.slane %v931_v17, %v3590_v36 }
 0x160   : > { %2976 = vmatmul.mubr.msk.bf16.gmra.mrb[4].mxu0 %vm566_vm0, %v3630_v53  ;;  %2992 = vmatmul.mubr.msk.bf16.gmra.mrb[4].mxu1 %vm566_vm0, %v3630_v53 }
 0x161   : > { %3000 = vmatpush3.bf16.msra.mxu0 %v3221_v28  ;;  %3003 = vmatprep.mubr.msk.bf16.mxu0 %vm566_vm0, %v3602_v14 }
 0x162   : > { %3001 = vmatprep.subr.bf16.mxu0 %v3222_v12 }
 0x165   : > { %3002 = vmatpush3.bf16.msra.mxu0 %v3222_v12 }
 0x168   : > { %3004 = vmatmul.mubr.msk.bf16.vlgmr.msra.gmra.mrb[8].mxu0 %vm566_vm0, %v3610_v42 }
 0x169   : > { %3007 = vmatprep.mubr.msk.bf16.mxu0 %vm566_vm0, %v3621_v27 }
 0x170   : > { %3008 = vmatmul.mubr.msk.bf16.gmra.mrb[12].mxu0 %vm566_vm0, %v3630_v53 }
 0x22b   : > { %v2973_v40 = vpop.f32.mrb[0].mxu0  ;;  %v2989_v41 = vpop.f32.mrb[0].mxu1 }
 0x22c   : > { %v788_v44 = vpop.f32.mrb[1].mxu0  ;;  %v891_v45 = vpop.f32.mrb[1].mxu1  ;;  %v3655_v48 = vadd.f32 %v2973_v40, %v717_v38  ;;  %v900_v49 = vadd.f32 %v2989_v41, %v832_v39 }
 0x22d   : > { %v2974_v46 = vpop.f32.mrb[2].mxu0  ;;  %v2990_v47 = vpop.f32.mrb[2].mxu1  ;;  %v789_v56 = vadd.f32 %v788_v44, %v717_v38  ;;  %v892_v57 = vadd.f32 %v891_v45, %v832_v39 }
 0x22e   : > { %v3657_v50 = vadd.f32 %v2974_v46, %v717_v38  ;;  %v903_v51 = vadd.f32 %v2990_v47, %v832_v39  ;;  %v791_v54 = vpop.f32.mrb[3].mxu0  ;;  %v894_v55 = vpop.f32.mrb[3].mxu1 }
 0x22f   : > { %v792_v58 = vadd.f32 %v791_v54, %v717_v38  ;;  %v895_v59 = vadd.f32 %v894_v55, %v832_v39 }
 0x230   : > { %v1026_v60 = vpack.c.bf16 %v3657_v50, %v3655_v48  ;;  %v1030_v61 = vpack.c.bf16 %v903_v51, %v900_v49 }
 0x231   : > { %v1025_v62 = vpack.c.bf16 %v792_v58, %v789_v56  ;;  %v1029_v63 = vpack.c.bf16 %v895_v59, %v892_v57 }
 0x232   : > { %v1050_v31 = vsel %vm1033_vm1, %v1030_v61, 0 }
 0x233   : > { %v2977_v24 = vpop.f32.mrb[4].mxu0  ;;  %v2993_v1 = vpop.f32.mrb[4].mxu1  ;;  %3195 = vmatprep.subr.msk.bf16.mxu1 %vm1033_vm1, %v1029_v63  ;;  %3019 = vmatprep.mubr.msk.bf16.mxu1 %vm1033_vm1, %v1025_v62  ;;  %v1047_v2 = vsel %vm1033_vm1, %v1029_v63, 0  ;;  %v3223_v62 = vld [vmem:[%s4176_s5 + $0x20] sm:$0xff]  }
 0x234   : > { %v804_v7 = vpop.f32.mrb[5].mxu0  ;;  %v907_v13 = vpop.f32.mrb[5].mxu1  ;;  %3012 = vmatpush3.bf16.xpose.msra.mxu1 %v1047_v2  ;;  %v3668_v32 = vadd.f32 %v2977_v24, %v717_v38  ;;  %v916_v18 = vadd.f32 %v2993_v1, %v832_v39  ;;  %v3225_v24 = vld [vmem:[%s4176_s5 + $0x30] sm:$0xff]   ;;  %v3226_v1 = vld [vmem:[%s4176_s5 + $0x38] sm:$0xff]  }
 0x235   : > { %v2978_v15 = vpop.f32.mrb[6].mxu0  ;;  %v2994_v16 = vpop.f32.mrb[6].mxu1  ;;  %3196 = vmatprep.subr.msk.bf16.mxu1 %vm1033_vm1, %v1030_v61  ;;  %v805_v21 = vadd.f32 %v804_v7, %v717_v38  ;;  %v908_v22 = vadd.f32 %v907_v13, %v832_v39 }
 0x236   : > { %v816_v25 = vadd.f32 %v2978_v15, %v717_v38  ;;  %v919_v33 = vadd.f32 %v2994_v16, %v832_v39  ;;  %v807_v19 = vpop.f32.mrb[7].mxu0  ;;  %v910_v20 = vpop.f32.mrb[7].mxu1 }
 0x237   : > { %v808_v23 = vadd.f32 %v807_v19, %v717_v38  ;;  %v911_v26 = vadd.f32 %v910_v20, %v832_v39 }
 0x238   : > { %v1028_v43 = vpack.c.bf16 %v816_v25, %v3668_v32  ;;  %v1032_v52 = vpack.c.bf16 %v919_v33, %v916_v18  ;;  %v2746_v33 = vld [vmem:[%s4177_s6 + $0x1] sm:$0x1] }
 0x239   : > { %v1027_v28 = vpack.c.bf16 %v808_v23, %v805_v21  ;;  %v1031_v29 = vpack.c.bf16 %v911_v26, %v908_v22  ;;  %v1428_v26 = vunpack.c.l.bf16 %v2746_v33 }
 0x23a   : > { %v1056_v63 = vsel %vm1033_vm1, %v1032_v52, 0 }
 0x23b   : > { %v3005_v12 = vpop.f32.mrb[8].mxu0  ;;  %v1053_v47 = vsel %vm1033_vm1, %v1031_v29, 0 }
 0x23c   : > { %v994_v34 = vpop.f32.mrb[9].mxu0  ;;  %3014 = vmatpush3.bf16.xpose.msra.mxu1 %v1050_v31  ;;  %v1003_v37 = vadd.f32 %v3005_v12, %v935_v30  ;;  %v1432_v12 = vrot.slane %v1428_v26, %v3590_v36 }
 0x23d   : > { %v3006_v35 = vpop.f32.mrb[10].mxu0  ;;  %3197 = vmatprep.subr.msk.bf16.mxu1 %vm1033_vm1, %v1031_v29  ;;  %v995_v38 = vadd.f32 %v994_v34, %v935_v30 }
 0x23e   : > { %v1006_v40 = vadd.f32 %v3006_v35, %v935_v30  ;;  %v997_v41 = vpop.f32.mrb[11].mxu0 }
 0x23f   : > { %v998_v39 = vadd.f32 %v997_v41, %v935_v30 }
 0x240   : > { %v1216_v44 = vpack.c.bf16 %v1006_v40, %v1003_v37 }
 0x241   : > { %v1215_v45 = vpack.c.bf16 %v998_v39, %v995_v38 }
 0x243   : > { %v3009_v46 = vpop.f32.mrb[12].mxu0  ;;  %3027 = vmatprep.subr.bf16.mxu0 %v1215_v45 }
 0x244   : > { %v1010_v49 = vpop.f32.mrb[13].mxu0  ;;  %3016 = vmatpush3.bf16.xpose.msra.mxu1 %v1053_v47  ;;  %3028 = vmatpush3.bf16.msra.mxu0 %v1215_v45  ;;  %v1019_v54 = vadd.f32 %v3009_v46, %v935_v30 }
 0x245   : > { %v3010_v51 = vpop.f32.mrb[14].mxu0  ;;  %3198 = vmatprep.subr.msk.bf16.mxu1 %vm1033_vm1, %v1032_v52  ;;  %3029 = vmatprep.subr.bf16.mxu0 %v1216_v44  ;;  %v1011_v57 = vadd.f32 %v1010_v49, %v935_v30 }
 0x246   : > { %v1022_v55 = vadd.f32 %v3010_v51, %v935_v30  ;;  %v1013_v56 = vpop.f32.mrb[15].mxu0 }
 0x247   : > { %v1014_v58 = vadd.f32 %v1013_v56, %v935_v30 }
 0x248   : > { %v1218_v59 = vpack.c.bf16 %v1022_v55, %v1019_v54  ;;  %3030 = vmatpush3.bf16.msra.mxu0 %v1216_v44 }
 0x249   : > { %v1217_v61 = vpack.c.bf16 %v1014_v58, %v1011_v57 }
 0x24b   : > { %3031 = vmatprep.subr.bf16.mxu0 %v1217_v61 }
 0x24c   : > { %3018 = vmatpush3.bf16.xpose.msra.mxu1 %v1056_v63  ;;  %3032 = vmatpush3.bf16.msra.mxu0 %v1217_v61 }
 0x24d   : > { %3033 = vmatprep.subr.bf16.mxu0 %v1218_v59  ;;  %3059 = vmatprep.subr.bf16.mxu1 %v3223_v62 }
 0x250   : > { %3034 = vmatpush3.bf16.msra.mxu0 %v1218_v59 }
 0x253   : > { %3020 = vmatmul.mubr.msk.bf16.vlgmr.msra.gmra.mrb[8].mxu1 %vm1033_vm1, %v1026_v60 }
 0x254   : > { %3023 = vmatprep.mubr.msk.bf16.mxu1 %vm1033_vm1, %v1027_v28  ;;  %3060 = vmatpush3.bf16.msra.mxu1 %v3223_v62 }
 0x255   : > { %3061 = vmatprep.subr.bf16.mxu1 %v3224_v0 }
 0x258   : > { %3062 = vmatpush3.bf16.msra.mxu1 %v3224_v0 }
 0x259   : > { %3063 = vmatprep.subr.bf16.mxu1 %v3225_v24 }
 0x25b   : > { %3024 = vmatmul.mubr.msk.bf16.gmra.mrb[12].mxu1 %vm1033_vm1, %v1028_v43 }
 0x25c   : > { %3064 = vmatpush3.bf16.msra.mxu1 %v3225_v24  ;;  %3067 = vmatprep.mubr.msk.bf16.mxu1 %vm566_vm0, %v3602_v14 }
 0x25d   : > { %3065 = vmatprep.subr.bf16.mxu1 %v3226_v1 }
 0x260   : > { %3066 = vmatpush3.bf16.msra.mxu1 %v3226_v1  ;;  %v3227_v1 = vld [vmem:[%s4174_s3 + $0x20] sm:$0xff]  }
 0x261   : > { %3043 = vmatprep.subr.bf16.mxu0 %v3227_v1 }
 0x263   : > { %3068 = vmatmul.mubr.msk.bf16.vlgmr.msra.gmra.mrb[16].mxu1 %vm566_vm0, %v3610_v42 }
 0x264   : > { %3071 = vmatprep.mubr.msk.bf16.mxu1 %vm566_vm0, %v3621_v27 }
 0x26b   : > { %3072 = vmatmul.mubr.msk.bf16.gmra.mrb[20].mxu1 %vm566_vm0, %v3630_v53 }
 0x326   : > { %v3021_v48 = vpop.f32.mrb[8].mxu1 }
 0x327   : > { %v1092_v50 = vpop.f32.mrb[9].mxu1  ;;  %v3705_v13 = vmul.f32 0.17677669, %v3021_v48 }
 0x328   : > { %v3703_v60 = vmul.f32 0.17677669, %v1092_v50  ;;  %v3022_v2 = vpop.f32.mrb[10].mxu1 }
 0x329   : > { %v1095_v7 = vpop.f32.mrb[11].mxu1  ;;  %v3711_v17 = vmul.f32 0.17677669, %v3022_v2  ;;  %v1137_v25 = vsel %vm566_vm0, %v3705_v13, -inf }
 0x32a   : > { %v3707_v15 = vmul.f32 0.17677669, %v1095_v7  ;;  %v1131_v16 = vsel %vm566_vm0, %v3703_v60, -inf }
 0x32b   : > { %1132 = vmax.xlane.f32.xlu0 %v1131_v16  ;;  %v1140_v22 = vsel %vm566_vm0, %v3711_v17, -inf }
 0x32c   : > { %v1134_v32 = vsel %vm566_vm0, %v3707_v15, -inf }
 0x32d   : > { %1135 = vmax.xlane.f32.xlu1 %v1134_v32 }
 0x32e   : > { %v3025_v18 = vpop.f32.mrb[12].mxu1 }
 0x32f   : > { %1138 = vmax.xlane.f32.xlu0 %v1137_v25  ;;  %v1108_v19 = vpop.f32.mrb[13].mxu1  ;;  %v3724_v43 = vmul.f32 0.17677669, %v3025_v18 }
 0x330   : > { %v3720_v20 = vmul.f32 0.17677669, %v1108_v19  ;;  %v3026_v21 = vpop.f32.mrb[14].mxu1 }
 0x331   : > { %1141 = vmax.xlane.f32.xlu1 %v1140_v22  ;;  %v1111_v23 = vpop.f32.mrb[15].mxu1  ;;  %v3730_v29 = vmul.f32 0.17677669, %v3026_v21  ;;  %v1149_v34 = vsel %vm566_vm0, %v3724_v43, -inf }
 0x332   : > { %v3726_v52 = vmul.f32 0.17677669, %v1111_v23  ;;  %v1143_v28 = vsel %vm566_vm0, %v3720_v20, -inf }
 0x333   : > { %1144 = vmax.xlane.f32.xlu0 %v1143_v28  ;;  %v1152_v40 = vsel %vm566_vm0, %v3730_v29, -inf }
 0x334   : > { %v1146_v30 = vsel %vm566_vm0, %v3726_v52, -inf }
 0x335   : > { %1147 = vmax.xlane.f32.xlu1 %v1146_v30 }
 0x336   : > { %v3069_v31 = vpop.f32.mrb[16].mxu1 }
 0x337   : > { %1150 = vmax.xlane.f32.xlu0 %v1149_v34  ;;  %v1491_v35 = vpop.f32.mrb[17].mxu1  ;;  %v1500_v41 = vadd.f32 %v3069_v31, %v1432_v12 }
 0x338   : > { %v3070_v37 = vpop.f32.mrb[18].mxu1  ;;  %v1492_v44 = vadd.f32 %v1491_v35, %v1432_v12 }
 0x339   : > { %v1503_v38 = vadd.f32 %v3070_v37, %v1432_v12  ;;  %v1494_v39 = vpop.f32.mrb[19].mxu1  ;;  %1153 = vmax.xlane.f32.xlu1 %v1152_v40 }
 0x33a   : > { %v1495_v45 = vadd.f32 %v1494_v39, %v1432_v12 }
 0x33b   : > { %v1632_v46 = vpack.c.bf16 %v1503_v38, %v1500_v41 }
 0x33c   : > { %v1631_v47 = vpack.c.bf16 %v1495_v45, %v1492_v44 }
 0x33d   : > { %v1651_v0 = vsel %vm1033_vm1, %v1632_v46, 0 }
 0x33e   : > { %v3073_v49 = vpop.f32.mrb[20].mxu1  ;;  %3199 = vmatprep.subr.msk.bf16.mxu1 %vm1033_vm1, %v1631_v47  ;;  %v1648_v51 = vsel %vm1033_vm1, %v1631_v47, 0 }
 0x33f   : > { %v1507_v54 = vpop.f32.mrb[21].mxu1  ;;  %3092 = vmatpush3.bf16.xpose.msra.mxu1 %v1648_v51  ;;  %v1516_v56 = vadd.f32 %v3073_v49, %v1432_v12 }
 0x340   : > { %v3074_v55 = vpop.f32.mrb[22].mxu1  ;;  %3200 = vmatprep.subr.msk.bf16.mxu1 %vm1033_vm1, %v1632_v46  ;;  %v1508_v59 = vadd.f32 %v1507_v54, %v1432_v12  ;;  %v3229_v46 = vld [vmem:[%s4174_s3 + $0x30] sm:$0xff]   ;;  %v3230_v54 = vld [vmem:[%s4174_s3 + $0x38] sm:$0xff]  }
 0x341   : > { %v1519_v57 = vadd.f32 %v3074_v55, %v1432_v12  ;;  %v1510_v58 = vpop.f32.mrb[23].mxu1  ;;  %v3231_v55 = vld [vmem:[%s4178_s7 + $0x20] sm:$0xff]  }
 0x342   : > { %v1511_v61 = vadd.f32 %v1510_v58, %v1432_v12  ;;  %v3234_v58 = vld [vmem:[%s4178_s7 + $0x38] sm:$0xff]  }
 0x343   : > { %v1634_v62 = vpack.c.bf16 %v1519_v57, %v1516_v56  ;;  %v3232_v56 = vld [vmem:[%s4178_s7 + $0x28] sm:$0xff]   ;;  %v3233_v57 = vld [vmem:[%s4178_s7 + $0x30] sm:$0xff]  }
 0x344   : > { %v1633_v63 = vpack.c.bf16 %v1511_v61, %v1508_v59 }
 0x345   : > { %v1657_v48 = vsel %vm1033_vm1, %v1634_v62, 0 }
 0x346   : > { %v1654_v24 = vsel %vm1033_vm1, %v1633_v63, 0 }
 0x347   : > { %3094 = vmatpush3.bf16.xpose.msra.mxu1 %v1651_v0 }
 0x348   : > { %3201 = vmatprep.subr.msk.bf16.mxu1 %vm1033_vm1, %v1633_v63 }
 0x34f   : > { %3096 = vmatpush3.bf16.xpose.msra.mxu1 %v1654_v24 }
 0x350   : > { %3202 = vmatprep.subr.msk.bf16.mxu1 %vm1033_vm1, %v1634_v62 }
 0x357   : > { %3098 = vmatpush3.bf16.xpose.msra.mxu1 %v1657_v48 }
 0x3b8   : > { %v1133_v50 = vpop.xlane.xlu0 %1132 }
 0x3b9   : > { %v1155_v2 = vsub.f32 %v3703_v60, %v1133_v50 }
 0x3ba   : > { %v1136_v7 = vpop.xlane.xlu1 %1135 }
 0x3bb   : > { %v1163_v16 = vmul.f32 1.442695, %v1155_v2  ;;  %v1156_v32 = vsub.f32 %v3707_v15, %v1136_v7 }
 0x3bc   : > { %v1139_v18 = vpop.xlane.xlu0 %1138 }
 0x3bd   : > { %v1165_v25 = vmul.f32 1.442695, %v1156_v32  ;;  %v1157_v33 = vsub.f32 %v3705_v13, %v1139_v18  ;;  %3267 = vpow2.f32 %v1163_v16 }
 0x3be   : > { %v1142_v19 = vpop.xlane.xlu1 %1141 }
 0x3bf   : > { %3269 = vpow2.f32 %v1165_v25  ;;  %v1167_v21 = vmul.f32 1.442695, %v1157_v33  ;;  %v1158_v22 = vsub.f32 %v3711_v17, %v1142_v19 }
 0x3c0   : > { %v1145_v23 = vpop.xlane.xlu0 %1144 }
 0x3c1   : > { %v1169_v26 = vmul.f32 1.442695, %v1158_v22  ;;  %v1159_v28 = vsub.f32 %v3720_v20, %v1145_v23  ;;  %3271 = vpow2.f32 %v1167_v21  ;;  %v2763_v22 = vld [vmem:[%s4179_s8 + $0x1] sm:$0x1] }
 0x3c2   : > { %v1148_v60 = vpop.xlane.xlu1 %1147 }
 0x3c3   : > { %3273 = vpow2.f32 %v1169_v26  ;;  %v1171_v30 = vmul.f32 1.442695, %v1159_v28  ;;  %v1160_v15 = vsub.f32 %v3726_v52, %v1148_v60 }
 0x3c4   : > { %v1151_v12 = vpop.xlane.xlu0 %1150 }
 0x3c5   : > { %v1173_v31 = vmul.f32 1.442695, %v1160_v15  ;;  %v1161_v13 = vsub.f32 %v3724_v43, %v1151_v12  ;;  %3275 = vpow2.f32 %v1171_v30  ;;  %v1533_v15 = vunpack.c.l.bf16 %v2763_v22 }
 0x3c6   : > { %v1154_v34 = vpop.xlane.xlu1 %1153 }
 0x3c7   : > { %3277 = vpow2.f32 %v1173_v31  ;;  %v1175_v35 = vmul.f32 1.442695, %v1161_v13  ;;  %v1162_v17 = vsub.f32 %v3730_v29, %v1154_v34  ;;  %v3758_v37 = vpop.eup %3267  ;;  %v3228_v29 = vld [vmem:[%s4174_s3 + $0x28] sm:$0xff]  }
 0x3c9   : > { %v3760_v40 = vpop.eup %3269  ;;  %v1177_v20 = vmul.f32 1.442695, %v1162_v17  ;;  %3279 = vpow2.f32 %v1175_v35  ;;  %v1537_v35 = vrot.slane %v1533_v15, %v3590_v36 }
 0x3ca   : > { %v1211_v41 = vpack.c.bf16 %v3760_v40, %v3758_v37 }
 0x3cb   : > { %3281 = vpow2.f32 %v1177_v20  ;;  %v3764_v52 = vpop.eup %3271 }
 0x3cc   : > { %3035 = vmatprep.mubr.msk.bf16.mxu0 %vm566_vm0, %v1211_v41 }
 0x3cd   : > { %v3767_v43 = vpop.eup %3273 }
 0x3ce   : > { %v1212_v38 = vpack.c.bf16 %v3767_v43, %v3764_v52 }
 0x3cf   : > { %v3774_v39 = vpop.eup %3275 }
 0x3d0   : > { %3036 = vmatmul.mubr.msk.bf16.vlgmr.msra.gmra.mrb[16].mxu0 %vm566_vm0, %v1212_v38 }
 0x3d1   : > { %v3777_v44 = vpop.eup %3277  ;;  %3044 = vmatpush3.bf16.msra.mxu0 %v3227_v1 }
 0x3d2   : > { %3045 = vmatprep.subr.bf16.mxu0 %v3228_v29  ;;  %v1213_v45 = vpack.c.bf16 %v3777_v44, %v3774_v39 }
 0x3d3   : > { %v3784_v47 = vpop.eup %3279 }
 0x3d4   : > { %3039 = vmatprep.mubr.msk.bf16.mxu0 %vm566_vm0, %v1213_v45 }
 0x3d5   : > { %v3787_v49 = vpop.eup %3281  ;;  %3046 = vmatpush3.bf16.msra.mxu0 %v3228_v29 }
 0x3d6   : > { %3047 = vmatprep.subr.bf16.mxu0 %v3229_v46  ;;  %v1214_v51 = vpack.c.bf16 %v3787_v49, %v3784_v47 }
 0x3d8   : > { %3040 = vmatmul.mubr.msk.bf16.gmra.mrb[20].mxu0 %vm566_vm0, %v1214_v51 }
 0x3d9   : > { %3048 = vmatpush3.bf16.msra.mxu0 %v3229_v46  ;;  %3051 = vmatprep.mubr.msk.bf16.mxu0 %vm566_vm0, %v3602_v14 }
 0x3da   : > { %3049 = vmatprep.subr.bf16.mxu0 %v3230_v54 }
 0x3dd   : > { %3050 = vmatpush3.bf16.msra.mxu0 %v3230_v54 }
 0x3de   : > { %3075 = vmatprep.subr.bf16.mxu0 %v3231_v55 }
 0x3e0   : > { %3052 = vmatmul.mubr.msk.bf16.vlgmr.msra.gmra.mrb[24].mxu0 %vm566_vm0, %v3610_v42 }
 0x3e1   : > { %3055 = vmatprep.mubr.msk.bf16.mxu0 %vm566_vm0, %v3621_v27  ;;  %3076 = vmatpush3.bf16.msra.mxu0 %v3231_v55 }
 0x3e2   : > { %3077 = vmatprep.subr.bf16.mxu0 %v3232_v56 }
 0x3e5   : > { %3078 = vmatpush3.bf16.msra.mxu0 %v3232_v56 }
 0x3e6   : > { %3079 = vmatprep.subr.bf16.mxu0 %v3233_v57 }
 0x3e8   : > { %3056 = vmatmul.mubr.msk.bf16.gmra.mrb[28].mxu0 %vm566_vm0, %v3630_v53 }
 0x3e9   : > { %3080 = vmatpush3.bf16.msra.mxu0 %v3233_v57  ;;  %3083 = vmatprep.mubr.msk.bf16.mxu0 %vm566_vm0, %v3602_v14 }
 0x3ea   : > { %3081 = vmatprep.subr.bf16.mxu0 %v3234_v58 }
 0x3ed   : > { %3082 = vmatpush3.bf16.msra.mxu0 %v3234_v58 }
 0x3f0   : > { %3084 = vmatmul.mubr.msk.bf16.vlgmr.msra.gmra.mrb[32].mxu0 %vm566_vm0, %v3610_v42  ;;  %v2729_v42 = vld [vmem:[%s4175_s4 + $0x1] sm:$0x1] }
 0x3f1   : > { %3087 = vmatprep.mubr.msk.bf16.mxu0 %vm566_vm0, %v3621_v27 }
 0x3f8   : > { %3088 = vmatmul.mubr.msk.bf16.gmra.mrb[36].mxu0 %vm566_vm0, %v3630_v53  ;;  %v1323_v53 = vunpack.c.l.bf16 %v2729_v42 }
 0x3fa   : > { %v1327_v1 = vrot.slane %v1323_v53, %v3590_v36 }
 0x4a3   : > { %v3823_v59 = vpop.f32.mrb[16].mxu0 }
 0x4a4   : > { %v3825_v61 = vpop.f32.mrb[17].mxu0 }
 0x4a5   : > { %v3827_v62 = vpop.f32.mrb[18].mxu0 }
 0x4a6   : > { %v3829_v63 = vpop.f32.mrb[19].mxu0 }
 0x4ab   : > { %v3831_v14 = vpop.f32.mrb[20].mxu0 }
 0x4ac   : > { %v3836_v0 = vpop.f32.mrb[21].mxu0 }
 0x4ad   : > { %v3838_v27 = vpop.f32.mrb[22].mxu0 }
 0x4ae   : > { %v3840_v24 = vpop.f32.mrb[23].mxu0 }
 0x4b3   : > { %v3053_v48 = vpop.f32.mrb[24].mxu0 }
 0x4b4   : > { %v1386_v50 = vpop.f32.mrb[25].mxu0  ;;  %v1395_v7 = vadd.f32 %v3053_v48, %v1327_v1 }
 0x4b5   : > { %v3054_v2 = vpop.f32.mrb[26].mxu0  ;;  %v1387_v18 = vadd.f32 %v1386_v50, %v1327_v1 }
 0x4b6   : > { %v1398_v16 = vadd.f32 %v3054_v2, %v1327_v1  ;;  %v1389_v32 = vpop.f32.mrb[27].mxu0 }
 0x4b7   : > { %v1390_v25 = vadd.f32 %v1389_v32, %v1327_v1 }
 0x4b8   : > { %v1628_v33 = vpack.c.bf16 %v1398_v16, %v1395_v7 }
 0x4b9   : > { %v1627_v19 = vpack.c.bf16 %v1390_v25, %v1387_v18 }
 0x4bb   : > { %v3057_v21 = vpop.f32.mrb[28].mxu0  ;;  %3099 = vmatprep.mubr.msk.bf16.mxu1 %vm1033_vm1, %v1627_v19 }
 0x4bc   : > { %v1402_v23 = vpop.f32.mrb[29].mxu0  ;;  %3100 = vmatmul.mubr.msk.bf16.vlgmr.msra.gmra.mrb[24].mxu1 %vm1033_vm1, %v1628_v33  ;;  %v1411_v28 = vadd.f32 %v3057_v21, %v1327_v1 }
 0x4bd   : > { %v3058_v26 = vpop.f32.mrb[30].mxu0  ;;  %v1403_v12 = vadd.f32 %v1402_v23, %v1327_v1 }
 0x4be   : > { %v1414_v60 = vadd.f32 %v3058_v26, %v1327_v1  ;;  %v1405_v30 = vpop.f32.mrb[31].mxu0 }
 0x4bf   : > { %v1406_v31 = vadd.f32 %v1405_v30, %v1327_v1 }
 0x4c0   : > { %v1630_v13 = vpack.c.bf16 %v1414_v60, %v1411_v28 }
 0x4c1   : > { %v1629_v34 = vpack.c.bf16 %v1406_v31, %v1403_v12 }
 0x4c3   : > { %v3085_v17 = vpop.f32.mrb[32].mxu0  ;;  %3103 = vmatprep.mubr.msk.bf16.mxu1 %vm1033_vm1, %v1629_v34 }
 0x4c4   : > { %v1596_v20 = vpop.f32.mrb[33].mxu0  ;;  %3104 = vmatmul.mubr.msk.bf16.gmra.mrb[28].mxu1 %vm1033_vm1, %v1630_v13  ;;  %v1605_v38 = vadd.f32 %v3085_v17, %v1537_v35 }
 0x4c5   : > { %v3086_v41 = vpop.f32.mrb[34].mxu0  ;;  %v1597_v46 = vadd.f32 %v1596_v20, %v1537_v35 }
 0x4c6   : > { %v1608_v29 = vadd.f32 %v3086_v41, %v1537_v35  ;;  %v1599_v45 = vpop.f32.mrb[35].mxu0 }
 0x4c7   : > { %v1600_v51 = vadd.f32 %v1599_v45, %v1537_v35 }
 0x4c8   : > { %v1817_v54 = vpack.c.bf16 %v1608_v29, %v1605_v38 }
 0x4c9   : > { %v1816_v55 = vpack.c.bf16 %v1600_v51, %v1597_v46 }
 0x4cb   : > { %v3089_v56 = vpop.f32.mrb[36].mxu0  ;;  %3107 = vmatprep.subr.bf16.mxu0 %v1816_v55 }
 0x4cc   : > { %v1612_v57 = vpop.f32.mrb[37].mxu0  ;;  %3108 = vmatpush3.bf16.msra.mxu0 %v1816_v55  ;;  %v1621_v42 = vadd.f32 %v3089_v56, %v1537_v35 }
 0x4cd   : > { %v3090_v58 = vpop.f32.mrb[38].mxu0  ;;  %3109 = vmatprep.subr.bf16.mxu0 %v1817_v54  ;;  %v1613_v48 = vadd.f32 %v1612_v57, %v1537_v35 }
 0x4ce   : > { %v1624_v53 = vadd.f32 %v3090_v58, %v1537_v35  ;;  %v1615_v1 = vpop.f32.mrb[39].mxu0 }
 0x4cf   : > { %v1616_v50 = vadd.f32 %v1615_v1, %v1537_v35 }
 0x4d0   : > { %v1819_v2 = vpack.c.bf16 %v1624_v53, %v1621_v42  ;;  %3110 = vmatpush3.bf16.msra.mxu0 %v1817_v54 }
 0x4d1   : > { %v1818_v7 = vpack.c.bf16 %v1616_v50, %v1613_v48 }
 0x4d3   : > { %3111 = vmatprep.subr.bf16.mxu0 %v1818_v7 }
 0x4d4   : > { %3112 = vmatpush3.bf16.msra.mxu0 %v1818_v7 }
 0x4d5   : > { %3113 = vmatprep.subr.bf16.mxu0 %v1819_v2 }
 0x4d8   : > { %3114 = vmatpush3.bf16.msra.mxu0 %v1819_v2 }
 0x58f   : > { %v3101_v16 = vpop.f32.mrb[24].mxu1 }
 0x590   : > { %v1693_v32 = vpop.f32.mrb[25].mxu1  ;;  %v1726_v19 = vmul.f32 0.17677669, %v3101_v16 }
 0x591   : > { %v1724_v18 = vmul.f32 0.17677669, %v1693_v32  ;;  %v3102_v25 = vpop.f32.mrb[26].mxu1 }
 0x592   : > { %v1696_v33 = vpop.f32.mrb[27].mxu1  ;;  %v1727_v23 = vmul.f32 0.17677669, %v3102_v25  ;;  %v1738_v60 = vsel %vm566_vm0, %v1726_v19, -inf }
 0x593   : > { %v1725_v21 = vmul.f32 0.17677669, %v1696_v33  ;;  %v1732_v22 = vsel %vm566_vm0, %v1724_v18, -inf }
 0x594   : > { %1733 = vmax.xlane.f32.xlu0 %v1732_v22  ;;  %v1741_v31 = vsel %vm566_vm0, %v1727_v23, -inf }
 0x595   : > { %v1735_v26 = vsel %vm566_vm0, %v1725_v21, -inf }
 0x596   : > { %1736 = vmax.xlane.f32.xlu1 %v1735_v26 }
 0x597   : > { %v3105_v28 = vpop.f32.mrb[28].mxu1 }
 0x598   : > { %1739 = vmax.xlane.f32.xlu0 %v1738_v60  ;;  %v1709_v30 = vpop.f32.mrb[29].mxu1  ;;  %v1730_v34 = vmul.f32 0.17677669, %v3105_v28 }
 0x599   : > { %v1728_v15 = vmul.f32 0.17677669, %v1709_v30  ;;  %v3106_v12 = vpop.f32.mrb[30].mxu1 }
 0x59a   : > { %1742 = vmax.xlane.f32.xlu1 %v1741_v31  ;;  %v1712_v13 = vpop.f32.mrb[31].mxu1  ;;  %v1731_v20 = vmul.f32 0.17677669, %v3106_v12  ;;  %v1750_v38 = vsel %vm566_vm0, %v1730_v34, -inf }
 0x59b   : > { %v1729_v35 = vmul.f32 0.17677669, %v1712_v13  ;;  %v1744_v17 = vsel %vm566_vm0, %v1728_v15, -inf }
 0x59c   : > { %1745 = vmax.xlane.f32.xlu0 %v1744_v17  ;;  %v1753_v29 = vsel %vm566_vm0, %v1731_v20, -inf }
 0x59d   : > { %v1747_v41 = vsel %vm566_vm0, %v1729_v35, -inf }
 0x59e   : > { %1748 = vmax.xlane.f32.xlu1 %v1747_v41 }
 0x5a0   : > { %1751 = vmax.xlane.f32.xlu0 %v1750_v38 }
 0x5a2   : > { %1754 = vmax.xlane.f32.xlu1 %v1753_v29 }
 0x621   : > { %v1734_v45 = vpop.xlane.xlu0 %1733 }
 0x622   : > { %v1756_v46 = vsub.f32 %v1724_v18, %v1734_v45 }
 0x623   : > { %v1737_v51 = vpop.xlane.xlu1 %1736 }
 0x624   : > { %v1764_v54 = vmul.f32 1.442695, %v1756_v46  ;;  %v1757_v55 = vsub.f32 %v1725_v21, %v1737_v51 }
 0x625   : > { %v1740_v56 = vpop.xlane.xlu0 %1739 }
 0x626   : > { %3283 = vpow2.f32 %v1764_v54  ;;  %v1766_v57 = vmul.f32 1.442695, %v1757_v55  ;;  %v1758_v58 = vsub.f32 %v1726_v19, %v1740_v56  ;;  %v1179_v56 = vsel %vm566_vm0, %v3758_v37, 0.0 }
 0x627   : > { %v1743_v42 = vpop.xlane.xlu1 %1742  ;;  %v1194_v37 = vsel %vm566_vm0, %v3777_v44, 0.0  ;;  %v3896_v44 = vld [vmem:[%s4180_s9] sm:$0xff]  }
 0x628   : > { %3285 = vpow2.f32 %v1766_v57  ;;  %v1768_v53 = vmul.f32 1.442695, %v1758_v58  ;;  %v1759_v1 = vsub.f32 %v1727_v23, %v1743_v42  ;;  %v1182_v57 = vsel %vm566_vm0, %v3760_v40, 0.0 }
 0x629   : > { %v1746_v48 = vpop.xlane.xlu0 %1745  ;;  %v1185_v58 = vsel %vm566_vm0, %v3764_v52, 0.0  ;;  %v1188_v42 = vsel %vm566_vm0, %v3767_v43, 0.0  ;;  %v1197_v40 = vsel %vm566_vm0, %v3784_v47, 0.0  ;;  %v1200_v52 = vsel %vm566_vm0, %v3787_v49, 0.0  ;;  %v3235_v43 = vld [vmem:[%s4180_s9 + $0x10] sm:$0xff]  }
 0x62a   : > { %3287 = vpow2.f32 %v1768_v53  ;;  %v1770_v50 = vmul.f32 1.442695, %v1759_v1  ;;  %v1760_v2 = vsub.f32 %v1728_v15, %v1746_v48  ;;  %v1191_v53 = vsel %vm566_vm0, %v3774_v39, 0.0  ;;  %3123 = vmatprep.subr.bf16.mxu0 %v3235_v43  ;;  %v3236_v39 = vld [vmem:[%s4180_s9 + $0x18] sm:$0xff]  }
 0x62b   : > { %v1749_v7 = vpop.xlane.xlu1 %1748 }
 0x62c   : > { %3289 = vpow2.f32 %v1770_v50  ;;  %v1772_v16 = vmul.f32 1.442695, %v1760_v2  ;;  %v1761_v32 = vsub.f32 %v1729_v35, %v1749_v7 }
 0x62d   : > { %v1752_v18 = vpop.xlane.xlu0 %1751 }
 0x62e   : > { %3291 = vpow2.f32 %v1772_v16  ;;  %v1774_v25 = vmul.f32 1.442695, %v1761_v32  ;;  %v1762_v33 = vsub.f32 %v1730_v34, %v1752_v18 }
 0x62f   : > { %v1755_v21 = vpop.xlane.xlu1 %1754 }
 0x630   : > { %v3284_v22 = vpop.eup %3283  ;;  %3293 = vpow2.f32 %v1774_v25  ;;  %v1776_v19 = vmul.f32 1.442695, %v1762_v33  ;;  %v1763_v26 = vsub.f32 %v1731_v20, %v1755_v21 }
 0x631   : > { %v1780_v28 = vsel %vm566_vm0, %v3284_v22, 0.0 }
 0x632   : > { %v3286_v23 = vpop.eup %3285  ;;  %3295 = vpow2.f32 %v1776_v19  ;;  %v1778_v60 = vmul.f32 1.442695, %v1763_v26  ;;  %1781 = vadd.xlane.f32.xlu0 %v1780_v28 }
 0x633   : > { %v1783_v30 = vsel %vm566_vm0, %v3286_v23, 0.0  ;;  %v1812_v15 = vpack.c.bf16 %v3286_v23, %v3284_v22 }
 0x634   : > { %v3288_v12 = vpop.eup %3287  ;;  %3297 = vpow2.f32 %v1778_v60  ;;  %1784 = vadd.xlane.f32.xlu1 %v1783_v30 }
 0x635   : > { %3115 = vmatprep.mubr.msk.bf16.mxu0 %vm566_vm0, %v1812_v15  ;;  %v1786_v31 = vsel %vm566_vm0, %v3288_v12, 0.0 }
 0x636   : > { %v3290_v13 = vpop.eup %3289  ;;  %1787 = vadd.xlane.f32.xlu0 %v1786_v31 }
 0x637   : > { %v1813_v34 = vpack.c.bf16 %v3290_v13, %v3288_v12  ;;  %v1789_v35 = vsel %vm566_vm0, %v3290_v13, 0.0 }
 0x638   : > { %v3292_v17 = vpop.eup %3291  ;;  %1790 = vadd.xlane.f32.xlu1 %v1789_v35 }
 0x639   : > { %3116 = vmatmul.mubr.msk.bf16.vlgmr.msra.gmra.mrb[40].mxu0 %vm566_vm0, %v1813_v34  ;;  %v1792_v20 = vsel %vm566_vm0, %v3292_v17, 0.0 }
 0x63a   : > { %v3294_v41 = vpop.eup %3293  ;;  %1793 = vadd.xlane.f32.xlu0 %v1792_v20  ;;  %3124 = vmatpush3.bf16.msra.mxu0 %v3235_v43 }
 0x63b   : > { %v1795_v38 = vsel %vm566_vm0, %v3294_v41, 0.0  ;;  %v1814_v29 = vpack.c.bf16 %v3294_v41, %v3292_v17  ;;  %3125 = vmatprep.subr.bf16.mxu0 %v3236_v39 }
 0x63c   : > { %v3296_v45 = vpop.eup %3295  ;;  %1796 = vadd.xlane.f32.xlu1 %v1795_v38 }
 0x63d   : > { %3119 = vmatprep.mubr.msk.bf16.mxu0 %vm566_vm0, %v1814_v29  ;;  %v1798_v46 = vsel %vm566_vm0, %v3296_v45, 0.0 }
 0x63e   : > { %v3298_v51 = vpop.eup %3297  ;;  %1799 = vadd.xlane.f32.xlu0 %v1798_v46  ;;  %3126 = vmatpush3.bf16.msra.mxu0 %v3236_v39 }
 0x63f   : > { %v1801_v54 = vsel %vm566_vm0, %v3298_v51, 0.0  ;;  %v1815_v55 = vpack.c.bf16 %v3298_v51, %v3296_v45  ;;  %3135 = vmatprep.subr.bf16.mxu0 %v3896_v44 }
 0x640   : > { %1802 = vadd.xlane.f32.xlu1 %v1801_v54 }
 0x641   : > { %3120 = vmatmul.mubr.msk.bf16.gmra.mrb[44].mxu0 %vm566_vm0, %v1815_v55 }
 0x642   : > { %1180 = vadd.xlane.f32.xlu0 %v1179_v56 }
 0x644   : > { %1183 = vadd.xlane.f32.xlu1 %v1182_v57 }
 0x646   : > { %1186 = vadd.xlane.f32.xlu0 %v1185_v58 }
 0x648   : > { %1189 = vadd.xlane.f32.xlu1 %v1188_v42 }
 0x64a   : > { %1192 = vadd.xlane.f32.xlu0 %v1191_v53 }
 0x64c   : > { %1195 = vadd.xlane.f32.xlu1 %v1194_v37 }
 0x64e   : > { %1198 = vadd.xlane.f32.xlu0 %v1197_v40  ;;  %v3238_v40 = vld [vmem:[%s4180_s9 + $0x8] sm:$0xff]  }
 0x650   : > { %1201 = vadd.xlane.f32.xlu1 %v1200_v52 }
 0x6bf   : > { %v1782_v47 = vpop.xlane.xlu0 %1781 }
 0x6c1   : > { %v1785_v49 = vpop.xlane.xlu1 %1784 }
 0x6c3   : > { %v1788_v1 = vpop.xlane.xlu0 %1787 }
 0x6c5   : > { %v1791_v48 = vpop.xlane.xlu1 %1790 }
 0x6c7   : > { %v1794_v50 = vpop.xlane.xlu0 %1793 }
 0x6c9   : > { %v1797_v2 = vpop.xlane.xlu1 %1796 }
 0x6cb   : > { %v1800_v7 = vpop.xlane.xlu0 %1799 }
 0x6cd   : > { %v1803_v16 = vpop.xlane.xlu1 %1802 }
 0x6cf   : > { %v1181_v32 = vpop.xlane.xlu0 %1180 }
 0x6d0   : > { %3299 = vrcp.f32 %v1181_v32 }
 0x6d1   : > { %v1184_v18 = vpop.xlane.xlu1 %1183 }
 0x6d2   : > { %3301 = vrcp.f32 %v1184_v18 }
 0x6d3   : > { %v1187_v25 = vpop.xlane.xlu0 %1186 }
 0x6d4   : > { %3303 = vrcp.f32 %v1187_v25 }
 0x6d5   : > { %v1190_v33 = vpop.xlane.xlu1 %1189 }
 0x6d6   : > { %3305 = vrcp.f32 %v1190_v33 }
 0x6d7   : > { %v1193_v21 = vpop.xlane.xlu0 %1192 }
 0x6d8   : > { %3307 = vrcp.f32 %v1193_v21 }
 0x6d9   : > { %v1196_v22 = vpop.xlane.xlu1 %1195 }
 0x6da   : > { %v3300_v19 = vpop.eup %3299  ;;  %3309 = vrcp.f32 %v1196_v22 }
 0x6db   : > { %v1199_v26 = vpop.xlane.xlu0 %1198  ;;  %v3900_v60 = vmul.f32 %v3300_v19, %v3825_v61 }
 0x6dc   : > { %v3302_v28 = vpop.eup %3301  ;;  %3311 = vrcp.f32 %v1199_v26 }
 0x6dd   : > { %v1202_v23 = vpop.xlane.xlu1 %1201  ;;  %v3903_v30 = vmul.f32 %v3302_v28, %v3829_v63 }
 0x6de   : > { %v3304_v15 = vpop.eup %3303  ;;  %3313 = vrcp.f32 %v1202_v23 }
 0x6df   : > { %v1304_v12 = vpack.c.bf16 %v3903_v30, %v3900_v60  ;;  %v1298_v13 = vmul.f32 %v3304_v15, %v3823_v59  ;;  %3315 = vrcp.f32 %v1782_v47 }
 0x6e0   : > { %v3306_v31 = vpop.eup %3305  ;;  %3317 = vrcp.f32 %v1788_v1 }
 0x6e1   : > { %v1299_v34 = vmul.f32 %v3306_v31, %v3827_v62  ;;  %3319 = vrcp.f32 %v1791_v48 }
 0x6e2   : > { %v3308_v35 = vpop.eup %3307  ;;  %3321 = vrcp.f32 %v1785_v49 }
 0x6e3   : > { %v1305_v17 = vpack.c.bf16 %v1299_v34, %v1298_v13  ;;  %v1300_v41 = vmul.f32 %v3308_v35, %v3836_v0  ;;  %3323 = vrcp.f32 %v1794_v50 }
 0x6e4   : > { %v3310_v20 = vpop.eup %3309  ;;  %3325 = vrcp.f32 %v1800_v7 }
 0x6e5   : > { %v1301_v61 = vmul.f32 %v3310_v20, %v3840_v24  ;;  %3327 = vrcp.f32 %v1803_v16 }
 0x6e6   : > { %v3312_v38 = vpop.eup %3311  ;;  %3329 = vrcp.f32 %v1797_v2 }
 0x6e7   : > { %v1306_v63 = vpack.c.bf16 %v1301_v61, %v1300_v41  ;;  %v1302_v45 = vmul.f32 %v3312_v38, %v3831_v14 }
 0x6e8   : > { %v3314_v29 = vpop.eup %3313 }
 0x6e9   : > { %v1303_v46 = vmul.f32 %v3314_v29, %v3838_v27  ;;  %v3316_v59 = vpop.eup %3315 }
 0x6ea   : > { %v3318_v0 = vpop.eup %3317 }
 0x6eb   : > { %v1307_v51 = vpack.c.bf16 %v1303_v46, %v1302_v45  ;;  %v3320_v54 = vpop.eup %3319 }
 0x6ec   : > { %v3322_v56 = vpop.eup %3321 }
 0x6ed   : > { %v3324_v52 = vpop.eup %3323 }
 0x6ee   : > { %v3326_v39 = vpop.eup %3325 }
 0x6ef   : > { %v3328_v49 = vpop.eup %3327 }
 0x6f0   : > { %v3330_v48 = vpop.eup %3329 }
 0x70c   : > { %v3117_v62 = vpop.f32.mrb[40].mxu0 }
 0x70d   : > { %v1866_v24 = vpop.f32.mrb[41].mxu0  ;;  %v1899_v57 = vmul.f32 %v3318_v0, %v3117_v62 }
 0x70e   : > { %v3118_v55 = vpop.f32.mrb[42].mxu0  ;;  %v1897_v27 = vmul.f32 %v3316_v59, %v1866_v24 }
 0x70f   : > { %v1900_v14 = vmul.f32 %v3320_v54, %v3118_v55  ;;  %v1869_v58 = vpop.f32.mrb[43].mxu0 }
 0x710   : > { %v1898_v42 = vmul.f32 %v3322_v56, %v1869_v58 }
 0x711   : > { %v1906_v53 = vpack.c.bf16 %v1900_v14, %v1899_v57 }
 0x712   : > { %v1905_v37 = vpack.c.bf16 %v1898_v42, %v1897_v27 }
 0x714   : > { %v3121_v43 = vpop.f32.mrb[44].mxu0  ;;  %3127 = vmatprep.mubr.msk.bf16.mxu0 %vm1033_vm1, %v1905_v37 }
 0x715   : > { %v1882_v47 = vpop.f32.mrb[45].mxu0  ;;  %3128 = vmatmul.mubr.msk.bf16.vlgmr.msra.gmra.mrb[48].mxu0 %vm1033_vm1, %v1906_v53  ;;  %v1903_v50 = vmul.f32 %v3326_v39, %v3121_v43 }
 0x716   : > { %3136 = vmatpush3.bf16.msra.mxu0 %v3896_v44  ;;  %v3122_v1 = vpop.f32.mrb[46].mxu0  ;;  %v1901_v16 = vmul.f32 %v3324_v52, %v1882_v47  ;;  %v2092_v44 = vld [vmem:[%s4181_s10] sm:$0x1] }
 0x717   : > { %v1904_v2 = vmul.f32 %v3328_v49, %v3122_v1  ;;  %v1885_v7 = vpop.f32.mrb[47].mxu0  ;;  %3137 = vmatprep.subr.bf16.mxu0 %v3238_v40  ;;  %v2093_v33 = vunpack.c.l.bf16 %v2092_v44 }
 0x718   : > { %v1902_v32 = vmul.f32 %v3330_v48, %v1885_v7 }
 0x719   : > { %v1908_v18 = vpack.c.bf16 %v1904_v2, %v1903_v50  ;;  %v2097_v21 = vrot.slane %v2093_v33, %v3590_v36 }
 0x71a   : > { %v1907_v25 = vpack.c.bf16 %v1902_v32, %v1901_v16  ;;  %3138 = vmatpush3.bf16.msra.mxu0 %v3238_v40 }
 0x71c   : > { %3131 = vmatprep.mubr.msk.bf16.mxu0 %vm1033_vm1, %v1907_v25 }
 0x71d   : > { %3132 = vmatmul.mubr.msk.bf16.gmra.mrb[52].mxu0 %vm1033_vm1, %v1908_v18 }
 0x71e   : > { %3139 = vmatprep.mubr.msk.bf16.mxu0 %vm1033_vm1, %v1304_v12 }
 0x725   : > { %3140 = vmatmul.mubr.msk.bf16.vlgmr.msra.gmra.mrb[48].mxu0 %vm1033_vm1, %v1305_v17 }
 0x726   : > { %3143 = vmatprep.mubr.msk.bf16.mxu0 %vm1033_vm1, %v1306_v63 }
 0x72d   : > { %3144 = vmatmul.mubr.msk.bf16.gmra.mrb[52].mxu0 %vm1033_vm1, %v1307_v51 }
 0x7f8   : > { %v3141_v22 = vpop.f32.mrb[48].mxu0 }
 0x7f9   : > { %v2061_v19 = vpop.f32.mrb[49].mxu0  ;;  %v2100_v26 = vadd.f32 %v3141_v22, %v2097_v21 }
 0x7fa   : > { %v2098_v28 = vadd.f32 %v2097_v21, %v2061_v19  ;;  %v3142_v23 = vpop.f32.mrb[50].mxu0 }
 0x7fb   : > { %v2064_v60 = vpop.f32.mrb[51].mxu0  ;;  %v2101_v15 = vadd.f32 %v3142_v23, %v2097_v21  ;;  %v3933_v31 = vadd.f32 %v3479_v4, %v2100_v26 }
 0x7fc   : > { %v3930_v30 = vadd.f32 %v3477_v3, %v2098_v28  ;;  %v2099_v12 = vadd.f32 %v2097_v21, %v2064_v60 }
 0x7fd   : > { %v3941_v35 = vadd.f32 %v3483_v6, %v2101_v15 }
 0x7fe   : > { %v3936_v13 = vadd.f32 %v3481_v5, %v2099_v12  ;;  %v2114_v34 = vsel %vm566_vm0, %v3930_v30, 0.0  ;;  %v2120_v5 = vsel %vm566_vm0, %v3933_v31, 0.0 }
 0x7ff   : > { %2115 = vadd.xlane.f32.xlu0 %v2114_v34  ;;  %v2123_v45 = vsel %vm566_vm0, %v3941_v35, 0.0 }
 0x800   : > { %v3145_v17 = vpop.f32.mrb[52].mxu0  ;;  %v2117_v3 = vsel %vm566_vm0, %v3936_v13, 0.0 }
 0x801   : > { %2118 = vadd.xlane.f32.xlu1 %v2117_v3  ;;  %v2077_v20 = vpop.f32.mrb[53].mxu0  ;;  %v2104_v41 = vadd.f32 %v3145_v17, %v2097_v21  ;;  %v3239_v17 = vld [vmem:[%s4184_s13] sm:$0xff]   ;;  %v3240_v3 = vld [vmem:[%s4184_s13 + $0x8] sm:$0xff]  }
 0x802   : > { %v2102_v61 = vadd.f32 %v2097_v21, %v2077_v20  ;;  %v3146_v4 = vpop.f32.mrb[54].mxu0  ;;  %3147 = vmatprep.subr.bf16.mxu1 %v3239_v17  ;;  %v3241_v20 = vld [vmem:[%s4184_s13 + $0x10] sm:$0xff]  }
 0x803   : > { %2121 = vadd.xlane.f32.xlu0 %v2120_v5  ;;  %v2080_v38 = vpop.f32.mrb[55].mxu0  ;;  %v2105_v29 = vadd.f32 %v3146_v4, %v2097_v21  ;;  %v3953_v46 = vadd.f32 %v3489_v10, %v2104_v41  ;;  %3148 = vmatpush3.bf16.msra.mxu1 %v3239_v17  ;;  %v3242_v41 = vld [vmem:[%s4184_s13 + $0x18] sm:$0xff]  }
 0x804   : > { %v3948_v63 = vadd.f32 %v3485_v8, %v2102_v61  ;;  %v2103_v6 = vadd.f32 %v2097_v21, %v2080_v38  ;;  %3149 = vmatprep.subr.bf16.mxu1 %v3240_v3 }
 0x805   : > { %2124 = vadd.xlane.f32.xlu1 %v2123_v45  ;;  %v3961_v62 = vadd.f32 %v3491_v11, %v2105_v29  ;;  %v2132_v0 = vsel %vm566_vm0, %v3953_v46, 0.0 }
 0x806   : > { %v3956_v51 = vadd.f32 %v3487_v9, %v2103_v6  ;;  %v2126_v59 = vsel %vm566_vm0, %v3948_v63, 0.0 }
 0x807   : > { %2127 = vadd.xlane.f32.xlu0 %v2126_v59  ;;  %v2135_v10 = vsel %vm566_vm0, %v3961_v62, 0.0  ;;  %3150 = vmatpush3.bf16.msra.mxu1 %v3240_v3 }
 0x808   : > { %v2129_v8 = vsel %vm566_vm0, %v3956_v51, 0.0  ;;  %3151 = vmatprep.subr.bf16.mxu1 %v3241_v20 }
 0x809   : > { %2130 = vadd.xlane.f32.xlu1 %v2129_v8 }
 0x80b   : > { %2133 = vadd.xlane.f32.xlu0 %v2132_v0  ;;  %3152 = vmatpush3.bf16.msra.mxu1 %v3241_v20  ;;  %v2218_v0 = vld [vmem:[%s4182_s11] sm:$0x1] }
 0x80c   : > { %3153 = vmatprep.subr.bf16.mxu1 %v3242_v41 }
 0x80d   : > { %2136 = vadd.xlane.f32.xlu1 %v2135_v10 }
 0x80f   : > { %3154 = vmatpush3.bf16.msra.mxu1 %v3242_v41 }
 0x88c   : > { %v2116_v9 = vpop.xlane.xlu0 %2115 }
 0x88d   : > { %v2138_v24 = vmul.f32 0.015625, %v2116_v9 }
 0x88e   : > { %v2119_v54 = vpop.xlane.xlu1 %2118 }
 0x88f   : > { %v3970_v55 = vsub.f32 %v3930_v30, %v2138_v24  ;;  %v2139_v11 = vmul.f32 0.015625, %v2119_v54 }
 0x890   : > { %v2122_v56 = vpop.xlane.xlu0 %2121 }
 0x891   : > { %v3973_v57 = vsub.f32 %v3936_v13, %v2139_v11  ;;  %v2140_v14 = vmul.f32 0.015625, %v2122_v56  ;;  %v2154_v58 = vmul.f32 %v3970_v55, %v3970_v55  ;;  %v2219_v56 = vunpack.c.l.bf16 %v2218_v0 }
 0x892   : > { %v2125_v27 = vpop.xlane.xlu1 %2124 }
 0x893   : > { %v3978_v42 = vsub.f32 %v3933_v31, %v2140_v14  ;;  %v2141_v53 = vmul.f32 0.015625, %v2125_v27  ;;  %v2162_v37 = vsel %vm566_vm0, %v2154_v58, 0.0  ;;  %v2155_v40 = vmul.f32 %v3973_v57, %v3973_v57  ;;  %v2232_v58 = vld [vmem:[%s4183_s12] sm:$0x1] }
 0x894   : > { %2163 = vadd.xlane.f32.xlu0 %v2162_v37  ;;  %v2128_v52 = vpop.xlane.xlu0 %2127 }
 0x895   : > { %v3984_v43 = vsub.f32 %v3941_v35, %v2141_v53  ;;  %v2142_v39 = vmul.f32 0.015625, %v2128_v52  ;;  %v2165_v47 = vsel %vm566_vm0, %v2155_v40, 0.0  ;;  %v2156_v49 = vmul.f32 %v3978_v42, %v3978_v42 }
 0x896   : > { %2166 = vadd.xlane.f32.xlu1 %v2165_v47  ;;  %v2131_v1 = vpop.xlane.xlu1 %2130  ;;  %v2233_v47 = vunpack.c.l.bf16 %v2232_v58  ;;  %v3249_v58 = vld [vmem:[%s4186_s15 + $0x30] sm:$0xff]  }
 0x897   : > { %v3990_v48 = vsub.f32 %v3948_v63, %v2142_v39  ;;  %v2143_v50 = vmul.f32 0.015625, %v2131_v1  ;;  %v2168_v2 = vsel %vm566_vm0, %v2156_v49, 0.0  ;;  %v2157_v7 = vmul.f32 %v3984_v43, %v3984_v43 }
 0x898   : > { %2169 = vadd.xlane.f32.xlu0 %v2168_v2  ;;  %v2134_v16 = vpop.xlane.xlu0 %2133  ;;  %v2223_v39 = vrot.slane %v2219_v56, %v3590_v36  ;;  %v3247_v56 = vld [vmem:[%s4186_s15 + $0x20] sm:$0xff]  }
 0x899   : > { %v3996_v32 = vsub.f32 %v3956_v51, %v2143_v50  ;;  %v2144_v18 = vmul.f32 0.015625, %v2134_v16  ;;  %v2171_v25 = vsel %vm566_vm0, %v2157_v7, 0.0  ;;  %v2158_v44 = vmul.f32 %v3990_v48, %v3990_v48 }
 0x89a   : > { %2172 = vadd.xlane.f32.xlu1 %v2171_v25  ;;  %v2137_v33 = vpop.xlane.xlu1 %2136 }
 0x89b   : > { %v4002_v21 = vsub.f32 %v3953_v46, %v2144_v18  ;;  %v2145_v22 = vmul.f32 0.015625, %v2137_v33  ;;  %v2174_v19 = vsel %vm566_vm0, %v2158_v44, 0.0  ;;  %v2159_v26 = vmul.f32 %v3996_v32, %v3996_v32 }
 0x89c   : > { %2175 = vadd.xlane.f32.xlu0 %v2174_v19  ;;  %v2237_v44 = vrot.slane %v2233_v47, %v3590_v36 }
 0x89d   : > { %v4008_v28 = vsub.f32 %v3961_v62, %v2145_v22  ;;  %v2177_v23 = vsel %vm566_vm0, %v2159_v26, 0.0  ;;  %v2160_v60 = vmul.f32 %v4002_v21, %v4002_v21 }
 0x89e   : > { %2178 = vadd.xlane.f32.xlu1 %v2177_v23 }
 0x89f   : > { %v2180_v15 = vsel %vm566_vm0, %v2160_v60, 0.0  ;;  %v2161_v12 = vmul.f32 %v4008_v28, %v4008_v28 }
 0x8a0   : > { %2181 = vadd.xlane.f32.xlu0 %v2180_v15 }
 0x8a1   : > { %v2183_v34 = vsel %vm566_vm0, %v2161_v12, 0.0 }
 0x8a2   : > { %2184 = vadd.xlane.f32.xlu1 %v2183_v34 }
 0x921   : > { %v2164_v61 = vpop.xlane.xlu0 %2163 }
 0x922   : > { %v2186_v4 = vmul.f32 0.015625, %v2164_v61 }
 0x923   : > { %v2167_v5 = vpop.xlane.xlu1 %2166 }
 0x924   : > { %v2194_v38 = vadd.f32 1e-06, %v2186_v4  ;;  %v2187_v29 = vmul.f32 0.015625, %v2167_v5 }
 0x925   : > { %v2170_v6 = vpop.xlane.xlu0 %2169 }
 0x926   : > { %3331 = vrsqrt.f32 %v2194_v38  ;;  %v2195_v45 = vadd.f32 1e-06, %v2187_v29  ;;  %v2188_v59 = vmul.f32 0.015625, %v2170_v6 }
 0x927   : > { %v2173_v8 = vpop.xlane.xlu1 %2172 }
 0x928   : > { %3333 = vrsqrt.f32 %v2195_v45  ;;  %v2196_v10 = vadd.f32 1e-06, %v2188_v59  ;;  %v2189_v9 = vmul.f32 0.015625, %v2173_v8 }
 0x929   : > { %v2176_v24 = vpop.xlane.xlu0 %2175 }
 0x92a   : > { %3335 = vrsqrt.f32 %v2196_v10  ;;  %v2197_v54 = vadd.f32 1e-06, %v2189_v9  ;;  %v2190_v11 = vmul.f32 0.015625, %v2176_v24 }
 0x92b   : > { %v2179_v14 = vpop.xlane.xlu1 %2178 }
 0x92c   : > { %3337 = vrsqrt.f32 %v2197_v54  ;;  %v2198_v27 = vadd.f32 1e-06, %v2190_v11  ;;  %v2191_v53 = vmul.f32 0.015625, %v2179_v14  ;;  %v3245_v54 = vld [vmem:[%s4186_s15 + $0x10] sm:$0xff]   ;;  %v3246_v11 = vld [vmem:[%s4186_s15 + $0x18] sm:$0xff]   ;;  %v3248_v14 = vld [vmem:[%s4186_s15 + $0x28] sm:$0xff]  }
 0x92d   : > { %v2182_v37 = vpop.xlane.xlu0 %2181 }
 0x92e   : > { %3339 = vrsqrt.f32 %v2198_v27  ;;  %v2199_v40 = vadd.f32 1e-06, %v2191_v53  ;;  %v2192_v52 = vmul.f32 0.015625, %v2182_v37  ;;  %v3250_v27 = vld [vmem:[%s4186_s15 + $0x38] sm:$0xff]   ;;  %v2258_v53 = vld [vmem:[%s4185_s14] sm:$0x1] }
 0x92f   : > { %v2185_v49 = vpop.xlane.xlu1 %2184  ;;  %v2259_v37 = vunpack.c.l.bf16 %v2258_v53 }
 0x930   : > { %v3332_v1 = vpop.eup %3331  ;;  %3341 = vrsqrt.f32 %v2199_v40  ;;  %v2200_v50 = vadd.f32 1e-06, %v2192_v52  ;;  %v2193_v2 = vmul.f32 0.015625, %v2185_v49 }
 0x931   : > { %v2210_v7 = vmul.f32 %v3332_v1, %v3970_v55  ;;  %v2263_v40 = vrot.slane %v2259_v37, %v3590_v36 }
 0x932   : > { %v3334_v16 = vpop.eup %3333  ;;  %3343 = vrsqrt.f32 %v2200_v50  ;;  %v2201_v18 = vadd.f32 1e-06, %v2193_v2 }
 0x933   : > { %v2211_v25 = vmul.f32 %v3334_v16, %v3973_v57  ;;  %v2224_v33 = vmul.f32 %v2223_v39, %v2210_v7 }
 0x934   : > { %v3336_v22 = vpop.eup %3335  ;;  %3345 = vrsqrt.f32 %v2201_v18 }
 0x935   : > { %v2212_v19 = vmul.f32 %v3336_v22, %v3978_v42  ;;  %v2225_v26 = vmul.f32 %v2223_v39, %v2211_v25  ;;  %v2238_v12 = vadd.f32 %v2237_v44, %v2224_v33 }
 0x936   : > { %v3338_v23 = vpop.eup %3337 }
 0x937   : > { %v2226_v60 = vmul.f32 %v2223_v39, %v2212_v19  ;;  %v2213_v15 = vmul.f32 %v3338_v23, %v3984_v43  ;;  %v2239_v34 = vadd.f32 %v2237_v44, %v2225_v26 }
 0x938   : > { %v3340_v55 = vpop.eup %3339 }
 0x939   : > { %v2227_v17 = vmul.f32 %v2223_v39, %v2213_v15  ;;  %v2214_v3 = vmul.f32 %v3340_v55, %v3990_v48  ;;  %v2246_v20 = vpack.c.bf16 %v2239_v34, %v2238_v12  ;;  %v2240_v41 = vadd.f32 %v2237_v44, %v2226_v60 }
 0x93a   : > { %v3342_v57 = vpop.eup %3341 }
 0x93b   : > { %v2241_v61 = vadd.f32 %v2237_v44, %v2227_v17  ;;  %v2215_v4 = vmul.f32 %v3342_v57, %v3996_v32  ;;  %3155 = vmatprep.mubr.msk.bf16.mxu1 %vm566_vm0, %v2246_v20  ;;  %v2228_v42 = vmul.f32 %v2223_v39, %v2214_v3 }
 0x93c   : > { %v3344_v5 = vpop.eup %3343 }
 0x93d   : > { %v2216_v38 = vmul.f32 %v3344_v5, %v4002_v21  ;;  %v2247_v29 = vpack.c.bf16 %v2241_v61, %v2240_v41  ;;  %v2229_v43 = vmul.f32 %v2223_v39, %v2215_v4  ;;  %v2242_v48 = vadd.f32 %v2237_v44, %v2228_v42  ;;  %v3243_v21 = vld [vmem:[%s4186_s15] sm:$0xff]  }
 0x93e   : > { %v3346_v6 = vpop.eup %3345  ;;  %3163 = vmatprep.subr.bf16.mxu1 %v3243_v21 }
 0x93f   : > { %v2217_v45 = vmul.f32 %v3346_v6, %v4008_v28  ;;  %3156 = vmatmul.mubr.msk.bf16.vlgmr.msra.gmra.mrb[32].mxu1 %vm566_vm0, %v2247_v29  ;;  %v2243_v59 = vadd.f32 %v2237_v44, %v2229_v43  ;;  %v2230_v8 = vmul.f32 %v2223_v39, %v2216_v38  ;;  %v3244_v28 = vld [vmem:[%s4186_s15 + $0x8] sm:$0xff]  }
 0x940   : > { %3164 = vmatpush3.bf16.msra.mxu1 %v3243_v21 }
 0x941   : > { %v2248_v0 = vpack.c.bf16 %v2243_v59, %v2242_v48  ;;  %v2231_v10 = vmul.f32 %v2223_v39, %v2217_v45  ;;  %v2244_v32 = vadd.f32 %v2237_v44, %v2230_v8  ;;  %3165 = vmatprep.subr.bf16.mxu1 %v3244_v28 }
 0x943   : > { %3159 = vmatprep.mubr.msk.bf16.mxu1 %vm566_vm0, %v2248_v0  ;;  %v2245_v9 = vadd.f32 %v2237_v44, %v2231_v10 }
 0x944   : > { %3166 = vmatpush3.bf16.msra.mxu1 %v3244_v28 }
 0x945   : > { %v2249_v24 = vpack.c.bf16 %v2245_v9, %v2244_v32  ;;  %3167 = vmatprep.subr.bf16.mxu1 %v3245_v54 }
 0x947   : > { %3160 = vmatmul.mubr.msk.bf16.gmra.mrb[36].mxu1 %vm566_vm0, %v2249_v24 }
 0x948   : > { %3168 = vmatpush3.bf16.msra.mxu1 %v3245_v54 }
 0x949   : > { %3169 = vmatprep.subr.bf16.mxu1 %v3246_v11 }
 0x94c   : > { %3170 = vmatpush3.bf16.msra.mxu1 %v3246_v11 }
 0x94d   : > { %3171 = vmatprep.subr.bf16.mxu1 %v3247_v56 }
 0x950   : > { %3172 = vmatpush3.bf16.msra.mxu1 %v3247_v56 }
 0x951   : > { %3173 = vmatprep.subr.bf16.mxu1 %v3248_v14 }
 0x954   : > { %3174 = vmatpush3.bf16.msra.mxu1 %v3248_v14 }
 0x955   : > { %3175 = vmatprep.subr.bf16.mxu1 %v3249_v58 }
 0x958   : > { %3176 = vmatpush3.bf16.msra.mxu1 %v3249_v58 }
 0x959   : > { %3177 = vmatprep.subr.bf16.mxu1 %v3250_v27 }
 0x95c   : > { %3178 = vmatpush3.bf16.msra.mxu1 %v3250_v27 }
 0xa12   : > { %v3157_v52 = vpop.f32.mrb[32].mxu1 }
 0xa13   : > { %v4077_v39 = vadd.f32 %v3157_v52, %v2263_v40  ;;  %v2334_v47 = vpop.f32.mrb[33].mxu1 }
 0xa14   : > { %v4079_v49 = vadd.f32 %v2334_v47, %v2263_v40  ;;  %v3158_v1 = vpop.f32.mrb[34].mxu1 }
 0xa15   : > { %v2367_v50 = vmul.f32 %v4077_v39, %v4077_v39  ;;  %v4083_v2 = vadd.f32 %v3158_v1, %v2263_v40  ;;  %v2337_v7 = vpop.f32.mrb[35].mxu1 }
 0xa16   : > { %v2365_v16 = vmul.f32 %v4079_v49, %v4079_v49  ;;  %v4087_v18 = vadd.f32 %v2337_v7, %v2263_v40 }
 0xa17   : > { %v2375_v25 = vmul.f32 %v2367_v50, %v4077_v39  ;;  %v2368_v44 = vmul.f32 %v4083_v2, %v4083_v2 }
 0xa18   : > { %v2373_v33 = vmul.f32 %v2365_v16, %v4079_v49  ;;  %v2366_v22 = vmul.f32 %v4087_v18, %v4087_v18 }
 0xa19   : > { %v2383_v19 = vmul.f32 0.044715, %v2375_v25  ;;  %v2376_v26 = vmul.f32 %v2368_v44, %v4083_v2 }
 0xa1a   : > { %v2381_v23 = vmul.f32 0.044715, %v2373_v33  ;;  %v2374_v60 = vmul.f32 %v2366_v22, %v4087_v18  ;;  %v3161_v15 = vpop.f32.mrb[36].mxu1 }
 0xa1b   : > { %v2391_v12 = vadd.f32 %v2383_v19, %v4077_v39  ;;  %v2384_v34 = vmul.f32 0.044715, %v2376_v26  ;;  %v4098_v55 = vadd.f32 %v3161_v15, %v2263_v40  ;;  %v2350_v17 = vpop.f32.mrb[37].mxu1 }
 0xa1c   : > { %v2389_v3 = vadd.f32 %v2381_v23, %v4079_v49  ;;  %v2382_v20 = vmul.f32 0.044715, %v2374_v60  ;;  %v4101_v57 = vadd.f32 %v2350_v17, %v2263_v40  ;;  %v3162_v41 = vpop.f32.mrb[38].mxu1 }
 0xa1d   : > { %v2399_v61 = vmul.f32 0.7978846, %v2391_v12  ;;  %v2392_v4 = vadd.f32 %v2384_v34, %v4083_v2  ;;  %v2371_v42 = vmul.f32 %v4098_v55, %v4098_v55  ;;  %v4106_v5 = vadd.f32 %v3162_v41, %v2263_v40  ;;  %v2353_v38 = vpop.f32.mrb[39].mxu1 }
 0xa1e   : > { %v2397_v29 = vmul.f32 0.7978846, %v2389_v3  ;;  %v2390_v43 = vadd.f32 %v2382_v20, %v4087_v18  ;;  %v2369_v6 = vmul.f32 %v4101_v57, %v4101_v57  ;;  %v4111_v45 = vadd.f32 %v2353_v38, %v2263_v40 }
 0xa1f   : > { %3347 = vtanh.f32 %v2399_v61  ;;  %v2400_v48 = vmul.f32 0.7978846, %v2392_v4  ;;  %v2379_v59 = vmul.f32 %v2371_v42, %v4098_v55  ;;  %v2372_v8 = vmul.f32 %v4106_v5, %v4106_v5 }
 0xa20   : > { %3349 = vtanh.f32 %v2397_v29  ;;  %v2398_v0 = vmul.f32 0.7978846, %v2390_v43  ;;  %v2377_v10 = vmul.f32 %v2369_v6, %v4101_v57  ;;  %v2370_v32 = vmul.f32 %v4111_v45, %v4111_v45 }
 0xa21   : > { %3351 = vtanh.f32 %v2400_v48  ;;  %v2387_v9 = vmul.f32 0.044715, %v2379_v59  ;;  %v2380_v24 = vmul.f32 %v2372_v8, %v4106_v5 }
 0xa22   : > { %3353 = vtanh.f32 %v2398_v0  ;;  %v2385_v21 = vmul.f32 0.044715, %v2377_v10  ;;  %v2378_v28 = vmul.f32 %v2370_v32, %v4111_v45  ;;  %v2457_v32 = vld [vmem:[%s4187_s16] sm:$0x1] }
 0xa23   : > { %v2395_v54 = vadd.f32 %v2387_v9, %v4098_v55  ;;  %v2388_v11 = vmul.f32 0.044715, %v2380_v24  ;;  %v2458_v9 = vunpack.c.l.bf16 %v2457_v32 }
 0xa24   : > { %v2393_v56 = vadd.f32 %v2385_v21, %v4101_v57  ;;  %v2386_v14 = vmul.f32 0.044715, %v2378_v28 }
 0xa25   : > { %v2403_v58 = vmul.f32 0.7978846, %v2395_v54  ;;  %v2396_v27 = vadd.f32 %v2388_v11, %v4106_v5  ;;  %v2462_v24 = vrot.slane %v2458_v9, %v3590_v36 }
 0xa26   : > { %v2401_v53 = vmul.f32 0.7978846, %v2393_v56  ;;  %v2394_v37 = vadd.f32 %v2386_v14, %v4111_v45 }
 0xa27   : > { %3355 = vtanh.f32 %v2403_v58  ;;  %v2404_v40 = vmul.f32 0.7978846, %v2396_v27 }
 0xa28   : > { %3357 = vtanh.f32 %v2401_v53  ;;  %v2402_v52 = vmul.f32 0.7978846, %v2394_v37 }
 0xa29   : > { %v3348_v47 = vpop.eup %3347  ;;  %3359 = vtanh.f32 %v2404_v40 }
 0xa2a   : > { %v3350_v1 = vpop.eup %3349  ;;  %v2415_v50 = vadd.f32 1.0, %v3348_v47  ;;  %3361 = vtanh.f32 %v2402_v52 }
 0xa2b   : > { %v3352_v7 = vpop.eup %3351  ;;  %v2413_v16 = vadd.f32 1.0, %v3350_v1 }
 0xa2c   : > { %v3354_v25 = vpop.eup %3353  ;;  %v2423_v44 = vmul.f32 0.5, %v2415_v50  ;;  %v2416_v33 = vadd.f32 1.0, %v3352_v7 }
 0xa2d   : > { %v2414_v22 = vadd.f32 1.0, %v3354_v25  ;;  %v2421_v19 = vmul.f32 0.5, %v2413_v16 }
 0xa2e   : > { %v2424_v26 = vmul.f32 0.5, %v2416_v33  ;;  %v2431_v60 = vmul.f32 %v2423_v44, %v4077_v39 }
 0xa2f   : > { %v2422_v23 = vmul.f32 0.5, %v2414_v22  ;;  %v2429_v34 = vmul.f32 %v2421_v19, %v4079_v49 }
 0xa30   : > { %v2432_v15 = vmul.f32 %v2424_v26, %v4083_v2 }
 0xa31   : > { %v3356_v12 = vpop.eup %3355  ;;  %v2430_v17 = vmul.f32 %v2422_v23, %v4087_v18 }
 0xa32   : > { %v3358_v3 = vpop.eup %3357  ;;  %v2438_v20 = vpack.c.bf16 %v2432_v15, %v2431_v60  ;;  %v2419_v41 = vadd.f32 1.0, %v3356_v12 }
 0xa33   : > { %v3360_v61 = vpop.eup %3359  ;;  %v2437_v4 = vpack.c.bf16 %v2430_v17, %v2429_v34  ;;  %v2417_v42 = vadd.f32 1.0, %v3358_v3 }
 0xa34   : > { %v3362_v38 = vpop.eup %3361  ;;  %v2420_v29 = vadd.f32 1.0, %v3360_v61  ;;  %v2427_v43 = vmul.f32 0.5, %v2419_v41 }
 0xa35   : > { %3179 = vmatprep.mubr.bf16.mxu1 %v2437_v4  ;;  %v2418_v6 = vadd.f32 1.0, %v3362_v38  ;;  %v2425_v48 = vmul.f32 0.5, %v2417_v42 }
 0xa36   : > { %3180 = vmatmul.mubr.bf16.vlgmr.msra.gmra.mrb[40].mxu1 %v2438_v20  ;;  %v2428_v39 = vmul.f32 0.5, %v2420_v29  ;;  %v2435_v59 = vmul.f32 %v2427_v43, %v4098_v55 }
 0xa37   : > { %v2426_v2 = vmul.f32 0.5, %v2418_v6  ;;  %v2433_v18 = vmul.f32 %v2425_v48, %v4101_v57 }
 0xa38   : > { %v2436_v49 = vmul.f32 %v2428_v39, %v4106_v5 }
 0xa39   : > { %v2434_v8 = vmul.f32 %v2426_v2, %v4111_v45 }
 0xa3a   : > { %v2440_v0 = vpack.c.bf16 %v2436_v49, %v2435_v59 }
 0xa3b   : > { %v2439_v10 = vpack.c.bf16 %v2434_v8, %v2433_v18 }
 0xa3d   : > { %3183 = vmatprep.mubr.bf16.mxu1 %v2439_v10 }
 0xa3e   : > { %3184 = vmatmul.mubr.bf16.gmra.mrb[44].mxu1 %v2440_v0 }
 0xb09   : > { %v3181_v21 = vpop.f32.mrb[40].mxu1 }
 0xb0a   : > { %v2554_v55 = vadd.f32 %v3181_v21, %v2462_v24  ;;  %v2545_v28 = vpop.f32.mrb[41].mxu1 }
 0xb0b   : > { %v2546_v5 = vadd.f32 %v2545_v28, %v2462_v24  ;;  %v3182_v54 = vpop.f32.mrb[42].mxu1 }
 0xb0c   : > { %v2578_v57 = vadd.f32 %v2554_v55, %v3933_v31  ;;  %v2557_v45 = vadd.f32 %v3182_v54, %v2462_v24  ;;  %v2548_v11 = vpop.f32.mrb[43].mxu1 }
 0xb0d   : > { %v2576_v36 = vadd.f32 %v2546_v5, %v3930_v30  ;;  %v2549_v56 = vadd.f32 %v2548_v11, %v2462_v24 }
 0xb0e   : > { %v2826_v14 = vpack.c.bf16 %v2578_v57, %v2578_v57  ;;  %v2579_v58 = vadd.f32 %v2557_v45, %v3941_v35 }
 0xb0f   : > { %v2824_v31 = vpack.c.bf16 %v2576_v36, %v2576_v36  ;;  %v2577_v27 = vadd.f32 %v2549_v56, %v3936_v13 }
 0xb10   : > { %2619 = vst.msk [vmem:[%s4143_s18 + $0x8] sm:$0xf] %vm2616_vm2, %v2826_v14  ;;  %v2827_v53 = vpack.c.bf16 %v2579_v58, %v2579_v58 }
 0xb11   : > { %2617 = vst.msk [vmem:[%s4143_s18] sm:$0xf] %vm2616_vm2, %v2824_v31  ;;  %v2825_v37 = vpack.c.bf16 %v2577_v27, %v2577_v27  ;;  %v3185_v40 = vpop.f32.mrb[44].mxu1 }
 0xb12   : > { %2620 = vst.msk [vmem:[%s4143_s18 + $0xc] sm:$0xf] %vm2616_vm2, %v2827_v53  ;;  %v2570_v52 = vadd.f32 %v3185_v40, %v2462_v24  ;;  %v2561_v30 = vpop.f32.mrb[45].mxu1 }
 0xb13   : > { %2618 = vst.msk [vmem:[%s4143_s18 + $0x4] sm:$0xf] %vm2616_vm2, %v2825_v37  ;;  %v2562_v35 = vadd.f32 %v2561_v30, %v2462_v24  ;;  %v3186_v47 = vpop.f32.mrb[46].mxu1 }
 0xb14   : > { %v2582_v13 = vadd.f32 %v2570_v52, %v3953_v46  ;;  %v2573_v1 = vadd.f32 %v3186_v47, %v2462_v24  ;;  %v2564_v50 = vpop.f32.mrb[47].mxu1 }
 0xb15   : > { %v2580_v7 = vadd.f32 %v2562_v35, %v3948_v63  ;;  %v2565_v16 = vadd.f32 %v2564_v50, %v2462_v24 }
 0xb16   : > { %v2830_v25 = vpack.c.bf16 %v2582_v13, %v2582_v13  ;;  %v2583_v44 = vadd.f32 %v2573_v1, %v3961_v62 }
 0xb17   : > { %v2828_v33 = vpack.c.bf16 %v2580_v7, %v2580_v7  ;;  %v2581_v22 = vadd.f32 %v2565_v16, %v3956_v51 }
 0xb18   : > { %2623 = vst.msk [vmem:[%s4143_s18 + $0x18] sm:$0xf] %vm2616_vm2, %v2830_v25  ;;  %v2831_v19 = vpack.c.bf16 %v2583_v44, %v2583_v44 }
 0xb19   : > { %2621 = vst.msk [vmem:[%s4143_s18 + $0x10] sm:$0xf] %vm2616_vm2, %v2828_v33  ;;  %v2829_v26 = vpack.c.bf16 %v2581_v22, %v2581_v22 }
 0xb1a   : > { %2624 = vst.msk [vmem:[%s4143_s18 + $0x1c] sm:$0xf] %vm2616_vm2, %v2831_v19 }
 0xb1b   : > { %2622 = vst.msk [vmem:[%s4143_s18 + $0x14] sm:$0xf] %vm2616_vm2, %v2829_v26 }
 0xb1c PF: > { %s27_s24 = sadd.s32 1, %s3369_s24  }
 0xb1d   : > { %p24_p4 = scmp.ge.s32.totalorder %s27_s24, 4  }
 0xb1f   :  { %26 = sbr.rel (!%p24_p4) target bundleno = 3 (0x3), region = 125 }

// kernel: vision_tower_forward.7
= control target key start
LH: loop header
LB: loop body
LE: loop exit
PB: predicated region body
PF: predicated region fallthrough
CT: control target
= control target key end

     0   :  { %s5204_s25 = smov 0   ;;  %s6932_s0 = inlined_call_operand.vmem [shape: bf16[2,64,64], index: 0, kind: input, shape index: {}]   ;;  %s6933_s1 = inlined_call_operand.vmem [shape: bf16[1,64], index: 1, kind: input, shape index: {}]   ;;  %s6934_s2 = inlined_call_operand.vmem [shape: bf16[1,64], index: 2, kind: input, shape index: {}]   ;;  %s6935_s3 = inlined_call_operand.vmem [shape: bf16[64,32], index: 3, kind: input, shape index: {}]   ;;  %s6936_s4 = inlined_call_operand.vmem [shape: bf16[1,32], index: 4, kind: input, shape index: {}]   ;;  %s6937_s5 = inlined_call_operand.vmem [shape: bf16[64,32], index: 5, kind: input, shape index: {}]   ;;  %s6938_s6 = inlined_call_operand.vmem [shape: bf16[1,32], index: 6, kind: input, shape index: {}]   ;;  %s6939_s7 = inlined_call_operand.vmem [shape: bf16[128,32], index: 7, kind: input, shape index: {}]   ;;  %s6940_s8 = inlined_call_operand.vmem [shape: f32[1,128], index: 8, kind: input, shape index: {}]   ;;  %s6941_s9 = inlined_call_operand.vmem [shape: bf16[128,32], index: 9, kind: input, shape index: {}]   ;;  %s6942_s10 = inlined_call_operand.vmem [shape: f32[1,128], index: 10, kind: input, shape index: {}]   ;;  %s6943_s11 = inlined_call_operand.vmem [shape: bf16[2,64,32], index: 11, kind: output, shape index: {0}]   ;;  %s6944_s12 = inlined_call_operand.vmem [shape: bf16[2,64,32], index: 12, kind: output, shape index: {1}]   ;;  %s6945_s13 = inlined_call_operand.vmem [shape: s32[2,64,128], index: 13, kind: output, shape index: {2}]  }
   0x1 LB: > { %s4106_s26 = sadd.s32 4294967295, %s5131_s25   ;;  %p4110_p0 = scmp.ge.s32.totalorder %s5131_s25, 1  ;;  %s5131_s25 = sphi %s5204_s25, %s24_s25  }
   0x2   : > { %p392_p1 = scmp.lt.s32.totalorder %s5131_s25, 3 }
   0x4   : > { %p393_p2 = pnand %p4110_p0, %p392_p1 }
   0x6   : > { %396 = sbr.rel (%p393_p2) target bundleno = 7480 (0x1d38), region = 64 }
   0xd   : > { %p446_p3 = scmp.lt.s32.totalorder %s4106_s26, 1  ;;  %vm483_vm0 = vcmask 523264   ;;  %v5067_v60 = vld [vmem:[%s6935_s3] sm:$0xff]   ;;  %v5069_v62 = vld [vmem:[%s6935_s3 + $0x8] sm:$0xff]   ;;  %vm902_vm1 = vcmask 261120  }
   0xe   : > { %v5068_v61 = vld [vmem:[%s6937_s5] sm:$0xff]   ;;  %4578 = vmatprep.subr.bf16.mxu0 %v5067_v60  ;;  %v5070_v63 = vld [vmem:[%s6937_s5 + $0x8] sm:$0xff]  }
   0xf   : > { %s7042_s26 = smov (!%p446_p3, %s4106_s26), 1  ;;  %4594 = vmatprep.subr.bf16.mxu1 %v5068_v61  ;;  %4579 = vmatpush3.bf16.msra.mxu0 %v5067_v60 }
  0x10   : > { %s5215_s27 = sshll.u32 %s7042_s26, 5  ;;  %4595 = vmatpush3.bf16.msra.mxu1 %v5068_v61  ;;  %4580 = vmatprep.subr.bf16.mxu0 %v5069_v62  ;;  %s4334_s15 = sshll.u32 %s7042_s26, 6 }
  0x11   : > { %s450_s30 = scalar_lea.vmem %s6932_s0, %s5215_s27  ;;  %4596 = vmatprep.subr.bf16.mxu1 %v5070_v63  ;;  %s455_s22 = scalar_lea.vmem %s6943_s11, %s5215_s27 }
  0x12   : > { %v4352_v0 = vld [vmem:[%s450_s30] sm:$0xff]   ;;  %v4367_v1 = vld [vmem:[%s450_s30 + $0x8] sm:$0xff]   ;;  %v4368_v2 = vld [vmem:[%s450_s30 + $0x10] sm:$0xff]   ;;  %s6853_s18 = scalar_lea.vmem %s6945_s13, %s4334_s15  ;;  %s460_s20 = scalar_lea.vmem %s6944_s12, %s5215_s27 }
  0x13   : > { %v4353_v3 = vunpack.c.l.bf16 %v4352_v0  ;;  %v4357_v4 = vunpack.c.l.bf16 %v4367_v1  ;;  %v4354_v5 = vunpack.c.h.bf16 %v4352_v0  ;;  %v4358_v6 = vunpack.c.h.bf16 %v4367_v1  ;;  %v4369_v15 = vld [vmem:[%s450_s30 + $0x18] sm:$0xff]   ;;  %v5071_v0 = vld [vmem:[%s6935_s3 + $0x10] sm:$0xff]   ;;  %4581 = vmatpush3.bf16.msra.mxu0 %v5069_v62 }
  0x14   : > { %v4361_v7 = vunpack.c.l.bf16 %v4368_v2  ;;  %v4362_v8 = vunpack.c.h.bf16 %v4368_v2  ;;  %v4365_v16 = vunpack.c.l.bf16 %v4369_v15  ;;  %v4366_v17 = vunpack.c.h.bf16 %v4369_v15  ;;  %v5072_v1 = vld [vmem:[%s6937_s5 + $0x10] sm:$0xff]   ;;  %4597 = vmatpush3.bf16.msra.mxu1 %v5070_v63  ;;  %4582 = vmatprep.subr.bf16.mxu0 %v5071_v0  ;;  %v5073_v2 = vld [vmem:[%s6935_s3 + $0x18] sm:$0xff]  }
  0x15   : > { %v484_v9 = vsel %vm483_vm0, %v4353_v3, 0.0  ;;  %v490_v10 = vsel %vm483_vm0, %v4357_v4, 0.0  ;;  %v487_v11 = vsel %vm483_vm0, %v4354_v5, 0.0  ;;  %v493_v12 = vsel %vm483_vm0, %v4358_v6, 0.0  ;;  %4598 = vmatprep.subr.bf16.mxu1 %v5072_v1 }
  0x16   : > { %485 = vadd.xlane.f32.xlu0 %v484_v9  ;;  %491 = vadd.xlane.f32.xlu1 %v490_v10  ;;  %v496_v13 = vsel %vm483_vm0, %v4361_v7, 0.0  ;;  %v499_v14 = vsel %vm483_vm0, %v4362_v8, 0.0  ;;  %v502_v18 = vsel %vm483_vm0, %v4365_v16, 0.0  ;;  %v505_v19 = vsel %vm483_vm0, %v4366_v17, 0.0 }
  0x17   : > { %4583 = vmatpush3.bf16.msra.mxu0 %v5071_v0  ;;  %v591_v10 = vlaneseq }
  0x18   : > { %4599 = vmatpush3.bf16.msra.mxu1 %v5072_v1  ;;  %4584 = vmatprep.subr.bf16.mxu0 %v5073_v2 }
  0x1a   : > { %488 = vadd.xlane.f32.xlu0 %v487_v11  ;;  %494 = vadd.xlane.f32.xlu1 %v493_v12 }
  0x1b   : > { %4585 = vmatpush3.bf16.msra.mxu0 %v5073_v2 }
  0x1e   : > { %497 = vadd.xlane.f32.xlu0 %v496_v13  ;;  %500 = vadd.xlane.f32.xlu1 %v499_v14 }
  0x22   : > { %503 = vadd.xlane.f32.xlu0 %v502_v18  ;;  %506 = vadd.xlane.f32.xlu1 %v505_v19 }
  0xa3   : > { %v486_v20 = vpop.xlane.xlu0 %485  ;;  %v492_v21 = vpop.xlane.xlu1 %491 }
  0xa4   : > { %v509_v22 = vmul.f32 0.015625, %v486_v20  ;;  %v511_v23 = vmul.f32 0.015625, %v492_v21  ;;  %v589_v20 = vld [vmem:[%s6933_s1] sm:$0x1] }
  0xa6   : > { %v5229_v24 = vsub.f32 %v4353_v3, %v509_v22  ;;  %v5231_v25 = vsub.f32 %v4357_v4, %v511_v23  ;;  %v5074_v3 = vld [vmem:[%s6937_s5 + $0x18] sm:$0xff]   ;;  %v5296_v4 = vld [vmem:[%s6939_s7] sm:$0xff]  }
  0xa7   : > { %v489_v26 = vpop.xlane.xlu0 %488  ;;  %v495_v27 = vpop.xlane.xlu1 %494  ;;  %4600 = vmatprep.subr.bf16.mxu1 %v5074_v3  ;;  %4994 = vmatprep.subr.msk.bf16.mxu0 %vm902_vm1, %v5296_v4 }
  0xa8   : > { %v510_v28 = vmul.f32 0.015625, %v489_v26  ;;  %v512_v29 = vmul.f32 0.015625, %v495_v27  ;;  %v525_v30 = vmul.f32 %v5229_v24, %v5229_v24  ;;  %v527_v31 = vmul.f32 %v5231_v25, %v5231_v25  ;;  %4601 = vmatpush3.bf16.msra.mxu1 %v5074_v3 }
  0xa9   : > { %4634 = vmatprep.subr.bf16.mxu1 %v5296_v4  ;;  %v590_v27 = vunpack.c.l.bf16 %v589_v20  ;;  %v5387_v20 = vld [vmem:[%s6939_s7 + $0x30] sm:$0xff]  }
  0xaa   : > { %v5237_v32 = vsub.f32 %v4354_v5, %v510_v28  ;;  %v5239_v33 = vsub.f32 %v4358_v6, %v512_v29  ;;  %v533_v34 = vsel %vm483_vm0, %v525_v30, 0.0  ;;  %v539_v37 = vsel %vm483_vm0, %v527_v31, 0.0  ;;  %v603_v31 = vld [vmem:[%s6934_s2] sm:$0x1] }
  0xab   : > { %534 = vadd.xlane.f32.xlu0 %v533_v34  ;;  %v498_v35 = vpop.xlane.xlu0 %497  ;;  %v501_v36 = vpop.xlane.xlu1 %500 }
  0xac   : > { %v513_v38 = vmul.f32 0.015625, %v498_v35  ;;  %v514_v39 = vmul.f32 0.015625, %v501_v36  ;;  %v526_v40 = vmul.f32 %v5237_v32, %v5237_v32  ;;  %v528_v41 = vmul.f32 %v5239_v33, %v5239_v33 }
  0xae   : > { %v5247_v42 = vsub.f32 %v4361_v7, %v513_v38  ;;  %v5249_v43 = vsub.f32 %v4362_v8, %v514_v39  ;;  %v536_v44 = vsel %vm483_vm0, %v526_v40, 0.0  ;;  %v542_v47 = vsel %vm483_vm0, %v528_v41, 0.0 }
  0xaf   : > { %540 = vadd.xlane.f32.xlu0 %v539_v37  ;;  %537 = vadd.xlane.f32.xlu1 %v536_v44  ;;  %v504_v45 = vpop.xlane.xlu0 %503  ;;  %v507_v46 = vpop.xlane.xlu1 %506  ;;  %v604_v40 = vunpack.c.l.bf16 %v603_v31 }
  0xb0   : > { %v515_v48 = vmul.f32 0.015625, %v504_v45  ;;  %v516_v49 = vmul.f32 0.015625, %v507_v46  ;;  %v529_v50 = vmul.f32 %v5247_v42, %v5247_v42  ;;  %v530_v51 = vmul.f32 %v5249_v43, %v5249_v43 }
  0xb2   : > { %v5257_v52 = vsub.f32 %v4365_v16, %v515_v48  ;;  %v5259_v53 = vsub.f32 %v4366_v17, %v516_v49  ;;  %v545_v54 = vsel %vm483_vm0, %v529_v50, 0.0  ;;  %v548_v55 = vsel %vm483_vm0, %v530_v51, 0.0 }
  0xb3   : > { %543 = vadd.xlane.f32.xlu1 %v542_v47  ;;  %546 = vadd.xlane.f32.xlu0 %v545_v54  ;;  %v592_v17 = vshrl.u32 %v591_v10, 7 }
  0xb4   : > { %v531_v56 = vmul.f32 %v5257_v52, %v5257_v52  ;;  %v532_v57 = vmul.f32 %v5259_v53, %v5259_v53 }
  0xb5   : > { %v5305_v28 = vsub.s32 0, %v592_v17  ;;  %v5366_v17 = vld [vmem:[%s6939_s7 + $0x20] sm:$0xff]  }
  0xb6   : > { %v551_v58 = vsel %vm483_vm0, %v531_v56, 0.0  ;;  %v554_v59 = vsel %vm483_vm0, %v532_v57, 0.0 }
  0xb7   : > { %549 = vadd.xlane.f32.xlu1 %v548_v55  ;;  %552 = vadd.xlane.f32.xlu0 %v551_v58  ;;  %v594_v39 = vrot.slane %v590_v27, %v5305_v28  ;;  %v608_v49 = vrot.slane %v604_v40, %v5305_v28  ;;  %v5421_v27 = vld [vmem:[%s6939_s7 + $0x38] sm:$0xff]  }
  0xbb   : > { %555 = vadd.xlane.f32.xlu1 %v554_v59 }
 0x138   : > { %v535_v5 = vpop.xlane.xlu0 %534 }
 0x139   : > { %v557_v6 = vmul.f32 0.015625, %v535_v5  ;;  %v5328_v5 = vld [vmem:[%s6939_s7 + $0x8] sm:$0xff]  }
 0x13b   : > { %v565_v7 = vadd.f32 1e-06, %v557_v6 }
 0x13c   : > { %v538_v8 = vpop.xlane.xlu1 %537  ;;  %v541_v9 = vpop.xlane.xlu0 %540 }
 0x13d   : > { %5091 = vrsqrt.f32 %v565_v7  ;;  %v558_v11 = vmul.f32 0.015625, %v538_v8  ;;  %v559_v12 = vmul.f32 0.015625, %v541_v9 }
 0x13f   : > { %v566_v13 = vadd.f32 1e-06, %v558_v11  ;;  %v567_v14 = vadd.f32 1e-06, %v559_v12 }
 0x140   : > { %v544_v15 = vpop.xlane.xlu1 %543  ;;  %v547_v16 = vpop.xlane.xlu0 %546 }
 0x141   : > { %5093 = vrsqrt.f32 %v566_v13  ;;  %v560_v18 = vmul.f32 0.015625, %v544_v15  ;;  %v561_v19 = vmul.f32 0.015625, %v547_v16  ;;  %v5348_v15 = vsel %vm902_vm1, %v5328_v5, 0  ;;  %v5356_v16 = vld [vmem:[%s6939_s7 + $0x18] sm:$0xff]  }
 0x142   : > { %5095 = vrsqrt.f32 %v567_v14 }
 0x143   : > { %v568_v21 = vadd.f32 1e-06, %v560_v18  ;;  %v569_v22 = vadd.f32 1e-06, %v561_v19  ;;  %v5377_v19 = vld [vmem:[%s6939_s7 + $0x28] sm:$0xff]  }
 0x144   : > { %v550_v23 = vpop.xlane.xlu1 %549  ;;  %v553_v26 = vpop.xlane.xlu0 %552 }
 0x145   : > { %5097 = vrsqrt.f32 %v568_v21  ;;  %v562_v29 = vmul.f32 0.015625, %v550_v23  ;;  %v563_v30 = vmul.f32 0.015625, %v553_v26  ;;  %v5392_v21 = vsel %vm902_vm1, %v5356_v16, 0 }
 0x146   : > { %5099 = vrsqrt.f32 %v569_v22  ;;  %v5401_v22 = vsel %vm902_vm1, %v5366_v17, 0  ;;  %v5408_v23 = vsel %vm902_vm1, %v5377_v19, 0  ;;  %v5415_v26 = vsel %vm902_vm1, %v5387_v20, 0 }
 0x147   : > { %v5092_v34 = vpop.eup %5091  ;;  %v570_v35 = vadd.f32 1e-06, %v562_v29  ;;  %v571_v36 = vadd.f32 1e-06, %v563_v30  ;;  %v5427_v29 = vsel %vm902_vm1, %v5421_v27, 0 }
 0x148   : > { %v556_v37 = vpop.xlane.xlu1 %555  ;;  %v581_v38 = vmul.f32 %v5092_v34, %v5229_v24  ;;  %v629_v30 = vld [vmem:[%s6936_s4] sm:$0x1] }
 0x149   : > { %5101 = vrsqrt.f32 %v570_v35  ;;  %v564_v41 = vmul.f32 0.015625, %v556_v37  ;;  %v630_v31 = vunpack.c.l.bf16 %v629_v30 }
 0x14a   : > { %5103 = vrsqrt.f32 %v571_v36  ;;  %v595_v48 = vmul.f32 %v594_v39, %v581_v38  ;;  %v744_v36 = vld [vmem:[%s6938_s6] sm:$0x1] }
 0x14b   : > { %v5094_v44 = vpop.eup %5093  ;;  %v572_v45 = vadd.f32 1e-06, %v564_v41  ;;  %v634_v34 = vrot.slane %v630_v31, %v5305_v28 }
 0x14c   : > { %v5096_v46 = vpop.eup %5095  ;;  %v582_v47 = vmul.f32 %v5094_v44, %v5237_v32  ;;  %v609_v55 = vadd.f32 %v608_v49, %v595_v48  ;;  %v745_v44 = vunpack.c.l.bf16 %v744_v36 }
 0x14d   : > { %5105 = vrsqrt.f32 %v572_v45  ;;  %v583_v50 = vmul.f32 %v5096_v46, %v5231_v25 }
 0x14e   : > { %v596_v51 = vmul.f32 %v594_v39, %v582_v47 }
 0x14f   : > { %v5098_v54 = vpop.eup %5097  ;;  %v597_v58 = vmul.f32 %v594_v39, %v583_v50 }
 0x150   : > { %v5100_v24 = vpop.eup %5099  ;;  %v610_v56 = vadd.f32 %v608_v49, %v596_v51  ;;  %v584_v57 = vmul.f32 %v5098_v54, %v5239_v33  ;;  %v5461_v54 = vrot.slane %v745_v44, %v5305_v28 }
 0x151   : > { %v585_v59 = vmul.f32 %v5100_v24, %v5247_v42  ;;  %v611_v25 = vadd.f32 %v608_v49, %v597_v58  ;;  %v5323_v42 = vsel %vm902_vm1, %v5296_v4, 0 }
 0x152   : > { %v617_v60 = vpack.c.bf16 %v610_v56, %v609_v55  ;;  %v598_v61 = vmul.f32 %v594_v39, %v584_v57  ;;  %6970 = vst [vmem:[#allocation6_spill] sm:$0xff] %v5461_v54 }
 0x153   : > { %v5102_v62 = vpop.eup %5101  ;;  %v599_v32 = vmul.f32 %v594_v39, %v585_v59 }
 0x154   : > { %v5104_v63 = vpop.eup %5103  ;;  %4586 = vmatprep.mubr.msk.bf16.mxu0 %vm483_vm0, %v617_v60  ;;  %4602 = vmatprep.mubr.msk.bf16.mxu1 %vm483_vm0, %v617_v60  ;;  %v612_v0 = vadd.f32 %v608_v49, %v598_v61  ;;  %v586_v1 = vmul.f32 %v5102_v62, %v5249_v43 }
 0x155   : > { %v587_v2 = vmul.f32 %v5104_v63, %v5257_v52  ;;  %v613_v7 = vadd.f32 %v608_v49, %v599_v32 }
 0x156   : > { %v618_v3 = vpack.c.bf16 %v612_v0, %v611_v25  ;;  %v600_v33 = vmul.f32 %v594_v39, %v586_v1 }
 0x157   : > { %v5106_v6 = vpop.eup %5105  ;;  %v601_v8 = vmul.f32 %v594_v39, %v587_v2 }
 0x158   : > { %4587 = vmatmul.mubr.msk.bf16.vlgmr.msra.gmra.mrb[0].mxu0 %vm483_vm0, %v618_v3  ;;  %4603 = vmatmul.mubr.msk.bf16.vlgmr.msra.gmra.mrb[0].mxu1 %vm483_vm0, %v618_v3  ;;  %v614_v43 = vadd.f32 %v608_v49, %v600_v33  ;;  %v588_v52 = vmul.f32 %v5106_v6, %v5259_v53  ;;  %v5343_v53 = vld [vmem:[%s6939_s7 + $0x10] sm:$0xff]  }
 0x159   : > { %4611 = vmatpush3.bf16.xpose.msra.mxu0 %v5323_v42  ;;  %4635 = vmatpush3.bf16.msra.mxu1 %v5296_v4  ;;  %v615_v12 = vadd.f32 %v608_v49, %v601_v8  ;;  %v5371_v18 = vsel %vm902_vm1, %v5343_v53, 0 }
 0x15a   : > { %v619_v9 = vpack.c.bf16 %v614_v43, %v613_v7  ;;  %v602_v11 = vmul.f32 %v594_v39, %v588_v52  ;;  %4995 = vmatprep.subr.msk.bf16.mxu0 %vm902_vm1, %v5328_v5  ;;  %4636 = vmatprep.subr.bf16.mxu1 %v5328_v5  ;;  %v5511_v7 = vld [vmem:[%s6940_s8] ss:$0 sm:$0xff] }
 0x15c   : > { %4590 = vmatprep.mubr.msk.bf16.mxu0 %vm483_vm0, %v619_v9  ;;  %4606 = vmatprep.mubr.msk.bf16.mxu1 %vm483_vm0, %v619_v9  ;;  %v616_v13 = vadd.f32 %v608_v49, %v602_v11 }
 0x15d   : > { %4637 = vmatpush3.bf16.msra.mxu1 %v5328_v5 }
 0x15e   : > { %v620_v14 = vpack.c.bf16 %v616_v13, %v615_v12  ;;  %4638 = vmatprep.subr.bf16.mxu1 %v5343_v53 }
 0x160   : > { %4591 = vmatmul.mubr.msk.bf16.gmra.mrb[4].mxu0 %vm483_vm0, %v620_v14  ;;  %4607 = vmatmul.mubr.msk.bf16.gmra.mrb[4].mxu1 %vm483_vm0, %v620_v14 }
 0x161   : > { %4613 = vmatpush3.bf16.xpose.msra.mxu0 %v5348_v15  ;;  %4639 = vmatpush3.bf16.msra.mxu1 %v5343_v53 }
 0x162   : > { %4996 = vmatprep.subr.msk.bf16.mxu0 %vm902_vm1, %v5343_v53  ;;  %4640 = vmatprep.subr.bf16.mxu1 %v5356_v16 }
 0x165   : > { %4641 = vmatpush3.bf16.msra.mxu1 %v5356_v16 }
 0x166   : > { %4642 = vmatprep.subr.bf16.mxu1 %v5366_v17 }
 0x169   : > { %4615 = vmatpush3.bf16.xpose.msra.mxu0 %v5371_v18  ;;  %4643 = vmatpush3.bf16.msra.mxu1 %v5366_v17 }
 0x16a   : > { %4997 = vmatprep.subr.msk.bf16.mxu0 %vm902_vm1, %v5356_v16  ;;  %4644 = vmatprep.subr.bf16.mxu1 %v5377_v19 }
 0x16d   : > { %4645 = vmatpush3.bf16.msra.mxu1 %v5377_v19 }
 0x16e   : > { %4646 = vmatprep.subr.bf16.mxu1 %v5387_v20 }
 0x171   : > { %4617 = vmatpush3.bf16.xpose.msra.mxu0 %v5392_v21  ;;  %4647 = vmatpush3.bf16.msra.mxu1 %v5387_v20 }
 0x172   : > { %4998 = vmatprep.subr.msk.bf16.mxu0 %vm902_vm1, %v5366_v17  ;;  %4648 = vmatprep.subr.bf16.mxu1 %v5421_v27 }
 0x175   : > { %4649 = vmatpush3.bf16.msra.mxu1 %v5421_v27 }
 0x176   : > { %5002 = vmatprep.subr.msk.bf16.mxu1 %vm902_vm1, %v5296_v4 }
 0x179   : > { %4619 = vmatpush3.bf16.xpose.msra.mxu0 %v5401_v22 }
 0x17a   : > { %4999 = vmatprep.subr.msk.bf16.mxu0 %vm902_vm1, %v5377_v19 }
 0x181   : > { %4621 = vmatpush3.bf16.xpose.msra.mxu0 %v5408_v23 }
 0x182   : > { %5000 = vmatprep.subr.msk.bf16.mxu0 %vm902_vm1, %v5387_v20 }
 0x189   : > { %4623 = vmatpush3.bf16.xpose.msra.mxu0 %v5415_v26 }
 0x18a   : > { %5001 = vmatprep.subr.msk.bf16.mxu0 %vm902_vm1, %v5421_v27 }
 0x191   : > { %4625 = vmatpush3.bf16.xpose.msra.mxu0 %v5427_v29 }
 0x192   : > { %4682 = vmatprep.subr.bf16.mxu0 %v5296_v4 }
 0x22b   : > { %v4588_v35 = vpop.f32.mrb[0].mxu0  ;;  %v5442_v37 = vpop.f32.mrb[0].mxu1 }
 0x22c   : > { %6966 = vst [vmem:[#allocation2_spill] sm:$0xff] %v5442_v37  ;;  %v705_v38 = vpop.f32.mrb[1].mxu0  ;;  %v5444_v39 = vpop.f32.mrb[1].mxu1  ;;  %v5456_v50 = vadd.f32 %v4588_v35, %v634_v34 }
 0x22d   : > { %6967 = vst [vmem:[#allocation3_spill] sm:$0xff] %v5444_v39  ;;  %v4589_v40 = vpop.f32.mrb[2].mxu0  ;;  %v5446_v41 = vpop.f32.mrb[2].mxu1  ;;  %v5452_v48 = vadd.f32 %v705_v38, %v634_v34 }
 0x22e   : > { %6968 = vst [vmem:[#allocation4_spill] sm:$0xff] %v5446_v41  ;;  %v5448_v45 = vadd.f32 %v4589_v40, %v634_v34  ;;  %v708_v46 = vpop.f32.mrb[3].mxu0  ;;  %v5450_v47 = vpop.f32.mrb[3].mxu1 }
 0x22f   : > { %6969 = vst [vmem:[#allocation5_spill] sm:$0xff] %v5450_v47  ;;  %v5454_v49 = vadd.f32 %v708_v46, %v634_v34 }
 0x230   : > { %v859_v24 = vpack.c.bf16 %v5448_v45, %v5456_v50 }
 0x231   : > { %v858_v51 = vpack.c.bf16 %v5454_v49, %v5452_v48 }
 0x233   : > { %v4592_v55 = vpop.f32.mrb[4].mxu0  ;;  %v4608_v56 = vpop.f32.mrb[4].mxu1  ;;  %4626 = vmatprep.mubr.msk.bf16.mxu0 %vm902_vm1, %v858_v51 }
 0x234   : > { %v5467_v57 = vadd.f32 %v4608_v56, %v5461_v54  ;;  %v721_v58 = vpop.f32.mrb[5].mxu0  ;;  %v5469_v59 = vpop.f32.mrb[5].mxu1  ;;  %4627 = vmatmul.mubr.msk.bf16.vlgmr.msra.gmra.mrb[8].mxu0 %vm902_vm1, %v859_v24  ;;  %v5485_v1 = vadd.f32 %v4592_v55, %v634_v34 }
 0x235   : > { %6972 = vst [vmem:[#allocation8_spill] sm:$0xff] %v5469_v59  ;;  %v4593_v60 = vpop.f32.mrb[6].mxu0  ;;  %v4609_v61 = vpop.f32.mrb[6].mxu1  ;;  %4683 = vmatpush3.bf16.msra.mxu0 %v5296_v4  ;;  %v5481_v25 = vadd.f32 %v721_v58, %v634_v34 }
 0x236   : > { %6971 = vst [vmem:[#allocation7_spill] sm:$0xff] %v5467_v57  ;;  %v5473_v28 = vadd.f32 %v4593_v60, %v634_v34  ;;  %v5476_v62 = vadd.f32 %v4609_v61, %v5461_v54  ;;  %v724_v32 = vpop.f32.mrb[7].mxu0  ;;  %v5478_v63 = vpop.f32.mrb[7].mxu1  ;;  %4684 = vmatprep.subr.bf16.mxu0 %v5328_v5  ;;  %v5522_v60 = vand.u32 127, %v591_v10 }
 0x237   : > { %6974 = vst [vmem:[#allocation10_spill] sm:$0xff] %v5478_v63  ;;  %v5483_v0 = vadd.f32 %v724_v32, %v634_v34 }
 0x238   : > { %6973 = vst [vmem:[#allocation9_spill] sm:$0xff] %v5476_v62  ;;  %v861_v3 = vpack.c.bf16 %v5473_v28, %v5485_v1 }
 0x239   : > { %v860_v2 = vpack.c.bf16 %v5483_v0, %v5481_v25  ;;  %4685 = vmatpush3.bf16.msra.mxu0 %v5328_v5 }
 0x23a   : > { %4686 = vmatprep.subr.bf16.mxu0 %v5343_v53 }
 0x23b   : > { %4630 = vmatprep.mubr.msk.bf16.mxu0 %vm902_vm1, %v860_v2 }
 0x23c   : > { %4631 = vmatmul.mubr.msk.bf16.gmra.mrb[12].mxu0 %vm902_vm1, %v861_v3 }
 0x23d   : > { %4687 = vmatpush3.bf16.msra.mxu0 %v5343_v53 }
 0x23e   : > { %4688 = vmatprep.subr.bf16.mxu0 %v5356_v16 }
 0x241   : > { %4689 = vmatpush3.bf16.msra.mxu0 %v5356_v16 }
 0x242   : > { %4690 = vmatprep.subr.bf16.mxu0 %v5366_v17 }
 0x245   : > { %4691 = vmatpush3.bf16.msra.mxu0 %v5366_v17 }
 0x246   : > { %4692 = vmatprep.subr.bf16.mxu0 %v5377_v19 }
 0x249   : > { %4693 = vmatpush3.bf16.msra.mxu0 %v5377_v19 }
 0x24a   : > { %4694 = vmatprep.subr.bf16.mxu0 %v5387_v20 }
 0x24d   : > { %4695 = vmatpush3.bf16.msra.mxu0 %v5387_v20 }
 0x24e   : > { %4696 = vmatprep.subr.bf16.mxu0 %v5421_v27 }
 0x251   : > { %4697 = vmatpush3.bf16.msra.mxu0 %v5421_v27 }
 0x252   : > { %5010 = vmatprep.subr.msk.bf16.mxu0 %vm902_vm1, %v5296_v4 }
 0x307   : > { %v4628_v33 = vpop.f32.mrb[8].mxu0 }
 0x308   : > { %v973_v6 = vpop.f32.mrb[9].mxu0  ;;  %v1006_v9 = vmul.f32 2.0, %v4628_v33 }
 0x309   : > { %v1004_v43 = vmul.f32 2.0, %v973_v6  ;;  %v4629_v52 = vpop.f32.mrb[10].mxu0 }
 0x30a   : > { %v976_v8 = vpop.f32.mrb[11].mxu0  ;;  %v1007_v13 = vmul.f32 2.0, %v4629_v52  ;;  %v1020_v31 = vsub.f32 %v5511_v7, %v1006_v9 }
 0x30b   : > { %v1005_v11 = vmul.f32 2.0, %v976_v8  ;;  %v1018_v12 = vsub.f32 %v5511_v7, %v1004_v43 }
 0x30c   : > { %v1021_v38 = vsub.f32 %v5511_v7, %v1007_v13 }
 0x30d   : > { %1026 = vmin.xlane.f32.xlu0 %v1018_v12  ;;  %v1019_v14 = vsub.f32 %v5511_v7, %v1005_v11 }
 0x30f   : > { %1028 = vmin.xlane.f32.xlu1 %v1019_v14  ;;  %v4632_v30 = vpop.f32.mrb[12].mxu0 }
 0x310   : > { %v989_v34 = vpop.f32.mrb[13].mxu0  ;;  %v1010_v44 = vmul.f32 2.0, %v4632_v30 }
 0x311   : > { %v1008_v35 = vmul.f32 2.0, %v989_v34  ;;  %1030 = vmin.xlane.f32.xlu0 %v1020_v31  ;;  %v4633_v36 = vpop.f32.mrb[14].mxu0 }
 0x312   : > { %v992_v40 = vpop.f32.mrb[15].mxu0  ;;  %v1011_v24 = vmul.f32 2.0, %v4633_v36  ;;  %v1024_v56 = vsub.f32 %v5511_v7, %v1010_v44 }
 0x313   : > { %v1009_v46 = vmul.f32 2.0, %v992_v40  ;;  %1032 = vmin.xlane.f32.xlu1 %v1021_v38  ;;  %v1022_v51 = vsub.f32 %v5511_v7, %v1008_v35 }
 0x314   : > { %v1025_v58 = vsub.f32 %v5511_v7, %v1011_v24 }
 0x315   : > { %1034 = vmin.xlane.f32.xlu0 %v1022_v51  ;;  %v1023_v55 = vsub.f32 %v5511_v7, %v1009_v46 }
 0x317   : > { %1036 = vmin.xlane.f32.xlu1 %v1023_v55 }
 0x319   : > { %1038 = vmin.xlane.f32.xlu0 %v1024_v56 }
 0x31b   : > { %1040 = vmin.xlane.f32.xlu1 %v1025_v58 }
 0x39a   : > { %v1027_v61 = vpop.xlane.xlu0 %1026 }
 0x39b   : > { %vm1042_vm2 = vcmp.le.f32.partialorder %v1018_v12, %v1027_v61 }
 0x39c   : > { %v1050_v32 = vsel %vm1042_vm2, %v5522_v60, 128  ;;  %v1029_v2 = vpop.xlane.xlu1 %1028 }
 0x39d   : > { %vm1043_vm3 = vcmp.le.f32.partialorder %v1019_v14, %v1029_v2  ;;  %v1059_v3 = vshra.s32 %v1050_v32, 16 }
 0x39e   : > { %v1051_v33 = vsel %vm1043_vm3, %v5522_v60, 128  ;;  %v1031_v6 = vpop.xlane.xlu0 %1030 }
 0x39f   : > { %vm1044_vm4 = vcmp.le.f32.partialorder %v1020_v31, %v1031_v6  ;;  %v1061_v43 = vcvt.s32.f32 %v1059_v3  ;;  %v1073_v52 = vshra.s32 %v1051_v33, 16 }
 0x3a0   : > { %v1052_v8 = vsel %vm1044_vm4, %v5522_v60, 128  ;;  %v1033_v9 = vpop.xlane.xlu1 %1032 }
 0x3a1   : > { %vm1045_vm5 = vcmp.le.f32.partialorder %v1021_v38, %v1033_v9  ;;  %1062 = vmin.xlane.f32.xlu0 %v1061_v43  ;;  %v1075_v10 = vcvt.s32.f32 %v1073_v52  ;;  %v1087_v11 = vshra.s32 %v1052_v8, 16  ;;  %v1058_v9 = vand.u32 65535, %v1050_v32 }
 0x3a2   : > { %v1053_v12 = vsel %vm1045_vm5, %v5522_v60, 128  ;;  %v1035_v13 = vpop.xlane.xlu0 %1034 }
 0x3a3   : > { %vm1046_vm6 = vcmp.le.f32.partialorder %v1022_v51, %v1035_v13  ;;  %1076 = vmin.xlane.f32.xlu1 %v1075_v10  ;;  %v1089_v14 = vcvt.s32.f32 %v1087_v11  ;;  %v1101_v30 = vshra.s32 %v1053_v12, 16  ;;  %v1060_v13 = vcvt.s32.f32 %v1058_v9 }
 0x3a4   : > { %v1054_v34 = vsel %vm1046_vm6, %v5522_v60, 128  ;;  %v1037_v35 = vpop.xlane.xlu1 %1036 }
 0x3a5   : > { %vm1047_vm7 = vcmp.le.f32.partialorder %v1023_v55, %v1037_v35  ;;  %1090 = vmin.xlane.f32.xlu0 %v1089_v14  ;;  %v1103_v31 = vcvt.s32.f32 %v1101_v30  ;;  %v1115_v36 = vshra.s32 %v1054_v34, 16  ;;  %v1086_v30 = vand.u32 65535, %v1052_v8 }
 0x3a6   : > { %v1055_v40 = vsel %vm1047_vm7, %v5522_v60, 128  ;;  %v1039_v38 = vpop.xlane.xlu0 %1038 }
 0x3a7   : > { %vm1048_vm8 = vcmp.le.f32.partialorder %v1024_v56, %v1039_v38  ;;  %1104 = vmin.xlane.f32.xlu1 %v1103_v31  ;;  %v1117_v44 = vcvt.s32.f32 %v1115_v36  ;;  %v1129_v46 = vshra.s32 %v1055_v40, 16  ;;  %v1072_v56 = vand.u32 65535, %v1051_v33 }
 0x3a8   : > { %v1056_v24 = vsel %vm1048_vm8, %v5522_v60, 128  ;;  %v1041_v51 = vpop.xlane.xlu1 %1040  ;;  %v1100_v38 = vand.u32 65535, %v1053_v12  ;;  %v1088_v62 = vcvt.s32.f32 %v1086_v30  ;;  %v1128_v33 = vand.u32 65535, %v1055_v40 }
 0x3a9   : > { %vm1049_vm9 = vcmp.le.f32.partialorder %v1025_v58, %v1041_v51  ;;  %1118 = vmin.xlane.f32.xlu0 %v1117_v44  ;;  %v1131_v61 = vcvt.s32.f32 %v1129_v46  ;;  %v1143_v2 = vshra.s32 %v1056_v24, 16  ;;  %v1074_v58 = vcvt.s32.f32 %v1072_v56 }
 0x3aa   : > { %v1057_v3 = vsel %vm1049_vm9, %v5522_v60, 128  ;;  %v1102_v32 = vcvt.s32.f32 %v1100_v38  ;;  %v1130_v56 = vcvt.s32.f32 %v1128_v33 }
 0x3ab   : > { %1132 = vmin.xlane.f32.xlu1 %v1131_v61  ;;  %v1145_v55 = vcvt.s32.f32 %v1143_v2  ;;  %v1157_v6 = vshra.s32 %v1057_v3, 16  ;;  %v1114_v2 = vand.u32 65535, %v1054_v34 }
 0x3ad   : > { %1146 = vmin.xlane.f32.xlu0 %v1145_v55  ;;  %v1159_v52 = vcvt.s32.f32 %v1157_v6  ;;  %v1116_v9 = vcvt.s32.f32 %v1114_v2 }
 0x3af   : > { %1160 = vmin.xlane.f32.xlu1 %v1159_v52 }
 0x42e   : > { %v1063_v11 = vpop.xlane.xlu0 %1062 }
 0x42f   : > { %vm1064_vm10 = vcmp.eq.f32.partialorder %v1061_v43, %v1063_v11 }
 0x430   : > { %v1077_v35 = vpop.xlane.xlu1 %1076  ;;  %v1065_v36 = vsel %vm1064_vm10, %v1060_v13, inf  ;;  %v1142_v13 = vand.u32 65535, %v1056_v24  ;;  %v1069_v24 = vcvt.f32.s32 %v1063_v11 }
 0x431   : > { %1066 = vmin.xlane.f32.xlu0 %v1065_v36  ;;  %vm1078_vm11 = vcmp.eq.f32.partialorder %v1075_v10, %v1077_v35  ;;  %v1156_v36 = vand.u32 65535, %v1057_v3 }
 0x432   : > { %v1091_v46 = vpop.xlane.xlu0 %1090  ;;  %v1079_v51 = vsel %vm1078_vm11, %v1074_v58, inf  ;;  %v1144_v30 = vcvt.s32.f32 %v1142_v13  ;;  %v1070_v38 = vshll.u32 %v1069_v24, 16 }
 0x433   : > { %1080 = vmin.xlane.f32.xlu1 %v1079_v51  ;;  %vm1092_vm12 = vcmp.eq.f32.partialorder %v1089_v14, %v1091_v46  ;;  %v1097_v51 = vcvt.f32.s32 %v1091_v46 }
 0x434   : > { %v1105_v6 = vpop.xlane.xlu1 %1104  ;;  %v1093_v57 = vsel %vm1092_vm12, %v1088_v62, inf }
 0x435   : > { %1094 = vmin.xlane.f32.xlu0 %v1093_v57  ;;  %vm1106_vm13 = vcmp.eq.f32.partialorder %v1103_v31, %v1105_v6  ;;  %v1158_v31 = vcvt.s32.f32 %v1156_v36  ;;  %v1111_v2 = vcvt.f32.s32 %v1105_v6 }
 0x436   : > { %v1119_v8 = vpop.xlane.xlu0 %1118  ;;  %v1107_v43 = vsel %vm1106_vm13, %v1102_v32, inf }
 0x437   : > { %1108 = vmin.xlane.f32.xlu1 %v1107_v43  ;;  %vm1120_vm14 = vcmp.eq.f32.partialorder %v1117_v44, %v1119_v8  ;;  %v1083_v44 = vcvt.f32.s32 %v1077_v35  ;;  %v1125_v13 = vcvt.f32.s32 %v1119_v8 }
 0x438   : > { %v1133_v12 = vpop.xlane.xlu1 %1132  ;;  %v1121_v10 = vsel %vm1120_vm14, %v1116_v9, inf  ;;  %v1098_v9 = vshll.u32 %v1097_v51, 16 }
 0x439   : > { %1122 = vmin.xlane.f32.xlu0 %v1121_v10  ;;  %vm1134_vm15 = vcmp.eq.f32.partialorder %v1131_v61, %v1133_v12  ;;  %v1084_v32 = vshll.u32 %v1083_v44, 16  ;;  %v1139_v36 = vcvt.f32.s32 %v1133_v12  ;;  %v1126_v6 = vshll.u32 %v1125_v13, 16 }
 0x43a   : > { %v1147_v34 = vpop.xlane.xlu0 %1146  ;;  %v1135_v14 = vsel %vm1134_vm15, %v1130_v56, inf  ;;  %v1112_v56 = vshll.u32 %v1111_v2, 16 }
 0x43b   : > { %1136 = vmin.xlane.f32.xlu1 %v1135_v14  ;;  %vm1148_vm0 = vcmp.eq.f32.partialorder %v1145_v55, %v1147_v34  ;;  %v1140_v12 = vshll.u32 %v1139_v36, 16 }
 0x43c   : > { %v1161_v62 = vpop.xlane.xlu1 %1160  ;;  %v1149_v57 = vsel %vm1148_vm0, %v1144_v30, inf  ;;  %v1153_v30 = vcvt.f32.s32 %v1147_v34 }
 0x43d   : > { %1150 = vmin.xlane.f32.xlu0 %v1149_v57  ;;  %vm1162_vm2 = vcmp.eq.f32.partialorder %v1159_v52, %v1161_v62 }
 0x43e   : > { %v1163_v40 = vsel %vm1162_vm2, %v1158_v31, inf  ;;  %v6948_v31 = vmov 1.0|1.0  }
 0x43f   : > { %1164 = vmin.xlane.f32.xlu1 %v1163_v40  ;;  %v1167_v40 = vcvt.f32.s32 %v1161_v62 }
 0x441   : > { %v1168_v2 = vshll.u32 %v1167_v40, 16 }
 0x4be   : > { %v1067_v58 = vpop.xlane.xlu0 %1066 }
 0x4bf   : > { %v1068_v3 = vcvt.f32.s32 %v1067_v58 }
 0x4c0   : > { %v1081_v61 = vpop.xlane.xlu1 %1080 }
 0x4c1   : > { %v5532_v33 = vadd.s32 %v1070_v38, %v1068_v3  ;;  %v1082_v43 = vcvt.f32.s32 %v1081_v61  ;;  %v1154_v38 = vshll.u32 %v1153_v30, 16 }
 0x4c2   : > { %v1095_v55 = vpop.xlane.xlu0 %1094 }
 0x4c3   : > { %v5534_v10 = vadd.s32 %v1084_v32, %v1082_v43  ;;  %v1096_v52 = vcvt.f32.s32 %v1095_v55  ;;  %vm1170_vm3 = vcmp.eq.s32.totalorder %v5522_v60, %v5532_v33 }
 0x4c4   : > { %v1109_v11 = vpop.xlane.xlu1 %1108 }
 0x4c5   : > { %v5536_v35 = vadd.s32 %v1098_v9, %v1096_v52  ;;  %v1110_v14 = vcvt.f32.s32 %v1109_v11  ;;  %vm1171_vm4 = vcmp.eq.s32.totalorder %v5522_v60, %v5534_v10 }
 0x4c6   : > { %v1123_v46 = vpop.xlane.xlu0 %1122  ;;  %vm4156_vm5 = vmpackc.low %vm1171_vm4, %vm1170_vm3 }
 0x4c7   : > { %v5542_v8 = vadd.s32 %v1112_v56, %v1110_v14  ;;  %v1124_v57 = vcvt.f32.s32 %v1123_v46  ;;  %4650 = vmatprep.mubr.msk.bf16.mxu1 %vm4156_vm5, %v6948_v31  ;;  %vm1172_vm6 = vcmp.eq.s32.totalorder %v5522_v60, %v5536_v35 }
 0x4c8   : > { %v1137_v24 = vpop.xlane.xlu1 %1136 }
 0x4c9   : > { %vm1173_vm7 = vcmp.eq.s32.totalorder %v5522_v60, %v5542_v8  ;;  %v5549_v44 = vadd.s32 %v1126_v6, %v1124_v57  ;;  %v1138_v58 = vcvt.f32.s32 %v1137_v24 }
 0x4ca   : > { %vm4158_vm8 = vmpackc.low %vm1173_vm7, %vm1172_vm6  ;;  %v1151_v34 = vpop.xlane.xlu0 %1150 }
 0x4cb   : > { %v5551_v51 = vadd.s32 %v1140_v12, %v1138_v58  ;;  %v1152_v3 = vcvt.f32.s32 %v1151_v34  ;;  %4651 = vmatmul.mubr.msk.bf16.vlgmr.msra.gmra.mrb[8].mxu1 %vm4158_vm8, %v6948_v31  ;;  %vm1174_vm9 = vcmp.eq.s32.totalorder %v5522_v60, %v5549_v44 }
 0x4cc   : > { %v1165_v62 = vpop.xlane.xlu1 %1164  ;;  %4659 = vmatpush3.bf16.xpose.msra.mxu1 %v5323_v42 }
 0x4cd   : > { %v5555_v61 = vadd.s32 %v1154_v38, %v1152_v3  ;;  %v1166_v32 = vcvt.f32.s32 %v1165_v62  ;;  %vm1175_vm10 = vcmp.eq.s32.totalorder %v5522_v60, %v5551_v51  ;;  %5003 = vmatprep.subr.msk.bf16.mxu1 %vm902_vm1, %v5328_v5 }
 0x4ce   : > { %vm4160_vm11 = vmpackc.low %vm1175_vm10, %vm1174_vm9 }
 0x4cf   : > { %v5563_v43 = vadd.s32 %v1168_v2, %v1166_v32  ;;  %4654 = vmatprep.mubr.msk.bf16.mxu1 %vm4160_vm11, %v6948_v31  ;;  %vm1176_vm12 = vcmp.eq.s32.totalorder %v5522_v60, %v5555_v61 }
 0x4d1   : > { %vm1177_vm13 = vcmp.eq.s32.totalorder %v5522_v60, %v5563_v43 }
 0x4d2   : > { %vm4162_vm14 = vmpackc.low %vm1177_vm13, %vm1176_vm12 }
 0x4d3   : > { %4655 = vmatmul.mubr.msk.bf16.gmra.mrb[12].mxu1 %vm4162_vm14, %v6948_v31 }
 0x4d4   : > { %4661 = vmatpush3.bf16.xpose.msra.mxu1 %v5348_v15 }
 0x4d5   : > { %5004 = vmatprep.subr.msk.bf16.mxu1 %vm902_vm1, %v5343_v53 }
 0x4dc   : > { %4663 = vmatpush3.bf16.xpose.msra.mxu1 %v5371_v18 }
 0x4dd   : > { %5005 = vmatprep.subr.msk.bf16.mxu1 %vm902_vm1, %v5356_v16 }
 0x4e4   : > { %4665 = vmatpush3.bf16.xpose.msra.mxu1 %v5392_v21 }
 0x4e5   : > { %5006 = vmatprep.subr.msk.bf16.mxu1 %vm902_vm1, %v5366_v17 }
 0x4ec   : > { %4667 = vmatpush3.bf16.xpose.msra.mxu1 %v5401_v22 }
 0x4ed   : > { %5007 = vmatprep.subr.msk.bf16.mxu1 %vm902_vm1, %v5377_v19 }
 0x4f4   : > { %4669 = vmatpush3.bf16.xpose.msra.mxu1 %v5408_v23 }
 0x4f5   : > { %5008 = vmatprep.subr.msk.bf16.mxu1 %vm902_vm1, %v5387_v20 }
 0x4fc   : > { %4671 = vmatpush3.bf16.xpose.msra.mxu1 %v5415_v26 }
 0x4fd   : > { %5009 = vmatprep.subr.msk.bf16.mxu1 %vm902_vm1, %v5421_v27 }
 0x504   : > { %4673 = vmatpush3.bf16.xpose.msra.mxu1 %v5427_v29 }
 0x505   : > { %4730 = vmatprep.subr.bf16.mxu1 %v5296_v4 }
 0x59e   : > { %v5591_v55 = vpop.f32.mrb[8].mxu1 }
 0x59f   : > { %v5593_v9 = vpop.f32.mrb[9].mxu1  ;;  %v5613_v14 = vsub.f32 %v5456_v50, %v5591_v55 }
 0x5a0   : > { %v5595_v13 = vpop.f32.mrb[10].mxu1  ;;  %v5605_v36 = vsub.f32 %v5452_v48, %v5593_v9 }
 0x5a1   : > { %v5599_v52 = vsub.f32 %v5448_v45, %v5595_v13  ;;  %v5601_v56 = vpop.f32.mrb[11].mxu1 }
 0x5a2   : > { %v5609_v11 = vsub.f32 %v5454_v49, %v5601_v56 }
 0x5a3   : > { %v1297_v45 = vpack.c.bf16 %v5599_v52, %v5613_v14 }
 0x5a4   : > { %v1296_v46 = vpack.c.bf16 %v5609_v11, %v5605_v36 }
 0x5a6   : > { %v5619_v6 = vpop.f32.mrb[12].mxu1  ;;  %4674 = vmatprep.mubr.msk.bf16.mxu1 %vm902_vm1, %v1296_v46 }
 0x5a7   : > { %v5622_v48 = vpop.f32.mrb[13].mxu1  ;;  %4675 = vmatmul.mubr.msk.bf16.vlgmr.msra.gmra.mrb[16].mxu1 %vm902_vm1, %v1297_v45  ;;  %v5645_v40 = vsub.f32 %v5485_v1, %v5619_v6 }
 0x5a8   : > { %v5625_v49 = vpop.f32.mrb[14].mxu1  ;;  %4731 = vmatpush3.bf16.msra.mxu1 %v5296_v4  ;;  %v5637_v57 = vsub.f32 %v5481_v25, %v5622_v48 }
 0x5a9   : > { %v5630_v50 = vsub.f32 %v5473_v28, %v5625_v49  ;;  %v5632_v30 = vpop.f32.mrb[15].mxu1  ;;  %4732 = vmatprep.subr.bf16.mxu1 %v5328_v5 }
 0x5aa   : > { %v5641_v12 = vsub.f32 %v5483_v0, %v5632_v30 }
 0x5ab   : > { %v1299_v24 = vpack.c.bf16 %v5630_v50, %v5645_v40 }
 0x5ac   : > { %v1298_v28 = vpack.c.bf16 %v5641_v12, %v5637_v57  ;;  %4733 = vmatpush3.bf16.msra.mxu1 %v5328_v5 }
 0x5ad   : > { %4734 = vmatprep.subr.bf16.mxu1 %v5343_v53 }
 0x5ae   : > { %4678 = vmatprep.mubr.msk.bf16.mxu1 %vm902_vm1, %v1298_v28 }
 0x5af   : > { %4679 = vmatmul.mubr.msk.bf16.gmra.mrb[20].mxu1 %vm902_vm1, %v1299_v24 }
 0x5b0   : > { %4735 = vmatpush3.bf16.msra.mxu1 %v5343_v53 }
 0x5b1   : > { %4736 = vmatprep.subr.bf16.mxu1 %v5356_v16 }
 0x5b4   : > { %4737 = vmatpush3.bf16.msra.mxu1 %v5356_v16 }
 0x5b5   : > { %4738 = vmatprep.subr.bf16.mxu1 %v5366_v17 }
 0x5b8   : > { %4739 = vmatpush3.bf16.msra.mxu1 %v5366_v17 }
 0x5b9   : > { %4740 = vmatprep.subr.bf16.mxu1 %v5377_v19 }
 0x5bc   : > { %4741 = vmatpush3.bf16.msra.mxu1 %v5377_v19 }
 0x5bd   : > { %4742 = vmatprep.subr.bf16.mxu1 %v5387_v20 }
 0x5c0   : > { %4743 = vmatpush3.bf16.msra.mxu1 %v5387_v20 }
 0x5c1   : > { %4744 = vmatprep.subr.bf16.mxu1 %v5421_v27 }
 0x5c4   : > { %4745 = vmatpush3.bf16.msra.mxu1 %v5421_v27 }
 0x5c5   : > { %5018 = vmatprep.subr.msk.bf16.mxu1 %vm902_vm1, %v5296_v4 }
 0x67a   : > { %v4676_v5 = vpop.f32.mrb[16].mxu1 }
 0x67b   : > { %v1346_v53 = vpop.f32.mrb[17].mxu1  ;;  %v1379_v0 = vmul.f32 2.0, %v4676_v5 }
 0x67c   : > { %v1377_v16 = vmul.f32 2.0, %v1346_v53  ;;  %v4677_v25 = vpop.f32.mrb[18].mxu1 }
 0x67d   : > { %v1349_v17 = vpop.f32.mrb[19].mxu1  ;;  %v1380_v58 = vmul.f32 2.0, %v4677_v25  ;;  %v1387_v27 = vsub.f32 %v5511_v7, %v1379_v0 }
 0x67e   : > { %v1378_v1 = vmul.f32 2.0, %v1349_v17  ;;  %v1385_v19 = vsub.f32 %v5511_v7, %v1377_v16 }
 0x67f   : > { %v1388_v2 = vsub.f32 %v5511_v7, %v1380_v58 }
 0x680   : > { %1393 = vmin.xlane.f32.xlu0 %v1385_v19  ;;  %v1386_v20 = vsub.f32 %v5511_v7, %v1378_v1 }
 0x682   : > { %1395 = vmin.xlane.f32.xlu1 %v1386_v20  ;;  %v4680_v34 = vpop.f32.mrb[20].mxu1 }
 0x683   : > { %v1362_v38 = vpop.f32.mrb[21].mxu1  ;;  %v1383_v32 = vmul.f32 2.0, %v4680_v34 }
 0x684   : > { %v1381_v3 = vmul.f32 2.0, %v1362_v38  ;;  %1397 = vmin.xlane.f32.xlu0 %v1387_v27  ;;  %v4681_v4 = vpop.f32.mrb[22].mxu1 }
 0x685   : > { %v1365_v62 = vpop.f32.mrb[23].mxu1  ;;  %v1384_v28 = vmul.f32 2.0, %v4681_v4  ;;  %v1391_v5 = vsub.f32 %v5511_v7, %v1383_v32 }
 0x686   : > { %v1382_v46 = vmul.f32 2.0, %v1365_v62  ;;  %1399 = vmin.xlane.f32.xlu1 %v1388_v2  ;;  %v1389_v45 = vsub.f32 %v5511_v7, %v1381_v3 }
 0x687   : > { %v1392_v53 = vsub.f32 %v5511_v7, %v1384_v28 }
 0x688   : > { %1401 = vmin.xlane.f32.xlu0 %v1389_v45  ;;  %v1390_v24 = vsub.f32 %v5511_v7, %v1382_v46 }
 0x68a   : > { %1403 = vmin.xlane.f32.xlu1 %v1390_v24 }
 0x68c   : > { %1405 = vmin.xlane.f32.xlu0 %v1391_v5 }
 0x68e   : > { %1407 = vmin.xlane.f32.xlu1 %v1392_v53 }
 0x70d   : > { %v1394_v16 = vpop.xlane.xlu0 %1393 }
 0x70e   : > { %vm1409_vm15 = vcmp.le.f32.partialorder %v1385_v19, %v1394_v16 }
 0x70f   : > { %v1417_v25 = vsel %vm1409_vm15, %v5522_v60, 128  ;;  %v1396_v17 = vpop.xlane.xlu1 %1395 }
 0x710   : > { %vm1410_vm0 = vcmp.le.f32.partialorder %v1386_v20, %v1396_v17  ;;  %v1426_v0 = vshra.s32 %v1417_v25, 16  ;;  %v1425_v59 = vand.u32 65535, %v1417_v25 }
 0x711   : > { %v1418_v1 = vsel %vm1410_vm0, %v5522_v60, 128  ;;  %v1398_v58 = vpop.xlane.xlu0 %1397  ;;  %vm1287_vm0 = vcmp.eq.s32.totalorder %v5522_v60, 0 }
 0x712   : > { %vm1411_vm2 = vcmp.le.f32.partialorder %v1387_v27, %v1398_v58  ;;  %v1428_v34 = vcvt.s32.f32 %v1426_v0  ;;  %v1440_v38 = vshra.s32 %v1418_v1, 16 }
 0x713   : > { %v1419_v3 = vsel %vm1411_vm2, %v5522_v60, 128  ;;  %v1400_v4 = vpop.xlane.xlu1 %1399  ;;  %vm1646_vm2 = vcmp.eq.s32.totalorder %v5522_v60, 1 }
 0x714   : > { %vm1412_vm3 = vcmp.le.f32.partialorder %v1388_v2, %v1400_v4  ;;  %1429 = vmin.xlane.f32.xlu0 %v1428_v34  ;;  %v1442_v7 = vcvt.s32.f32 %v1440_v38  ;;  %v1454_v62 = vshra.s32 %v1419_v3, 16  ;;  %v1453_v37 = vand.u32 65535, %v1419_v3 }
 0x715   : > { %v1420_v19 = vsel %vm1412_vm3, %v5522_v60, 128  ;;  %v1402_v32 = vpop.xlane.xlu0 %1401 }
 0x716   : > { %vm1413_vm4 = vcmp.le.f32.partialorder %v1389_v45, %v1402_v32  ;;  %1443 = vmin.xlane.f32.xlu1 %v1442_v7  ;;  %v1456_v20 = vcvt.s32.f32 %v1454_v62  ;;  %v1468_v46 = vshra.s32 %v1420_v19, 16  ;;  %v1455_v47 = vcvt.s32.f32 %v1453_v37 }
 0x717   : > { %v1421_v28 = vsel %vm1413_vm4, %v5522_v60, 128  ;;  %v1404_v16 = vpop.xlane.xlu1 %1403 }
 0x718   : > { %vm1414_vm5 = vcmp.le.f32.partialorder %v1390_v24, %v1404_v16  ;;  %1457 = vmin.xlane.f32.xlu0 %v1456_v20  ;;  %v1470_v27 = vcvt.s32.f32 %v1468_v46  ;;  %v1482_v17 = vshra.s32 %v1421_v28, 16 }
 0x719   : > { %v1422_v0 = vsel %vm1414_vm5, %v5522_v60, 128  ;;  %v1406_v2 = vpop.xlane.xlu0 %1405 }
 0x71a   : > { %vm1415_vm6 = vcmp.le.f32.partialorder %v1391_v5, %v1406_v2  ;;  %1471 = vmin.xlane.f32.xlu1 %v1470_v27  ;;  %v1484_v58 = vcvt.s32.f32 %v1482_v17  ;;  %v1496_v38 = vshra.s32 %v1422_v0, 16  ;;  %v1439_v5 = vand.u32 65535, %v1418_v1 }
 0x71b   : > { %v1423_v4 = vsel %vm1415_vm6, %v5522_v60, 128  ;;  %v1408_v45 = vpop.xlane.xlu1 %1407  ;;  %v1427_v17 = vcvt.s32.f32 %v1425_v59  ;;  %v1495_v1 = vand.u32 65535, %v1422_v0 }
 0x71c   : > { %vm1416_vm7 = vcmp.le.f32.partialorder %v1392_v53, %v1408_v45  ;;  %1485 = vmin.xlane.f32.xlu0 %v1484_v58  ;;  %v1498_v62 = vcvt.s32.f32 %v1496_v38  ;;  %v1510_v32 = vshra.s32 %v1423_v4, 16  ;;  %v1441_v53 = vcvt.s32.f32 %v1439_v5 }
 0x71d   : > { %v1424_v31 = vsel %vm1416_vm7, %v5522_v60, 128  ;;  %v1467_v45 = vand.u32 65535, %v1420_v19  ;;  %v1497_v19 = vcvt.s32.f32 %v1495_v1 }
 0x71e   : > { %1499 = vmin.xlane.f32.xlu1 %v1498_v62  ;;  %v1512_v24 = vcvt.s32.f32 %v1510_v32  ;;  %v1524_v46 = vshra.s32 %v1424_v31, 16  ;;  %v1481_v32 = vand.u32 65535, %v1421_v28  ;;  %v1523_v5 = vand.u32 65535, %v1424_v31 }
 0x71f   : > { %v1469_v25 = vcvt.s32.f32 %v1467_v45 }
 0x720   : > { %1513 = vmin.xlane.f32.xlu0 %v1512_v24  ;;  %v1526_v16 = vcvt.s32.f32 %v1524_v46  ;;  %v1483_v3 = vcvt.s32.f32 %v1481_v32  ;;  %v1525_v28 = vcvt.s32.f32 %v1523_v5 }
 0x722   : > { %1527 = vmin.xlane.f32.xlu1 %v1526_v16 }
 0x7a1   : > { %v1430_v2 = vpop.xlane.xlu0 %1429 }
 0x7a2   : > { %vm1431_vm8 = vcmp.eq.f32.partialorder %v1428_v34, %v1430_v2  ;;  %v1436_v0 = vcvt.f32.s32 %v1430_v2 }
 0x7a3   : > { %v1444_v63 = vpop.xlane.xlu1 %1443  ;;  %v1432_v41 = vsel %vm1431_vm8, %v1427_v17, inf  ;;  %v1509_v17 = vand.u32 65535, %v1423_v4 }
 0x7a4   : > { %1433 = vmin.xlane.f32.xlu0 %v1432_v41  ;;  %vm1445_vm9 = vcmp.eq.f32.partialorder %v1442_v7, %v1444_v63  ;;  %v1437_v31 = vshll.u32 %v1436_v0, 16 }
 0x7a5   : > { %v1458_v38 = vpop.xlane.xlu0 %1457  ;;  %v1446_v39 = vsel %vm1445_vm9, %v1441_v53, inf }
 0x7a6   : > { %1447 = vmin.xlane.f32.xlu1 %v1446_v39  ;;  %vm1459_vm10 = vcmp.eq.f32.partialorder %v1456_v20, %v1458_v38  ;;  %v1511_v20 = vcvt.s32.f32 %v1509_v17 }
 0x7a7   : > { %v1472_v46 = vpop.xlane.xlu1 %1471  ;;  %v1460_v54 = vsel %vm1459_vm10, %v1455_v47, inf }
 0x7a8   : > { %1461 = vmin.xlane.f32.xlu0 %v1460_v54  ;;  %vm1473_vm11 = vcmp.eq.f32.partialorder %v1470_v27, %v1472_v46  ;;  %v1478_v45 = vcvt.f32.s32 %v1472_v46  ;;  %v1289_v46 = vsel %vm1287_vm0, %v5534_v10, 0 }
 0x7a9   : > { %v1486_v59 = vpop.xlane.xlu0 %1485  ;;  %v1474_v34 = vsel %vm1473_vm11, %v1469_v25, inf }
 0x7aa   : > { %1475 = vmin.xlane.f32.xlu1 %v1474_v34  ;;  %vm1487_vm12 = vcmp.eq.f32.partialorder %v1484_v58, %v1486_v59  ;;  %v1450_v58 = vcvt.f32.s32 %v1444_v63  ;;  %v1492_v34 = vcvt.f32.s32 %v1486_v59 }
 0x7ab   : > { %v1500_v41 = vpop.xlane.xlu1 %1499  ;;  %v1488_v7 = vsel %vm1487_vm12, %v1483_v3, inf }
 0x7ac   : > { %1489 = vmin.xlane.f32.xlu0 %v1488_v7  ;;  %vm1501_vm13 = vcmp.eq.f32.partialorder %v1498_v62, %v1500_v41  ;;  %v1464_v62 = vcvt.f32.s32 %v1458_v38  ;;  %v1451_v32 = vshll.u32 %v1450_v58, 16  ;;  %v1479_v7 = vshll.u32 %v1478_v45, 16 }
 0x7ad   : > { %v1514_v37 = vpop.xlane.xlu0 %1513  ;;  %v1502_v39 = vsel %vm1501_vm13, %v1497_v19, inf  ;;  %v1506_v19 = vcvt.f32.s32 %v1500_v41  ;;  %v6975_v58 = vmov 1.0|1.0  }
 0x7ae   : > { %1503 = vmin.xlane.f32.xlu1 %v1502_v39  ;;  %vm1515_vm14 = vcmp.eq.f32.partialorder %v1512_v24, %v1514_v37  ;;  %v1465_v63 = vshll.u32 %v1464_v62, 16  ;;  %v1520_v10 = vcvt.f32.s32 %v1514_v37 }
 0x7af   : > { %v5684_v47 = vpop.xlane.xlu1 %1527  ;;  %v1516_v54 = vsel %vm1515_vm14, %v1511_v20, inf  ;;  %v1290_v20 = vsel %vm1287_vm0, %v5536_v35, 0 }
 0x7b0   : > { %1517 = vmin.xlane.f32.xlu0 %v1516_v54  ;;  %vm1529_vm15 = vcmp.eq.f32.partialorder %v1526_v16, %v5684_v47  ;;  %v1288_v16 = vsel %vm1287_vm0, %v5532_v33, 0  ;;  %v1493_v54 = vshll.u32 %v1492_v34, 16  ;;  %v1534_v62 = vcvt.f32.s32 %v5684_v47 }
 0x7b1   : > { %v1530_v27 = vsel %vm1529_vm15, %v1525_v28, inf }
 0x7b2   : > { %1531 = vmin.xlane.f32.xlu1 %v1530_v27  ;;  %v1535_v34 = vshll.u32 %v1534_v62, 16 }
 0x831   : > { %v1434_v4 = vpop.xlane.xlu0 %1433 }
 0x832   : > { %v1435_v53 = vcvt.f32.s32 %v1434_v4  ;;  %v1291_v4 = vsel %vm1287_vm0, %v5542_v8, 0 }
 0x833   : > { %v1448_v24 = vpop.xlane.xlu1 %1447 }
 0x834   : > { %v1438_v25 = vadd.s32 %v1437_v31, %v1435_v53  ;;  %v1449_v1 = vcvt.f32.s32 %v1448_v24  ;;  %v1507_v31 = vshll.u32 %v1506_v19, 16  ;;  %v1292_v24 = vsel %vm1287_vm0, %v5549_v44, 0 }
 0x835   : > { %v1462_v2 = vpop.xlane.xlu0 %1461  ;;  %v1295_v19 = vsel %vm1287_vm0, %v5563_v43, 0  ;;  %v5778_v43 = vld [vmem:[%s6939_s7 + $0x18] sm:$0xff]  }
 0x836   : > { %v5694_v3 = vsel %vm1646_vm2, %v1438_v25, %v1288_v16  ;;  %v1452_v38 = vadd.s32 %v1451_v32, %v1449_v1  ;;  %v1463_v17 = vcvt.f32.s32 %v1462_v2  ;;  %vm1537_vm3 = vcmp.eq.s32.totalorder %v5522_v60, %v1438_v25 }
 0x837   : > { %v1476_v5 = vpop.xlane.xlu1 %1475  ;;  %v1521_v32 = vshll.u32 %v1520_v10, 16  ;;  %v1293_v16 = vsel %vm1287_vm0, %v5551_v51, 0  ;;  %v1294_v51 = vsel %vm1287_vm0, %v5555_v61, 0  ;;  %v5770_v61 = vld [vmem:[%s6939_s7 + $0x10] sm:$0xff]  }
 0x838   : > { %v5702_v33 = vsel %vm1646_vm2, %v1452_v38, %v1289_v46  ;;  %v1466_v59 = vadd.s32 %v1465_v63, %v1463_v17  ;;  %v1477_v39 = vcvt.f32.s32 %v1476_v5  ;;  %vm1538_vm4 = vcmp.eq.s32.totalorder %v5522_v60, %v1452_v38  ;;  %v5744_v17 = vld [vmem:[%s6939_s7 + $0x8] sm:$0xff]  }
 0x839   : > { %v1490_v28 = vpop.xlane.xlu0 %1489  ;;  %vm4176_vm5 = vmpackc.low %vm1538_vm4, %vm1537_vm3 }
 0x83a   : > { %v5710_v41 = vsel %vm1646_vm2, %v1466_v59, %v1290_v20  ;;  %v1480_v27 = vadd.s32 %v1479_v7, %v1477_v39  ;;  %v1491_v0 = vcvt.f32.s32 %v1490_v28  ;;  %4698 = vmatprep.mubr.msk.bf16.mxu0 %vm4176_vm5, %v6975_v58  ;;  %vm1539_vm6 = vcmp.eq.s32.totalorder %v5522_v60, %v1466_v59  ;;  %v5786_v59 = vld [vmem:[%s6939_s7 + $0x20] sm:$0xff]   ;;  %v5794_v39 = vld [vmem:[%s6939_s7 + $0x28] sm:$0xff]   ;;  %v5802_v20 = vld [vmem:[%s6939_s7 + $0x30] sm:$0xff]  }
 0x83b   : > { %v1504_v35 = vpop.xlane.xlu1 %1503  ;;  %v5114_v28 = vld [vmem:[%s6939_s7] sm:$0xff]  }
 0x83c   : > { %vm1540_vm7 = vcmp.eq.s32.totalorder %v5522_v60, %v1480_v27  ;;  %v5721_v37 = vsel %vm1646_vm2, %v1480_v27, %v1291_v4  ;;  %v1494_v53 = vadd.s32 %v1493_v54, %v1491_v0  ;;  %v1505_v45 = vcvt.f32.s32 %v1504_v35  ;;  %v5810_v54 = vld [vmem:[%s6939_s7 + $0x38] sm:$0xff]  }
 0x83d   : > { %vm4178_vm8 = vmpackc.low %vm1540_vm7, %vm1539_vm6  ;;  %v1518_v8 = vpop.xlane.xlu0 %1517 }
 0x83e   : > { %v5728_v47 = vsel %vm1646_vm2, %v1494_v53, %v1292_v24  ;;  %v1508_v25 = vadd.s32 %v1507_v31, %v1505_v45  ;;  %v1519_v1 = vcvt.f32.s32 %v1518_v8  ;;  %4699 = vmatmul.mubr.msk.bf16.vlgmr.msra.gmra.mrb[16].mxu0 %vm4178_vm8, %v6975_v58  ;;  %vm1541_vm9 = vcmp.eq.s32.totalorder %v5522_v60, %v1494_v53 }
 0x83f   : > { %v1532_v2 = vpop.xlane.xlu1 %1531  ;;  %4707 = vmatpush3.bf16.xpose.msra.mxu0 %v5323_v42 }
 0x840   : > { %v5738_v44 = vsel %vm1646_vm2, %v1508_v25, %v1293_v16  ;;  %v1522_v63 = vadd.s32 %v1521_v32, %v1519_v1  ;;  %v1533_v38 = vcvt.f32.s32 %v1532_v2  ;;  %vm1542_vm10 = vcmp.eq.s32.totalorder %v5522_v60, %v1508_v25  ;;  %5011 = vmatprep.subr.msk.bf16.mxu0 %vm902_vm1, %v5744_v17 }
 0x841   : > { %vm4180_vm11 = vmpackc.low %vm1542_vm10, %vm1541_vm9 }
 0x842   : > { %v5753_v46 = vsel %vm1646_vm2, %v1522_v63, %v1294_v51  ;;  %v1536_v7 = vadd.s32 %v1535_v34, %v1533_v38  ;;  %4702 = vmatprep.mubr.msk.bf16.mxu0 %vm4180_vm11, %v6975_v58  ;;  %vm1543_vm12 = vcmp.eq.s32.totalorder %v5522_v60, %v1522_v63  ;;  %v5895_v51 = vld [vmem:[%s6940_s8] ss:$0 sm:$0xff] }
 0x843   : > { %6984 = vst [vmem:[#allocation19_spill] sm:$0xff] %v5895_v51 }
 0x844   : > { %v5761_v5 = vsel %vm1646_vm2, %v1536_v7, %v1295_v19  ;;  %vm1544_vm13 = vcmp.eq.s32.totalorder %v5522_v60, %v1536_v7 }
 0x845   : > { %vm4182_vm14 = vmpackc.low %vm1544_vm13, %vm1543_vm12 }
 0x846   : > { %4703 = vmatmul.mubr.msk.bf16.gmra.mrb[20].mxu0 %vm4182_vm14, %v6975_v58 }
 0x847   : > { %4709 = vmatpush3.bf16.xpose.msra.mxu0 %v5348_v15 }
 0x848   : > { %5012 = vmatprep.subr.msk.bf16.mxu0 %vm902_vm1, %v5770_v61 }
 0x84f   : > { %4711 = vmatpush3.bf16.xpose.msra.mxu0 %v5371_v18 }
 0x850   : > { %5013 = vmatprep.subr.msk.bf16.mxu0 %vm902_vm1, %v5778_v43 }
 0x857   : > { %4713 = vmatpush3.bf16.xpose.msra.mxu0 %v5392_v21 }
 0x858   : > { %5014 = vmatprep.subr.msk.bf16.mxu0 %vm902_vm1, %v5786_v59 }
 0x85f   : > { %4715 = vmatpush3.bf16.xpose.msra.mxu0 %v5401_v22 }
 0x860   : > { %5015 = vmatprep.subr.msk.bf16.mxu0 %vm902_vm1, %v5794_v39 }
 0x867   : > { %4717 = vmatpush3.bf16.xpose.msra.mxu0 %v5408_v23 }
 0x868   : > { %5016 = vmatprep.subr.msk.bf16.mxu0 %vm902_vm1, %v5802_v20 }
 0x86f   : > { %4719 = vmatpush3.bf16.xpose.msra.mxu0 %v5415_v26 }
 0x870   : > { %5017 = vmatprep.subr.msk.bf16.mxu0 %vm902_vm1, %v5810_v54 }
 0x877   : > { %4721 = vmatpush3.bf16.xpose.msra.mxu0 %v5427_v29 }
 0x878   : > { %4778 = vmatprep.subr.bf16.mxu0 %v5114_v28 }
 0x911   : > { %v4700_v10 = vpop.f32.mrb[16].mxu0 }
 0x912   : > { %v5819_v27 = vadd.f32 %v4700_v10, %v5591_v55  ;;  %v1599_v0 = vpop.f32.mrb[17].mxu0 }
 0x913   : > { %v5822_v4 = vadd.f32 %v1599_v0, %v5593_v9  ;;  %v4701_v31 = vpop.f32.mrb[18].mxu0  ;;  %v5831_v45 = vsub.f32 %v5605_v36, %v1599_v0  ;;  %v5840_v9 = vsub.f32 %v5613_v14, %v4700_v10 }
 0x914   : > { %v5825_v62 = vadd.f32 %v4701_v31, %v5595_v13  ;;  %v5828_v35 = vsub.f32 %v5599_v52, %v4701_v31  ;;  %v1602_v53 = vpop.f32.mrb[19].mxu0 }
 0x915   : > { %v5834_v24 = vadd.f32 %v1602_v53, %v5601_v56  ;;  %v5837_v55 = vsub.f32 %v5609_v11, %v1602_v53 }
 0x916   : > { %v1656_v52 = vpack.c.bf16 %v5828_v35, %v5840_v9 }
 0x917   : > { %v1655_v13 = vpack.c.bf16 %v5837_v55, %v5831_v45 }
 0x919   : > { %v4704_v8 = vpop.f32.mrb[20].mxu0  ;;  %4722 = vmatprep.mubr.msk.bf16.mxu0 %vm902_vm1, %v1655_v13 }
 0x91a   : > { %v5848_v36 = vadd.f32 %v4704_v8, %v5619_v6  ;;  %v1615_v56 = vpop.f32.mrb[21].mxu0  ;;  %4723 = vmatmul.mubr.msk.bf16.vlgmr.msra.gmra.mrb[24].mxu0 %vm902_vm1, %v1656_v52  ;;  %v5871_v34 = vsub.f32 %v5645_v40, %v4704_v8 }
 0x91b   : > { %v5852_v11 = vadd.f32 %v1615_v56, %v5622_v48  ;;  %v4705_v14 = vpop.f32.mrb[22].mxu0  ;;  %4779 = vmatpush3.bf16.msra.mxu0 %v5114_v28  ;;  %v5862_v6 = vsub.f32 %v5637_v57, %v1615_v56 }
 0x91c   : > { %6976 = vst [vmem:[#allocation11_spill] sm:$0xff] %v5848_v36  ;;  %v5855_v32 = vadd.f32 %v4705_v14, %v5625_v49  ;;  %v5858_v25 = vsub.f32 %v5630_v50, %v4705_v14  ;;  %v1618_v1 = vpop.f32.mrb[23].mxu0  ;;  %4780 = vmatprep.subr.bf16.mxu0 %v5744_v17  ;;  %6983 = vst [vmem:[#allocation18_spill] sm:$0xff] %v5871_v34 }
 0x91d   : > { %6977 = vst [vmem:[#allocation12_spill] sm:$0xff] %v5852_v11  ;;  %6980 = vst [vmem:[#allocation15_spill] sm:$0xff] %v5862_v6  ;;  %v5865_v16 = vadd.f32 %v1618_v1, %v5632_v30  ;;  %v5868_v48 = vsub.f32 %v5641_v12, %v1618_v1 }
 0x91e   : > { %6978 = vst [vmem:[#allocation13_spill] sm:$0xff] %v5855_v32  ;;  %6979 = vst [vmem:[#allocation14_spill] sm:$0xff] %v5858_v25  ;;  %v1658_v50 = vpack.c.bf16 %v5858_v25, %v5871_v34 }
 0x91f   : > { %6981 = vst [vmem:[#allocation16_spill] sm:$0xff] %v5865_v16  ;;  %6982 = vst [vmem:[#allocation17_spill] sm:$0xff] %v5868_v48  ;;  %v1657_v49 = vpack.c.bf16 %v5868_v48, %v5862_v6  ;;  %4781 = vmatpush3.bf16.msra.mxu0 %v5744_v17 }
 0x920   : > { %4782 = vmatprep.subr.bf16.mxu0 %v5770_v61 }
 0x921   : > { %4726 = vmatprep.mubr.msk.bf16.mxu0 %vm902_vm1, %v1657_v49 }
 0x922   : > { %4727 = vmatmul.mubr.msk.bf16.gmra.mrb[28].mxu0 %vm902_vm1, %v1658_v50 }
 0x923   : > { %4783 = vmatpush3.bf16.msra.mxu0 %v5770_v61 }
 0x924   : > { %4784 = vmatprep.subr.bf16.mxu0 %v5778_v43 }
 0x927   : > { %4785 = vmatpush3.bf16.msra.mxu0 %v5778_v43 }
 0x928   : > { %4786 = vmatprep.subr.bf16.mxu0 %v5786_v59 }
 0x92b   : > { %4787 = vmatpush3.bf16.msra.mxu0 %v5786_v59 }
 0x92c   : > { %4788 = vmatprep.subr.bf16.mxu0 %v5794_v39 }
 0x92f   : > { %4789 = vmatpush3.bf16.msra.mxu0 %v5794_v39 }
 0x930   : > { %4790 = vmatprep.subr.bf16.mxu0 %v5802_v20 }
 0x933   : > { %4791 = vmatpush3.bf16.msra.mxu0 %v5802_v20 }
 0x934   : > { %4792 = vmatprep.subr.bf16.mxu0 %v5810_v54 }
 0x937   : > { %4793 = vmatpush3.bf16.msra.mxu0 %v5810_v54 }
 0x9ed   : > { %v4724_v30 = vpop.f32.mrb[24].mxu0 }
 0x9ee   : > { %v1705_v57 = vpop.f32.mrb[25].mxu0  ;;  %v1738_v63 = vmul.f32 2.0, %v4724_v30 }
 0x9ef   : > { %v1736_v12 = vmul.f32 2.0, %v1705_v57  ;;  %v4725_v40 = vpop.f32.mrb[26].mxu0 }
 0x9f0   : > { %v1708_v2 = vpop.f32.mrb[27].mxu0  ;;  %v1739_v19 = vmul.f32 2.0, %v4725_v40  ;;  %v1746_v0 = vsub.f32 %v5895_v51, %v1738_v63 }
 0x9f1   : > { %v1737_v38 = vmul.f32 2.0, %v1708_v2  ;;  %v1744_v7 = vsub.f32 %v5895_v51, %v1736_v12 }
 0x9f2   : > { %v1747_v52 = vsub.f32 %v5895_v51, %v1739_v19 }
 0x9f3   : > { %1752 = vmin.xlane.f32.xlu0 %v1744_v7  ;;  %v1745_v28 = vsub.f32 %v5895_v51, %v1737_v38 }
 0x9f5   : > { %1754 = vmin.xlane.f32.xlu1 %v1745_v28  ;;  %v4728_v10 = vpop.f32.mrb[28].mxu0 }
 0x9f6   : > { %v1721_v31 = vpop.f32.mrb[29].mxu0  ;;  %v1742_v56 = vmul.f32 2.0, %v4728_v10 }
 0x9f7   : > { %v1740_v53 = vmul.f32 2.0, %v1721_v31  ;;  %1756 = vmin.xlane.f32.xlu0 %v1746_v0  ;;  %v4729_v13 = vpop.f32.mrb[30].mxu0 }
 0x9f8   : > { %v1724_v8 = vpop.f32.mrb[31].mxu0  ;;  %v1743_v49 = vmul.f32 2.0, %v4729_v13  ;;  %v1750_v30 = vsub.f32 %v5895_v51, %v1742_v56 }
 0x9f9   : > { %v1741_v14 = vmul.f32 2.0, %v1724_v8  ;;  %1758 = vmin.xlane.f32.xlu1 %v1747_v52  ;;  %v1748_v1 = vsub.f32 %v5895_v51, %v1740_v53 }
 0x9fa   : > { %v1751_v57 = vsub.f32 %v5895_v51, %v1743_v49 }
 0x9fb   : > { %1760 = vmin.xlane.f32.xlu0 %v1748_v1  ;;  %v1749_v50 = vsub.f32 %v5895_v51, %v1741_v14 }
 0x9fd   : > { %1762 = vmin.xlane.f32.xlu1 %v1749_v50 }
 0x9ff   : > { %1764 = vmin.xlane.f32.xlu0 %v1750_v30 }
 0xa01   : > { %1766 = vmin.xlane.f32.xlu1 %v1751_v57 }
 0xa80   : > { %v1753_v12 = vpop.xlane.xlu0 %1752 }
 0xa81   : > { %vm1768_vm15 = vcmp.le.f32.partialorder %v1744_v7, %v1753_v12 }
 0xa82   : > { %v1776_v40 = vsel %vm1768_vm15, %v5522_v60, 128  ;;  %v1755_v2 = vpop.xlane.xlu1 %1754 }
 0xa83   : > { %vm1769_vm0 = vcmp.le.f32.partialorder %v1745_v28, %v1755_v2  ;;  %v1785_v63 = vshra.s32 %v1776_v40, 16  ;;  %v1784_v16 = vand.u32 65535, %v1776_v40 }
 0xa84   : > { %v1777_v38 = vsel %vm1769_vm0, %v5522_v60, 128  ;;  %v1757_v19 = vpop.xlane.xlu0 %1756  ;;  %vm2005_vm0 = vcmp.eq.s32.totalorder %v5522_v60, 2 }
 0xa85   : > { %vm1770_vm2 = vcmp.le.f32.partialorder %v1746_v0, %v1757_v19  ;;  %v1787_v10 = vcvt.s32.f32 %v1785_v63  ;;  %v1799_v31 = vshra.s32 %v1777_v38, 16 }
 0xa86   : > { %v1778_v53 = vsel %vm1770_vm2, %v5522_v60, 128  ;;  %v1759_v13 = vpop.xlane.xlu1 %1758 }
 0xa87   : > { %vm1771_vm3 = vcmp.le.f32.partialorder %v1747_v52, %v1759_v13  ;;  %1788 = vmin.xlane.f32.xlu0 %v1787_v10  ;;  %v1801_v8 = vcvt.s32.f32 %v1799_v31  ;;  %v1813_v56 = vshra.s32 %v1778_v53, 16  ;;  %v1812_v6 = vand.u32 65535, %v1778_v53 }
 0xa88   : > { %v1779_v7 = vsel %vm1771_vm3, %v5522_v60, 128  ;;  %v1761_v14 = vpop.xlane.xlu0 %1760 }
 0xa89   : > { %vm1772_vm4 = vcmp.le.f32.partialorder %v1748_v1, %v1761_v14  ;;  %1802 = vmin.xlane.f32.xlu1 %v1801_v8  ;;  %v1815_v28 = vcvt.s32.f32 %v1813_v56  ;;  %v1827_v49 = vshra.s32 %v1779_v7, 16  ;;  %v1814_v11 = vcvt.s32.f32 %v1812_v6 }
 0xa8a   : > { %v1780_v12 = vsel %vm1772_vm4, %v5522_v60, 128  ;;  %v1763_v2 = vpop.xlane.xlu1 %1762 }
 0xa8b   : > { %vm1773_vm5 = vcmp.le.f32.partialorder %v1749_v50, %v1763_v2  ;;  %1816 = vmin.xlane.f32.xlu0 %v1815_v28  ;;  %v1829_v0 = vcvt.s32.f32 %v1827_v49  ;;  %v1841_v63 = vshra.s32 %v1780_v12, 16 }
 0xa8c   : > { %v1781_v19 = vsel %vm1773_vm5, %v5522_v60, 128  ;;  %v1765_v52 = vpop.xlane.xlu0 %1764 }
 0xa8d   : > { %vm1774_vm6 = vcmp.le.f32.partialorder %v1750_v30, %v1765_v52  ;;  %1830 = vmin.xlane.f32.xlu1 %v1829_v0  ;;  %v1843_v31 = vcvt.s32.f32 %v1841_v63  ;;  %v1855_v13 = vshra.s32 %v1781_v19, 16  ;;  %v1798_v30 = vand.u32 65535, %v1777_v38 }
 0xa8e   : > { %v1782_v51 = vsel %vm1774_vm6, %v5522_v60, 128  ;;  %v1767_v1 = vpop.xlane.xlu1 %1766  ;;  %v1786_v63 = vcvt.s32.f32 %v1784_v16  ;;  %v1854_v38 = vand.u32 65535, %v1781_v19 }
 0xa8f   : > { %vm1775_vm7 = vcmp.le.f32.partialorder %v1751_v57, %v1767_v1  ;;  %1844 = vmin.xlane.f32.xlu0 %v1843_v31  ;;  %v1857_v56 = vcvt.s32.f32 %v1855_v13  ;;  %v1869_v14 = vshra.s32 %v1782_v51, 16  ;;  %v1800_v57 = vcvt.s32.f32 %v1798_v30 }
 0xa90   : > { %v1783_v48 = vsel %vm1775_vm7, %v5522_v60, 128  ;;  %v1826_v1 = vand.u32 65535, %v1779_v7  ;;  %v1856_v7 = vcvt.s32.f32 %v1854_v38 }
 0xa91   : > { %1858 = vmin.xlane.f32.xlu1 %v1857_v56  ;;  %v1871_v50 = vcvt.s32.f32 %v1869_v14  ;;  %v1883_v49 = vshra.s32 %v1783_v48, 16  ;;  %v1840_v14 = vand.u32 65535, %v1780_v12  ;;  %v1882_v30 = vand.u32 65535, %v1783_v48 }
 0xa92   : > { %v1828_v40 = vcvt.s32.f32 %v1826_v1 }
 0xa93   : > { %1872 = vmin.xlane.f32.xlu0 %v1871_v50  ;;  %v1885_v2 = vcvt.s32.f32 %v1883_v49  ;;  %v1842_v53 = vcvt.s32.f32 %v1840_v14  ;;  %v1884_v12 = vcvt.s32.f32 %v1882_v30 }
 0xa95   : > { %1886 = vmin.xlane.f32.xlu1 %v1885_v2 }
 0xb14   : > { %v1789_v52 = vpop.xlane.xlu0 %1788 }
 0xb15   : > { %vm1790_vm8 = vcmp.eq.f32.partialorder %v1787_v10, %v1789_v52 }
 0xb16   : > { %v1803_v25 = vpop.xlane.xlu1 %1802  ;;  %v1791_v32 = vsel %vm1790_vm8, %v1786_v63, inf  ;;  %v1868_v63 = vand.u32 65535, %v1782_v51  ;;  %v1795_v51 = vcvt.f32.s32 %v1789_v52 }
 0xb17   : > { %1792 = vmin.xlane.f32.xlu0 %v1791_v32  ;;  %vm1804_vm9 = vcmp.eq.f32.partialorder %v1801_v8, %v1803_v25  ;;  %v1809_v19 = vcvt.f32.s32 %v1803_v25 }
 0xb18   : > { %v1817_v13 = vpop.xlane.xlu0 %1816  ;;  %v1805_v34 = vsel %vm1804_vm9, %v1800_v57, inf  ;;  %v1796_v57 = vshll.u32 %v1795_v51, 16 }
 0xb19   : > { %1806 = vmin.xlane.f32.xlu1 %v1805_v34  ;;  %vm1818_vm10 = vcmp.eq.f32.partialorder %v1815_v28, %v1817_v13  ;;  %v1870_v28 = vcvt.s32.f32 %v1868_v63  ;;  %v1823_v1 = vcvt.f32.s32 %v1817_v13 }
 0xb1a   : > { %v1831_v49 = vpop.xlane.xlu1 %1830  ;;  %v1819_v36 = vsel %vm1818_vm10, %v1814_v11, inf }
 0xb1b   : > { %1820 = vmin.xlane.f32.xlu0 %v1819_v36  ;;  %vm1832_vm11 = vcmp.eq.f32.partialorder %v1829_v0, %v1831_v49  ;;  %v1837_v14 = vcvt.f32.s32 %v1831_v49  ;;  %v1824_v63 = vshll.u32 %v1823_v1, 16 }
 0xb1c   : > { %v1845_v16 = vpop.xlane.xlu0 %1844  ;;  %v1833_v10 = vsel %vm1832_vm11, %v1828_v40, inf  ;;  %v1810_v40 = vshll.u32 %v1809_v19, 16 }
 0xb1d   : > { %1834 = vmin.xlane.f32.xlu1 %v1833_v10  ;;  %vm1846_vm12 = vcmp.eq.f32.partialorder %v1843_v31, %v1845_v16  ;;  %v1851_v10 = vcvt.f32.s32 %v1845_v16 }
 0xb1e   : > { %v1859_v32 = vpop.xlane.xlu1 %1858  ;;  %v1847_v8 = vsel %vm1846_vm12, %v1842_v53, inf }
 0xb1f   : > { %1848 = vmin.xlane.f32.xlu0 %v1847_v8  ;;  %vm1860_vm13 = vcmp.eq.f32.partialorder %v1857_v56, %v1859_v32  ;;  %v1838_v8 = vshll.u32 %v1837_v14, 16  ;;  %v1865_v13 = vcvt.f32.s32 %v1859_v32 }
 0xb20   : > { %v1873_v6 = vpop.xlane.xlu0 %1872  ;;  %v1861_v34 = vsel %vm1860_vm13, %v1856_v7, inf }
 0xb21   : > { %1862 = vmin.xlane.f32.xlu1 %v1861_v34  ;;  %vm1874_vm14 = vcmp.eq.f32.partialorder %v1871_v50, %v1873_v6  ;;  %v1852_v34 = vshll.u32 %v1851_v10, 16 }
 0xb22   : > { %v1887_v11 = vpop.xlane.xlu1 %1886  ;;  %v1875_v36 = vsel %vm1874_vm14, %v1870_v28, inf }
 0xb23   : > { %1876 = vmin.xlane.f32.xlu0 %v1875_v36  ;;  %vm1888_vm15 = vcmp.eq.f32.partialorder %v1885_v2, %v1887_v11 }
 0xb24   : > { %v1889_v0 = vsel %vm1888_vm15, %v1884_v12, inf }
 0xb25   : > { %1890 = vmin.xlane.f32.xlu1 %v1889_v0  ;;  %v1866_v0 = vshll.u32 %v1865_v13, 16 }
 0xba4   : > { %v1793_v31 = vpop.xlane.xlu0 %1792 }
 0xba5   : > { %v1794_v48 = vcvt.f32.s32 %v1793_v31 }
 0xba6   : > { %v1807_v56 = vpop.xlane.xlu1 %1806 }
 0xba7   : > { %v1797_v38 = vadd.s32 %v1796_v57, %v1794_v48  ;;  %v1808_v50 = vcvt.f32.s32 %v1807_v56 }
 0xba8   : > { %v1821_v53 = vpop.xlane.xlu0 %1820 }
 0xba9   : > { %v5917_v2 = vsel %vm2005_vm0, %v1797_v38, %v5694_v3  ;;  %v1811_v25 = vadd.s32 %v1810_v40, %v1808_v50  ;;  %v1822_v52 = vcvt.f32.s32 %v1821_v53  ;;  %vm1896_vm2 = vcmp.eq.s32.totalorder %v5522_v60, %v1797_v38 }
 0xbaa   : > { %v1835_v7 = vpop.xlane.xlu1 %1834  ;;  %v1879_v3 = vcvt.f32.s32 %v1873_v6 }
 0xbab   : > { %v5923_v49 = vsel %vm2005_vm0, %v1811_v25, %v5702_v33  ;;  %v1825_v16 = vadd.s32 %v1824_v63, %v1822_v52  ;;  %v1836_v30 = vcvt.f32.s32 %v1835_v7  ;;  %vm1897_vm3 = vcmp.eq.s32.totalorder %v5522_v60, %v1811_v25  ;;  %v6990_v25 = vld [vmem:[#allocation15_spill] sm:$0xff]  ;;  %v6992_v7 = vld [vmem:[#allocation17_spill] sm:$0xff] }
 0xbac   : > { %v1849_v28 = vpop.xlane.xlu0 %1848  ;;  %vm4196_vm4 = vmpackc.low %vm1897_vm3, %vm1896_vm2  ;;  %v1893_v33 = vcvt.f32.s32 %v1887_v11  ;;  %v1880_v57 = vshll.u32 %v1879_v3, 16 }
 0xbad   : > { %v5929_v32 = vsel %vm2005_vm0, %v1825_v16, %v5710_v41  ;;  %v1839_v36 = vadd.s32 %v1838_v8, %v1836_v30  ;;  %v1850_v12 = vcvt.f32.s32 %v1849_v28  ;;  %4746 = vmatprep.mubr.msk.bf16.mxu1 %vm4196_vm4, %v6975_v58  ;;  %vm1898_vm5 = vcmp.eq.s32.totalorder %v5522_v60, %v1825_v16  ;;  %v6991_v8 = vld [vmem:[#allocation16_spill] sm:$0xff] }
 0xbae   : > { %v1863_v51 = vpop.xlane.xlu1 %1862  ;;  %v1894_v14 = vshll.u32 %v1893_v33, 16 }
 0xbaf   : > { %vm1899_vm6 = vcmp.eq.s32.totalorder %v5522_v60, %v1839_v36  ;;  %v5937_v6 = vsel %vm2005_vm0, %v1839_v36, %v5721_v37  ;;  %v1853_v19 = vadd.s32 %v1852_v34, %v1850_v12  ;;  %v1864_v31 = vcvt.f32.s32 %v1863_v51 }
 0xbb0   : > { %vm4198_vm7 = vmpackc.low %vm1899_vm6, %vm1898_vm5  ;;  %v1877_v41 = vpop.xlane.xlu0 %1876 }
 0xbb1   : > { %v5942_v1 = vsel %vm2005_vm0, %v1853_v19, %v5728_v47  ;;  %v1867_v11 = vadd.s32 %v1866_v0, %v1864_v31  ;;  %v1878_v48 = vcvt.f32.s32 %v1877_v41  ;;  %4747 = vmatmul.mubr.msk.bf16.vlgmr.msra.gmra.mrb[24].mxu1 %vm4198_vm7, %v6975_v58  ;;  %vm1900_vm8 = vcmp.eq.s32.totalorder %v5522_v60, %v1853_v19  ;;  %v6993_v19 = vld [vmem:[#allocation19_spill] sm:$0xff] }
 0xbb2   : > { %v1891_v56 = vpop.xlane.xlu1 %1890  ;;  %4755 = vmatpush3.bf16.xpose.msra.mxu1 %v5323_v42 }
 0xbb3   : > { %v5950_v37 = vsel %vm2005_vm0, %v1867_v11, %v5738_v44  ;;  %v1881_v40 = vadd.s32 %v1880_v57, %v1878_v48  ;;  %v1892_v38 = vcvt.f32.s32 %v1891_v56  ;;  %vm1901_vm9 = vcmp.eq.s32.totalorder %v5522_v60, %v1867_v11  ;;  %5019 = vmatprep.subr.msk.bf16.mxu1 %vm902_vm1, %v5744_v17 }
 0xbb4   : > { %vm4200_vm10 = vmpackc.low %vm1901_vm9, %vm1900_vm8 }
 0xbb5   : > { %v5958_v47 = vsel %vm2005_vm0, %v1881_v40, %v5753_v46  ;;  %v1895_v50 = vadd.s32 %v1894_v14, %v1892_v38  ;;  %4750 = vmatprep.mubr.msk.bf16.mxu1 %vm4200_vm10, %v6975_v58  ;;  %vm1902_vm11 = vcmp.eq.s32.totalorder %v5522_v60, %v1881_v40 }
 0xbb7   : > { %v5964_v42 = vsel %vm2005_vm0, %v1895_v50, %v5761_v5  ;;  %vm1903_vm12 = vcmp.eq.s32.totalorder %v5522_v60, %v1895_v50 }
 0xbb8   : > { %vm4202_vm13 = vmpackc.low %vm1903_vm12, %vm1902_vm11 }
 0xbb9   : > { %4751 = vmatmul.mubr.msk.bf16.gmra.mrb[28].mxu1 %vm4202_vm13, %v6975_v58 }
 0xbba   : > { %4757 = vmatpush3.bf16.xpose.msra.mxu1 %v5348_v15 }
 0xbbb   : > { %5020 = vmatprep.subr.msk.bf16.mxu1 %vm902_vm1, %v5770_v61 }
 0xbc2   : > { %4759 = vmatpush3.bf16.xpose.msra.mxu1 %v5371_v18 }
 0xbc3   : > { %5021 = vmatprep.subr.msk.bf16.mxu1 %vm902_vm1, %v5778_v43 }
 0xbca   : > { %4761 = vmatpush3.bf16.xpose.msra.mxu1 %v5392_v21 }
 0xbcb   : > { %5022 = vmatprep.subr.msk.bf16.mxu1 %vm902_vm1, %v5786_v59 }
 0xbd2   : > { %4763 = vmatpush3.bf16.xpose.msra.mxu1 %v5401_v22 }
 0xbd3   : > { %5023 = vmatprep.subr.msk.bf16.mxu1 %vm902_vm1, %v5794_v39 }
 0xbda   : > { %4765 = vmatpush3.bf16.xpose.msra.mxu1 %v5408_v23 }
 0xbdb   : > { %5024 = vmatprep.subr.msk.bf16.mxu1 %vm902_vm1, %v5802_v20  ;;  %v6985_v20 = vld [vmem:[#allocation11_spill] sm:$0xff] }
 0xbe2   : > { %4767 = vmatpush3.bf16.xpose.msra.mxu1 %v5415_v26 }
 0xbe3   : > { %5025 = vmatprep.subr.msk.bf16.mxu1 %vm902_vm1, %v5810_v54 }
 0xbea   : > { %4769 = vmatpush3.bf16.xpose.msra.mxu1 %v5427_v29 }
 0xc84   : > { %v4748_v15 = vpop.f32.mrb[24].mxu1 }
 0xc85   : > { %v5989_v18 = vadd.f32 %v4748_v15, %v5819_v27  ;;  %v1958_v21 = vpop.f32.mrb[25].mxu1  ;;  %v1999_v23 = vsub.f32 %v5840_v9, %v4748_v15  ;;  %v6988_v9 = vld [vmem:[#allocation13_spill] sm:$0xff] }
 0xc86   : > { %v5992_v22 = vadd.f32 %v1958_v21, %v5822_v4  ;;  %v4749_v44 = vpop.f32.mrb[26].mxu1  ;;  %v1997_v5 = vsub.f32 %v5831_v45, %v1958_v21  ;;  %v6986_v4 = vld [vmem:[#allocation12_spill] sm:$0xff]  ;;  %v6987_v45 = vld [vmem:[#allocation18_spill] sm:$0xff] }
 0xc87   : > { %v5996_v17 = vadd.f32 %v4749_v44, %v5825_v62  ;;  %v2000_v26 = vsub.f32 %v5828_v35, %v4749_v44  ;;  %v1961_v46 = vpop.f32.mrb[27].mxu1 }
 0xc88   : > { %v6001_v29 = vadd.f32 %v1961_v46, %v5834_v24  ;;  %v1998_v61 = vsub.f32 %v5837_v55, %v1961_v46  ;;  %v6989_v55 = vld [vmem:[#allocation14_spill] sm:$0xff] }
 0xc89   : > { %v2015_v43 = vpack.c.bf16 %v2000_v26, %v1999_v23 }
 0xc8a   : > { %v2014_v59 = vpack.c.bf16 %v1998_v61, %v1997_v5 }
 0xc8c   : > { %v4752_v39 = vpop.f32.mrb[28].mxu1  ;;  %4770 = vmatprep.mubr.msk.bf16.mxu1 %vm902_vm1, %v2014_v59 }
 0xc8d   : > { %v6006_v54 = vadd.f32 %v4752_v39, %v6985_v20  ;;  %v1974_v27 = vpop.f32.mrb[29].mxu1  ;;  %4771 = vmatmul.mubr.msk.bf16.vlgmr.msra.gmra.mrb[32].mxu1 %vm902_vm1, %v2015_v43  ;;  %v2003_v24 = vsub.f32 %v6987_v45, %v4752_v39 }
 0xc8e   : > { %v6010_v62 = vadd.f32 %v1974_v27, %v6986_v4  ;;  %v4753_v35 = vpop.f32.mrb[30].mxu1  ;;  %v2001_v52 = vsub.f32 %v6990_v25, %v1974_v27 }
 0xc8f   : > { %v6014_v10 = vadd.f32 %v4753_v35, %v6988_v9  ;;  %v2004_v53 = vsub.f32 %v6989_v55, %v4753_v35  ;;  %v1977_v63 = vpop.f32.mrb[31].mxu1 }
 0xc90   : > { %v6019_v13 = vadd.f32 %v1977_v63, %v6991_v8  ;;  %v2002_v16 = vsub.f32 %v6992_v7, %v1977_v63 }
 0xc91   : > { %v2017_v30 = vpack.c.bf16 %v2004_v53, %v2003_v24 }
 0xc92   : > { %v2016_v34 = vpack.c.bf16 %v2002_v16, %v2001_v52 }
 0xc94   : > { %4774 = vmatprep.mubr.msk.bf16.mxu1 %vm902_vm1, %v2016_v34 }
 0xc95   : > { %4775 = vmatmul.mubr.msk.bf16.gmra.mrb[36].mxu1 %vm902_vm1, %v2017_v30 }
 0xd60   : > { %v4772_v28 = vpop.f32.mrb[32].mxu1 }
 0xd61   : > { %v2064_v3 = vpop.f32.mrb[33].mxu1  ;;  %v2097_v33 = vmul.f32 2.0, %v4772_v28 }
 0xd62   : > { %v2095_v36 = vmul.f32 2.0, %v2064_v3  ;;  %v4773_v12 = vpop.f32.mrb[34].mxu1 }
 0xd63   : > { %v2067_v0 = vpop.f32.mrb[35].mxu1  ;;  %v2098_v41 = vmul.f32 2.0, %v4773_v12  ;;  %v2105_v48 = vsub.f32 %v6993_v19, %v2097_v33 }
 0xd64   : > { %v2096_v51 = vmul.f32 2.0, %v2067_v0  ;;  %v2103_v31 = vsub.f32 %v6993_v19, %v2095_v36 }
 0xd65   : > { %v2106_v38 = vsub.f32 %v6993_v19, %v2098_v41 }
 0xd66   : > { %2111 = vmin.xlane.f32.xlu0 %v2103_v31  ;;  %v2104_v57 = vsub.f32 %v6993_v19, %v2096_v51 }
 0xd68   : > { %2113 = vmin.xlane.f32.xlu1 %v2104_v57  ;;  %v4776_v11 = vpop.f32.mrb[36].mxu1 }
 0xd69   : > { %v2080_v14 = vpop.f32.mrb[37].mxu1  ;;  %v2101_v15 = vmul.f32 2.0, %v4776_v11 }
 0xd6a   : > { %v2099_v56 = vmul.f32 2.0, %v2080_v14  ;;  %2115 = vmin.xlane.f32.xlu0 %v2105_v48  ;;  %v4777_v40 = vpop.f32.mrb[38].mxu1 }
 0xd6b   : > { %v2083_v50 = vpop.f32.mrb[39].mxu1  ;;  %v2102_v23 = vmul.f32 2.0, %v4777_v40  ;;  %v2109_v46 = vsub.f32 %v6993_v19, %v2101_v15 }
 0xd6c   : > { %v2100_v21 = vmul.f32 2.0, %v2083_v50  ;;  %2117 = vmin.xlane.f32.xlu1 %v2106_v38  ;;  %v2107_v44 = vsub.f32 %v6993_v19, %v2099_v56 }
 0xd6d   : > { %v2110_v5 = vsub.f32 %v6993_v19, %v2102_v23 }
 0xd6e   : > { %2119 = vmin.xlane.f32.xlu0 %v2107_v44  ;;  %v2108_v26 = vsub.f32 %v6993_v19, %v2100_v21 }
 0xd70   : > { %2121 = vmin.xlane.f32.xlu1 %v2108_v26 }
 0xd72   : > { %2123 = vmin.xlane.f32.xlu0 %v2109_v46 }
 0xd74   : > { %2125 = vmin.xlane.f32.xlu1 %v2110_v5 }
 0xdf3   : > { %v2112_v61 = vpop.xlane.xlu0 %2111 }
 0xdf4   : > { %vm2127_vm14 = vcmp.le.f32.partialorder %v2103_v31, %v2112_v61 }
 0xdf5   : > { %v2135_v43 = vsel %vm2127_vm14, %v5522_v60, 128  ;;  %v2114_v59 = vpop.xlane.xlu1 %2113 }
 0xdf6   : > { %vm2128_vm15 = vcmp.le.f32.partialorder %v2104_v57, %v2114_v59  ;;  %v2144_v39 = vshra.s32 %v2135_v43, 16  ;;  %v2143_v11 = vand.u32 65535, %v2135_v43 }
 0xdf7   : > { %v2136_v20 = vsel %vm2128_vm15, %v5522_v60, 128  ;;  %v2116_v27 = vpop.xlane.xlu0 %2115  ;;  %vm2356_vm15 = vcmp.eq.s32.totalorder %v5522_v60, 3 }
 0xdf8   : > { %vm2129_vm0 = vcmp.le.f32.partialorder %v2105_v48, %v2116_v27  ;;  %v2146_v4 = vcvt.s32.f32 %v2144_v39  ;;  %v2158_v35 = vshra.s32 %v2136_v20, 16  ;;  %v2157_v48 = vand.u32 65535, %v2136_v20 }
 0xdf9   : > { %v2137_v45 = vsel %vm2129_vm0, %v5522_v60, 128  ;;  %v2118_v24 = vpop.xlane.xlu1 %2117  ;;  %v2145_v40 = vcvt.s32.f32 %v2143_v11 }
 0xdfa   : > { %v2172_v9 = vshra.s32 %v2137_v45, 16  ;;  %vm2130_vm2 = vcmp.le.f32.partialorder %v2106_v38, %v2118_v24  ;;  %2147 = vmin.xlane.f32.xlu0 %v2146_v4  ;;  %v2160_v55 = vcvt.s32.f32 %v2158_v35  ;;  %v2171_v14 = vand.u32 65535, %v2137_v45 }
 0xdfb   : > { %v2138_v53 = vsel %vm2130_vm2, %v5522_v60, 128  ;;  %v2120_v63 = vpop.xlane.xlu0 %2119  ;;  %v2159_v21 = vcvt.s32.f32 %v2157_v48 }
 0xdfc   : > { %v2186_v25 = vshra.s32 %v2138_v53, 16  ;;  %vm2131_vm3 = vcmp.le.f32.partialorder %v2107_v44, %v2120_v63  ;;  %2161 = vmin.xlane.f32.xlu1 %v2160_v55  ;;  %v2174_v52 = vcvt.s32.f32 %v2172_v9  ;;  %v2185_v38 = vand.u32 65535, %v2138_v53 }
 0xdfd   : > { %v2139_v8 = vsel %vm2131_vm3, %v5522_v60, 128  ;;  %v2122_v7 = vpop.xlane.xlu1 %2121 }
 0xdfe   : > { %v2200_v16 = vshra.s32 %v2139_v8, 16  ;;  %vm2132_vm4 = vcmp.le.f32.partialorder %v2108_v26, %v2122_v7  ;;  %2175 = vmin.xlane.f32.xlu0 %v2174_v52  ;;  %v2188_v30 = vcvt.s32.f32 %v2186_v25  ;;  %v2199_v44 = vand.u32 65535, %v2139_v8 }
 0xdff   : > { %v2140_v34 = vsel %vm2132_vm4, %v5522_v60, 128  ;;  %v2124_v28 = vpop.xlane.xlu0 %2123  ;;  %v2187_v59 = vcvt.s32.f32 %v2185_v38 }
 0xe00   : > { %v2214_v3 = vshra.s32 %v2140_v34, 16  ;;  %vm2133_vm5 = vcmp.le.f32.partialorder %v2109_v46, %v2124_v28  ;;  %2189 = vmin.xlane.f32.xlu1 %v2188_v30  ;;  %v2202_v36 = vcvt.s32.f32 %v2200_v16  ;;  %v2173_v46 = vcvt.s32.f32 %v2171_v14  ;;  %v6067_v16 = vld [vmem:[%s6941_s9] sm:$0xff]   ;;  %v6090_v28 = vld [vmem:[%s6941_s9 + $0x18] sm:$0xff]  }
 0xe01   : > { %v2141_v12 = vsel %vm2133_vm5, %v5522_v60, 128  ;;  %v2126_v0 = vpop.xlane.xlu1 %2125  ;;  %5026 = vmatprep.subr.msk.bf16.mxu0 %vm902_vm1, %v6067_v16  ;;  %4826 = vmatprep.subr.bf16.mxu1 %v6067_v16 }
 0xe02   : > { %v2228_v33 = vshra.s32 %v2141_v12, 16  ;;  %vm2134_vm6 = vcmp.le.f32.partialorder %v2110_v5, %v2126_v0  ;;  %2203 = vmin.xlane.f32.xlu0 %v2202_v36  ;;  %v2216_v51 = vcvt.s32.f32 %v2214_v3  ;;  %v2213_v5 = vand.u32 65535, %v2140_v34  ;;  %4827 = vmatpush3.bf16.msra.mxu1 %v6067_v16  ;;  %v6082_v34 = vld [vmem:[%s6941_s9 + $0x10] sm:$0xff]   ;;  %v6097_v3 = vld [vmem:[%s6941_s9 + $0x20] sm:$0xff]   ;;  %v6118_v0 = vld [vmem:[%s6941_s9 + $0x38] sm:$0xff]  }
 0xe03   : > { %v2142_v19 = vsel %vm2134_vm6, %v5522_v60, 128  ;;  %v2227_v39 = vand.u32 65535, %v2141_v12  ;;  %v6111_v12 = vld [vmem:[%s6941_s9 + $0x30] sm:$0xff]  }
 0xe04   : > { %v2242_v31 = vshra.s32 %v2142_v19, 16  ;;  %2217 = vmin.xlane.f32.xlu1 %v2216_v51  ;;  %v2230_v41 = vcvt.s32.f32 %v2228_v33  ;;  %v2241_v35 = vand.u32 65535, %v2142_v19  ;;  %v2215_v9 = vcvt.s32.f32 %v2213_v5 }
 0xe05   : > { %v2229_v63 = vcvt.s32.f32 %v2227_v39 }
 0xe06   : > { %2231 = vmin.xlane.f32.xlu0 %v2230_v41  ;;  %v2244_v57 = vcvt.s32.f32 %v2242_v31  ;;  %v2243_v8 = vcvt.s32.f32 %v2241_v35 }
 0xe08   : > { %2245 = vmin.xlane.f32.xlu1 %v2244_v57 }
 0xe87   : > { %v6040_v56 = vpop.xlane.xlu0 %2147 }
 0xe88   : > { %vm2149_vm7 = vcmp.eq.f32.partialorder %v2146_v4, %v6040_v56  ;;  %v2201_v4 = vcvt.s32.f32 %v2199_v44  ;;  %v2154_v33 = vcvt.f32.s32 %v6040_v56 }
 0xe89   : > { %v6043_v50 = vpop.xlane.xlu1 %2161  ;;  %v2150_v15 = vsel %vm2149_vm7, %v2145_v40, inf }
 0xe8a   : > { %2151 = vmin.xlane.f32.xlu0 %v2150_v15  ;;  %vm2163_vm8 = vcmp.eq.f32.partialorder %v2160_v55, %v6043_v50  ;;  %v2155_v31 = vshll.u32 %v2154_v33, 16 }
 0xe8b   : > { %v6046_v23 = vpop.xlane.xlu0 %2175  ;;  %v2164_v26 = vsel %vm2163_vm8, %v2159_v21, inf }
 0xe8c   : > { %2165 = vmin.xlane.f32.xlu1 %v2164_v26  ;;  %vm2177_vm9 = vcmp.eq.f32.partialorder %v2174_v52, %v6046_v23 }
 0xe8d   : > { %v6049_v61 = vpop.xlane.xlu1 %2189  ;;  %v2178_v43 = vsel %vm2177_vm9, %v2173_v46, inf }
 0xe8e   : > { %2179 = vmin.xlane.f32.xlu0 %v2178_v43  ;;  %vm2191_vm10 = vcmp.eq.f32.partialorder %v2188_v30, %v6049_v61  ;;  %v6076_v30 = vld [vmem:[%s6941_s9 + $0x8] sm:$0xff]   ;;  %v2196_v11 = vcvt.f32.s32 %v6049_v61 }
 0xe8f   : > { %v6052_v20 = vpop.xlane.xlu0 %2203  ;;  %v2192_v27 = vsel %vm2191_vm10, %v2187_v59, inf  ;;  %4828 = vmatprep.subr.bf16.mxu1 %v6076_v30 }
 0xe90   : > { %2193 = vmin.xlane.f32.xlu1 %v2192_v27  ;;  %vm2205_vm11 = vcmp.eq.f32.partialorder %v2202_v36, %v6052_v20  ;;  %4829 = vmatpush3.bf16.msra.mxu1 %v6076_v30  ;;  %v6104_v36 = vld [vmem:[%s6941_s9 + $0x28] sm:$0xff]   ;;  %v2210_v15 = vcvt.f32.s32 %v6052_v20  ;;  %v2197_v26 = vshll.u32 %v2196_v11, 16 }
 0xe91   : > { %v6055_v45 = vpop.xlane.xlu1 %2217  ;;  %v2206_v24 = vsel %vm2205_vm11, %v2201_v4, inf  ;;  %4830 = vmatprep.subr.bf16.mxu1 %v6082_v34 }
 0xe92   : > { %2207 = vmin.xlane.f32.xlu0 %v2206_v24  ;;  %vm2219_vm12 = vcmp.eq.f32.partialorder %v2216_v51, %v6055_v45  ;;  %v2168_v51 = vcvt.f32.s32 %v6043_v50  ;;  %v2224_v46 = vcvt.f32.s32 %v6055_v45  ;;  %v2211_v39 = vshll.u32 %v2210_v15, 16 }
 0xe93   : > { %v6058_v55 = vpop.xlane.xlu0 %2231  ;;  %v2220_v53 = vsel %vm2219_vm12, %v2215_v9, inf  ;;  %v6154_v9 = vsel %vm902_vm1, %v6067_v16, 0  ;;  %v6219_v15 = vsel %vm902_vm1, %v6090_v28, 0 }
 0xe94   : > { %2221 = vmin.xlane.f32.xlu1 %v2220_v53  ;;  %vm2233_vm13 = vcmp.eq.f32.partialorder %v2230_v41, %v6058_v55  ;;  %4831 = vmatpush3.bf16.msra.mxu1 %v6082_v34  ;;  %v2182_v41 = vcvt.f32.s32 %v6046_v23  ;;  %v2169_v14 = vshll.u32 %v2168_v51, 16  ;;  %v2238_v20 = vcvt.f32.s32 %v6058_v55 }
 0xe95   : > { %v6061_v25 = vpop.xlane.xlu1 %2245  ;;  %v2234_v52 = vsel %vm2233_vm13, %v2229_v63, inf  ;;  %4832 = vmatprep.subr.bf16.mxu1 %v6090_v28  ;;  %vm3920_vm13 = vcmask 257024  }
 0xe96   : > { %2235 = vmin.xlane.f32.xlu0 %v2234_v52  ;;  %vm2247_vm14 = vcmp.eq.f32.partialorder %v2244_v57, %v6061_v25  ;;  %v2183_v44 = vshll.u32 %v2182_v41, 16  ;;  %v2252_v45 = vcvt.f32.s32 %v6061_v25  ;;  %v2239_v52 = vshll.u32 %v2238_v20, 16  ;;  %v7001_v41 = vld [vmem:[#allocation5_spill] sm:$0xff] }
 0xe97   : > { %v2248_v7 = vsel %vm2247_vm14, %v2243_v8, inf }
 0xe98   : > { %2249 = vmin.xlane.f32.xlu1 %v2248_v7  ;;  %4833 = vmatpush3.bf16.msra.mxu1 %v6090_v28  ;;  %v2253_v33 = vshll.u32 %v2252_v45, 16  ;;  %v7010_v45 = vld [vmem:[#allocation9_spill] sm:$0xff] }
 0xe99   : > { %4834 = vmatprep.subr.bf16.mxu1 %v6097_v3 }
 0xe9c   : > { %4835 = vmatpush3.bf16.msra.mxu1 %v6097_v3 }
 0xe9d   : > { %4836 = vmatprep.subr.bf16.mxu1 %v6104_v36 }
 0xea0   : > { %4837 = vmatpush3.bf16.msra.mxu1 %v6104_v36 }
 0xea1   : > { %4838 = vmatprep.subr.bf16.mxu1 %v6111_v12 }
 0xea4   : > { %4839 = vmatpush3.bf16.msra.mxu1 %v6111_v12 }
 0xea5   : > { %4840 = vmatprep.subr.bf16.mxu1 %v6118_v0 }
 0xea8   : > { %4841 = vmatpush3.bf16.msra.mxu1 %v6118_v0 }
 0xea9   : > { %5034 = vmatprep.subr.msk.bf16.mxu1 %vm902_vm1, %v6067_v16 }
 0xf17   : > { %v2152_v19 = vpop.xlane.xlu0 %2151 }
 0xf18   : > { %v2153_v57 = vcvt.f32.s32 %v2152_v19 }
 0xf19   : > { %v2166_v48 = vpop.xlane.xlu1 %2165 }
 0xf1a   : > { %v2156_v40 = vadd.s32 %v2155_v31, %v2153_v57  ;;  %v2167_v38 = vcvt.f32.s32 %v2166_v48 }
 0xf1b   : > { %v2180_v21 = vpop.xlane.xlu0 %2179 }
 0xf1c   : > { %v6133_v56 = vsel %vm2356_vm15, %v2156_v40, %v5917_v2  ;;  %v2170_v50 = vadd.s32 %v2169_v14, %v2167_v38  ;;  %v2181_v23 = vcvt.f32.s32 %v2180_v21  ;;  %vm2255_vm0 = vcmp.eq.s32.totalorder %v5522_v60, %v2156_v40 }
 0xf1d   : > { %6994 = vst [vmem:[#allocation11_spill] sm:$0xff] %v6133_v56  ;;  %v2194_v5 = vpop.xlane.xlu1 %2193  ;;  %v6226_v21 = vsel %vm902_vm1, %v6097_v3, 0 }
 0xf1e   : > { %v6140_v61 = vsel %vm2356_vm15, %v2170_v50, %v5923_v49  ;;  %v2184_v43 = vadd.s32 %v2183_v44, %v2181_v23  ;;  %v2195_v59 = vcvt.f32.s32 %v2194_v5  ;;  %vm2256_vm2 = vcmp.eq.s32.totalorder %v5522_v60, %v2170_v50  ;;  %v7006_v5 = vld [vmem:[#allocation10_spill] sm:$0xff] }
 0xf1f   : > { %6995 = vst [vmem:[#allocation12_spill] sm:$0xff] %v6140_v61  ;;  %v2208_v2 = vpop.xlane.xlu0 %2207  ;;  %vm4216_vm3 = vmpackc.low %vm2256_vm2, %vm2255_vm0  ;;  %v2225_v49 = vshll.u32 %v2224_v46, 16  ;;  %v6233_v44 = vsel %vm902_vm1, %v6104_v36, 0  ;;  %v6240_v50 = vsel %vm902_vm1, %v6111_v12, 0  ;;  %v6247_v23 = vsel %vm902_vm1, %v6118_v0, 0 }
 0xf20   : > { %v6147_v27 = vsel %vm2356_vm15, %v2184_v43, %v5929_v32  ;;  %v2198_v4 = vadd.s32 %v2197_v26, %v2195_v59  ;;  %v2209_v35 = vcvt.f32.s32 %v2208_v2  ;;  %4794 = vmatprep.mubr.msk.bf16.mxu0 %vm4216_vm3, %v6975_v58  ;;  %vm2257_vm4 = vcmp.eq.s32.totalorder %v5522_v60, %v2184_v43  ;;  %v7005_v26 = vld [vmem:[#allocation4_spill] sm:$0xff]  ;;  %v7007_v59 = vld [vmem:[#allocation2_spill] sm:$0xff] }
 0xf21   : > { %6996 = vst [vmem:[#allocation18_spill] sm:$0xff] %v6147_v27  ;;  %v2222_v24 = vpop.xlane.xlu1 %2221  ;;  %v7008_v2 = vld [vmem:[#allocation8_spill] sm:$0xff] }
 0xf22   : > { %vm2258_vm5 = vcmp.eq.s32.totalorder %v5522_v60, %v2198_v4  ;;  %v6160_v32 = vsel %vm2356_vm15, %v2198_v4, %v5937_v6  ;;  %v2212_v55 = vadd.s32 %v2211_v39, %v2209_v35  ;;  %v2223_v53 = vcvt.f32.s32 %v2222_v24 }
 0xf23   : > { %6997 = vst [vmem:[#allocation13_spill] sm:$0xff] %v6160_v32  ;;  %vm4218_vm6 = vmpackc.low %vm2258_vm5, %vm2257_vm4  ;;  %v2236_v63 = vpop.xlane.xlu0 %2235 }
 0xf24   : > { %v6165_v25 = vsel %vm2356_vm15, %v2212_v55, %v5942_v1  ;;  %v2226_v8 = vadd.s32 %v2225_v49, %v2223_v53  ;;  %v2237_v7 = vcvt.f32.s32 %v2236_v63  ;;  %4795 = vmatmul.mubr.msk.bf16.vlgmr.msra.gmra.mrb[32].mxu0 %vm4218_vm6, %v6975_v58  ;;  %vm2259_vm7 = vcmp.eq.s32.totalorder %v5522_v60, %v2212_v55  ;;  %v7000_v1 = vld [vmem:[#allocation6_spill] sm:$0xff]  ;;  %v7009_v49 = vld [vmem:[#allocation7_spill] sm:$0xff] }
 0xf25   : > { %6998 = vst [vmem:[#allocation14_spill] sm:$0xff] %v6165_v25  ;;  %4803 = vmatpush3.bf16.xpose.msra.mxu0 %v6154_v9  ;;  %v2250_v51 = vpop.xlane.xlu1 %2249  ;;  %v6180_v57 = vadd.f32 %v7001_v41, %v7000_v1  ;;  %v6252_v46 = vadd.f32 %v7005_v26, %v7000_v1  ;;  %v6257_v43 = vadd.f32 %v7006_v5, %v7000_v1 }
 0xf26   : > { %v6173_v6 = vsel %vm2356_vm15, %v2226_v8, %v5950_v37  ;;  %v2240_v19 = vadd.s32 %v2239_v52, %v2237_v7  ;;  %v2251_v31 = vcvt.f32.s32 %v2250_v51  ;;  %vm2260_vm8 = vcmp.eq.s32.totalorder %v5522_v60, %v2226_v8  ;;  %5027 = vmatprep.subr.msk.bf16.mxu0 %vm902_vm1, %v6076_v30  ;;  %v7003_v37 = vld [vmem:[#allocation3_spill] sm:$0xff] }
 0xf27   : > { %6999 = vst [vmem:[#allocation15_spill] sm:$0xff] %v6173_v6  ;;  %vm4220_vm9 = vmpackc.low %vm2260_vm8, %vm2259_vm7  ;;  %v6190_v14 = vadd.f32 %v7003_v37, %v7000_v1  ;;  %v6261_v39 = vadd.f32 %v7007_v59, %v7000_v1  ;;  %v6265_v20 = vadd.f32 %v7008_v2, %v7000_v1  ;;  %v2385_v24 = vpack.c.bf16 %v7010_v45, %v7009_v49 }
 0xf28   : > { %v6185_v11 = vsel %vm2356_vm15, %v2240_v19, %v5958_v47  ;;  %v2254_v48 = vadd.s32 %v2253_v33, %v2251_v31  ;;  %4798 = vmatprep.mubr.msk.bf16.mxu0 %vm4220_vm9, %v6975_v58  ;;  %vm2261_vm10 = vcmp.eq.s32.totalorder %v5522_v60, %v2240_v19  ;;  %v6201_v47 = vsel %vm902_vm1, %v6076_v30, 0 }
 0xf29   : > { %7002 = vst [vmem:[#allocation16_spill] sm:$0xff] %v6185_v11  ;;  %v2382_v38 = vpack.c.bf16 %v6180_v57, %v6190_v14  ;;  %v2383_v4 = vpack.c.bf16 %v6252_v46, %v6261_v39  ;;  %v2384_v35 = vpack.c.bf16 %v6257_v43, %v6265_v20 }
 0xf2a   : > { %v6195_v40 = vsel %vm2356_vm15, %v2254_v48, %v5964_v42  ;;  %vm2262_vm11 = vcmp.eq.s32.totalorder %v5522_v60, %v2254_v48  ;;  %v6212_v42 = vsel %vm902_vm1, %v6082_v34, 0 }
 0xf2b   : > { %7004 = vst [vmem:[#allocation17_spill] sm:$0xff] %v6195_v40  ;;  %vm4222_vm12 = vmpackc.low %vm2262_vm11, %vm2261_vm10 }
 0xf2c   : > { %4799 = vmatmul.mubr.msk.bf16.gmra.mrb[36].mxu0 %vm4222_vm12, %v6975_v58 }
 0xf2d   : > { %4805 = vmatpush3.bf16.xpose.msra.mxu0 %v6201_v47  ;;  %4818 = vmatprep.mubr.msk.bf16.mxu0 %vm902_vm1, %v2382_v38 }
 0xf2e   : > { %5028 = vmatprep.subr.msk.bf16.mxu0 %vm902_vm1, %v6082_v34 }
 0xf35   : > { %4807 = vmatpush3.bf16.xpose.msra.mxu0 %v6212_v42 }
 0xf36   : > { %5029 = vmatprep.subr.msk.bf16.mxu0 %vm902_vm1, %v6090_v28 }
 0xf3d   : > { %4809 = vmatpush3.bf16.xpose.msra.mxu0 %v6219_v15 }
 0xf3e   : > { %5030 = vmatprep.subr.msk.bf16.mxu0 %vm902_vm1, %v6097_v3 }
 0xf45   : > { %4811 = vmatpush3.bf16.xpose.msra.mxu0 %v6226_v21 }
 0xf46   : > { %5031 = vmatprep.subr.msk.bf16.mxu0 %vm902_vm1, %v6104_v36 }
 0xf4d   : > { %4813 = vmatpush3.bf16.xpose.msra.mxu0 %v6233_v44 }
 0xf4e   : > { %5032 = vmatprep.subr.msk.bf16.mxu0 %vm902_vm1, %v6111_v12 }
 0xf55   : > { %4815 = vmatpush3.bf16.xpose.msra.mxu0 %v6240_v50 }
 0xf56   : > { %5033 = vmatprep.subr.msk.bf16.mxu0 %vm902_vm1, %v6118_v0 }
 0xf5d   : > { %4817 = vmatpush3.bf16.xpose.msra.mxu0 %v6247_v23 }
 0xf5e   : > { %4874 = vmatprep.subr.bf16.mxu0 %v6067_v16 }
 0xf64   : > { %4819 = vmatmul.mubr.msk.bf16.vlgmr.msra.gmra.mrb[40].mxu0 %vm902_vm1, %v2383_v4 }
 0xf65   : > { %4822 = vmatprep.mubr.msk.bf16.mxu0 %vm902_vm1, %v2384_v35  ;;  %4875 = vmatpush3.bf16.msra.mxu0 %v6067_v16 }
 0xf66   : > { %4876 = vmatprep.subr.bf16.mxu0 %v6076_v30 }
 0xf69   : > { %4877 = vmatpush3.bf16.msra.mxu0 %v6076_v30 }
 0xf6a   : > { %4878 = vmatprep.subr.bf16.mxu0 %v6082_v34 }
 0xf6c   : > { %4823 = vmatmul.mubr.msk.bf16.gmra.mrb[44].mxu0 %vm902_vm1, %v2385_v24 }
 0xf6d   : > { %4879 = vmatpush3.bf16.msra.mxu0 %v6082_v34 }
 0xf6e   : > { %4880 = vmatprep.subr.bf16.mxu0 %v6090_v28 }
 0xf71   : > { %4881 = vmatpush3.bf16.msra.mxu0 %v6090_v28 }
 0xf72   : > { %4882 = vmatprep.subr.bf16.mxu0 %v6097_v3 }
 0xf75   : > { %4883 = vmatpush3.bf16.msra.mxu0 %v6097_v3 }
 0xf76   : > { %4884 = vmatprep.subr.bf16.mxu0 %v6104_v36 }
 0xf79   : > { %4885 = vmatpush3.bf16.msra.mxu0 %v6104_v36 }
 0xf7a   : > { %4886 = vmatprep.subr.bf16.mxu0 %v6111_v12 }
 0xf7d   : > { %4887 = vmatpush3.bf16.msra.mxu0 %v6111_v12 }
 0xf7e   : > { %4888 = vmatprep.subr.bf16.mxu0 %v6118_v0 }
 0xf81   : > { %4889 = vmatpush3.bf16.msra.mxu0 %v6118_v0 }
 0xf82   : > { %5042 = vmatprep.subr.msk.bf16.mxu0 %vm902_vm1, %v6067_v16 }
 0xff7   : > { %v4796_v55 = vpop.f32.mrb[32].mxu0 }
 0xff8   : > { %v2350_v53 = vadd.f32 %v4796_v55, %v5989_v18  ;;  %v2317_v63 = vpop.f32.mrb[33].mxu0 }
 0xff9   : > { %v2348_v52 = vadd.f32 %v2317_v63, %v5992_v22  ;;  %v4797_v8 = vpop.f32.mrb[34].mxu0 }
 0xffa   : > { %v4337_v7 = vpack.c.bf16 %v2350_v53, %v2350_v53  ;;  %v2351_v33 = vadd.f32 %v4797_v8, %v5996_v17  ;;  %v2320_v51 = vpop.f32.mrb[35].mxu0 }
 0xffb   : > { %v4335_v19 = vpack.c.bf16 %v2348_v52, %v2348_v52  ;;  %v2349_v31 = vadd.f32 %v2320_v51, %v6001_v29 }
 0xffc   : > { %3923 = vst.msk [vmem:[%s455_s22 + $0x8] sm:$0xf] %vm3920_vm13, %v4337_v7  ;;  %v4338_v1 = vpack.c.bf16 %v2351_v33, %v2351_v33 }
 0xffd   : > { %3921 = vst.msk [vmem:[%s455_s22] sm:$0xf] %vm3920_vm13, %v4335_v19  ;;  %v4336_v18 = vpack.c.bf16 %v2349_v31, %v2349_v31 }
 0xffe   : > { %3924 = vst.msk [vmem:[%s455_s22 + $0xc] sm:$0xf] %vm3920_vm13, %v4338_v1 }
 0xfff   : > { %3922 = vst.msk [vmem:[%s455_s22 + $0x4] sm:$0xf] %vm3920_vm13, %v4336_v18  ;;  %v4800_v41 = vpop.f32.mrb[36].mxu0 }
0x1000   : > { %v2354_v22 = vadd.f32 %v4800_v41, %v6006_v54  ;;  %v2333_v48 = vpop.f32.mrb[37].mxu0 }
0x1001   : > { %v2352_v17 = vadd.f32 %v2333_v48, %v6010_v62  ;;  %v4801_v37 = vpop.f32.mrb[38].mxu0  ;;  %v6316_v62 = vld [vmem:[%s6942_s10] ss:$0 sm:$0xff] }
0x1002   : > { %v4341_v38 = vpack.c.bf16 %v2354_v22, %v2354_v22  ;;  %v2355_v29 = vadd.f32 %v4801_v37, %v6014_v10  ;;  %v2336_v26 = vpop.f32.mrb[39].mxu0  ;;  %7011 = vst [vmem:[#allocation19_spill] sm:$0xff] %v6316_v62 }
0x1003   : > { %v4339_v5 = vpack.c.bf16 %v2352_v17, %v2352_v17  ;;  %v2353_v59 = vadd.f32 %v2336_v26, %v6019_v13 }
0x1004   : > { %3927 = vst.msk [vmem:[%s455_s22 + $0x18] sm:$0xf] %vm3920_vm13, %v4341_v38  ;;  %v4342_v2 = vpack.c.bf16 %v2355_v29, %v2355_v29 }
0x1005   : > { %3925 = vst.msk [vmem:[%s455_s22 + $0x10] sm:$0xf] %vm3920_vm13, %v4339_v5  ;;  %v4340_v4 = vpack.c.bf16 %v2353_v59, %v2353_v59 }
0x1006   : > { %3928 = vst.msk [vmem:[%s455_s22 + $0x1c] sm:$0xf] %vm3920_vm13, %v4342_v2 }
0x1007   : > { %3926 = vst.msk [vmem:[%s455_s22 + $0x14] sm:$0xf] %vm3920_vm13, %v4340_v4 }
0x1037   : > { %v4820_v54 = vpop.f32.mrb[40].mxu0 }
0x1038   : > { %v2496_v10 = vpop.f32.mrb[41].mxu0  ;;  %v2529_v55 = vmul.f32 2.0, %v4820_v54 }
0x1039   : > { %v2527_v35 = vmul.f32 2.0, %v2496_v10  ;;  %v4821_v24 = vpop.f32.mrb[42].mxu0 }
0x103a   : > { %v2499_v13 = vpop.f32.mrb[43].mxu0  ;;  %v2530_v52 = vmul.f32 2.0, %v4821_v24  ;;  %v2543_v7 = vsub.f32 %v6316_v62, %v2529_v55 }
0x103b   : > { %v2541_v53 = vsub.f32 %v6316_v62, %v2527_v35  ;;  %v2528_v63 = vmul.f32 2.0, %v2499_v13 }
0x103c   : > { %v2544_v19 = vsub.f32 %v6316_v62, %v2530_v52 }
0x103d   : > { %v2542_v8 = vsub.f32 %v6316_v62, %v2528_v63  ;;  %2549 = vmin.xlane.f32.xlu0 %v2541_v53 }
0x103f   : > { %2551 = vmin.xlane.f32.xlu1 %v2542_v8  ;;  %v4824_v33 = vpop.f32.mrb[44].mxu0 }
0x1040   : > { %v2512_v51 = vpop.f32.mrb[45].mxu0  ;;  %v2533_v41 = vmul.f32 2.0, %v4824_v33 }
0x1041   : > { %v2531_v31 = vmul.f32 2.0, %v2512_v51  ;;  %2553 = vmin.xlane.f32.xlu0 %v2543_v7  ;;  %v4825_v1 = vpop.f32.mrb[46].mxu0 }
0x1042   : > { %v2515_v18 = vpop.f32.mrb[47].mxu0  ;;  %v2534_v17 = vmul.f32 2.0, %v4825_v1  ;;  %v2547_v38 = vsub.f32 %v6316_v62, %v2533_v41 }
0x1043   : > { %v2545_v22 = vsub.f32 %v6316_v62, %v2531_v31  ;;  %v2532_v48 = vmul.f32 2.0, %v2515_v18  ;;  %2555 = vmin.xlane.f32.xlu1 %v2544_v19 }
0x1044   : > { %v2548_v29 = vsub.f32 %v6316_v62, %v2534_v17 }
0x1045   : > { %v2546_v37 = vsub.f32 %v6316_v62, %v2532_v48  ;;  %2557 = vmin.xlane.f32.xlu0 %v2545_v22 }
0x1047   : > { %2559 = vmin.xlane.f32.xlu1 %v2546_v37 }
0x1049   : > { %2561 = vmin.xlane.f32.xlu0 %v2547_v38 }
0x104b   : > { %2563 = vmin.xlane.f32.xlu1 %v2548_v29 }
0x10ca   : > { %v2550_v26 = vpop.xlane.xlu0 %2549 }
0x10cb   : > { %vm2565_vm14 = vcmp.le.f32.partialorder %v2541_v53, %v2550_v26 }
0x10cc   : > { %v2573_v5 = vsel %vm2565_vm14, %v5522_v60, 128  ;;  %v2552_v59 = vpop.xlane.xlu1 %2551 }
0x10cd   : > { %v2582_v2 = vshra.s32 %v2573_v5, 16  ;;  %vm2566_vm15 = vcmp.le.f32.partialorder %v2542_v8, %v2552_v59 }
0x10ce   : > { %v2574_v4 = vsel %vm2566_vm15, %v5522_v60, 128  ;;  %v2554_v54 = vpop.xlane.xlu0 %2553 }
0x10cf   : > { %v2584_v10 = vcvt.s32.f32 %v2582_v2  ;;  %v2596_v35 = vshra.s32 %v2574_v4, 16  ;;  %vm2567_vm0 = vcmp.le.f32.partialorder %v2543_v7, %v2554_v54 }
0x10d0   : > { %v2556_v24 = vpop.xlane.xlu1 %2555  ;;  %v2575_v55 = vsel %vm2567_vm0, %v5522_v60, 128 }
0x10d1   : > { %v2598_v13 = vcvt.s32.f32 %v2596_v35  ;;  %vm2568_vm2 = vcmp.le.f32.partialorder %v2544_v19, %v2556_v24  ;;  %2585 = vmin.xlane.f32.xlu0 %v2584_v10  ;;  %v2610_v63 = vshra.s32 %v2575_v55, 16  ;;  %v2581_v24 = vand.u32 65535, %v2573_v5 }
0x10d2   : > { %v2576_v53 = vsel %vm2568_vm2, %v5522_v60, 128  ;;  %v2558_v52 = vpop.xlane.xlu0 %2557 }
0x10d3   : > { %v2624_v33 = vshra.s32 %v2576_v53, 16  ;;  %vm2569_vm3 = vcmp.le.f32.partialorder %v2545_v22, %v2558_v52  ;;  %2599 = vmin.xlane.f32.xlu1 %v2598_v13  ;;  %v2612_v8 = vcvt.s32.f32 %v2610_v63  ;;  %v2595_v63 = vand.u32 65535, %v2574_v4 }
0x10d4   : > { %v2577_v51 = vsel %vm2569_vm3, %v5522_v60, 128  ;;  %v2560_v31 = vpop.xlane.xlu1 %2559 }
0x10d5   : > { %v2626_v1 = vcvt.s32.f32 %v2624_v33  ;;  %v2638_v18 = vshra.s32 %v2577_v51, 16  ;;  %vm2570_vm4 = vcmp.le.f32.partialorder %v2546_v37, %v2560_v31  ;;  %2613 = vmin.xlane.f32.xlu0 %v2612_v8  ;;  %v2609_v33 = vand.u32 65535, %v2575_v55 }
0x10d6   : > { %v2562_v7 = vpop.xlane.xlu0 %2561  ;;  %v2578_v19 = vsel %vm2570_vm4, %v5522_v60, 128  ;;  %v2597_v31 = vcvt.s32.f32 %v2595_v63 }
0x10d7   : > { %v2640_v41 = vcvt.s32.f32 %v2638_v18  ;;  %vm2571_vm5 = vcmp.le.f32.partialorder %v2547_v38, %v2562_v7  ;;  %2627 = vmin.xlane.f32.xlu1 %v2626_v1  ;;  %v2652_v48 = vshra.s32 %v2578_v19, 16  ;;  %v2583_v38 = vcvt.s32.f32 %v2581_v24 }
0x10d8   : > { %v2579_v17 = vsel %vm2571_vm5, %v5522_v60, 128  ;;  %v2564_v26 = vpop.xlane.xlu1 %2563  ;;  %v2623_v18 = vand.u32 65535, %v2576_v53  ;;  %v2651_v5 = vand.u32 65535, %v2578_v19 }
0x10d9   : > { %v2666_v22 = vshra.s32 %v2579_v17, 16  ;;  %vm2572_vm6 = vcmp.le.f32.partialorder %v2548_v29, %v2564_v26  ;;  %v2654_v59 = vcvt.s32.f32 %v2652_v48  ;;  %2641 = vmin.xlane.f32.xlu0 %v2640_v41  ;;  %v2611_v26 = vcvt.s32.f32 %v2609_v33 }
0x10da   : > { %v2580_v2 = vsel %vm2572_vm6, %v5522_v60, 128  ;;  %v2665_v24 = vand.u32 65535, %v2579_v17 }
0x10db   : > { %v2668_v54 = vcvt.s32.f32 %v2666_v22  ;;  %v2680_v35 = vshra.s32 %v2580_v2, 16  ;;  %2655 = vmin.xlane.f32.xlu1 %v2654_v59  ;;  %v2637_v22 = vand.u32 65535, %v2577_v51  ;;  %v2679_v63 = vand.u32 65535, %v2580_v2 }
0x10dc   : > { %v2667_v51 = vcvt.s32.f32 %v2665_v24 }
0x10dd   : > { %v2682_v37 = vcvt.s32.f32 %v2680_v35  ;;  %2669 = vmin.xlane.f32.xlu0 %v2668_v54  ;;  %v2625_v35 = vcvt.s32.f32 %v2623_v18 }
0x10df   : > { %2683 = vmin.xlane.f32.xlu1 %v2682_v37 }
0x115e   : > { %v2586_v52 = vpop.xlane.xlu0 %2585 }
0x115f   : > { %vm2587_vm7 = vcmp.eq.f32.partialorder %v2584_v10, %v2586_v52  ;;  %v2639_v10 = vcvt.s32.f32 %v2637_v22 }
0x1160   : > { %v2600_v7 = vpop.xlane.xlu1 %2599  ;;  %v2588_v29 = vsel %vm2587_vm7, %v2583_v38, inf }
0x1161   : > { %vm2601_vm8 = vcmp.eq.f32.partialorder %v2598_v13, %v2600_v7  ;;  %2589 = vmin.xlane.f32.xlu0 %v2588_v29  ;;  %v2653_v13 = vcvt.s32.f32 %v2651_v5  ;;  %v2592_v29 = vcvt.f32.s32 %v2586_v52 }
0x1162   : > { %v2602_v48 = vsel %vm2601_vm8, %v2597_v31, inf  ;;  %v2614_v40 = vpop.xlane.xlu0 %2613 }
0x1163   : > { %2603 = vmin.xlane.f32.xlu1 %v2602_v48  ;;  %vm2615_vm9 = vcmp.eq.f32.partialorder %v2612_v8, %v2614_v40  ;;  %v2593_v2 = vshll.u32 %v2592_v29, 16  ;;  %v2620_v22 = vcvt.f32.s32 %v2614_v40 }
0x1164   : > { %v2628_v11 = vpop.xlane.xlu1 %2627  ;;  %v2616_v4 = vsel %vm2615_vm9, %v2611_v26, inf }
0x1165   : > { %vm2629_vm10 = vcmp.eq.f32.partialorder %v2626_v1, %v2628_v11  ;;  %2617 = vmin.xlane.f32.xlu0 %v2616_v4  ;;  %v2681_v1 = vcvt.s32.f32 %v2679_v63  ;;  %v2634_v5 = vcvt.f32.s32 %v2628_v11  ;;  %v2621_v24 = vshll.u32 %v2620_v22, 16 }
0x1166   : > { %v2630_v55 = vsel %vm2629_vm10, %v2625_v35, inf  ;;  %v2642_v53 = vpop.xlane.xlu0 %2641 }
0x1167   : > { %2631 = vmin.xlane.f32.xlu1 %v2630_v55  ;;  %vm2643_vm11 = vcmp.eq.f32.partialorder %v2640_v41, %v2642_v53  ;;  %v2606_v41 = vcvt.f32.s32 %v2600_v7 }
0x1168   : > { %v2656_v38 = vpop.xlane.xlu1 %2655  ;;  %v2644_v33 = vsel %vm2643_vm11, %v2639_v10, inf }
0x1169   : > { %vm2657_vm12 = vcmp.eq.f32.partialorder %v2654_v59, %v2656_v38  ;;  %2645 = vmin.xlane.f32.xlu0 %v2644_v33  ;;  %v2607_v35 = vshll.u32 %v2606_v41, 16  ;;  %v2635_v33 = vshll.u32 %v2634_v5, 16  ;;  %v2662_v40 = vcvt.f32.s32 %v2656_v38 }
0x116a   : > { %v2670_v31 = vpop.xlane.xlu0 %2669  ;;  %v2658_v8 = vsel %vm2657_vm12, %v2653_v13, inf }
0x116b   : > { %vm2671_vm14 = vcmp.eq.f32.partialorder %v2668_v54, %v2670_v31  ;;  %2659 = vmin.xlane.f32.xlu1 %v2658_v8  ;;  %v2676_v8 = vcvt.f32.s32 %v2670_v31  ;;  %v2663_v38 = vshll.u32 %v2662_v40, 16 }
0x116c   : > { %v2684_v19 = vpop.xlane.xlu1 %2683  ;;  %v2672_v18 = vsel %vm2671_vm14, %v2667_v51, inf }
0x116d   : > { %vm2685_vm15 = vcmp.eq.f32.partialorder %v2682_v37, %v2684_v19  ;;  %2673 = vmin.xlane.f32.xlu0 %v2672_v18  ;;  %v2648_v37 = vcvt.f32.s32 %v2642_v53  ;;  %v2690_v18 = vcvt.f32.s32 %v2684_v19 }
0x116e   : > { %v2686_v17 = vsel %vm2685_vm15, %v2681_v1, inf }
0x116f   : > { %2687 = vmin.xlane.f32.xlu1 %v2686_v17  ;;  %v2649_v53 = vshll.u32 %v2648_v37, 16  ;;  %v2691_v19 = vshll.u32 %v2690_v18, 16 }
0x11ee   : > { %v2590_v48 = vpop.xlane.xlu0 %2589 }
0x11ef   : > { %v2591_v26 = vcvt.f32.s32 %v2590_v48 }
0x11f0   : > { %v2604_v59 = vpop.xlane.xlu1 %2603 }
0x11f1   : > { %v6334_v4 = vadd.s32 %v2593_v2, %v2591_v26  ;;  %v2605_v54 = vcvt.f32.s32 %v2604_v59  ;;  %v2677_v2 = vshll.u32 %v2676_v8, 16 }
0x11f2   : > { %v2618_v10 = vpop.xlane.xlu0 %2617 }
0x11f3   : > { %v6336_v55 = vadd.s32 %v2607_v35, %v2605_v54  ;;  %v2619_v13 = vcvt.f32.s32 %v2618_v10  ;;  %vm2693_vm0 = vcmp.eq.s32.totalorder %v5522_v60, %v6334_v4 }
0x11f4   : > { %v2632_v63 = vpop.xlane.xlu1 %2631 }
0x11f5   : > { %v2633_v52 = vcvt.f32.s32 %v2632_v63  ;;  %vm2694_vm2 = vcmp.eq.s32.totalorder %v5522_v60, %v6336_v55  ;;  %v6342_v11 = vadd.s32 %v2621_v24, %v2619_v13 }
0x11f6   : > { %vm4245_vm3 = vmpackc.low %vm2694_vm2, %vm2693_vm0  ;;  %v2646_v51 = vpop.xlane.xlu0 %2645 }
0x11f7   : > { %v6344_v7 = vadd.s32 %v2635_v33, %v2633_v52  ;;  %4842 = vmatprep.mubr.msk.bf16.mxu1 %vm4245_vm3, %v6975_v58  ;;  %v2647_v1 = vcvt.f32.s32 %v2646_v51  ;;  %vm2695_vm4 = vcmp.eq.s32.totalorder %v5522_v60, %v6342_v11 }
0x11f8   : > { %v2660_v17 = vpop.xlane.xlu1 %2659 }
0x11f9   : > { %vm2696_vm5 = vcmp.eq.s32.totalorder %v5522_v60, %v6344_v7  ;;  %v6351_v29 = vadd.s32 %v2649_v53, %v2647_v1  ;;  %v2661_v41 = vcvt.f32.s32 %v2660_v17 }
0x11fa   : > { %vm4247_vm6 = vmpackc.low %vm2696_vm5, %vm2695_vm4  ;;  %v2674_v48 = vpop.xlane.xlu0 %2673 }
0x11fb   : > { %4843 = vmatmul.mubr.msk.bf16.vlgmr.msra.gmra.mrb[40].mxu1 %vm4247_vm6, %v6975_v58  ;;  %v6354_v26 = vadd.s32 %v2663_v38, %v2661_v41  ;;  %v2675_v31 = vcvt.f32.s32 %v2674_v48  ;;  %vm2697_vm7 = vcmp.eq.s32.totalorder %v5522_v60, %v6351_v29 }
0x11fc   : > { %4851 = vmatpush3.bf16.xpose.msra.mxu1 %v6154_v9  ;;  %v2688_v22 = vpop.xlane.xlu1 %2687 }
0x11fd   : > { %5035 = vmatprep.subr.msk.bf16.mxu1 %vm902_vm1, %v6076_v30  ;;  %v6359_v59 = vadd.s32 %v2677_v2, %v2675_v31  ;;  %v2689_v35 = vcvt.f32.s32 %v2688_v22  ;;  %vm2698_vm8 = vcmp.eq.s32.totalorder %v5522_v60, %v6354_v26 }
0x11fe   : > { %vm4249_vm9 = vmpackc.low %vm2698_vm8, %vm2697_vm7 }
0x11ff   : > { %v6365_v5 = vadd.s32 %v2691_v19, %v2689_v35  ;;  %4846 = vmatprep.mubr.msk.bf16.mxu1 %vm4249_vm9, %v6975_v58  ;;  %vm2699_vm10 = vcmp.eq.s32.totalorder %v5522_v60, %v6359_v59 }
0x1201   : > { %vm2700_vm11 = vcmp.eq.s32.totalorder %v5522_v60, %v6365_v5 }
0x1202   : > { %vm4251_vm12 = vmpackc.low %vm2700_vm11, %vm2699_vm10 }
0x1203   : > { %4847 = vmatmul.mubr.msk.bf16.gmra.mrb[44].mxu1 %vm4251_vm12, %v6975_v58 }
0x1204   : > { %4853 = vmatpush3.bf16.xpose.msra.mxu1 %v6201_v47 }
0x1205   : > { %5036 = vmatprep.subr.msk.bf16.mxu1 %vm902_vm1, %v6082_v34 }
0x120c   : > { %4855 = vmatpush3.bf16.xpose.msra.mxu1 %v6212_v42 }
0x120d   : > { %5037 = vmatprep.subr.msk.bf16.mxu1 %vm902_vm1, %v6090_v28 }
0x1214   : > { %4857 = vmatpush3.bf16.xpose.msra.mxu1 %v6219_v15 }
0x1215   : > { %5038 = vmatprep.subr.msk.bf16.mxu1 %vm902_vm1, %v6097_v3 }
0x121c   : > { %4859 = vmatpush3.bf16.xpose.msra.mxu1 %v6226_v21 }
0x121d   : > { %5039 = vmatprep.subr.msk.bf16.mxu1 %vm902_vm1, %v6104_v36 }
0x1224   : > { %4861 = vmatpush3.bf16.xpose.msra.mxu1 %v6233_v44 }
0x1225   : > { %5040 = vmatprep.subr.msk.bf16.mxu1 %vm902_vm1, %v6111_v12 }
0x122c   : > { %4863 = vmatpush3.bf16.xpose.msra.mxu1 %v6240_v50 }
0x122d   : > { %5041 = vmatprep.subr.msk.bf16.mxu1 %vm902_vm1, %v6118_v0 }
0x1234   : > { %4865 = vmatpush3.bf16.xpose.msra.mxu1 %v6247_v23 }
0x1235   : > { %4922 = vmatprep.subr.bf16.mxu1 %v6067_v16 }
0x12ce   : > { %v6393_v54 = vpop.f32.mrb[40].mxu1 }
0x12cf   : > { %v6395_v10 = vpop.f32.mrb[41].mxu1  ;;  %v6415_v52 = vsub.f32 %v6261_v39, %v6393_v54 }
0x12d0   : > { %v6397_v24 = vpop.f32.mrb[42].mxu1  ;;  %v6407_v63 = vsub.f32 %v6190_v14, %v6395_v10 }
0x12d1   : > { %v6401_v37 = vsub.f32 %v6252_v46, %v6397_v24  ;;  %v6403_v13 = vpop.f32.mrb[43].mxu1 }
0x12d2   : > { %v6411_v33 = vsub.f32 %v6180_v57, %v6403_v13 }
0x12d3   : > { %v2820_v46 = vpack.c.bf16 %v6401_v37, %v6415_v52 }
0x12d4   : > { %v2819_v40 = vpack.c.bf16 %v6411_v33, %v6407_v63 }
0x12d6   : > { %4866 = vmatprep.mubr.msk.bf16.mxu1 %vm902_vm1, %v2819_v40  ;;  %v6422_v51 = vpop.f32.mrb[44].mxu1 }
0x12d7   : > { %4867 = vmatmul.mubr.msk.bf16.vlgmr.msra.gmra.mrb[48].mxu1 %vm902_vm1, %v2820_v46  ;;  %v6425_v14 = vpop.f32.mrb[45].mxu1  ;;  %v6447_v18 = vsub.f32 %v7009_v49, %v6422_v51 }
0x12d8   : > { %4923 = vmatpush3.bf16.msra.mxu1 %v6067_v16  ;;  %v6428_v57 = vpop.f32.mrb[46].mxu1  ;;  %v6439_v8 = vsub.f32 %v6265_v20, %v6425_v14 }
0x12d9   : > { %4924 = vmatprep.subr.bf16.mxu1 %v6076_v30  ;;  %v6433_v39 = vsub.f32 %v7010_v45, %v6428_v57  ;;  %v6435_v53 = vpop.f32.mrb[47].mxu1  ;;  %7012 = vst [vmem:[#allocation6_spill] sm:$0xff] %v6447_v18 }
0x12da   : > { %v6443_v1 = vsub.f32 %v6257_v43, %v6435_v53 }
0x12db   : > { %v2822_v17 = vpack.c.bf16 %v6433_v39, %v6447_v18 }
0x12dc   : > { %4925 = vmatpush3.bf16.msra.mxu1 %v6076_v30  ;;  %v2821_v45 = vpack.c.bf16 %v6443_v1, %v6439_v8 }
0x12dd   : > { %4926 = vmatprep.subr.bf16.mxu1 %v6082_v34 }
0x12de   : > { %4870 = vmatprep.mubr.msk.bf16.mxu1 %vm902_vm1, %v2821_v45 }
0x12df   : > { %4871 = vmatmul.mubr.msk.bf16.gmra.mrb[52].mxu1 %vm902_vm1, %v2822_v17 }
0x12e0   : > { %4927 = vmatpush3.bf16.msra.mxu1 %v6082_v34 }
0x12e1   : > { %4928 = vmatprep.subr.bf16.mxu1 %v6090_v28 }
0x12e4   : > { %4929 = vmatpush3.bf16.msra.mxu1 %v6090_v28 }
0x12e5   : > { %4930 = vmatprep.subr.bf16.mxu1 %v6097_v3 }
0x12e8   : > { %4931 = vmatpush3.bf16.msra.mxu1 %v6097_v3 }
0x12e9   : > { %4932 = vmatprep.subr.bf16.mxu1 %v6104_v36 }
0x12ec   : > { %4933 = vmatpush3.bf16.msra.mxu1 %v6104_v36 }
0x12ed   : > { %4934 = vmatprep.subr.bf16.mxu1 %v6111_v12 }
0x12f0   : > { %4935 = vmatpush3.bf16.msra.mxu1 %v6111_v12 }
0x12f1   : > { %4936 = vmatprep.subr.bf16.mxu1 %v6118_v0 }
0x12f4   : > { %4937 = vmatpush3.bf16.msra.mxu1 %v6118_v0 }
0x12f5   : > { %5050 = vmatprep.subr.msk.bf16.mxu1 %vm902_vm1, %v6067_v16 }
0x13aa   : > { %v4868_v30 = vpop.f32.mrb[48].mxu1 }
0x13ab   : > { %v2869_v34 = vpop.f32.mrb[49].mxu1  ;;  %v2902_v20 = vmul.f32 2.0, %v4868_v30 }
0x13ac   : > { %v2900_v28 = vmul.f32 2.0, %v2869_v34  ;;  %v4869_v43 = vpop.f32.mrb[50].mxu1 }
0x13ad   : > { %v2872_v3 = vpop.f32.mrb[51].mxu1  ;;  %v2903_v38 = vmul.f32 2.0, %v4869_v43  ;;  %v2910_v12 = vsub.f32 %v6316_v62, %v2902_v20 }
0x13ae   : > { %v2908_v49 = vsub.f32 %v6316_v62, %v2900_v28  ;;  %v2901_v36 = vmul.f32 2.0, %v2872_v3 }
0x13af   : > { %v2911_v48 = vsub.f32 %v6316_v62, %v2903_v38 }
0x13b0   : > { %v2909_v41 = vsub.f32 %v6316_v62, %v2901_v36  ;;  %2916 = vmin.xlane.f32.xlu0 %v2908_v49 }
0x13b2   : > { %2918 = vmin.xlane.f32.xlu1 %v2909_v41  ;;  %v4872_v0 = vpop.f32.mrb[52].mxu1 }
0x13b3   : > { %v2885_v16 = vpop.f32.mrb[53].mxu1  ;;  %v2906_v22 = vmul.f32 2.0, %v4872_v0 }
0x13b4   : > { %2920 = vmin.xlane.f32.xlu0 %v2910_v12  ;;  %v2904_v2 = vmul.f32 2.0, %v2885_v16  ;;  %v4873_v31 = vpop.f32.mrb[54].mxu1 }
0x13b5   : > { %v2888_v19 = vpop.f32.mrb[55].mxu1  ;;  %v2907_v46 = vmul.f32 2.0, %v4873_v31  ;;  %v2914_v17 = vsub.f32 %v6316_v62, %v2906_v22 }
0x13b6   : > { %2922 = vmin.xlane.f32.xlu1 %v2911_v48  ;;  %v2912_v35 = vsub.f32 %v6316_v62, %v2904_v2  ;;  %v2905_v40 = vmul.f32 2.0, %v2888_v19 }
0x13b7   : > { %v2915_v30 = vsub.f32 %v6316_v62, %v2907_v46 }
0x13b8   : > { %v2913_v45 = vsub.f32 %v6316_v62, %v2905_v40  ;;  %2924 = vmin.xlane.f32.xlu0 %v2912_v35 }
0x13ba   : > { %2926 = vmin.xlane.f32.xlu1 %v2913_v45 }
0x13bc   : > { %2928 = vmin.xlane.f32.xlu0 %v2914_v17 }
0x13be   : > { %2930 = vmin.xlane.f32.xlu1 %v2915_v30 }
0x143d   : > { %v2917_v34 = vpop.xlane.xlu0 %2916 }
0x143e   : > { %vm2932_vm14 = vcmp.le.f32.partialorder %v2908_v49, %v2917_v34 }
0x143f   : > { %v2940_v28 = vsel %vm2932_vm14, %v5522_v60, 128  ;;  %v2919_v43 = vpop.xlane.xlu1 %2918 }
0x1440   : > { %v2949_v3 = vshra.s32 %v2940_v28, 16  ;;  %vm2933_vm15 = vcmp.le.f32.partialorder %v2909_v41, %v2919_v43 }
0x1441   : > { %v2941_v20 = vsel %vm2933_vm15, %v5522_v60, 128  ;;  %v2921_v36 = vpop.xlane.xlu0 %2920 }
0x1442   : > { %v2951_v38 = vcvt.s32.f32 %v2949_v3  ;;  %v2963_v0 = vshra.s32 %v2941_v20, 16  ;;  %vm2934_vm0 = vcmp.le.f32.partialorder %v2910_v12, %v2921_v36  ;;  %v2962_v32 = vand.u32 65535, %v2941_v20 }
0x1443   : > { %v2923_v16 = vpop.xlane.xlu1 %2922  ;;  %v2942_v31 = vsel %vm2934_vm0, %v5522_v60, 128  ;;  %vm2810_vm0 = vcmp.eq.s32.totalorder %v5522_v60, 64 }
0x1444   : > { %v2965_v2 = vcvt.s32.f32 %v2963_v0  ;;  %vm2935_vm2 = vcmp.le.f32.partialorder %v2911_v48, %v2923_v16  ;;  %2952 = vmin.xlane.f32.xlu0 %v2951_v38  ;;  %v2977_v19 = vshra.s32 %v2942_v31, 16 }
0x1445   : > { %v2943_v49 = vsel %vm2935_vm2, %v5522_v60, 128  ;;  %v2925_v40 = vpop.xlane.xlu0 %2924  ;;  %vm3169_vm2 = vcmp.eq.s32.totalorder %v5522_v60, 65 }
0x1446   : > { %v2991_v22 = vshra.s32 %v2943_v49, 16  ;;  %2966 = vmin.xlane.f32.xlu1 %v2965_v2  ;;  %v2979_v46 = vcvt.s32.f32 %v2977_v19  ;;  %vm2936_vm3 = vcmp.le.f32.partialorder %v2912_v35, %v2925_v40 }
0x1447   : > { %v2944_v34 = vsel %vm2936_vm3, %v5522_v60, 128  ;;  %v2927_v43 = vpop.xlane.xlu1 %2926 }
0x1448   : > { %v2993_v41 = vcvt.s32.f32 %v2991_v22  ;;  %v3005_v3 = vshra.s32 %v2944_v34, 16  ;;  %vm2937_vm4 = vcmp.le.f32.partialorder %v2913_v45, %v2927_v43  ;;  %2980 = vmin.xlane.f32.xlu0 %v2979_v46  ;;  %v2948_v43 = vand.u32 65535, %v2940_v28 }
0x1449   : > { %v2945_v12 = vsel %vm2937_vm4, %v5522_v60, 128  ;;  %v2929_v36 = vpop.xlane.xlu0 %2928  ;;  %v3004_v62 = vand.u32 65535, %v2944_v34 }
0x144a   : > { %2994 = vmin.xlane.f32.xlu1 %v2993_v41  ;;  %v3007_v48 = vcvt.s32.f32 %v3005_v3  ;;  %v3019_v0 = vshra.s32 %v2945_v12, 16  ;;  %vm2938_vm5 = vcmp.le.f32.partialorder %v2914_v17, %v2929_v36  ;;  %v2950_v3 = vcvt.s32.f32 %v2948_v43 }
0x144b   : > { %v2931_v16 = vpop.xlane.xlu1 %2930  ;;  %v2946_v25 = vsel %vm2938_vm5, %v5522_v60, 128  ;;  %v2976_v17 = vand.u32 65535, %v2942_v31  ;;  %v2964_v36 = vcvt.s32.f32 %v2962_v32  ;;  %v3018_v28 = vand.u32 65535, %v2945_v12 }
0x144c   : > { %v3021_v6 = vcvt.s32.f32 %v3019_v0  ;;  %vm2939_vm6 = vcmp.le.f32.partialorder %v2915_v30, %v2931_v16  ;;  %3008 = vmin.xlane.f32.xlu0 %v3007_v48  ;;  %v3033_v35 = vshra.s32 %v2946_v25, 16  ;;  %v2990_v0 = vand.u32 65535, %v2943_v49 }
0x144d   : > { %v2947_v19 = vsel %vm2939_vm6, %v5522_v60, 128  ;;  %v2978_v56 = vcvt.s32.f32 %v2976_v17  ;;  %v3032_v49 = vand.u32 65535, %v2946_v25 }
0x144e   : > { %v3047_v22 = vshra.s32 %v2947_v19, 16  ;;  %3022 = vmin.xlane.f32.xlu1 %v3021_v6  ;;  %v3035_v45 = vcvt.s32.f32 %v3033_v35  ;;  %v2992_v35 = vcvt.s32.f32 %v2990_v0  ;;  %v3046_v43 = vand.u32 65535, %v2947_v19 }
0x1450   : > { %v3049_v40 = vcvt.s32.f32 %v3047_v22  ;;  %3036 = vmin.xlane.f32.xlu0 %v3035_v45 }
0x1452   : > { %3050 = vmin.xlane.f32.xlu1 %v3049_v40 }
0x14d1   : > { %v2953_v27 = vpop.xlane.xlu0 %2952 }
0x14d2   : > { %vm2954_vm7 = vcmp.eq.f32.partialorder %v2951_v38, %v2953_v27  ;;  %v3006_v38 = vcvt.s32.f32 %v3004_v62  ;;  %v2959_v12 = vcvt.f32.s32 %v2953_v27 }
0x14d3   : > { %v2967_v61 = vpop.xlane.xlu1 %2966  ;;  %v2955_v30 = vsel %vm2954_vm7, %v2950_v3, inf }
0x14d4   : > { %vm2968_vm8 = vcmp.eq.f32.partialorder %v2965_v2, %v2967_v61  ;;  %2956 = vmin.xlane.f32.xlu0 %v2955_v30  ;;  %v3020_v2 = vcvt.s32.f32 %v3018_v28 }
0x14d5   : > { %v2969_v16 = vsel %vm2968_vm8, %v2964_v36, inf  ;;  %v2981_v18 = vpop.xlane.xlu0 %2980  ;;  %v3034_v36 = vcvt.s32.f32 %v3032_v49 }
0x14d6   : > { %2970 = vmin.xlane.f32.xlu1 %v2969_v16  ;;  %vm2982_vm9 = vcmp.eq.f32.partialorder %v2979_v46, %v2981_v18  ;;  %v2987_v30 = vcvt.f32.s32 %v2981_v18 }
0x14d7   : > { %v2995_v22 = vpop.xlane.xlu1 %2994  ;;  %v2983_v20 = vsel %vm2982_vm9, %v2978_v56, inf }
0x14d8   : > { %vm2996_vm10 = vcmp.eq.f32.partialorder %v2993_v41, %v2995_v22  ;;  %2984 = vmin.xlane.f32.xlu0 %v2983_v20  ;;  %v3048_v41 = vcvt.s32.f32 %v3046_v43  ;;  %v3001_v16 = vcvt.f32.s32 %v2995_v22 }
0x14d9   : > { %v2997_v31 = vsel %vm2996_vm10, %v2992_v35, inf  ;;  %v3009_v32 = vpop.xlane.xlu0 %3008 }
0x14da   : > { %2998 = vmin.xlane.f32.xlu1 %v2997_v31  ;;  %vm3010_vm11 = vcmp.eq.f32.partialorder %v3007_v48, %v3009_v32  ;;  %v2973_v48 = vcvt.f32.s32 %v2967_v61  ;;  %v2812_v61 = vsel %vm2810_vm0, %v6336_v55, 0  ;;  %v2988_v31 = vshll.u32 %v2987_v30, 16 }
0x14db   : > { %v3023_v3 = vpop.xlane.xlu1 %3022  ;;  %v3011_v17 = vsel %vm3010_vm11, %v3006_v38, inf  ;;  %v3002_v38 = vshll.u32 %v3001_v16, 16  ;;  %v3015_v49 = vcvt.f32.s32 %v3009_v32  ;;  %v2814_v32 = vsel %vm2810_vm0, %v6344_v7, 0 }
0x14dc   : > { %vm3024_vm12 = vcmp.eq.f32.partialorder %v3021_v6, %v3023_v3  ;;  %3012 = vmin.xlane.f32.xlu0 %v3011_v17  ;;  %v2960_v6 = vshll.u32 %v2959_v12, 16  ;;  %v2974_v28 = vshll.u32 %v2973_v48, 16  ;;  %v3029_v55 = vcvt.f32.s32 %v3023_v3 }
0x14dd   : > { %v3025_v34 = vsel %vm3024_vm12, %v3020_v2, inf  ;;  %v6486_v46 = vpop.xlane.xlu0 %3036 }
0x14de   : > { %3026 = vmin.xlane.f32.xlu1 %v3025_v34  ;;  %vm3038_vm14 = vcmp.eq.f32.partialorder %v3035_v45, %v6486_v46  ;;  %v3043_v12 = vcvt.f32.s32 %v6486_v46  ;;  %v2815_v46 = vsel %vm2810_vm0, %v6351_v29, 0  ;;  %v6540_v29 = vld [vmem:[%s6941_s9 + $0x8] sm:$0xff]  }
0x14df   : > { %v3051_v56 = vpop.xlane.xlu1 %3050  ;;  %v3039_v62 = vsel %vm3038_vm14, %v3034_v36, inf  ;;  %v2813_v36 = vsel %vm2810_vm0, %v6342_v11, 0 }
0x14e0   : > { %vm3052_vm15 = vcmp.eq.f32.partialorder %v3049_v40, %v3051_v56  ;;  %3040 = vmin.xlane.f32.xlu0 %v3039_v62  ;;  %v2811_v40 = vsel %vm2810_vm0, %v6334_v4, 0 }
0x14e1   : > { %v3053_v25 = vsel %vm3052_vm15, %v3048_v41, inf }
0x14e2   : > { %3054 = vmin.xlane.f32.xlu1 %v3053_v25  ;;  %v3016_v25 = vshll.u32 %v3015_v49, 16  ;;  %v2818_v49 = vsel %vm2810_vm0, %v6365_v5, 0  ;;  %v6580_v5 = vld [vmem:[%s6941_s9 + $0x18] sm:$0xff]  }
0x1561   : > { %v2957_v19 = vpop.xlane.xlu0 %2956 }
0x1562   : > { %v2958_v0 = vcvt.f32.s32 %v2957_v19  ;;  %v3057_v19 = vcvt.f32.s32 %v3051_v56 }
0x1563   : > { %v2971_v35 = vpop.xlane.xlu1 %2970 }
0x1564   : > { %v2961_v45 = vadd.s32 %v2960_v6, %v2958_v0  ;;  %v2972_v20 = vcvt.f32.s32 %v2971_v35  ;;  %v3030_v6 = vshll.u32 %v3029_v55, 16  ;;  %v6596_v55 = vld [vmem:[%s6941_s9 + $0x28] sm:$0xff]  }
0x1565   : > { %v2985_v22 = vpop.xlane.xlu0 %2984 }
0x1566   : > { %v6499_v27 = vsel %vm3169_vm2, %v2961_v45, %v2811_v40  ;;  %v2975_v18 = vadd.s32 %v2974_v28, %v2972_v20  ;;  %v2986_v2 = vcvt.f32.s32 %v2985_v22  ;;  %vm3060_vm3 = vcmp.eq.s32.totalorder %v5522_v60, %v2961_v45 }
0x1567   : > { %v2999_v43 = vpop.xlane.xlu1 %2998  ;;  %v2816_v28 = vsel %vm2810_vm0, %v6354_v26, 0  ;;  %v3044_v45 = vshll.u32 %v3043_v12, 16  ;;  %v3058_v20 = vshll.u32 %v3057_v19, 16 }
0x1568   : > { %v6503_v17 = vsel %vm3169_vm2, %v2975_v18, %v2812_v61  ;;  %v3000_v4 = vcvt.f32.s32 %v2999_v43  ;;  %vm3061_vm4 = vcmp.eq.s32.totalorder %v5522_v60, %v2975_v18  ;;  %v2989_v34 = vadd.s32 %v2988_v31, %v2986_v2 }
0x1569   : > { %vm4265_vm5 = vmpackc.low %vm3061_vm4, %vm3060_vm3  ;;  %v3013_v62 = vpop.xlane.xlu0 %3012  ;;  %v2817_v31 = vsel %vm2810_vm0, %v6359_v59, 0  ;;  %v6572_v59 = vld [vmem:[%s6941_s9 + $0x10] sm:$0xff]  }
0x156a   : > { %v3003_v41 = vadd.s32 %v3002_v38, %v3000_v4  ;;  %4890 = vmatprep.mubr.msk.bf16.mxu0 %vm4265_vm5, %v6975_v58  ;;  %v6517_v3 = vsel %vm3169_vm2, %v2989_v34, %v2813_v36  ;;  %v3014_v48 = vcvt.f32.s32 %v3013_v62  ;;  %vm3062_vm6 = vcmp.eq.s32.totalorder %v5522_v60, %v2989_v34  ;;  %v6588_v4 = vld [vmem:[%s6941_s9 + $0x20] sm:$0xff]   ;;  %v6604_v34 = vld [vmem:[%s6941_s9 + $0x30] sm:$0xff]   ;;  %v6612_v36 = vld [vmem:[%s6941_s9 + $0x38] sm:$0xff]  }
0x156b   : > { %v3027_v7 = vpop.xlane.xlu1 %3026 }
0x156c   : > { %vm3063_vm7 = vcmp.eq.s32.totalorder %v5522_v60, %v3003_v41  ;;  %v6523_v11 = vsel %vm3169_vm2, %v3003_v41, %v2814_v32  ;;  %v3017_v0 = vadd.s32 %v3016_v25, %v3014_v48  ;;  %v3028_v30 = vcvt.f32.s32 %v3027_v7  ;;  %v5123_v32 = vld [vmem:[%s6941_s9] sm:$0xff]  }
0x156d   : > { %vm4267_vm8 = vmpackc.low %vm3063_vm7, %vm3062_vm6  ;;  %v3041_v35 = vpop.xlane.xlu0 %3040 }
0x156e   : > { %4891 = vmatmul.mubr.msk.bf16.vlgmr.msra.gmra.mrb[48].mxu0 %vm4267_vm8, %v6975_v58  ;;  %v6531_v56 = vsel %vm3169_vm2, %v3017_v0, %v2815_v46  ;;  %v3031_v16 = vadd.s32 %v3030_v6, %v3028_v30  ;;  %v3042_v40 = vcvt.f32.s32 %v3041_v35  ;;  %vm3064_vm9 = vcmp.eq.s32.totalorder %v5522_v60, %v3017_v0 }
0x156f   : > { %4899 = vmatpush3.bf16.xpose.msra.mxu0 %v6154_v9  ;;  %v3055_v61 = vpop.xlane.xlu1 %3054 }
0x1570   : > { %5043 = vmatprep.subr.msk.bf16.mxu0 %vm902_vm1, %v6540_v29  ;;  %v6546_v18 = vsel %vm3169_vm2, %v3031_v16, %v2816_v28  ;;  %v3056_v22 = vcvt.f32.s32 %v3055_v61  ;;  %vm3065_vm10 = vcmp.eq.s32.totalorder %v5522_v60, %v3031_v16  ;;  %v3045_v26 = vadd.s32 %v3044_v45, %v3042_v40 }
0x1571   : > { %vm4269_vm11 = vmpackc.low %vm3065_vm10, %vm3064_vm9 }
0x1572   : > { %v3059_v38 = vadd.s32 %v3058_v20, %v3056_v22  ;;  %4894 = vmatprep.mubr.msk.bf16.mxu0 %vm4269_vm11, %v6975_v58  ;;  %v6559_v2 = vsel %vm3169_vm2, %v3045_v26, %v2817_v31  ;;  %vm3066_vm12 = vcmp.eq.s32.totalorder %v5522_v60, %v3045_v26  ;;  %v7022_v31 = vld [vmem:[#allocation19_spill] sm:$0xff] }
0x1574   : > { %v6563_v43 = vsel %vm3169_vm2, %v3059_v38, %v2818_v49  ;;  %vm3067_vm14 = vcmp.eq.s32.totalorder %v5522_v60, %v3059_v38 }
0x1575   : > { %vm4271_vm15 = vmpackc.low %vm3067_vm14, %vm3066_vm12 }
0x1576   : > { %4895 = vmatmul.mubr.msk.bf16.gmra.mrb[52].mxu0 %vm4271_vm15, %v6975_v58 }
0x1577   : > { %4901 = vmatpush3.bf16.xpose.msra.mxu0 %v6201_v47 }
0x1578   : > { %5044 = vmatprep.subr.msk.bf16.mxu0 %vm902_vm1, %v6572_v59 }
0x157f   : > { %4903 = vmatpush3.bf16.xpose.msra.mxu0 %v6212_v42 }
0x1580   : > { %5045 = vmatprep.subr.msk.bf16.mxu0 %vm902_vm1, %v6580_v5 }
0x1587   : > { %4905 = vmatpush3.bf16.xpose.msra.mxu0 %v6219_v15 }
0x1588   : > { %5046 = vmatprep.subr.msk.bf16.mxu0 %vm902_vm1, %v6588_v4 }
0x158f   : > { %4907 = vmatpush3.bf16.xpose.msra.mxu0 %v6226_v21 }
0x1590   : > { %5047 = vmatprep.subr.msk.bf16.mxu0 %vm902_vm1, %v6596_v55 }
0x1597   : > { %4909 = vmatpush3.bf16.xpose.msra.mxu0 %v6233_v44 }
0x1598   : > { %5048 = vmatprep.subr.msk.bf16.mxu0 %vm902_vm1, %v6604_v34 }
0x159f   : > { %4911 = vmatpush3.bf16.xpose.msra.mxu0 %v6240_v50 }
0x15a0   : > { %5049 = vmatprep.subr.msk.bf16.mxu0 %vm902_vm1, %v6612_v36 }
0x15a7   : > { %4913 = vmatpush3.bf16.xpose.msra.mxu0 %v6247_v23 }
0x15a8   : > { %4970 = vmatprep.subr.bf16.mxu0 %v5123_v32 }
0x1641   : > { %v4892_v41 = vpop.f32.mrb[48].mxu0 }
0x1642   : > { %v6621_v62 = vadd.f32 %v4892_v41, %v6393_v54  ;;  %v3122_v25 = vpop.f32.mrb[49].mxu0 }
0x1643   : > { %v6624_v12 = vadd.f32 %v3122_v25, %v6395_v10  ;;  %v4893_v48 = vpop.f32.mrb[50].mxu0  ;;  %v6633_v0 = vsub.f32 %v6407_v63, %v3122_v25  ;;  %v6642_v10 = vsub.f32 %v6415_v52, %v4892_v41  ;;  %v6698_v41 = vld [vmem:[%s6942_s10] ss:$0 sm:$0xff] }
0x1644   : > { %v6627_v19 = vadd.f32 %v4893_v48, %v6397_v24  ;;  %v6630_v7 = vsub.f32 %v6401_v37, %v4893_v48  ;;  %v3125_v6 = vpop.f32.mrb[51].mxu0 }
0x1645   : > { %v6636_v30 = vadd.f32 %v3125_v6, %v6403_v13  ;;  %v6639_v54 = vsub.f32 %v6411_v33, %v3125_v6 }
0x1646   : > { %v3179_v37 = vpack.c.bf16 %v6630_v7, %v6642_v10 }
0x1647   : > { %v3178_v24 = vpack.c.bf16 %v6639_v54, %v6633_v0 }
0x1649   : > { %4914 = vmatprep.mubr.msk.bf16.mxu0 %vm902_vm1, %v3178_v24  ;;  %v4896_v46 = vpop.f32.mrb[52].mxu0 }
0x164a   : > { %4915 = vmatmul.mubr.msk.bf16.vlgmr.msra.gmra.mrb[56].mxu0 %vm902_vm1, %v3179_v37  ;;  %v6651_v13 = vadd.f32 %v4896_v46, %v6422_v51  ;;  %v3138_v63 = vpop.f32.mrb[53].mxu0 }
0x164b   : > { %4971 = vmatpush3.bf16.msra.mxu0 %v5123_v32  ;;  %v6654_v33 = vadd.f32 %v3138_v63, %v6425_v14  ;;  %v4897_v52 = vpop.f32.mrb[54].mxu0  ;;  %v6664_v45 = vsub.f32 %v6439_v8, %v3138_v63  ;;  %v7020_v14 = vld [vmem:[#allocation6_spill] sm:$0xff] }
0x164c   : > { %7013 = vst [vmem:[#allocation5_spill] sm:$0xff] %v6651_v13  ;;  %4972 = vmatprep.subr.bf16.mxu0 %v6540_v29  ;;  %v6658_v16 = vadd.f32 %v4897_v52, %v6428_v57  ;;  %v6661_v35 = vsub.f32 %v6433_v39, %v4897_v52  ;;  %v3141_v28 = vpop.f32.mrb[55].mxu0  ;;  %v6673_v40 = vsub.f32 %v7020_v14, %v4896_v46  ;;  %7023 = vst [vmem:[#allocation6_spill] sm:$0xff] %v6698_v41 }
0x164d   : > { %7014 = vst [vmem:[#allocation3_spill] sm:$0xff] %v6654_v33  ;;  %7017 = vst [vmem:[#allocation2_spill] sm:$0xff] %v6664_v45  ;;  %v6667_v51 = vadd.f32 %v3141_v28, %v6435_v53  ;;  %v6670_v20 = vsub.f32 %v6443_v1, %v3141_v28 }
0x164e   : > { %7015 = vst [vmem:[#allocation4_spill] sm:$0xff] %v6658_v16  ;;  %7016 = vst [vmem:[#allocation10_spill] sm:$0xff] %v6661_v35  ;;  %v3181_v39 = vpack.c.bf16 %v6661_v35, %v6673_v40 }
0x164f   : > { %7018 = vst [vmem:[#allocation8_spill] sm:$0xff] %v6667_v51  ;;  %7019 = vst [vmem:[#allocation7_spill] sm:$0xff] %v6670_v20  ;;  %4973 = vmatpush3.bf16.msra.mxu0 %v6540_v29  ;;  %v3180_v57 = vpack.c.bf16 %v6670_v20, %v6664_v45 }
0x1650   : > { %7021 = vst [vmem:[#allocation9_spill] sm:$0xff] %v6673_v40  ;;  %4974 = vmatprep.subr.bf16.mxu0 %v6572_v59 }
0x1651   : > { %4918 = vmatprep.mubr.msk.bf16.mxu0 %vm902_vm1, %v3180_v57 }
0x1652   : > { %4919 = vmatmul.mubr.msk.bf16.gmra.mrb[60].mxu0 %vm902_vm1, %v3181_v39 }
0x1653   : > { %4975 = vmatpush3.bf16.msra.mxu0 %v6572_v59 }
0x1654   : > { %4976 = vmatprep.subr.bf16.mxu0 %v6580_v5 }
0x1657   : > { %4977 = vmatpush3.bf16.msra.mxu0 %v6580_v5 }
0x1658   : > { %4978 = vmatprep.subr.bf16.mxu0 %v6588_v4 }
0x165b   : > { %4979 = vmatpush3.bf16.msra.mxu0 %v6588_v4 }
0x165c   : > { %4980 = vmatprep.subr.bf16.mxu0 %v6596_v55 }
0x165f   : > { %4981 = vmatpush3.bf16.msra.mxu0 %v6596_v55 }
0x1660   : > { %4982 = vmatprep.subr.bf16.mxu0 %v6604_v34 }
0x1663   : > { %4983 = vmatpush3.bf16.msra.mxu0 %v6604_v34 }
0x1664   : > { %4984 = vmatprep.subr.bf16.mxu0 %v6612_v36 }
0x1667   : > { %4985 = vmatpush3.bf16.msra.mxu0 %v6612_v36 }
0x171d   : > { %v4916_v53 = vpop.f32.mrb[56].mxu0 }
0x171e   : > { %v3228_v8 = vpop.f32.mrb[57].mxu0  ;;  %v3261_v26 = vmul.f32 2.0, %v4916_v53 }
0x171f   : > { %v3259_v1 = vmul.f32 2.0, %v3228_v8  ;;  %v4917_v61 = vpop.f32.mrb[58].mxu0 }
0x1720   : > { %v3231_v22 = vpop.f32.mrb[59].mxu0  ;;  %v3262_v32 = vmul.f32 2.0, %v4917_v61  ;;  %v3269_v48 = vsub.f32 %v6698_v41, %v3261_v26 }
0x1721   : > { %v3267_v38 = vsub.f32 %v7022_v31, %v3259_v1  ;;  %v3260_v49 = vmul.f32 2.0, %v3231_v22 }
0x1722   : > { %v3270_v24 = vsub.f32 %v6698_v41, %v3262_v32 }
0x1723   : > { %v3268_v25 = vsub.f32 %v6698_v41, %v3260_v49  ;;  %3275 = vmin.xlane.f32.xlu0 %v3267_v38 }
0x1725   : > { %3277 = vmin.xlane.f32.xlu1 %v3268_v25  ;;  %v4920_v6 = vpop.f32.mrb[60].mxu0 }
0x1726   : > { %v3244_v37 = vpop.f32.mrb[61].mxu0  ;;  %v3265_v28 = vmul.f32 2.0, %v4920_v6 }
0x1727   : > { %3279 = vmin.xlane.f32.xlu0 %v3269_v48  ;;  %v3263_v46 = vmul.f32 2.0, %v3244_v37  ;;  %v4921_v63 = vpop.f32.mrb[62].mxu0 }
0x1728   : > { %v3247_v52 = vpop.f32.mrb[63].mxu0  ;;  %v3266_v39 = vmul.f32 2.0, %v4921_v63  ;;  %v3273_v8 = vsub.f32 %v6698_v41, %v3265_v28 }
0x1729   : > { %3281 = vmin.xlane.f32.xlu1 %v3270_v24  ;;  %v3271_v14 = vsub.f32 %v6698_v41, %v3263_v46  ;;  %v3264_v57 = vmul.f32 2.0, %v3247_v52 }
0x172a   : > { %v3274_v1 = vsub.f32 %v6698_v41, %v3266_v39 }
0x172b   : > { %v3272_v53 = vsub.f32 %v6698_v41, %v3264_v57  ;;  %3283 = vmin.xlane.f32.xlu0 %v3271_v14 }
0x172d   : > { %3285 = vmin.xlane.f32.xlu1 %v3272_v53 }
0x172f   : > { %3287 = vmin.xlane.f32.xlu0 %v3273_v8 }
0x1731   : > { %3289 = vmin.xlane.f32.xlu1 %v3274_v1 }
0x17b0   : > { %v3276_v61 = vpop.xlane.xlu0 %3275 }
0x17b1   : > { %vm3291_vm0 = vcmp.le.f32.partialorder %v3267_v38, %v3276_v61 }
0x17b2   : > { %v3299_v22 = vsel %vm3291_vm0, %v5522_v60, 128  ;;  %v3278_v26 = vpop.xlane.xlu1 %3277 }
0x17b3   : > { %v3308_v31 = vshra.s32 %v3299_v22, 16  ;;  %vm3292_vm2 = vcmp.le.f32.partialorder %v3268_v25, %v3278_v26 }
0x17b4   : > { %v3300_v49 = vsel %vm3292_vm2, %v5522_v60, 128  ;;  %v3280_v32 = vpop.xlane.xlu0 %3279 }
0x17b5   : > { %v3310_v6 = vcvt.s32.f32 %v3308_v31  ;;  %v3322_v37 = vshra.s32 %v3300_v49, 16  ;;  %vm3293_vm3 = vcmp.le.f32.partialorder %v3269_v48, %v3280_v32  ;;  %v3321_v45 = vand.u32 65535, %v3300_v49 }
0x17b6   : > { %v3282_v46 = vpop.xlane.xlu1 %3281  ;;  %v3301_v52 = vsel %vm3293_vm3, %v5522_v60, 128  ;;  %vm3528_vm3 = vcmp.eq.s32.totalorder %v5522_v60, 66 }
0x17b7   : > { %v3324_v63 = vcvt.s32.f32 %v3322_v37  ;;  %vm3294_vm4 = vcmp.le.f32.partialorder %v3270_v24, %v3282_v46  ;;  %3311 = vmin.xlane.f32.xlu0 %v3310_v6  ;;  %v3336_v28 = vshra.s32 %v3301_v52, 16 }
0x17b8   : > { %v3302_v38 = vsel %vm3294_vm4, %v5522_v60, 128  ;;  %v3284_v39 = vpop.xlane.xlu0 %3283 }
0x17b9   : > { %v3350_v57 = vshra.s32 %v3302_v38, 16  ;;  %3325 = vmin.xlane.f32.xlu1 %v3324_v63  ;;  %v3338_v61 = vcvt.s32.f32 %v3336_v28  ;;  %vm3295_vm5 = vcmp.le.f32.partialorder %v3271_v14, %v3284_v39 }
0x17ba   : > { %v3303_v26 = vsel %vm3295_vm5, %v5522_v60, 128  ;;  %v3286_v31 = vpop.xlane.xlu1 %3285 }
0x17bb   : > { %v3352_v25 = vcvt.s32.f32 %v3350_v57  ;;  %v3364_v41 = vshra.s32 %v3303_v26, 16  ;;  %vm3296_vm6 = vcmp.le.f32.partialorder %v3272_v53, %v3286_v31  ;;  %3339 = vmin.xlane.f32.xlu0 %v3338_v61  ;;  %v3307_v31 = vand.u32 65535, %v3299_v22 }
0x17bc   : > { %v3304_v48 = vsel %vm3296_vm6, %v5522_v60, 128  ;;  %v3288_v32 = vpop.xlane.xlu0 %3287  ;;  %v3363_v33 = vand.u32 65535, %v3303_v26 }
0x17bd   : > { %3353 = vmin.xlane.f32.xlu1 %v3352_v25  ;;  %v3366_v24 = vcvt.s32.f32 %v3364_v41  ;;  %v3378_v37 = vshra.s32 %v3304_v48, 16  ;;  %vm3297_vm7 = vcmp.le.f32.partialorder %v3273_v8, %v3288_v32  ;;  %v3309_v41 = vcvt.s32.f32 %v3307_v31 }
0x17be   : > { %v3290_v46 = vpop.xlane.xlu1 %3289  ;;  %v3305_v51 = vsel %vm3297_vm7, %v5522_v60, 128  ;;  %v3335_v8 = vand.u32 65535, %v3301_v52  ;;  %v3323_v32 = vcvt.s32.f32 %v3321_v45  ;;  %v3377_v22 = vand.u32 65535, %v3304_v48 }
0x17bf   : > { %v3380_v20 = vcvt.s32.f32 %v3378_v37  ;;  %vm3298_vm8 = vcmp.le.f32.partialorder %v3274_v1, %v3290_v46  ;;  %3367 = vmin.xlane.f32.xlu0 %v3366_v24  ;;  %v3392_v14 = vshra.s32 %v3305_v51, 16  ;;  %v3349_v37 = vand.u32 65535, %v3302_v38 }
0x17c0   : > { %v3306_v28 = vsel %vm3298_vm8, %v5522_v60, 128  ;;  %v3337_v40 = vcvt.s32.f32 %v3335_v8  ;;  %v3391_v38 = vand.u32 65535, %v3305_v51 }
0x17c1   : > { %v3406_v57 = vshra.s32 %v3306_v28, 16  ;;  %3381 = vmin.xlane.f32.xlu1 %v3380_v20  ;;  %v3394_v53 = vcvt.s32.f32 %v3392_v14  ;;  %v3351_v14 = vcvt.s32.f32 %v3349_v37  ;;  %v3405_v31 = vand.u32 65535, %v3306_v28 }
0x17c3   : > { %v3408_v39 = vcvt.s32.f32 %v3406_v57  ;;  %3395 = vmin.xlane.f32.xlu0 %v3394_v53  ;;  %v3407_v48 = vcvt.s32.f32 %v3405_v31 }
0x17c5   : > { %3409 = vmin.xlane.f32.xlu1 %v3408_v39 }
0x1844   : > { %v3312_v35 = vpop.xlane.xlu0 %3311 }
0x1845   : > { %vm3313_vm9 = vcmp.eq.f32.partialorder %v3310_v6, %v3312_v35  ;;  %v3365_v6 = vcvt.s32.f32 %v3363_v33  ;;  %v3318_v51 = vcvt.f32.s32 %v3312_v35 }
0x1846   : > { %v3326_v16 = vpop.xlane.xlu1 %3325  ;;  %v3314_v1 = vsel %vm3313_vm9, %v3309_v41, inf }
0x1847   : > { %vm3327_vm10 = vcmp.eq.f32.partialorder %v3324_v63, %v3326_v16  ;;  %3315 = vmin.xlane.f32.xlu0 %v3314_v1  ;;  %v3379_v63 = vcvt.s32.f32 %v3377_v22  ;;  %v3319_v28 = vshll.u32 %v3318_v51, 16 }
0x1848   : > { %v3328_v46 = vsel %vm3327_vm10, %v3323_v32, inf  ;;  %v3340_v13 = vpop.xlane.xlu0 %3339  ;;  %v3393_v32 = vcvt.s32.f32 %v3391_v38 }
0x1849   : > { %3329 = vmin.xlane.f32.xlu1 %v3328_v46  ;;  %vm3341_vm11 = vcmp.eq.f32.partialorder %v3338_v61, %v3340_v13  ;;  %v3346_v46 = vcvt.f32.s32 %v3340_v13 }
0x184a   : > { %v3354_v57 = vpop.xlane.xlu1 %3353  ;;  %v3342_v49 = vsel %vm3341_vm11, %v3337_v40, inf }
0x184b   : > { %vm3355_vm12 = vcmp.eq.f32.partialorder %v3352_v25, %v3354_v57  ;;  %3343 = vmin.xlane.f32.xlu0 %v3342_v49  ;;  %v3347_v35 = vshll.u32 %v3346_v46, 16 }
0x184c   : > { %v3356_v52 = vsel %vm3355_vm12, %v3351_v14, inf  ;;  %v3368_v45 = vpop.xlane.xlu0 %3367 }
0x184d   : > { %3357 = vmin.xlane.f32.xlu1 %v3356_v52  ;;  %vm3369_vm14 = vcmp.eq.f32.partialorder %v3366_v24, %v3368_v45  ;;  %v3332_v24 = vcvt.f32.s32 %v3326_v16  ;;  %v3374_v38 = vcvt.f32.s32 %v3368_v45 }
0x184e   : > { %v3382_v41 = vpop.xlane.xlu1 %3381  ;;  %v3370_v8 = vsel %vm3369_vm14, %v3365_v6, inf }
0x184f   : > { %vm3383_vm15 = vcmp.eq.f32.partialorder %v3380_v20, %v3382_v41  ;;  %3371 = vmin.xlane.f32.xlu0 %v3370_v8  ;;  %v3360_v20 = vcvt.f32.s32 %v3354_v57  ;;  %v3333_v22 = vshll.u32 %v3332_v24, 16  ;;  %v3388_v8 = vcvt.f32.s32 %v3382_v41 }
0x1850   : > { %v3384_v26 = vsel %vm3383_vm15, %v3379_v63, inf  ;;  %v3396_v61 = vpop.xlane.xlu0 %3395  ;;  %v3375_v45 = vshll.u32 %v3374_v38, 16 }
0x1851   : > { %3385 = vmin.xlane.f32.xlu1 %v3384_v26  ;;  %vm3397_vm0 = vcmp.eq.f32.partialorder %v3394_v53, %v3396_v61  ;;  %v3361_v16 = vshll.u32 %v3360_v20, 16  ;;  %v3389_v24 = vshll.u32 %v3388_v8, 16 }
0x1852   : > { %v3410_v40 = vpop.xlane.xlu1 %3409  ;;  %v3398_v25 = vsel %vm3397_vm0, %v3393_v32, inf }
0x1853   : > { %vm3411_vm2 = vcmp.eq.f32.partialorder %v3408_v39, %v3410_v40  ;;  %3399 = vmin.xlane.f32.xlu0 %v3398_v25 }
0x1854   : > { %v3412_v33 = vsel %vm3411_vm2, %v3407_v48, inf  ;;  %v3402_v48 = vcvt.f32.s32 %v3396_v61 }
0x1855   : > { %3413 = vmin.xlane.f32.xlu1 %v3412_v33  ;;  %v3416_v33 = vcvt.f32.s32 %v3410_v40 }
0x1857   : > { %v3417_v46 = vshll.u32 %v3416_v33, 16 }
0x18d4   : > { %v3316_v37 = vpop.xlane.xlu0 %3315 }
0x18d5   : > { %v3317_v1 = vcvt.f32.s32 %v3316_v37 }
0x18d6   : > { %v3330_v14 = vpop.xlane.xlu1 %3329 }
0x18d7   : > { %v3320_v49 = vadd.s32 %v3319_v28, %v3317_v1  ;;  %v3331_v52 = vcvt.f32.s32 %v3330_v14  ;;  %v3403_v1 = vshll.u32 %v3402_v48, 16 }
0x18d8   : > { %v3344_v6 = vpop.xlane.xlu0 %3343 }
0x18d9   : > { %v6719_v53 = vsel %vm3528_vm3, %v3320_v49, %v6499_v27  ;;  %v3334_v39 = vadd.s32 %v3333_v22, %v3331_v52  ;;  %v3345_v63 = vcvt.f32.s32 %v3344_v6  ;;  %vm3419_vm4 = vcmp.eq.s32.totalorder %v5522_v60, %v3320_v49  ;;  %v7027_v52 = vld [vmem:[#allocation4_spill] sm:$0xff] }
0x18da   : > { %v3358_v31 = vpop.xlane.xlu1 %3357 }
0x18db   : > { %v6724_v13 = vsel %vm3528_vm3, %v3334_v39, %v6503_v17  ;;  %v3359_v57 = vcvt.f32.s32 %v3358_v31  ;;  %vm3420_vm5 = vcmp.eq.s32.totalorder %v5522_v60, %v3334_v39  ;;  %v3348_v27 = vadd.s32 %v3347_v35, %v3345_v63  ;;  %v7030_v63 = vld [vmem:[#allocation8_spill] sm:$0xff] }
0x18dc   : > { %vm4285_vm6 = vmpackc.low %vm3420_vm5, %vm3419_vm4  ;;  %v3372_v32 = vpop.xlane.xlu0 %3371 }
0x18dd   : > { %v3362_v26 = vadd.s32 %v3361_v16, %v3359_v57  ;;  %4938 = vmatprep.mubr.msk.bf16.mxu1 %vm4285_vm6, %v6975_v58  ;;  %v6732_v25 = vsel %vm3528_vm3, %v3348_v27, %v6517_v3  ;;  %v3373_v17 = vcvt.f32.s32 %v3372_v32  ;;  %vm3421_vm7 = vcmp.eq.s32.totalorder %v5522_v60, %v3348_v27  ;;  %v7029_v16 = vld [vmem:[#allocation2_spill] sm:$0xff]  ;;  %v7031_v57 = vld [vmem:[#allocation7_spill] sm:$0xff] }
0x18de   : > { %v3386_v51 = vpop.xlane.xlu1 %3385 }
0x18df   : > { %vm3422_vm8 = vcmp.eq.s32.totalorder %v5522_v60, %v3362_v26  ;;  %v6739_v41 = vsel %vm3528_vm3, %v3362_v26, %v6523_v11  ;;  %v3376_v61 = vadd.s32 %v3375_v45, %v3373_v17  ;;  %v3387_v37 = vcvt.f32.s32 %v3386_v51 }
0x18e0   : > { %vm4287_vm9 = vmpackc.low %vm3422_vm8, %vm3421_vm7  ;;  %v3400_v28 = vpop.xlane.xlu0 %3399 }
0x18e1   : > { %4939 = vmatmul.mubr.msk.bf16.vlgmr.msra.gmra.mrb[56].mxu1 %vm4287_vm9, %v6975_v58  ;;  %v6745_v3 = vsel %vm3528_vm3, %v3376_v61, %v6531_v56  ;;  %v3390_v40 = vadd.s32 %v3389_v24, %v3387_v37  ;;  %v3401_v11 = vcvt.f32.s32 %v3400_v28  ;;  %vm3423_vm10 = vcmp.eq.s32.totalorder %v5522_v60, %v3376_v61  ;;  %v7032_v24 = vld [vmem:[#allocation6_spill] sm:$0xff] }
0x18e2   : > { %4947 = vmatpush3.bf16.xpose.msra.mxu1 %v6154_v9  ;;  %v3414_v20 = vpop.xlane.xlu1 %3413 }
0x18e3   : > { %5051 = vmatprep.subr.msk.bf16.mxu1 %vm902_vm1, %v6540_v29  ;;  %v6753_v14 = vsel %vm3528_vm3, %v3390_v40, %v6546_v18  ;;  %v3415_v22 = vcvt.f32.s32 %v3414_v20  ;;  %vm3424_vm11 = vcmp.eq.s32.totalorder %v5522_v60, %v3390_v40  ;;  %v3404_v56 = vadd.s32 %v3403_v1, %v3401_v11 }
0x18e4   : > { %vm4289_vm12 = vmpackc.low %vm3424_vm11, %vm3423_vm10 }
0x18e5   : > { %v3418_v9 = vadd.s32 %v3417_v46, %v3415_v22  ;;  %4942 = vmatprep.mubr.msk.bf16.mxu1 %vm4289_vm12, %v6975_v58  ;;  %v6761_v49 = vsel %vm3528_vm3, %v3404_v56, %v6559_v2  ;;  %vm3425_vm14 = vcmp.eq.s32.totalorder %v5522_v60, %v3404_v56 }
0x18e7   : > { %v6766_v29 = vsel %vm3528_vm3, %v3418_v9, %v6563_v43  ;;  %vm3426_vm15 = vcmp.eq.s32.totalorder %v5522_v60, %v3418_v9 }
0x18e8   : > { %vm4291_vm0 = vmpackc.low %vm3426_vm15, %vm3425_vm14 }
0x18e9   : > { %4943 = vmatmul.mubr.msk.bf16.gmra.mrb[60].mxu1 %vm4291_vm0, %v6975_v58 }
0x18ea   : > { %4949 = vmatpush3.bf16.xpose.msra.mxu1 %v6201_v47 }
0x18eb   : > { %5052 = vmatprep.subr.msk.bf16.mxu1 %vm902_vm1, %v6572_v59 }
0x18f2   : > { %4951 = vmatpush3.bf16.xpose.msra.mxu1 %v6212_v42 }
0x18f3   : > { %5053 = vmatprep.subr.msk.bf16.mxu1 %vm902_vm1, %v6580_v5 }
0x18fa   : > { %4953 = vmatpush3.bf16.xpose.msra.mxu1 %v6219_v15 }
0x18fb   : > { %5054 = vmatprep.subr.msk.bf16.mxu1 %vm902_vm1, %v6588_v4 }
0x1902   : > { %4955 = vmatpush3.bf16.xpose.msra.mxu1 %v6226_v21 }
0x1903   : > { %5055 = vmatprep.subr.msk.bf16.mxu1 %vm902_vm1, %v6596_v55 }
0x190a   : > { %4957 = vmatpush3.bf16.xpose.msra.mxu1 %v6233_v44 }
0x190b   : > { %5056 = vmatprep.subr.msk.bf16.mxu1 %vm902_vm1, %v6604_v34 }
0x1912   : > { %4959 = vmatpush3.bf16.xpose.msra.mxu1 %v6240_v50 }
0x1913   : > { %5057 = vmatprep.subr.msk.bf16.mxu1 %vm902_vm1, %v6612_v36  ;;  %v7024_v36 = vld [vmem:[#allocation5_spill] sm:$0xff] }
0x191a   : > { %4961 = vmatpush3.bf16.xpose.msra.mxu1 %v6247_v23 }
0x19b4   : > { %v4940_v47 = vpop.f32.mrb[56].mxu1 }
0x19b5   : > { %v6791_v42 = vadd.f32 %v4940_v47, %v6621_v62  ;;  %v3481_v15 = vpop.f32.mrb[57].mxu1  ;;  %v3522_v44 = vsub.f32 %v6642_v10, %v4940_v47  ;;  %v7026_v10 = vld [vmem:[#allocation9_spill] sm:$0xff] }
0x19b6   : > { %v6794_v21 = vadd.f32 %v3481_v15, %v6624_v12  ;;  %v4941_v18 = vpop.f32.mrb[58].mxu1  ;;  %v3520_v59 = vsub.f32 %v6633_v0, %v3481_v15 }
0x19b7   : > { %v6798_v2 = vadd.f32 %v4941_v18, %v6627_v19  ;;  %v3523_v50 = vsub.f32 %v6630_v7, %v4941_v18  ;;  %v3484_v43 = vpop.f32.mrb[59].mxu1  ;;  %v7025_v19 = vld [vmem:[#allocation3_spill] sm:$0xff] }
0x19b8   : > { %v6803_v23 = vadd.f32 %v3484_v43, %v6636_v30  ;;  %v3521_v5 = vsub.f32 %v6639_v54, %v3484_v43  ;;  %v7028_v54 = vld [vmem:[#allocation10_spill] sm:$0xff] }
0x19b9   : > { %v3538_v4 = vpack.c.bf16 %v3523_v50, %v3522_v44 }
0x19ba   : > { %v3537_v55 = vpack.c.bf16 %v3521_v5, %v3520_v59 }
0x19bc   : > { %4962 = vmatprep.mubr.msk.bf16.mxu1 %vm902_vm1, %v3537_v55  ;;  %v4944_v34 = vpop.f32.mrb[60].mxu1 }
0x19bd   : > { %4963 = vmatmul.mubr.msk.bf16.vlgmr.msra.gmra.mrb[64].mxu1 %vm902_vm1, %v3538_v4  ;;  %v6809_v62 = vadd.f32 %v4944_v34, %v7024_v36  ;;  %v3497_v12 = vpop.f32.mrb[61].mxu1  ;;  %v3526_v30 = vsub.f32 %v7026_v10, %v4944_v34 }
0x19be   : > { %v6812_v7 = vadd.f32 %v3497_v12, %v7025_v19  ;;  %v4945_v0 = vpop.f32.mrb[62].mxu1  ;;  %v3524_v38 = vsub.f32 %v7029_v16, %v3497_v12 }
0x19bf   : > { %v6816_v39 = vadd.f32 %v4945_v0, %v7027_v52  ;;  %v3527_v6 = vsub.f32 %v7028_v54, %v4945_v0  ;;  %v3500_v35 = vpop.f32.mrb[63].mxu1 }
0x19c0   : > { %v6821_v31 = vadd.f32 %v3500_v35, %v7030_v63  ;;  %v3525_v8 = vsub.f32 %v7031_v57, %v3500_v35 }
0x19c1   : > { %v3540_v27 = vpack.c.bf16 %v3527_v6, %v3526_v30 }
0x19c2   : > { %v3539_v26 = vpack.c.bf16 %v3525_v8, %v3524_v38 }
0x19c4   : > { %4966 = vmatprep.mubr.msk.bf16.mxu1 %vm902_vm1, %v3539_v26 }
0x19c5   : > { %4967 = vmatmul.mubr.msk.bf16.gmra.mrb[68].mxu1 %vm902_vm1, %v3540_v27 }
0x1a90   : > { %v4964_v32 = vpop.f32.mrb[64].mxu1 }
0x1a91   : > { %v3587_v45 = vpop.f32.mrb[65].mxu1  ;;  %v3620_v51 = vmul.f32 2.0, %v4964_v32 }
0x1a92   : > { %v3618_v48 = vmul.f32 2.0, %v3587_v45  ;;  %v4965_v17 = vpop.f32.mrb[66].mxu1 }
0x1a93   : > { %v3590_v33 = vpop.f32.mrb[67].mxu1  ;;  %v3621_v40 = vmul.f32 2.0, %v4965_v17  ;;  %v3628_v1 = vsub.f32 %v7032_v24, %v3620_v51 }
0x1a94   : > { %v3626_v61 = vsub.f32 %v7032_v24, %v3618_v48  ;;  %v3619_v37 = vmul.f32 2.0, %v3590_v33 }
0x1a95   : > { %v3629_v11 = vsub.f32 %v7032_v24, %v3621_v40 }
0x1a96   : > { %v3627_v28 = vsub.f32 %v7032_v24, %v3619_v37  ;;  %3634 = vmin.xlane.f32.xlu0 %v3626_v61 }
0x1a98   : > { %3636 = vmin.xlane.f32.xlu1 %v3627_v28  ;;  %v4968_v46 = vpop.f32.mrb[68].mxu1 }
0x1a99   : > { %v3603_v20 = vpop.f32.mrb[69].mxu1  ;;  %v3624_v47 = vmul.f32 2.0, %v4968_v46 }
0x1a9a   : > { %3638 = vmin.xlane.f32.xlu0 %v3628_v1  ;;  %v3622_v22 = vmul.f32 2.0, %v3603_v20  ;;  %v4969_v56 = vpop.f32.mrb[70].mxu1 }
0x1a9b   : > { %v3606_v9 = vpop.f32.mrb[71].mxu1  ;;  %v3625_v44 = vmul.f32 2.0, %v4969_v56  ;;  %v3632_v43 = vsub.f32 %v7032_v24, %v3624_v47 }
0x1a9c   : > { %3640 = vmin.xlane.f32.xlu1 %v3629_v11  ;;  %v3630_v15 = vsub.f32 %v7032_v24, %v3622_v22  ;;  %v3623_v18 = vmul.f32 2.0, %v3606_v9 }
0x1a9d   : > { %v3633_v59 = vsub.f32 %v7032_v24, %v3625_v44 }
0x1a9e   : > { %v3631_v50 = vsub.f32 %v7032_v24, %v3623_v18  ;;  %3642 = vmin.xlane.f32.xlu0 %v3630_v15 }
0x1aa0   : > { %3644 = vmin.xlane.f32.xlu1 %v3631_v50 }
0x1aa2   : > { %3646 = vmin.xlane.f32.xlu0 %v3632_v43 }
0x1aa4   : > { %3648 = vmin.xlane.f32.xlu1 %v3633_v59 }
0x1b23   : > { %v3635_v5 = vpop.xlane.xlu0 %3634 }
0x1b24   : > { %vm3650_vm1 = vcmp.le.f32.partialorder %v3626_v61, %v3635_v5 }
0x1b25   : > { %v3658_v4 = vsel %vm3650_vm1, %v5522_v60, 128  ;;  %v3637_v55 = vpop.xlane.xlu1 %3636 }
0x1b26   : > { %v3667_v34 = vshra.s32 %v3658_v4, 16  ;;  %vm3651_vm2 = vcmp.le.f32.partialorder %v3627_v28, %v3637_v55 }
0x1b27   : > { %v3659_v36 = vsel %vm3651_vm2, %v5522_v60, 128  ;;  %v3639_v12 = vpop.xlane.xlu0 %3638  ;;  %vm3879_vm2 = vcmp.eq.s32.totalorder %v5522_v60, 67 }
0x1b28   : > { %v3669_v19 = vcvt.s32.f32 %v3667_v34  ;;  %v3681_v0 = vshra.s32 %v3659_v36, 16  ;;  %vm3652_vm3 = vcmp.le.f32.partialorder %v3628_v1, %v3639_v12  ;;  %v3666_v1 = vand.u32 65535, %v3658_v4 }
0x1b29   : > { %v3641_v10 = vpop.xlane.xlu1 %3640  ;;  %v3660_v52 = vsel %vm3652_vm3, %v5522_v60, 128  ;;  %v3680_v46 = vand.u32 65535, %v3659_v36 }
0x1b2a   : > { %v3683_v30 = vcvt.s32.f32 %v3681_v0  ;;  %vm3653_vm4 = vcmp.le.f32.partialorder %v3629_v11, %v3641_v10  ;;  %3670 = vmin.xlane.f32.xlu0 %v3669_v19  ;;  %v3695_v54 = vshra.s32 %v3660_v52, 16  ;;  %v3668_v11 = vcvt.s32.f32 %v3666_v1 }
0x1b2b   : > { %v3661_v6 = vsel %vm3653_vm4, %v5522_v60, 128  ;;  %v3643_v16 = vpop.xlane.xlu0 %3642  ;;  %v3694_v22 = vand.u32 65535, %v3660_v52  ;;  %v3682_v56 = vcvt.s32.f32 %v3680_v46 }
0x1b2c   : > { %v3709_v35 = vshra.s32 %v3661_v6, 16  ;;  %3684 = vmin.xlane.f32.xlu1 %v3683_v30  ;;  %v3697_v38 = vcvt.s32.f32 %v3695_v54  ;;  %vm3654_vm5 = vcmp.le.f32.partialorder %v3630_v15, %v3643_v16  ;;  %v3708_v9 = vand.u32 65535, %v3661_v6 }
0x1b2d   : > { %v3662_v57 = vsel %vm3654_vm5, %v5522_v60, 128  ;;  %v3645_v8 = vpop.xlane.xlu1 %3644  ;;  %v3696_v44 = vcvt.s32.f32 %v3694_v22 }
0x1b2e   : > { %v3711_v63 = vcvt.s32.f32 %v3709_v35  ;;  %v3723_v27 = vshra.s32 %v3662_v57, 16  ;;  %vm3655_vm6 = vcmp.le.f32.partialorder %v3631_v50, %v3645_v8  ;;  %3698 = vmin.xlane.f32.xlu0 %v3697_v38  ;;  %v3722_v50 = vand.u32 65535, %v3662_v57 }
0x1b2f   : > { %v3663_v26 = vsel %vm3655_vm6, %v5522_v60, 128  ;;  %v3647_v32 = vpop.xlane.xlu0 %3646 }
0x1b30   : > { %3712 = vmin.xlane.f32.xlu1 %v3711_v63  ;;  %v3725_v45 = vcvt.s32.f32 %v3723_v27  ;;  %v3737_v48 = vshra.s32 %v3663_v26, 16  ;;  %vm3656_vm7 = vcmp.le.f32.partialorder %v3632_v43, %v3647_v32  ;;  %v3736_v4 = vand.u32 65535, %v3663_v26 }
0x1b31   : > { %v3649_v17 = vpop.xlane.xlu1 %3648  ;;  %v3664_v51 = vsel %vm3656_vm7, %v5522_v60, 128  ;;  %v3724_v36 = vcvt.s32.f32 %v3722_v50 }
0x1b32   : > { %v3739_v33 = vcvt.s32.f32 %v3737_v48  ;;  %vm3657_vm8 = vcmp.le.f32.partialorder %v3633_v59, %v3649_v17  ;;  %3726 = vmin.xlane.f32.xlu0 %v3725_v45  ;;  %v3751_v24 = vshra.s32 %v3664_v51, 16  ;;  %v3710_v59 = vcvt.s32.f32 %v3708_v9 }
0x1b33   : > { %v3665_v61 = vsel %vm3657_vm8, %v5522_v60, 128  ;;  %v3738_v0 = vcvt.s32.f32 %v3736_v4 }
0x1b34   : > { %v3765_v37 = vshra.s32 %v3665_v61, 16  ;;  %3740 = vmin.xlane.f32.xlu1 %v3739_v33  ;;  %v3753_v40 = vcvt.s32.f32 %v3751_v24  ;;  %v3764_v10 = vand.u32 65535, %v3665_v61 }
0x1b36   : > { %v3767_v28 = vcvt.s32.f32 %v3765_v37  ;;  %3754 = vmin.xlane.f32.xlu0 %v3753_v40  ;;  %v3766_v16 = vcvt.s32.f32 %v3764_v10 }
0x1b38   : > { %3768 = vmin.xlane.f32.xlu1 %v3767_v28 }
0x1bb7   : > { %v3671_v20 = vpop.xlane.xlu0 %3670 }
0x1bb8   : > { %vm3672_vm9 = vcmp.eq.f32.partialorder %v3669_v19, %v3671_v20  ;;  %v3750_v19 = vand.u32 65535, %v3664_v51  ;;  %v3677_v8 = vcvt.f32.s32 %v3671_v20  ;;  %v7033_v20 = vld [vmem:[#allocation11_spill] sm:$0xff] }
0x1bb9   : > { %v3685_v47 = vpop.xlane.xlu1 %3684  ;;  %v3673_v15 = vsel %vm3672_vm9, %v3668_v11, inf }
0x1bba   : > { %vm3686_vm10 = vcmp.eq.f32.partialorder %v3683_v30, %v3685_v47  ;;  %3674 = vmin.xlane.f32.xlu0 %v3673_v15  ;;  %v3752_v6 = vcvt.s32.f32 %v3750_v19  ;;  %v3691_v27 = vcvt.f32.s32 %v3685_v47  ;;  %v3678_v32 = vshll.u32 %v3677_v8, 16 }
0x1bbb   : > { %v3687_v18 = vsel %vm3686_vm10, %v3682_v56, inf  ;;  %v3699_v43 = vpop.xlane.xlu0 %3698 }
0x1bbc   : > { %3688 = vmin.xlane.f32.xlu1 %v3687_v18  ;;  %vm3700_vm11 = vcmp.eq.f32.partialorder %v3697_v38, %v3699_v43  ;;  %v3705_v48 = vcvt.f32.s32 %v3699_v43  ;;  %v3692_v51 = vshll.u32 %v3691_v27, 16 }
0x1bbd   : > { %v3713_v5 = vpop.xlane.xlu1 %3712  ;;  %v3701_v55 = vsel %vm3700_vm11, %v3696_v44, inf }
0x1bbe   : > { %vm3714_vm12 = vcmp.eq.f32.partialorder %v3711_v63, %v3713_v5  ;;  %3702 = vmin.xlane.f32.xlu0 %v3701_v55  ;;  %v3719_v17 = vcvt.f32.s32 %v3713_v5  ;;  %v3706_v46 = vshll.u32 %v3705_v48, 16 }
0x1bbf   : > { %v3715_v34 = vsel %vm3714_vm12, %v3710_v59, inf  ;;  %v3727_v12 = vpop.xlane.xlu0 %3726 }
0x1bc0   : > { %3716 = vmin.xlane.f32.xlu1 %v3715_v34  ;;  %vm3728_vm14 = vcmp.eq.f32.partialorder %v3725_v45, %v3727_v12  ;;  %v3733_v37 = vcvt.f32.s32 %v3727_v12  ;;  %v3720_v11 = vshll.u32 %v3719_v17, 16 }
0x1bc1   : > { %v3741_v30 = vpop.xlane.xlu1 %3740  ;;  %v3729_v52 = vsel %vm3728_vm14, %v3724_v36, inf  ;;  %v7035_v36 = vld [vmem:[#allocation18_spill] sm:$0xff] }
0x1bc2   : > { %vm3742_vm15 = vcmp.eq.f32.partialorder %v3739_v33, %v3741_v30  ;;  %3730 = vmin.xlane.f32.xlu0 %v3729_v52  ;;  %v3747_v18 = vcvt.f32.s32 %v3741_v30  ;;  %v3734_v43 = vshll.u32 %v3733_v37, 16  ;;  %v7036_v30 = vld [vmem:[#allocation13_spill] sm:$0xff] }
0x1bc3   : > { %v3743_v54 = vsel %vm3742_vm15, %v3738_v0, inf  ;;  %v6842_v35 = vpop.xlane.xlu0 %3754 }
0x1bc4   : > { %3744 = vmin.xlane.f32.xlu1 %v3743_v54  ;;  %vm3756_vm0 = vcmp.eq.f32.partialorder %v3753_v40, %v6842_v35  ;;  %v3761_v4 = vcvt.f32.s32 %v6842_v35  ;;  %v3748_v10 = vshll.u32 %v3747_v18, 16 }
0x1bc5   : > { %v6845_v38 = vpop.xlane.xlu1 %3768  ;;  %v3757_v63 = vsel %vm3756_vm0, %v3752_v6, inf }
0x1bc6   : > { %vm3770_vm1 = vcmp.eq.f32.partialorder %v3767_v28, %v6845_v38  ;;  %3758 = vmin.xlane.f32.xlu0 %v3757_v63  ;;  %v7037_v63 = vld [vmem:[#allocation14_spill] sm:$0xff] }
0x1bc7   : > { %v3771_v57 = vsel %vm3770_vm1, %v3766_v16, inf }
0x1bc8   : > { %3772 = vmin.xlane.f32.xlu1 %v3771_v57 }
0x1c47   : > { %v3675_v26 = vpop.xlane.xlu0 %3674 }
0x1c48   : > { %v3676_v45 = vcvt.f32.s32 %v3675_v26 }
0x1c49   : > { %v3689_v33 = vpop.xlane.xlu1 %3688 }
0x1c4a   : > { %v3679_v24 = vadd.s32 %v3678_v32, %v3676_v45  ;;  %v3690_v61 = vcvt.f32.s32 %v3689_v33  ;;  %v7039_v33 = vld [vmem:[#allocation16_spill] sm:$0xff] }
0x1c4b   : > { %v3703_v1 = vpop.xlane.xlu0 %3702 }
0x1c4c   : > { %v3880_v40 = vsel %vm3879_vm2, %v3679_v24, %v6719_v53  ;;  %v3693_v28 = vadd.s32 %v3692_v51, %v3690_v61  ;;  %v3704_v56 = vcvt.f32.s32 %v3703_v1  ;;  %vm3778_vm3 = vcmp.eq.s32.totalorder %v5522_v60, %v3679_v24  ;;  %v7034_v53 = vld [vmem:[#allocation12_spill] sm:$0xff]  ;;  %v7040_v61 = vld [vmem:[#allocation17_spill] sm:$0xff] }
0x1c4d   : > { %v3969_v22 = vadd.s32 %v3880_v40, %v7033_v20  ;;  %v3717_v9 = vpop.xlane.xlu1 %3716 }
0x1c4e   : > { %v3881_v47 = vsel %vm3879_vm2, %v3693_v28, %v6724_v13  ;;  %v3718_v15 = vcvt.f32.s32 %v3717_v9  ;;  %vm3779_vm4 = vcmp.eq.s32.totalorder %v5522_v60, %v3693_v28  ;;  %v3707_v50 = vadd.s32 %v3706_v46, %v3704_v56 }
0x1c4f   : > { %3977 = vst [vmem:[%s6853_s18] sm:$0xff] %v3969_v22  ;;  %v3970_v44 = vadd.s32 %v3881_v47, %v7034_v53  ;;  %vm4305_vm5 = vmpackc.low %vm3779_vm4, %vm3778_vm3  ;;  %v3731_v5 = vpop.xlane.xlu0 %3730  ;;  %v3775_v13 = vcvt.f32.s32 %v6845_v38 }
0x1c50   : > { %v3721_v59 = vadd.s32 %v3720_v11, %v3718_v15  ;;  %4986 = vmatprep.mubr.msk.bf16.mxu0 %vm4305_vm5, %v6975_v58  ;;  %v3882_v55 = vsel %vm3879_vm2, %v3707_v50, %v6732_v25  ;;  %v3732_v34 = vcvt.f32.s32 %v3731_v5  ;;  %vm3780_vm6 = vcmp.eq.s32.totalorder %v5522_v60, %v3707_v50 }
0x1c51   : > { %3978 = vst [vmem:[%s6853_s18 + $0x8] sm:$0xff] %v3970_v44  ;;  %v3971_v12 = vadd.s32 %v3882_v55, %v7035_v36  ;;  %v3745_v0 = vpop.xlane.xlu1 %3744  ;;  %v3776_v38 = vshll.u32 %v3775_v13, 16 }
0x1c52   : > { %vm3781_vm7 = vcmp.eq.s32.totalorder %v5522_v60, %v3721_v59  ;;  %v3883_v19 = vsel %vm3879_vm2, %v3721_v59, %v6739_v41  ;;  %v3735_v54 = vadd.s32 %v3734_v43, %v3732_v34  ;;  %v3746_v6 = vcvt.f32.s32 %v3745_v0 }
0x1c53   : > { %vm4307_vm8 = vmpackc.low %vm3781_vm7, %vm3780_vm6  ;;  %v3972_v52 = vadd.s32 %v3883_v19, %v7036_v30  ;;  %3979 = vst [vmem:[%s6853_s18 + $0x10] sm:$0xff] %v3971_v12  ;;  %v3759_v16 = vpop.xlane.xlu0 %3758  ;;  %v3762_v41 = vshll.u32 %v3761_v4, 16 }
0x1c54   : > { %4987 = vmatmul.mubr.msk.bf16.vlgmr.msra.gmra.mrb[64].mxu0 %vm4307_vm8, %v6975_v58  ;;  %v3884_v25 = vsel %vm3879_vm2, %v3735_v54, %v6745_v3  ;;  %v3749_v35 = vadd.s32 %v3748_v10, %v3746_v6  ;;  %v3760_v8 = vcvt.f32.s32 %v3759_v16  ;;  %vm3782_vm9 = vcmp.eq.s32.totalorder %v5522_v60, %v3735_v54  ;;  %v7038_v3 = vld [vmem:[#allocation15_spill] sm:$0xff] }
0x1c55   : > { %3980 = vst [vmem:[%s6853_s18 + $0x18] sm:$0xff] %v3972_v52  ;;  %v3973_v57 = vadd.s32 %v3884_v25, %v7037_v63  ;;  %v3773_v27 = vpop.xlane.xlu1 %3772 }
0x1c56   : > { %v3885_v26 = vsel %vm3879_vm2, %v3749_v35, %v6753_v14  ;;  %v3774_v32 = vcvt.f32.s32 %v3773_v27  ;;  %vm3783_vm10 = vcmp.eq.s32.totalorder %v5522_v60, %v3749_v35  ;;  %v3763_v48 = vadd.s32 %v3762_v41, %v3760_v8 }
0x1c57   : > { %3981 = vst [vmem:[%s6853_s18 + $0x20] sm:$0xff] %v3973_v57  ;;  %v3974_v45 = vadd.s32 %v3885_v26, %v7038_v3  ;;  %vm4309_vm11 = vmpackc.low %vm3783_vm10, %vm3782_vm9 }
0x1c58   : > { %v3777_v17 = vadd.s32 %v3776_v38, %v3774_v32  ;;  %4990 = vmatprep.mubr.msk.bf16.mxu0 %vm4309_vm11, %v6975_v58  ;;  %v3886_v14 = vsel %vm3879_vm2, %v3763_v48, %v6761_v49  ;;  %vm3784_vm12 = vcmp.eq.s32.totalorder %v5522_v60, %v3763_v48 }
0x1c59   : > { %3982 = vst [vmem:[%s6853_s18 + $0x28] sm:$0xff] %v3974_v45  ;;  %v3975_v51 = vadd.s32 %v3886_v14, %v7039_v33 }
0x1c5a   : > { %vm3785_vm14 = vcmp.eq.s32.totalorder %v5522_v60, %v3777_v17  ;;  %v3887_v24 = vsel %vm3879_vm2, %v3777_v17, %v6766_v29 }
0x1c5b   : > { %v3976_v37 = vadd.s32 %v3887_v24, %v7040_v61  ;;  %vm4311_vm15 = vmpackc.low %vm3785_vm14, %vm3784_vm12  ;;  %3983 = vst [vmem:[%s6853_s18 + $0x30] sm:$0xff] %v3975_v51 }
0x1c5c   : > { %4991 = vmatmul.mubr.msk.bf16.gmra.mrb[68].mxu0 %vm4311_vm15, %v6975_v58 }
0x1c5d   : > { %3984 = vst [vmem:[%s6853_s18 + $0x38] sm:$0xff] %v3976_v37 }
0x1d27   : > { %v4988_v40 = vpop.f32.mrb[64].mxu0 }
0x1d28   : > { %v3873_v49 = vadd.f32 %v4988_v40, %v6791_v42  ;;  %v3840_v28 = vpop.f32.mrb[65].mxu0 }
0x1d29   : > { %v3871_v1 = vadd.f32 %v3840_v28, %v6794_v21  ;;  %v4989_v46 = vpop.f32.mrb[66].mxu0 }
0x1d2a   : > { %v4345_v60 = vpack.c.bf16 %v3873_v49, %v3873_v49  ;;  %v3874_v29 = vadd.f32 %v4989_v46, %v6798_v2  ;;  %v3843_v11 = vpop.f32.mrb[67].mxu0 }
0x1d2b   : > { %v4343_v20 = vpack.c.bf16 %v3871_v1, %v3871_v1  ;;  %v3872_v22 = vadd.f32 %v3843_v11, %v6803_v23 }
0x1d2c   : > { %3963 = vst.msk [vmem:[%s460_s20 + $0x8] sm:$0xf] %vm3920_vm13, %v4345_v60  ;;  %v4346_v58 = vpack.c.bf16 %v3874_v29, %v3874_v29 }
0x1d2d   : > { %3961 = vst.msk [vmem:[%s460_s20] sm:$0xf] %vm3920_vm13, %v4343_v20  ;;  %v4344_v42 = vpack.c.bf16 %v3872_v22, %v3872_v22 }
0x1d2e   : > { %3964 = vst.msk [vmem:[%s460_s20 + $0xc] sm:$0xf] %vm3920_vm13, %v4346_v58 }
0x1d2f   : > { %3962 = vst.msk [vmem:[%s460_s20 + $0x4] sm:$0xf] %vm3920_vm13, %v4344_v42  ;;  %v4992_v56 = vpop.f32.mrb[68].mxu0 }
0x1d30   : > { %v3877_v21 = vadd.f32 %v4992_v56, %v6809_v62  ;;  %v3856_v9 = vpop.f32.mrb[69].mxu0 }
0x1d31   : > { %v3875_v2 = vadd.f32 %v3856_v9, %v6812_v7  ;;  %v4993_v47 = vpop.f32.mrb[70].mxu0 }
0x1d32   : > { %v4349_v15 = vpack.c.bf16 %v3877_v21, %v3877_v21  ;;  %v3878_v23 = vadd.f32 %v4993_v47, %v6816_v39  ;;  %v3859_v18 = vpop.f32.mrb[71].mxu0 }
0x1d33   : > { %v4347_v53 = vpack.c.bf16 %v3875_v2, %v3875_v2  ;;  %v3876_v44 = vadd.f32 %v3859_v18, %v6821_v31 }
0x1d34   : > { %3967 = vst.msk [vmem:[%s460_s20 + $0x18] sm:$0xf] %vm3920_vm13, %v4349_v15  ;;  %v4350_v50 = vpack.c.bf16 %v3878_v23, %v3878_v23 }
0x1d35   : > { %3965 = vst.msk [vmem:[%s460_s20 + $0x10] sm:$0xf] %vm3920_vm13, %v4347_v53  ;;  %v4348_v43 = vpack.c.bf16 %v3876_v44, %v3876_v44 }
0x1d36   : > { %3968 = vst.msk [vmem:[%s460_s20 + $0x1c] sm:$0xf] %vm3920_vm13, %v4350_v50 }
0x1d37   : > { %3966 = vst.msk [vmem:[%s460_s20 + $0x14] sm:$0xf] %vm3920_vm13, %v4348_v43 }
0x1d38 PF: > { %s24_s25 = sadd.s32 1, %s5131_s25  }
0x1d39   : > { %p21_p4 = scmp.ge.s32.totalorder %s24_s25, 4  }
0x1d3b   :  { %23 = sbr.rel (!%p21_p4) target bundleno = 1 (0x1), region = 118 }

</bundles_post_ra>
